<compile_context>
chip_gen: v5e
topology: v5e:2x2
jax: 0.10.0
libtpu: 0.0.40
codegen_flags: <defaults>
</compile_context>

<pallas_src>
import functools

import numpy as np

import jax
import jax.numpy as jnp
from jax import lax
from jax.experimental import pallas as pl
from jax.experimental.pallas import tpu as pltpu


_VMEM = pl.BlockSpec(memory_space=pltpu.MemorySpace.VMEM)


# ----------------------------------------------------------------------------
# Fused multi-layer bidirectional LSTM (used twice inside the single kernel)
# ----------------------------------------------------------------------------
def _bilstm_stack(x_ref, lens_bc_ref, layer_refs, zx_ref, hf_ref, hb_ref, H):
    """Runs all LSTM layers / both directions with everything resident in VMEM.

    x_ref:       (T, B, Din) f32, time-major input.
    lens_bc_ref: (B, 1) int32 valid lengths.
    layer_refs:  flat [wih_0, whh_0, b_0, wih_1, ...] with
        wih_l: (Din_l, 8H) bf16 = [W_ih^fwd | W_ih^bwd]
        whh_l: (2H, 8H)   bf16 = blockdiag(W_hh^fwd, W_hh^bwd)
        b_l:   (1, 8H)    f32  = [b^fwd | b^bwd]
    On return hf_ref / hb_ref (T, B, H) hold the LAST layer's per-direction
    outputs with pack_padded semantics (zeros at t >= len; backward direction
    starts at t = len - 1 with zero initial state).
    """
    T, B, _ = x_ref.shape
    n_layers = len(layer_refs) // 3
    lens = lens_bc_ref[...]                                   # (B, 1) int32

    for layer in range(n_layers):
        wih_ref, whh_ref, b_ref = layer_refs[3 * layer:3 * layer + 3]

        # --- hoisted input projection: one MXU matmul per layer, off the
        #     serial h->h critical path (instead of T tiny matmuls). ---
        if layer == 0:
            inp = x_ref[...]
        else:
            inp = jnp.concatenate([hf_ref[...], hb_ref[...]], axis=-1)
        zx = jnp.einsum('tbd,de->tbe', inp.astype(jnp.bfloat16), wih_ref[...],
                        preferred_element_type=jnp.float32) + b_ref[...][None]
        zx_ref[...] = zx                                      # (T, B, 8H) f32

        whh = whh_ref[...]                                    # (2H, 8H) bf16
        h_f = jnp.zeros((B, H), jnp.float32)
        c_f = jnp.zeros((B, H), jnp.float32)
        h_b = jnp.zeros((B, H), jnp.float32)
        c_b = jnp.zeros((B, H), jnp.float32)

        def gates(z, c):
            i = jax.nn.sigmoid(z[:, 0 * H:1 * H])
            f = jax.nn.sigmoid(z[:, 1 * H:2 * H])
            g = jnp.tanh(z[:, 2 * H:3 * H])
            o = jax.nn.sigmoid(z[:, 3 * H:4 * H])
            c_new = f * c + i * g
            h_new = o * jnp.tanh(c_new)
            return h_new, c_new

        # --- fully unrolled time loop: forward processes t = s while
        #     backward processes t = T-1-s in the same step, with a single
        #     block-diagonal [h_f | h_b] @ W_hh matmul for both. ---
        for s in range(T):
            tf = s
            tb = T - 1 - s
            h_cat = jnp.concatenate([h_f, h_b], axis=-1).astype(jnp.bfloat16)
            z_rec = jnp.dot(h_cat, whh, preferred_element_type=jnp.float32)
            z_f = zx_ref[tf][:, 0:4 * H] + z_rec[:, 0:4 * H]
            z_b = zx_ref[tb][:, 4 * H:8 * H] + z_rec[:, 4 * H:8 * H]

            hf_new, cf_new = gates(z_f, c_f)
            hb_new, cb_new = gates(z_b, c_b)

            # pack_padded semantics via masking (no sequence reversal needed):
            # fwd outputs/state are zero for t >= len; bwd state stays zero
            # until its first valid step t = len - 1.
            mask_f = tf < lens
            mask_b = tb < lens
            h_f = jnp.where(mask_f, hf_new, 0.0)
            c_f = jnp.where(mask_f, cf_new, 0.0)
            h_b = jnp.where(mask_b, hb_new, 0.0)
            c_b = jnp.where(mask_b, cb_new, 0.0)

            hf_ref[tf] = h_f
            hb_ref[tb] = h_b


# ----------------------------------------------------------------------------
# Single fused kernel: both encoders + e_col scatter + attention + output head
# ----------------------------------------------------------------------------
def _sel_fused_kernel(nlens_bc_ref, nlens_rc_ref, qlens_bc_ref, qlens_rc_ref,
                      colnum_ref, colsel_ref, c_ref, x_ref, *rest,
                      n_layers, H, B, C):
    nw = 3 * n_layers
    col_layers = rest[:nw]
    q_layers = rest[nw:2 * nw]
    (watt_ref, batt_ref, wk_ref, bk_ref, wc_ref, bc_ref, wo_ref, bo_ref,
     score_ref, zx_c, hf_c, hb_c, zx_q, hf_q, hb_q) = rest[2 * nw:]

    Tn, NC, _ = c_ref.shape
    T, Bq, _ = x_ref.shape

    # ---- column-name bi-LSTM encoder ----
    _bilstm_stack(c_ref, nlens_bc_ref, col_layers, zx_c, hf_c, hb_c, H)

    # hidden state at t = name_len - 1 for each column name (one-hot over time).
    pos_tn = lax.broadcasted_iota(jnp.int32, (Tn, NC), 0)
    pick = (pos_tn == (nlens_rc_ref[...] - 1)).astype(jnp.float32)      # (Tn, NC)
    name_f = jnp.sum(pick[:, :, None] * hf_c[...], axis=0)              # (NC, H)
    name_b = jnp.sum(pick[:, :, None] * hb_c[...], axis=0)              # (NC, H)
    name_out = jnp.concatenate([name_f, name_b], axis=-1)               # (NC, Nh)

    # e_col scatter: static one-hot weighting (VPU multiply + sublane reduce);
    # padded columns stay exactly zero, matching the reference's zero-init.
    e_col = jnp.sum(colsel_ref[...][..., None] * name_out[None, None],
                    axis=2)                                             # (B, C, Nh)

    # ---- question bi-LSTM encoder ----
    _bilstm_stack(x_ref, qlens_bc_ref, q_layers, zx_q, hf_q, hb_q, H)
    h_enc = jnp.concatenate([hf_q[...], hb_q[...]], axis=-1)            # (T, B, Nh)

    # sel_att: att_val = h_enc @ w_att + b, mask(>=len -> -100), softmax over t.
    att_val = jnp.sum(h_enc * watt_ref[...][None], axis=-1) + batt_ref[...]
    pos_t = lax.broadcasted_iota(jnp.int32, (T, Bq), 0)
    att_val = jnp.where(pos_t < qlens_rc_ref[...], att_val, -100.0)     # (T, B)
    m = jnp.max(att_val, axis=0, keepdims=True)
    e = jnp.exp(att_val - m)
    att = e / jnp.sum(e, axis=0, keepdims=True)
    ksel = jnp.sum(att[:, :, None] * h_enc, axis=0)                     # (B, Nh)

    # sel_out head: tanh(K_sel@Wk + bk + e_col@Wc + bc) @ wo + bo, mask cols.
    KK = jnp.dot(ksel.astype(jnp.bfloat16), wk_ref[...],
                 preferred_element_type=jnp.float32) + bk_ref[...]      # (B, Nh)
    CC = (jnp.einsum('bcd,de->bce', e_col.astype(jnp.bfloat16),
                     wc_ref[...], preferred_element_type=jnp.float32)
          + bc_ref[...][None])                                          # (B, C, Nh)
    t = jnp.tanh(KK[:, None, :] + CC)
    s = jnp.sum(t * wo_ref[...][None], axis=-1) + bo_ref[...]           # (B, C)
    pos_c = lax.broadcasted_iota(jnp.int32, (B, C), 1)
    score_ref[...] = jnp.where(pos_c < colnum_ref[...], s, -100.0)


# ----------------------------------------------------------------------------
# Cost estimate
# ----------------------------------------------------------------------------
def _cost(col_ws, q_ws, Tn, NC, T, B, C, H, bytes_extra):
    Nh = 2 * H
    flops = 0
    for (wih, whh, _b) in col_ws:
        flops += 2 * Tn * NC * wih.shape[0] * wih.shape[1]
        flops += 2 * Tn * NC * whh.shape[0] * whh.shape[1]
    for (wih, whh, _b) in q_ws:
        flops += 2 * T * B * wih.shape[0] * wih.shape[1]
        flops += 2 * T * B * whh.shape[0] * whh.shape[1]
    flops += 2 * B * C * NC * Nh          # e_col one-hot scatter
    flops += 2 * B * Nh * Nh              # sel_out_K
    flops += 2 * B * C * Nh * Nh          # sel_out_col
    trans = ((len(col_ws) * Tn * NC + len(q_ws) * T * B) * 8 * H
             + T * B + B * C * Nh)
    byts = bytes_extra + sum(int(w.size) * w.dtype.itemsize
                             for lw in (list(col_ws) + list(q_ws)) for w in lw)
    return pl.CostEstimate(flops=int(flops), transcendentals=int(trans),
                           bytes_accessed=int(byts))


# ----------------------------------------------------------------------------
# SelPredictor forward (jitted; col_len / col_num are static tuples)
# ----------------------------------------------------------------------------
@functools.partial(jax.jit, static_argnames=("col_len", "col_num"))
def sel_predictor_forward(params, x_emb_var, x_len, col_inp_var, col_name_len,
                          *, col_len, col_num):
    B = x_emb_var.shape[0]
    C = max(col_num)
    n_cols = col_inp_var.shape[0]

    col_layers = params['sel_col_name_enc']
    q_layers = params['sel_lstm']
    n_layers = len(q_layers)
    H = q_layers[0][1].shape[0] // 2
    Nh = 2 * H

    # time-major inputs
    c_tbd = jnp.transpose(col_inp_var, (1, 0, 2))             # (Tn, NC, Dw)
    x_tbd = jnp.transpose(x_emb_var, (1, 0, 2))               # (T, B, Dw)
    Tn, T = c_tbd.shape[0], x_tbd.shape[0]

    # static one-hot scatter map: e_col[b, c] = name_out[offset[b] + c], c<col_len[b]
    sel_np = np.zeros((B, C, n_cols), np.float32)
    st = 0
    for b, cur in enumerate(col_len):
        for c in range(cur):
            sel_np[b, c, st + c] = 1.0
        st += cur
    colsel = jnp.asarray(sel_np)

    nlens_bc = col_name_len.reshape(n_cols, 1).astype(jnp.int32)
    nlens_rc = col_name_len.reshape(1, n_cols).astype(jnp.int32)
    qlens_bc = x_len.reshape(B, 1).astype(jnp.int32)
    qlens_rc = x_len.reshape(1, B).astype(jnp.int32)
    colnum_bc = jnp.asarray(col_num, jnp.int32).reshape(B, 1)

    w_att, b_att = params['sel_att']
    wk, bk = params['sel_out_K']
    wc, bc = params['sel_out_col']
    wo, bo = params['sel_out']

    col_flat = [w for lw in col_layers for w in lw]
    q_flat = [w for lw in q_layers for w in lw]
    n_in = 8 + len(col_flat) + len(q_flat) + 8

    cost = _cost(col_layers, q_layers, Tn, n_cols, T, B, C, H,
                 bytes_extra=4 * (int(c_tbd.size) + int(x_tbd.size)
                                  + B * C * Nh + B * C))

    return pl.pallas_call(
        functools.partial(_sel_fused_kernel, n_layers=n_layers, H=H, B=B, C=C),
        out_shape=jax.ShapeDtypeStruct((B, C), jnp.float32),
        in_specs=[_VMEM] * n_in,
        out_specs=_VMEM,
        scratch_shapes=[pltpu.VMEM((Tn, n_cols, 8 * H), jnp.float32),
                        pltpu.VMEM((Tn, n_cols, H), jnp.float32),
                        pltpu.VMEM((Tn, n_cols, H), jnp.float32),
                        pltpu.VMEM((T, B, 8 * H), jnp.float32),
                        pltpu.VMEM((T, B, H), jnp.float32),
                        pltpu.VMEM((T, B, H), jnp.float32)],
        compiler_params=pltpu.CompilerParams(vmem_limit_bytes=32 * 1024 * 1024),
        cost_estimate=cost,
    )(nlens_bc, nlens_rc, qlens_bc, qlens_rc, colnum_bc, colsel,
      c_tbd, x_tbd, *col_flat, *q_flat,
      w_att.T, b_att, wk.astype(jnp.bfloat16), bk,
      wc.astype(jnp.bfloat16), bc, wo.T, bo)                   # (B, C)


# ----------------------------------------------------------------------------
# Parameter init (deterministic, synthetic; pre-fused for the kernel)
# ----------------------------------------------------------------------------
def init_bilstm_params(key, n_layers, input_size, hidden, scale=0.1):
    """Per layer: (W_ih_cat bf16 (Din,8H), W_hh_blockdiag bf16 (2H,8H),
    b_cat f32 (1,8H)) combining fwd/bwd directions. Gate order i,f,g,o."""
    layers = []
    for l in range(n_layers):
        din = input_size if l == 0 else 2 * hidden
        dirs = []
        for _ in range(2):                                    # fwd, bwd
            key, k1, k2, k3 = jax.random.split(key, 4)
            w_ih = scale * jax.random.normal(k1, (din, 4 * hidden), jnp.float32)
            w_hh = scale * jax.random.normal(k2, (hidden, 4 * hidden), jnp.float32)
            b = scale * jax.random.normal(k3, (1, 4 * hidden), jnp.float32)
            dirs.append((w_ih, w_hh, b))
        (wif, whf, bfw), (wib, whb, bbw) = dirs
        wih = jnp.concatenate([wif, wib], axis=1).astype(jnp.bfloat16)
        whh = jnp.zeros((2 * hidden, 8 * hidden), jnp.float32)
        whh = whh.at[:hidden, :4 * hidden].set(whf)
        whh = whh.at[hidden:, 4 * hidden:].set(whb)
        whh = whh.astype(jnp.bfloat16)
        bias = jnp.concatenate([bfw, bbw], axis=1)            # f32
        layers.append((wih, whh, bias))
    return layers, key


def init_linear(key, d_in, d_out, scale=0.1):
    key, k1, k2 = jax.random.split(key, 3)
    w = scale * jax.random.normal(k1, (d_in, d_out), jnp.float32)  # (in, out)
    b = scale * jax.random.normal(k2, (1, d_out), jnp.float32)
    return (w, b), key


# ----------------------------------------------------------------------------
if __name__ == "__main__":
    # Small, forward-consistent shapes.
    N_word, N_h, N_depth, max_tok_num = 16, 32, 2, 32
    H = N_h // 2                      # per-direction hidden size (N_h / 2)
    B = 2
    max_x_len = 8
    x_len = jnp.asarray([8, 6], jnp.int32)

    col_len = (3, 4)                  # columns per example (static)
    n_cols_total = sum(col_len)       # 7 column names across the batch
    max_name_tok = 5
    col_name_len = jnp.asarray([2, 3, 5, 1, 4, 2, 3], jnp.int32)
    col_num = (3, 4)

    key = jax.random.PRNGKey(0)
    key, kx, kc = jax.random.split(key, 3)
    x_emb_var = jax.random.normal(kx, (B, max_x_len, N_word), jnp.float32)
    col_inp_var = jax.random.normal(kc, (n_cols_total, max_name_tok, N_word),
                                    jnp.float32)
    # zero padded token embeddings (as real preprocessed inputs would be)
    tok_pos = jnp.arange(max_x_len)[None, :, None]
    x_emb_var = x_emb_var * (tok_pos < x_len[:, None, None])
    name_pos = jnp.arange(max_name_tok)[None, :, None]
    col_inp_var = col_inp_var * (name_pos < col_name_len[:, None, None])

    # Parameters (deterministic synthetic init, no checkpoint load).
    params = {}
    params['sel_lstm'], key = init_bilstm_params(key, N_depth, N_word, H)
    params['sel_col_name_enc'], key = init_bilstm_params(key, N_depth, N_word, H)
    params['sel_att'], key = init_linear(key, N_h, 1)          # stored (in, out)
    params['sel_out_K'], key = init_linear(key, N_h, N_h)
    params['sel_out_col'], key = init_linear(key, N_h, N_h)
    params['sel_out'], key = init_linear(key, N_h, 1)

    sel_score = sel_predictor_forward(params, x_emb_var, x_len, col_inp_var,
                                      col_name_len,
                                      col_len=col_len, col_num=col_num)
    jax.block_until_ready(sel_score)
    assert sel_score.shape == (B, max(col_num))
    assert bool(jnp.all(jnp.isfinite(sel_score)))
    print("KERNEL_OK")
</pallas_src>

<mosaic_0001>
module attributes {stable_mosaic.version = 11 : i64} {
  func.func @_sel_fused_kernel(%arg0: memref<7x1xi32, #tpu.memory_space<vmem>>, %arg1: memref<1x7xi32, #tpu.memory_space<vmem>>, %arg2: memref<2x1xi32, #tpu.memory_space<vmem>>, %arg3: memref<1x2xi32, #tpu.memory_space<vmem>>, %arg4: memref<2x1xi32, #tpu.memory_space<vmem>>, %arg5: memref<2x4x7xf32, #tpu.memory_space<vmem>>, %arg6: memref<5x7x16xf32, #tpu.memory_space<vmem>>, %arg7: memref<8x2x16xf32, #tpu.memory_space<vmem>>, %arg8: memref<16x128xbf16, #tpu.memory_space<vmem>>, %arg9: memref<32x128xbf16, #tpu.memory_space<vmem>>, %arg10: memref<1x128xf32, #tpu.memory_space<vmem>>, %arg11: memref<32x128xbf16, #tpu.memory_space<vmem>>, %arg12: memref<32x128xbf16, #tpu.memory_space<vmem>>, %arg13: memref<1x128xf32, #tpu.memory_space<vmem>>, %arg14: memref<16x128xbf16, #tpu.memory_space<vmem>>, %arg15: memref<32x128xbf16, #tpu.memory_space<vmem>>, %arg16: memref<1x128xf32, #tpu.memory_space<vmem>>, %arg17: memref<32x128xbf16, #tpu.memory_space<vmem>>, %arg18: memref<32x128xbf16, #tpu.memory_space<vmem>>, %arg19: memref<1x128xf32, #tpu.memory_space<vmem>>, %arg20: memref<1x32xf32, #tpu.memory_space<vmem>>, %arg21: memref<1x1xf32, #tpu.memory_space<vmem>>, %arg22: memref<32x32xbf16, #tpu.memory_space<vmem>>, %arg23: memref<1x32xf32, #tpu.memory_space<vmem>>, %arg24: memref<32x32xbf16, #tpu.memory_space<vmem>>, %arg25: memref<1x32xf32, #tpu.memory_space<vmem>>, %arg26: memref<1x32xf32, #tpu.memory_space<vmem>>, %arg27: memref<1x1xf32, #tpu.memory_space<vmem>>, %arg28: memref<2x4xf32, #tpu.memory_space<vmem>>, %arg29: memref<5x7x128xf32, #tpu.memory_space<vmem>>, %arg30: memref<5x7x16xf32, #tpu.memory_space<vmem>>, %arg31: memref<5x7x16xf32, #tpu.memory_space<vmem>>, %arg32: memref<8x2x128xf32, #tpu.memory_space<vmem>>, %arg33: memref<8x2x16xf32, #tpu.memory_space<vmem>>, %arg34: memref<8x2x16xf32, #tpu.memory_space<vmem>>) attributes {dimension_semantics = [], scalar_prefetch = 0 : i64, scratch_operands = 6 : i64, tpu.core_type = #tpu.core_type<tc>} {
    %c0 = arith.constant 0 : index
    %c0_0 = arith.constant 0 : index
    %0 = vector.load %arg0[%c0, %c0_0] : memref<7x1xi32, #tpu.memory_space<vmem>>, vector<7x1xi32>
    %c0_1 = arith.constant 0 : index
    %c0_2 = arith.constant 0 : index
    %c0_3 = arith.constant 0 : index
    %1 = vector.load %arg6[%c0_1, %c0_2, %c0_3] : memref<5x7x16xf32, #tpu.memory_space<vmem>>, vector<5x7x16xf32>
    %2 = arith.truncf %1 : vector<5x7x16xf32> to vector<5x7x16xbf16>
    %c0_4 = arith.constant 0 : index
    %c0_5 = arith.constant 0 : index
    %3 = vector.load %arg8[%c0_4, %c0_5] : memref<16x128xbf16, #tpu.memory_space<vmem>>, vector<16x128xbf16>
    "tpu.trace_start"() <{level = 10 : i32, message = "tbd,de->tbe"}> : () -> ()
    %cst = arith.constant dense<0.000000e+00> : vector<5x7x128xf32>
    %4 = tpu.matmul %2, %3, %cst {dimension_numbers = #tpu.dot_dimension_numbers<[2], [0], [0, 1], [1], [0, 0, 0, 1, 1, 1], [], []>} : vector<5x7x16xbf16>, vector<16x128xbf16>, vector<5x7x128xf32> -> vector<5x7x128xf32>
    "tpu.trace_stop"() : () -> ()
    %c0_6 = arith.constant 0 : index
    %c0_7 = arith.constant 0 : index
    %5 = vector.load %arg10[%c0_6, %c0_7] : memref<1x128xf32, #tpu.memory_space<vmem>>, vector<1x128xf32>
    %6 = vector.shape_cast %5 : vector<1x128xf32> to vector<1x1x128xf32>
    %7 = vector.broadcast %6 : vector<1x1x128xf32> to vector<5x7x128xf32>
    %8 = arith.addf %4, %7 : vector<5x7x128xf32>
    %c0_8 = arith.constant 0 : index
    %c0_9 = arith.constant 0 : index
    %c0_10 = arith.constant 0 : index
    %9 = vector.load %arg29[%c0_8, %c0_9, %c0_10] : memref<5x7x128xf32, #tpu.memory_space<vmem>>, vector<5x7x128xf32>
    tpu.vector_store %arg29[%c0_8, %c0_9, %c0_10], %8 {strides = array<i32>} : memref<5x7x128xf32, #tpu.memory_space<vmem>>, vector<5x7x128xf32>,
    %c0_11 = arith.constant 0 : index
    %c0_12 = arith.constant 0 : index
    %10 = vector.load %arg9[%c0_11, %c0_12] : memref<32x128xbf16, #tpu.memory_space<vmem>>, vector<32x128xbf16>
    %cst_13 = arith.constant 0.000000e+00 : f32
    %11 = vector.broadcast %cst_13 : f32 to vector<7x16xf32>
    %cst_14 = arith.constant 0.000000e+00 : f32
    %12 = vector.broadcast %cst_14 : f32 to vector<7x16xf32>
    %cst_15 = arith.constant 0.000000e+00 : f32
    %13 = vector.broadcast %cst_15 : f32 to vector<7x16xf32>
    %cst_16 = arith.constant 0.000000e+00 : f32
    %14 = vector.broadcast %cst_16 : f32 to vector<7x16xf32>
    %15 = tpu.concatenate %11, %13 in 1 : vector<7x16xf32>, vector<7x16xf32> -> vector<7x32xf32>
    %16 = arith.truncf %15 : vector<7x32xf32> to vector<7x32xbf16>
    %cst_17 = arith.constant dense<0.000000e+00> : vector<7x128xf32>
    %17 = tpu.matmul %16, %10, %cst_17 {dimension_numbers = #tpu.dot_dimension_numbers<[1], [0], [0], [1], [0, 0, 1, 1], [], []>} : vector<7x32xbf16>, vector<32x128xbf16>, vector<7x128xf32> -> vector<7x128xf32>
    %c0_18 = arith.constant 0 : index
    %c0_19 = arith.constant 0 : index
    %c0_20 = arith.constant 0 : index
    %18 = vector.load %arg29[%c0_18, %c0_19, %c0_20] : memref<5x7x128xf32, #tpu.memory_space<vmem>>, vector<1x7x128xf32>
    %19 = vector.shape_cast %18 : vector<1x7x128xf32> to vector<7x128xf32>
    %20 = vector.extract_strided_slice %19 {offsets = [0, 0], sizes = [7, 64], strides = [1, 1]} : vector<7x128xf32> to vector<7x64xf32>
    %21 = vector.extract_strided_slice %17 {offsets = [0, 0], sizes = [7, 64], strides = [1, 1]} : vector<7x128xf32> to vector<7x64xf32>
    %22 = arith.addf %20, %21 : vector<7x64xf32>
    %c4 = arith.constant 4 : index
    %c0_21 = arith.constant 0 : index
    %c0_22 = arith.constant 0 : index
    %23 = vector.load %arg29[%c4, %c0_21, %c0_22] : memref<5x7x128xf32, #tpu.memory_space<vmem>>, vector<1x7x128xf32>
    %24 = vector.shape_cast %23 : vector<1x7x128xf32> to vector<7x128xf32>
    %25 = vector.extract_strided_slice %24 {offsets = [0, 64], sizes = [7, 64], strides = [1, 1]} : vector<7x128xf32> to vector<7x64xf32>
    %26 = vector.extract_strided_slice %17 {offsets = [0, 64], sizes = [7, 64], strides = [1, 1]} : vector<7x128xf32> to vector<7x64xf32>
    %27 = arith.addf %25, %26 : vector<7x64xf32>
    %28 = vector.extract_strided_slice %22 {offsets = [0, 0], sizes = [7, 16], strides = [1, 1]} : vector<7x64xf32> to vector<7x16xf32>
    %29 = arith.negf %28 : vector<7x16xf32>
    %30 = math.exp %29 : vector<7x16xf32>
    %cst_23 = arith.constant 1.000000e+00 : f32
    %31 = vector.broadcast %cst_23 : f32 to vector<7x16xf32>
    %32 = arith.addf %31, %30 : vector<7x16xf32>
    %33 = arith.divf %31, %32 : vector<7x16xf32>
    %34 = vector.extract_strided_slice %22 {offsets = [0, 16], sizes = [7, 16], strides = [1, 1]} : vector<7x64xf32> to vector<7x16xf32>
    %35 = arith.negf %34 : vector<7x16xf32>
    %36 = math.exp %35 : vector<7x16xf32>
    %cst_24 = arith.constant 1.000000e+00 : f32
    %37 = vector.broadcast %cst_24 : f32 to vector<7x16xf32>
    %38 = arith.addf %37, %36 : vector<7x16xf32>
    %39 = arith.divf %37, %38 : vector<7x16xf32>
    %40 = vector.extract_strided_slice %22 {offsets = [0, 32], sizes = [7, 16], strides = [1, 1]} : vector<7x64xf32> to vector<7x16xf32>
    %41 = math.tanh %40 : vector<7x16xf32>
    %42 = vector.extract_strided_slice %22 {offsets = [0, 48], sizes = [7, 16], strides = [1, 1]} : vector<7x64xf32> to vector<7x16xf32>
    %43 = arith.negf %42 : vector<7x16xf32>
    %44 = math.exp %43 : vector<7x16xf32>
    %cst_25 = arith.constant 1.000000e+00 : f32
    %45 = vector.broadcast %cst_25 : f32 to vector<7x16xf32>
    %46 = arith.addf %45, %44 : vector<7x16xf32>
    %47 = arith.divf %45, %46 : vector<7x16xf32>
    %48 = arith.mulf %39, %12 : vector<7x16xf32>
    %49 = arith.mulf %33, %41 : vector<7x16xf32>
    %50 = arith.addf %48, %49 : vector<7x16xf32>
    %51 = math.tanh %50 : vector<7x16xf32>
    %52 = arith.mulf %47, %51 : vector<7x16xf32>
    %53 = vector.extract_strided_slice %27 {offsets = [0, 0], sizes = [7, 16], strides = [1, 1]} : vector<7x64xf32> to vector<7x16xf32>
    %54 = arith.negf %53 : vector<7x16xf32>
    %55 = math.exp %54 : vector<7x16xf32>
    %cst_26 = arith.constant 1.000000e+00 : f32
    %56 = vector.broadcast %cst_26 : f32 to vector<7x16xf32>
    %57 = arith.addf %56, %55 : vector<7x16xf32>
    %58 = arith.divf %56, %57 : vector<7x16xf32>
    %59 = vector.extract_strided_slice %27 {offsets = [0, 16], sizes = [7, 16], strides = [1, 1]} : vector<7x64xf32> to vector<7x16xf32>
    %60 = arith.negf %59 : vector<7x16xf32>
    %61 = math.exp %60 : vector<7x16xf32>
    %cst_27 = arith.constant 1.000000e+00 : f32
    %62 = vector.broadcast %cst_27 : f32 to vector<7x16xf32>
    %63 = arith.addf %62, %61 : vector<7x16xf32>
    %64 = arith.divf %62, %63 : vector<7x16xf32>
    %65 = vector.extract_strided_slice %27 {offsets = [0, 32], sizes = [7, 16], strides = [1, 1]} : vector<7x64xf32> to vector<7x16xf32>
    %66 = math.tanh %65 : vector<7x16xf32>
    %67 = vector.extract_strided_slice %27 {offsets = [0, 48], sizes = [7, 16], strides = [1, 1]} : vector<7x64xf32> to vector<7x16xf32>
    %68 = arith.negf %67 : vector<7x16xf32>
    %69 = math.exp %68 : vector<7x16xf32>
    %cst_28 = arith.constant 1.000000e+00 : f32
    %70 = vector.broadcast %cst_28 : f32 to vector<7x16xf32>
    %71 = arith.addf %70, %69 : vector<7x16xf32>
    %72 = arith.divf %70, %71 : vector<7x16xf32>
    %73 = arith.mulf %64, %14 : vector<7x16xf32>
    %74 = arith.mulf %58, %66 : vector<7x16xf32>
    %75 = arith.addf %73, %74 : vector<7x16xf32>
    %76 = math.tanh %75 : vector<7x16xf32>
    %77 = arith.mulf %72, %76 : vector<7x16xf32>
    %c0_i32 = arith.constant 0 : i32
    %78 = vector.broadcast %c0_i32 : i32 to vector<7x1xi32>
    %79 = arith.cmpi sgt, %0, %78 : vector<7x1xi32>
    %c4_i32 = arith.constant 4 : i32
    %80 = vector.broadcast %c4_i32 : i32 to vector<7x1xi32>
    %81 = arith.cmpi sgt, %0, %80 : vector<7x1xi32>
    %cst_29 = arith.constant 0.000000e+00 : f32
    %82 = vector.shape_cast %79 : vector<7x1xi1> to vector<7x1xi1>
    %83 = vector.broadcast %82 : vector<7x1xi1> to vector<7x16xi1>
    %84 = vector.broadcast %cst_29 : f32 to vector<7x16xf32>
    %85 = arith.select %83, %52, %84 : vector<7x16xi1>, vector<7x16xf32>
    %cst_30 = arith.constant 0.000000e+00 : f32
    %86 = vector.shape_cast %79 : vector<7x1xi1> to vector<7x1xi1>
    %87 = vector.broadcast %86 : vector<7x1xi1> to vector<7x16xi1>
    %88 = vector.broadcast %cst_30 : f32 to vector<7x16xf32>
    %89 = arith.select %87, %50, %88 : vector<7x16xi1>, vector<7x16xf32>
    %cst_31 = arith.constant 0.000000e+00 : f32
    %90 = vector.shape_cast %81 : vector<7x1xi1> to vector<7x1xi1>
    %91 = vector.broadcast %90 : vector<7x1xi1> to vector<7x16xi1>
    %92 = vector.broadcast %cst_31 : f32 to vector<7x16xf32>
    %93 = arith.select %91, %77, %92 : vector<7x16xi1>, vector<7x16xf32>
    %cst_32 = arith.constant 0.000000e+00 : f32
    %94 = vector.shape_cast %81 : vector<7x1xi1> to vector<7x1xi1>
    %95 = vector.broadcast %94 : vector<7x1xi1> to vector<7x16xi1>
    %96 = vector.broadcast %cst_32 : f32 to vector<7x16xf32>
    %97 = arith.select %95, %75, %96 : vector<7x16xi1>, vector<7x16xf32>
    %c0_33 = arith.constant 0 : index
    %c0_34 = arith.constant 0 : index
    %c0_35 = arith.constant 0 : index
    %98 = vector.load %arg30[%c0_33, %c0_34, %c0_35] : memref<5x7x16xf32, #tpu.memory_space<vmem>>, vector<1x7x16xf32>
    %99 = vector.shape_cast %98 : vector<1x7x16xf32> to vector<7x16xf32>
    %100 = vector.shape_cast %85 : vector<7x16xf32> to vector<1x7x16xf32>
    tpu.vector_store %arg30[%c0_33, %c0_34, %c0_35], %100 {strides = array<i32>} : memref<5x7x16xf32, #tpu.memory_space<vmem>>, vector<1x7x16xf32>,
    %c4_36 = arith.constant 4 : index
    %c0_37 = arith.constant 0 : index
    %c0_38 = arith.constant 0 : index
    %101 = vector.load %arg31[%c4_36, %c0_37, %c0_38] : memref<5x7x16xf32, #tpu.memory_space<vmem>>, vector<1x7x16xf32>
    %102 = vector.shape_cast %101 : vector<1x7x16xf32> to vector<7x16xf32>
    %103 = vector.shape_cast %93 : vector<7x16xf32> to vector<1x7x16xf32>
    tpu.vector_store %arg31[%c4_36, %c0_37, %c0_38], %103 {strides = array<i32>} : memref<5x7x16xf32, #tpu.memory_space<vmem>>, vector<1x7x16xf32>,
    %104 = tpu.concatenate %85, %93 in 1 : vector<7x16xf32>, vector<7x16xf32> -> vector<7x32xf32>
    %105 = arith.truncf %104 : vector<7x32xf32> to vector<7x32xbf16>
    %cst_39 = arith.constant dense<0.000000e+00> : vector<7x128xf32>
    %106 = tpu.matmul %105, %10, %cst_39 {dimension_numbers = #tpu.dot_dimension_numbers<[1], [0], [0], [1], [0, 0, 1, 1], [], []>} : vector<7x32xbf16>, vector<32x128xbf16>, vector<7x128xf32> -> vector<7x128xf32>
    %c1 = arith.constant 1 : index
    %c0_40 = arith.constant 0 : index
    %c0_41 = arith.constant 0 : index
    %107 = vector.load %arg29[%c1, %c0_40, %c0_41] : memref<5x7x128xf32, #tpu.memory_space<vmem>>, vector<1x7x128xf32>
    %108 = vector.shape_cast %107 : vector<1x7x128xf32> to vector<7x128xf32>
    %109 = vector.extract_strided_slice %108 {offsets = [0, 0], sizes = [7, 64], strides = [1, 1]} : vector<7x128xf32> to vector<7x64xf32>
    %110 = vector.extract_strided_slice %106 {offsets = [0, 0], sizes = [7, 64], strides = [1, 1]} : vector<7x128xf32> to vector<7x64xf32>
    %111 = arith.addf %109, %110 : vector<7x64xf32>
    %c3 = arith.constant 3 : index
    %c0_42 = arith.constant 0 : index
    %c0_43 = arith.constant 0 : index
    %112 = vector.load %arg29[%c3, %c0_42, %c0_43] : memref<5x7x128xf32, #tpu.memory_space<vmem>>, vector<1x7x128xf32>
    %113 = vector.shape_cast %112 : vector<1x7x128xf32> to vector<7x128xf32>
    %114 = vector.extract_strided_slice %113 {offsets = [0, 64], sizes = [7, 64], strides = [1, 1]} : vector<7x128xf32> to vector<7x64xf32>
    %115 = vector.extract_strided_slice %106 {offsets = [0, 64], sizes = [7, 64], strides = [1, 1]} : vector<7x128xf32> to vector<7x64xf32>
    %116 = arith.addf %114, %115 : vector<7x64xf32>
    %117 = vector.extract_strided_slice %111 {offsets = [0, 0], sizes = [7, 16], strides = [1, 1]} : vector<7x64xf32> to vector<7x16xf32>
    %118 = arith.negf %117 : vector<7x16xf32>
    %119 = math.exp %118 : vector<7x16xf32>
    %cst_44 = arith.constant 1.000000e+00 : f32
    %120 = vector.broadcast %cst_44 : f32 to vector<7x16xf32>
    %121 = arith.addf %120, %119 : vector<7x16xf32>
    %122 = arith.divf %120, %121 : vector<7x16xf32>
    %123 = vector.extract_strided_slice %111 {offsets = [0, 16], sizes = [7, 16], strides = [1, 1]} : vector<7x64xf32> to vector<7x16xf32>
    %124 = arith.negf %123 : vector<7x16xf32>
    %125 = math.exp %124 : vector<7x16xf32>
    %cst_45 = arith.constant 1.000000e+00 : f32
    %126 = vector.broadcast %cst_45 : f32 to vector<7x16xf32>
    %127 = arith.addf %126, %125 : vector<7x16xf32>
    %128 = arith.divf %126, %127 : vector<7x16xf32>
    %129 = vector.extract_strided_slice %111 {offsets = [0, 32], sizes = [7, 16], strides = [1, 1]} : vector<7x64xf32> to vector<7x16xf32>
    %130 = math.tanh %129 : vector<7x16xf32>
    %131 = vector.extract_strided_slice %111 {offsets = [0, 48], sizes = [7, 16], strides = [1, 1]} : vector<7x64xf32> to vector<7x16xf32>
    %132 = arith.negf %131 : vector<7x16xf32>
    %133 = math.exp %132 : vector<7x16xf32>
    %cst_46 = arith.constant 1.000000e+00 : f32
    %134 = vector.broadcast %cst_46 : f32 to vector<7x16xf32>
    %135 = arith.addf %134, %133 : vector<7x16xf32>
    %136 = arith.divf %134, %135 : vector<7x16xf32>
    %137 = arith.mulf %128, %89 : vector<7x16xf32>
    %138 = arith.mulf %122, %130 : vector<7x16xf32>
    %139 = arith.addf %137, %138 : vector<7x16xf32>
    %140 = math.tanh %139 : vector<7x16xf32>
    %141 = arith.mulf %136, %140 : vector<7x16xf32>
    %142 = vector.extract_strided_slice %116 {offsets = [0, 0], sizes = [7, 16], strides = [1, 1]} : vector<7x64xf32> to vector<7x16xf32>
    %143 = arith.negf %142 : vector<7x16xf32>
    %144 = math.exp %143 : vector<7x16xf32>
    %cst_47 = arith.constant 1.000000e+00 : f32
    %145 = vector.broadcast %cst_47 : f32 to vector<7x16xf32>
    %146 = arith.addf %145, %144 : vector<7x16xf32>
    %147 = arith.divf %145, %146 : vector<7x16xf32>
    %148 = vector.extract_strided_slice %116 {offsets = [0, 16], sizes = [7, 16], strides = [1, 1]} : vector<7x64xf32> to vector<7x16xf32>
    %149 = arith.negf %148 : vector<7x16xf32>
    %150 = math.exp %149 : vector<7x16xf32>
    %cst_48 = arith.constant 1.000000e+00 : f32
    %151 = vector.broadcast %cst_48 : f32 to vector<7x16xf32>
    %152 = arith.addf %151, %150 : vector<7x16xf32>
    %153 = arith.divf %151, %152 : vector<7x16xf32>
    %154 = vector.extract_strided_slice %116 {offsets = [0, 32], sizes = [7, 16], strides = [1, 1]} : vector<7x64xf32> to vector<7x16xf32>
    %155 = math.tanh %154 : vector<7x16xf32>
    %156 = vector.extract_strided_slice %116 {offsets = [0, 48], sizes = [7, 16], strides = [1, 1]} : vector<7x64xf32> to vector<7x16xf32>
    %157 = arith.negf %156 : vector<7x16xf32>
    %158 = math.exp %157 : vector<7x16xf32>
    %cst_49 = arith.constant 1.000000e+00 : f32
    %159 = vector.broadcast %cst_49 : f32 to vector<7x16xf32>
    %160 = arith.addf %159, %158 : vector<7x16xf32>
    %161 = arith.divf %159, %160 : vector<7x16xf32>
    %162 = arith.mulf %153, %97 : vector<7x16xf32>
    %163 = arith.mulf %147, %155 : vector<7x16xf32>
    %164 = arith.addf %162, %163 : vector<7x16xf32>
    %165 = math.tanh %164 : vector<7x16xf32>
    %166 = arith.mulf %161, %165 : vector<7x16xf32>
    %c1_i32 = arith.constant 1 : i32
    %167 = vector.broadcast %c1_i32 : i32 to vector<7x1xi32>
    %168 = arith.cmpi sgt, %0, %167 : vector<7x1xi32>
    %c3_i32 = arith.constant 3 : i32
    %169 = vector.broadcast %c3_i32 : i32 to vector<7x1xi32>
    %170 = arith.cmpi sgt, %0, %169 : vector<7x1xi32>
    %cst_50 = arith.constant 0.000000e+00 : f32
    %171 = vector.shape_cast %168 : vector<7x1xi1> to vector<7x1xi1>
    %172 = vector.broadcast %171 : vector<7x1xi1> to vector<7x16xi1>
    %173 = vector.broadcast %cst_50 : f32 to vector<7x16xf32>
    %174 = arith.select %172, %141, %173 : vector<7x16xi1>, vector<7x16xf32>
    %cst_51 = arith.constant 0.000000e+00 : f32
    %175 = vector.shape_cast %168 : vector<7x1xi1> to vector<7x1xi1>
    %176 = vector.broadcast %175 : vector<7x1xi1> to vector<7x16xi1>
    %177 = vector.broadcast %cst_51 : f32 to vector<7x16xf32>
    %178 = arith.select %176, %139, %177 : vector<7x16xi1>, vector<7x16xf32>
    %cst_52 = arith.constant 0.000000e+00 : f32
    %179 = vector.shape_cast %170 : vector<7x1xi1> to vector<7x1xi1>
    %180 = vector.broadcast %179 : vector<7x1xi1> to vector<7x16xi1>
    %181 = vector.broadcast %cst_52 : f32 to vector<7x16xf32>
    %182 = arith.select %180, %166, %181 : vector<7x16xi1>, vector<7x16xf32>
    %cst_53 = arith.constant 0.000000e+00 : f32
    %183 = vector.shape_cast %170 : vector<7x1xi1> to vector<7x1xi1>
    %184 = vector.broadcast %183 : vector<7x1xi1> to vector<7x16xi1>
    %185 = vector.broadcast %cst_53 : f32 to vector<7x16xf32>
    %186 = arith.select %184, %164, %185 : vector<7x16xi1>, vector<7x16xf32>
    %c1_54 = arith.constant 1 : index
    %c0_55 = arith.constant 0 : index
    %c0_56 = arith.constant 0 : index
    %187 = vector.load %arg30[%c1_54, %c0_55, %c0_56] : memref<5x7x16xf32, #tpu.memory_space<vmem>>, vector<1x7x16xf32>
    %188 = vector.shape_cast %187 : vector<1x7x16xf32> to vector<7x16xf32>
    %189 = vector.shape_cast %174 : vector<7x16xf32> to vector<1x7x16xf32>
    tpu.vector_store %arg30[%c1_54, %c0_55, %c0_56], %189 {strides = array<i32>} : memref<5x7x16xf32, #tpu.memory_space<vmem>>, vector<1x7x16xf32>,
    %c3_57 = arith.constant 3 : index
    %c0_58 = arith.constant 0 : index
    %c0_59 = arith.constant 0 : index
    %190 = vector.load %arg31[%c3_57, %c0_58, %c0_59] : memref<5x7x16xf32, #tpu.memory_space<vmem>>, vector<1x7x16xf32>
    %191 = vector.shape_cast %190 : vector<1x7x16xf32> to vector<7x16xf32>
    %192 = vector.shape_cast %182 : vector<7x16xf32> to vector<1x7x16xf32>
    tpu.vector_store %arg31[%c3_57, %c0_58, %c0_59], %192 {strides = array<i32>} : memref<5x7x16xf32, #tpu.memory_space<vmem>>, vector<1x7x16xf32>,
    %193 = tpu.concatenate %174, %182 in 1 : vector<7x16xf32>, vector<7x16xf32> -> vector<7x32xf32>
    %194 = arith.truncf %193 : vector<7x32xf32> to vector<7x32xbf16>
    %cst_60 = arith.constant dense<0.000000e+00> : vector<7x128xf32>
    %195 = tpu.matmul %194, %10, %cst_60 {dimension_numbers = #tpu.dot_dimension_numbers<[1], [0], [0], [1], [0, 0, 1, 1], [], []>} : vector<7x32xbf16>, vector<32x128xbf16>, vector<7x128xf32> -> vector<7x128xf32>
    %c2 = arith.constant 2 : index
    %c0_61 = arith.constant 0 : index
    %c0_62 = arith.constant 0 : index
    %196 = vector.load %arg29[%c2, %c0_61, %c0_62] : memref<5x7x128xf32, #tpu.memory_space<vmem>>, vector<1x7x128xf32>
    %197 = vector.shape_cast %196 : vector<1x7x128xf32> to vector<7x128xf32>
    %198 = vector.extract_strided_slice %197 {offsets = [0, 0], sizes = [7, 64], strides = [1, 1]} : vector<7x128xf32> to vector<7x64xf32>
    %199 = vector.extract_strided_slice %195 {offsets = [0, 0], sizes = [7, 64], strides = [1, 1]} : vector<7x128xf32> to vector<7x64xf32>
    %200 = arith.addf %198, %199 : vector<7x64xf32>
    %c2_63 = arith.constant 2 : index
    %c0_64 = arith.constant 0 : index
    %c0_65 = arith.constant 0 : index
    %201 = vector.load %arg29[%c2_63, %c0_64, %c0_65] : memref<5x7x128xf32, #tpu.memory_space<vmem>>, vector<1x7x128xf32>
    %202 = vector.shape_cast %201 : vector<1x7x128xf32> to vector<7x128xf32>
    %203 = vector.extract_strided_slice %202 {offsets = [0, 64], sizes = [7, 64], strides = [1, 1]} : vector<7x128xf32> to vector<7x64xf32>
    %204 = vector.extract_strided_slice %195 {offsets = [0, 64], sizes = [7, 64], strides = [1, 1]} : vector<7x128xf32> to vector<7x64xf32>
    %205 = arith.addf %203, %204 : vector<7x64xf32>
    %206 = vector.extract_strided_slice %200 {offsets = [0, 0], sizes = [7, 16], strides = [1, 1]} : vector<7x64xf32> to vector<7x16xf32>
    %207 = arith.negf %206 : vector<7x16xf32>
    %208 = math.exp %207 : vector<7x16xf32>
    %cst_66 = arith.constant 1.000000e+00 : f32
    %209 = vector.broadcast %cst_66 : f32 to vector<7x16xf32>
    %210 = arith.addf %209, %208 : vector<7x16xf32>
    %211 = arith.divf %209, %210 : vector<7x16xf32>
    %212 = vector.extract_strided_slice %200 {offsets = [0, 16], sizes = [7, 16], strides = [1, 1]} : vector<7x64xf32> to vector<7x16xf32>
    %213 = arith.negf %212 : vector<7x16xf32>
    %214 = math.exp %213 : vector<7x16xf32>
    %cst_67 = arith.constant 1.000000e+00 : f32
    %215 = vector.broadcast %cst_67 : f32 to vector<7x16xf32>
    %216 = arith.addf %215, %214 : vector<7x16xf32>
    %217 = arith.divf %215, %216 : vector<7x16xf32>
    %218 = vector.extract_strided_slice %200 {offsets = [0, 32], sizes = [7, 16], strides = [1, 1]} : vector<7x64xf32> to vector<7x16xf32>
    %219 = math.tanh %218 : vector<7x16xf32>
    %220 = vector.extract_strided_slice %200 {offsets = [0, 48], sizes = [7, 16], strides = [1, 1]} : vector<7x64xf32> to vector<7x16xf32>
    %221 = arith.negf %220 : vector<7x16xf32>
    %222 = math.exp %221 : vector<7x16xf32>
    %cst_68 = arith.constant 1.000000e+00 : f32
    %223 = vector.broadcast %cst_68 : f32 to vector<7x16xf32>
    %224 = arith.addf %223, %222 : vector<7x16xf32>
    %225 = arith.divf %223, %224 : vector<7x16xf32>
    %226 = arith.mulf %217, %178 : vector<7x16xf32>
    %227 = arith.mulf %211, %219 : vector<7x16xf32>
    %228 = arith.addf %226, %227 : vector<7x16xf32>
    %229 = math.tanh %228 : vector<7x16xf32>
    %230 = arith.mulf %225, %229 : vector<7x16xf32>
    %231 = vector.extract_strided_slice %205 {offsets = [0, 0], sizes = [7, 16], strides = [1, 1]} : vector<7x64xf32> to vector<7x16xf32>
    %232 = arith.negf %231 : vector<7x16xf32>
    %233 = math.exp %232 : vector<7x16xf32>
    %cst_69 = arith.constant 1.000000e+00 : f32
    %234 = vector.broadcast %cst_69 : f32 to vector<7x16xf32>
    %235 = arith.addf %234, %233 : vector<7x16xf32>
    %236 = arith.divf %234, %235 : vector<7x16xf32>
    %237 = vector.extract_strided_slice %205 {offsets = [0, 16], sizes = [7, 16], strides = [1, 1]} : vector<7x64xf32> to vector<7x16xf32>
    %238 = arith.negf %237 : vector<7x16xf32>
    %239 = math.exp %238 : vector<7x16xf32>
    %cst_70 = arith.constant 1.000000e+00 : f32
    %240 = vector.broadcast %cst_70 : f32 to vector<7x16xf32>
    %241 = arith.addf %240, %239 : vector<7x16xf32>
    %242 = arith.divf %240, %241 : vector<7x16xf32>
    %243 = vector.extract_strided_slice %205 {offsets = [0, 32], sizes = [7, 16], strides = [1, 1]} : vector<7x64xf32> to vector<7x16xf32>
    %244 = math.tanh %243 : vector<7x16xf32>
    %245 = vector.extract_strided_slice %205 {offsets = [0, 48], sizes = [7, 16], strides = [1, 1]} : vector<7x64xf32> to vector<7x16xf32>
    %246 = arith.negf %245 : vector<7x16xf32>
    %247 = math.exp %246 : vector<7x16xf32>
    %cst_71 = arith.constant 1.000000e+00 : f32
    %248 = vector.broadcast %cst_71 : f32 to vector<7x16xf32>
    %249 = arith.addf %248, %247 : vector<7x16xf32>
    %250 = arith.divf %248, %249 : vector<7x16xf32>
    %251 = arith.mulf %242, %186 : vector<7x16xf32>
    %252 = arith.mulf %236, %244 : vector<7x16xf32>
    %253 = arith.addf %251, %252 : vector<7x16xf32>
    %254 = math.tanh %253 : vector<7x16xf32>
    %255 = arith.mulf %250, %254 : vector<7x16xf32>
    %c2_i32 = arith.constant 2 : i32
    %256 = vector.broadcast %c2_i32 : i32 to vector<7x1xi32>
    %257 = arith.cmpi sgt, %0, %256 : vector<7x1xi32>
    %c2_i32_72 = arith.constant 2 : i32
    %258 = vector.broadcast %c2_i32_72 : i32 to vector<7x1xi32>
    %259 = arith.cmpi sgt, %0, %258 : vector<7x1xi32>
    %cst_73 = arith.constant 0.000000e+00 : f32
    %260 = vector.shape_cast %257 : vector<7x1xi1> to vector<7x1xi1>
    %261 = vector.broadcast %260 : vector<7x1xi1> to vector<7x16xi1>
    %262 = vector.broadcast %cst_73 : f32 to vector<7x16xf32>
    %263 = arith.select %261, %230, %262 : vector<7x16xi1>, vector<7x16xf32>
    %cst_74 = arith.constant 0.000000e+00 : f32
    %264 = vector.shape_cast %257 : vector<7x1xi1> to vector<7x1xi1>
    %265 = vector.broadcast %264 : vector<7x1xi1> to vector<7x16xi1>
    %266 = vector.broadcast %cst_74 : f32 to vector<7x16xf32>
    %267 = arith.select %265, %228, %266 : vector<7x16xi1>, vector<7x16xf32>
    %cst_75 = arith.constant 0.000000e+00 : f32
    %268 = vector.shape_cast %259 : vector<7x1xi1> to vector<7x1xi1>
    %269 = vector.broadcast %268 : vector<7x1xi1> to vector<7x16xi1>
    %270 = vector.broadcast %cst_75 : f32 to vector<7x16xf32>
    %271 = arith.select %269, %255, %270 : vector<7x16xi1>, vector<7x16xf32>
    %cst_76 = arith.constant 0.000000e+00 : f32
    %272 = vector.shape_cast %259 : vector<7x1xi1> to vector<7x1xi1>
    %273 = vector.broadcast %272 : vector<7x1xi1> to vector<7x16xi1>
    %274 = vector.broadcast %cst_76 : f32 to vector<7x16xf32>
    %275 = arith.select %273, %253, %274 : vector<7x16xi1>, vector<7x16xf32>
    %c2_77 = arith.constant 2 : index
    %c0_78 = arith.constant 0 : index
    %c0_79 = arith.constant 0 : index
    %276 = vector.load %arg30[%c2_77, %c0_78, %c0_79] : memref<5x7x16xf32, #tpu.memory_space<vmem>>, vector<1x7x16xf32>
    %277 = vector.shape_cast %276 : vector<1x7x16xf32> to vector<7x16xf32>
    %278 = vector.shape_cast %263 : vector<7x16xf32> to vector<1x7x16xf32>
    tpu.vector_store %arg30[%c2_77, %c0_78, %c0_79], %278 {strides = array<i32>} : memref<5x7x16xf32, #tpu.memory_space<vmem>>, vector<1x7x16xf32>,
    %c2_80 = arith.constant 2 : index
    %c0_81 = arith.constant 0 : index
    %c0_82 = arith.constant 0 : index
    %279 = vector.load %arg31[%c2_80, %c0_81, %c0_82] : memref<5x7x16xf32, #tpu.memory_space<vmem>>, vector<1x7x16xf32>
    %280 = vector.shape_cast %279 : vector<1x7x16xf32> to vector<7x16xf32>
    %281 = vector.shape_cast %271 : vector<7x16xf32> to vector<1x7x16xf32>
    tpu.vector_store %arg31[%c2_80, %c0_81, %c0_82], %281 {strides = array<i32>} : memref<5x7x16xf32, #tpu.memory_space<vmem>>, vector<1x7x16xf32>,
    %282 = tpu.concatenate %263, %271 in 1 : vector<7x16xf32>, vector<7x16xf32> -> vector<7x32xf32>
    %283 = arith.truncf %282 : vector<7x32xf32> to vector<7x32xbf16>
    %cst_83 = arith.constant dense<0.000000e+00> : vector<7x128xf32>
    %284 = tpu.matmul %283, %10, %cst_83 {dimension_numbers = #tpu.dot_dimension_numbers<[1], [0], [0], [1], [0, 0, 1, 1], [], []>} : vector<7x32xbf16>, vector<32x128xbf16>, vector<7x128xf32> -> vector<7x128xf32>
    %c3_84 = arith.constant 3 : index
    %c0_85 = arith.constant 0 : index
    %c0_86 = arith.constant 0 : index
    %285 = vector.load %arg29[%c3_84, %c0_85, %c0_86] : memref<5x7x128xf32, #tpu.memory_space<vmem>>, vector<1x7x128xf32>
    %286 = vector.shape_cast %285 : vector<1x7x128xf32> to vector<7x128xf32>
    %287 = vector.extract_strided_slice %286 {offsets = [0, 0], sizes = [7, 64], strides = [1, 1]} : vector<7x128xf32> to vector<7x64xf32>
    %288 = vector.extract_strided_slice %284 {offsets = [0, 0], sizes = [7, 64], strides = [1, 1]} : vector<7x128xf32> to vector<7x64xf32>
    %289 = arith.addf %287, %288 : vector<7x64xf32>
    %c1_87 = arith.constant 1 : index
    %c0_88 = arith.constant 0 : index
    %c0_89 = arith.constant 0 : index
    %290 = vector.load %arg29[%c1_87, %c0_88, %c0_89] : memref<5x7x128xf32, #tpu.memory_space<vmem>>, vector<1x7x128xf32>
    %291 = vector.shape_cast %290 : vector<1x7x128xf32> to vector<7x128xf32>
    %292 = vector.extract_strided_slice %291 {offsets = [0, 64], sizes = [7, 64], strides = [1, 1]} : vector<7x128xf32> to vector<7x64xf32>
    %293 = vector.extract_strided_slice %284 {offsets = [0, 64], sizes = [7, 64], strides = [1, 1]} : vector<7x128xf32> to vector<7x64xf32>
    %294 = arith.addf %292, %293 : vector<7x64xf32>
    %295 = vector.extract_strided_slice %289 {offsets = [0, 0], sizes = [7, 16], strides = [1, 1]} : vector<7x64xf32> to vector<7x16xf32>
    %296 = arith.negf %295 : vector<7x16xf32>
    %297 = math.exp %296 : vector<7x16xf32>
    %cst_90 = arith.constant 1.000000e+00 : f32
    %298 = vector.broadcast %cst_90 : f32 to vector<7x16xf32>
    %299 = arith.addf %298, %297 : vector<7x16xf32>
    %300 = arith.divf %298, %299 : vector<7x16xf32>
    %301 = vector.extract_strided_slice %289 {offsets = [0, 16], sizes = [7, 16], strides = [1, 1]} : vector<7x64xf32> to vector<7x16xf32>
    %302 = arith.negf %301 : vector<7x16xf32>
    %303 = math.exp %302 : vector<7x16xf32>
    %cst_91 = arith.constant 1.000000e+00 : f32
    %304 = vector.broadcast %cst_91 : f32 to vector<7x16xf32>
    %305 = arith.addf %304, %303 : vector<7x16xf32>
    %306 = arith.divf %304, %305 : vector<7x16xf32>
    %307 = vector.extract_strided_slice %289 {offsets = [0, 32], sizes = [7, 16], strides = [1, 1]} : vector<7x64xf32> to vector<7x16xf32>
    %308 = math.tanh %307 : vector<7x16xf32>
    %309 = vector.extract_strided_slice %289 {offsets = [0, 48], sizes = [7, 16], strides = [1, 1]} : vector<7x64xf32> to vector<7x16xf32>
    %310 = arith.negf %309 : vector<7x16xf32>
    %311 = math.exp %310 : vector<7x16xf32>
    %cst_92 = arith.constant 1.000000e+00 : f32
    %312 = vector.broadcast %cst_92 : f32 to vector<7x16xf32>
    %313 = arith.addf %312, %311 : vector<7x16xf32>
    %314 = arith.divf %312, %313 : vector<7x16xf32>
    %315 = arith.mulf %306, %267 : vector<7x16xf32>
    %316 = arith.mulf %300, %308 : vector<7x16xf32>
    %317 = arith.addf %315, %316 : vector<7x16xf32>
    %318 = math.tanh %317 : vector<7x16xf32>
    %319 = arith.mulf %314, %318 : vector<7x16xf32>
    %320 = vector.extract_strided_slice %294 {offsets = [0, 0], sizes = [7, 16], strides = [1, 1]} : vector<7x64xf32> to vector<7x16xf32>
    %321 = arith.negf %320 : vector<7x16xf32>
    %322 = math.exp %321 : vector<7x16xf32>
    %cst_93 = arith.constant 1.000000e+00 : f32
    %323 = vector.broadcast %cst_93 : f32 to vector<7x16xf32>
    %324 = arith.addf %323, %322 : vector<7x16xf32>
    %325 = arith.divf %323, %324 : vector<7x16xf32>
    %326 = vector.extract_strided_slice %294 {offsets = [0, 16], sizes = [7, 16], strides = [1, 1]} : vector<7x64xf32> to vector<7x16xf32>
    %327 = arith.negf %326 : vector<7x16xf32>
    %328 = math.exp %327 : vector<7x16xf32>
    %cst_94 = arith.constant 1.000000e+00 : f32
    %329 = vector.broadcast %cst_94 : f32 to vector<7x16xf32>
    %330 = arith.addf %329, %328 : vector<7x16xf32>
    %331 = arith.divf %329, %330 : vector<7x16xf32>
    %332 = vector.extract_strided_slice %294 {offsets = [0, 32], sizes = [7, 16], strides = [1, 1]} : vector<7x64xf32> to vector<7x16xf32>
    %333 = math.tanh %332 : vector<7x16xf32>
    %334 = vector.extract_strided_slice %294 {offsets = [0, 48], sizes = [7, 16], strides = [1, 1]} : vector<7x64xf32> to vector<7x16xf32>
    %335 = arith.negf %334 : vector<7x16xf32>
    %336 = math.exp %335 : vector<7x16xf32>
    %cst_95 = arith.constant 1.000000e+00 : f32
    %337 = vector.broadcast %cst_95 : f32 to vector<7x16xf32>
    %338 = arith.addf %337, %336 : vector<7x16xf32>
    %339 = arith.divf %337, %338 : vector<7x16xf32>
    %340 = arith.mulf %331, %275 : vector<7x16xf32>
    %341 = arith.mulf %325, %333 : vector<7x16xf32>
    %342 = arith.addf %340, %341 : vector<7x16xf32>
    %343 = math.tanh %342 : vector<7x16xf32>
    %344 = arith.mulf %339, %343 : vector<7x16xf32>
    %c3_i32_96 = arith.constant 3 : i32
    %345 = vector.broadcast %c3_i32_96 : i32 to vector<7x1xi32>
    %346 = arith.cmpi sgt, %0, %345 : vector<7x1xi32>
    %c1_i32_97 = arith.constant 1 : i32
    %347 = vector.broadcast %c1_i32_97 : i32 to vector<7x1xi32>
    %348 = arith.cmpi sgt, %0, %347 : vector<7x1xi32>
    %cst_98 = arith.constant 0.000000e+00 : f32
    %349 = vector.shape_cast %346 : vector<7x1xi1> to vector<7x1xi1>
    %350 = vector.broadcast %349 : vector<7x1xi1> to vector<7x16xi1>
    %351 = vector.broadcast %cst_98 : f32 to vector<7x16xf32>
    %352 = arith.select %350, %319, %351 : vector<7x16xi1>, vector<7x16xf32>
    %cst_99 = arith.constant 0.000000e+00 : f32
    %353 = vector.shape_cast %346 : vector<7x1xi1> to vector<7x1xi1>
    %354 = vector.broadcast %353 : vector<7x1xi1> to vector<7x16xi1>
    %355 = vector.broadcast %cst_99 : f32 to vector<7x16xf32>
    %356 = arith.select %354, %317, %355 : vector<7x16xi1>, vector<7x16xf32>
    %cst_100 = arith.constant 0.000000e+00 : f32
    %357 = vector.shape_cast %348 : vector<7x1xi1> to vector<7x1xi1>
    %358 = vector.broadcast %357 : vector<7x1xi1> to vector<7x16xi1>
    %359 = vector.broadcast %cst_100 : f32 to vector<7x16xf32>
    %360 = arith.select %358, %344, %359 : vector<7x16xi1>, vector<7x16xf32>
    %cst_101 = arith.constant 0.000000e+00 : f32
    %361 = vector.shape_cast %348 : vector<7x1xi1> to vector<7x1xi1>
    %362 = vector.broadcast %361 : vector<7x1xi1> to vector<7x16xi1>
    %363 = vector.broadcast %cst_101 : f32 to vector<7x16xf32>
    %364 = arith.select %362, %342, %363 : vector<7x16xi1>, vector<7x16xf32>
    %c3_102 = arith.constant 3 : index
    %c0_103 = arith.constant 0 : index
    %c0_104 = arith.constant 0 : index
    %365 = vector.load %arg30[%c3_102, %c0_103, %c0_104] : memref<5x7x16xf32, #tpu.memory_space<vmem>>, vector<1x7x16xf32>
    %366 = vector.shape_cast %365 : vector<1x7x16xf32> to vector<7x16xf32>
    %367 = vector.shape_cast %352 : vector<7x16xf32> to vector<1x7x16xf32>
    tpu.vector_store %arg30[%c3_102, %c0_103, %c0_104], %367 {strides = array<i32>} : memref<5x7x16xf32, #tpu.memory_space<vmem>>, vector<1x7x16xf32>,
    %c1_105 = arith.constant 1 : index
    %c0_106 = arith.constant 0 : index
    %c0_107 = arith.constant 0 : index
    %368 = vector.load %arg31[%c1_105, %c0_106, %c0_107] : memref<5x7x16xf32, #tpu.memory_space<vmem>>, vector<1x7x16xf32>
    %369 = vector.shape_cast %368 : vector<1x7x16xf32> to vector<7x16xf32>
    %370 = vector.shape_cast %360 : vector<7x16xf32> to vector<1x7x16xf32>
    tpu.vector_store %arg31[%c1_105, %c0_106, %c0_107], %370 {strides = array<i32>} : memref<5x7x16xf32, #tpu.memory_space<vmem>>, vector<1x7x16xf32>,
    %371 = tpu.concatenate %352, %360 in 1 : vector<7x16xf32>, vector<7x16xf32> -> vector<7x32xf32>
    %372 = arith.truncf %371 : vector<7x32xf32> to vector<7x32xbf16>
    %cst_108 = arith.constant dense<0.000000e+00> : vector<7x128xf32>
    %373 = tpu.matmul %372, %10, %cst_108 {dimension_numbers = #tpu.dot_dimension_numbers<[1], [0], [0], [1], [0, 0, 1, 1], [], []>} : vector<7x32xbf16>, vector<32x128xbf16>, vector<7x128xf32> -> vector<7x128xf32>
    %c4_109 = arith.constant 4 : index
    %c0_110 = arith.constant 0 : index
    %c0_111 = arith.constant 0 : index
    %374 = vector.load %arg29[%c4_109, %c0_110, %c0_111] : memref<5x7x128xf32, #tpu.memory_space<vmem>>, vector<1x7x128xf32>
    %375 = vector.shape_cast %374 : vector<1x7x128xf32> to vector<7x128xf32>
    %376 = vector.extract_strided_slice %375 {offsets = [0, 0], sizes = [7, 64], strides = [1, 1]} : vector<7x128xf32> to vector<7x64xf32>
    %377 = vector.extract_strided_slice %373 {offsets = [0, 0], sizes = [7, 64], strides = [1, 1]} : vector<7x128xf32> to vector<7x64xf32>
    %378 = arith.addf %376, %377 : vector<7x64xf32>
    %c0_112 = arith.constant 0 : index
    %c0_113 = arith.constant 0 : index
    %c0_114 = arith.constant 0 : index
    %379 = vector.load %arg29[%c0_112, %c0_113, %c0_114] : memref<5x7x128xf32, #tpu.memory_space<vmem>>, vector<1x7x128xf32>
    %380 = vector.shape_cast %379 : vector<1x7x128xf32> to vector<7x128xf32>
    %381 = vector.extract_strided_slice %380 {offsets = [0, 64], sizes = [7, 64], strides = [1, 1]} : vector<7x128xf32> to vector<7x64xf32>
    %382 = vector.extract_strided_slice %373 {offsets = [0, 64], sizes = [7, 64], strides = [1, 1]} : vector<7x128xf32> to vector<7x64xf32>
    %383 = arith.addf %381, %382 : vector<7x64xf32>
    %384 = vector.extract_strided_slice %378 {offsets = [0, 0], sizes = [7, 16], strides = [1, 1]} : vector<7x64xf32> to vector<7x16xf32>
    %385 = arith.negf %384 : vector<7x16xf32>
    %386 = math.exp %385 : vector<7x16xf32>
    %cst_115 = arith.constant 1.000000e+00 : f32
    %387 = vector.broadcast %cst_115 : f32 to vector<7x16xf32>
    %388 = arith.addf %387, %386 : vector<7x16xf32>
    %389 = arith.divf %387, %388 : vector<7x16xf32>
    %390 = vector.extract_strided_slice %378 {offsets = [0, 16], sizes = [7, 16], strides = [1, 1]} : vector<7x64xf32> to vector<7x16xf32>
    %391 = arith.negf %390 : vector<7x16xf32>
    %392 = math.exp %391 : vector<7x16xf32>
    %cst_116 = arith.constant 1.000000e+00 : f32
    %393 = vector.broadcast %cst_116 : f32 to vector<7x16xf32>
    %394 = arith.addf %393, %392 : vector<7x16xf32>
    %395 = arith.divf %393, %394 : vector<7x16xf32>
    %396 = vector.extract_strided_slice %378 {offsets = [0, 32], sizes = [7, 16], strides = [1, 1]} : vector<7x64xf32> to vector<7x16xf32>
    %397 = math.tanh %396 : vector<7x16xf32>
    %398 = vector.extract_strided_slice %378 {offsets = [0, 48], sizes = [7, 16], strides = [1, 1]} : vector<7x64xf32> to vector<7x16xf32>
    %399 = arith.negf %398 : vector<7x16xf32>
    %400 = math.exp %399 : vector<7x16xf32>
    %cst_117 = arith.constant 1.000000e+00 : f32
    %401 = vector.broadcast %cst_117 : f32 to vector<7x16xf32>
    %402 = arith.addf %401, %400 : vector<7x16xf32>
    %403 = arith.divf %401, %402 : vector<7x16xf32>
    %404 = arith.mulf %395, %356 : vector<7x16xf32>
    %405 = arith.mulf %389, %397 : vector<7x16xf32>
    %406 = arith.addf %404, %405 : vector<7x16xf32>
    %407 = math.tanh %406 : vector<7x16xf32>
    %408 = arith.mulf %403, %407 : vector<7x16xf32>
    %409 = vector.extract_strided_slice %383 {offsets = [0, 0], sizes = [7, 16], strides = [1, 1]} : vector<7x64xf32> to vector<7x16xf32>
    %410 = arith.negf %409 : vector<7x16xf32>
    %411 = math.exp %410 : vector<7x16xf32>
    %cst_118 = arith.constant 1.000000e+00 : f32
    %412 = vector.broadcast %cst_118 : f32 to vector<7x16xf32>
    %413 = arith.addf %412, %411 : vector<7x16xf32>
    %414 = arith.divf %412, %413 : vector<7x16xf32>
    %415 = vector.extract_strided_slice %383 {offsets = [0, 16], sizes = [7, 16], strides = [1, 1]} : vector<7x64xf32> to vector<7x16xf32>
    %416 = arith.negf %415 : vector<7x16xf32>
    %417 = math.exp %416 : vector<7x16xf32>
    %cst_119 = arith.constant 1.000000e+00 : f32
    %418 = vector.broadcast %cst_119 : f32 to vector<7x16xf32>
    %419 = arith.addf %418, %417 : vector<7x16xf32>
    %420 = arith.divf %418, %419 : vector<7x16xf32>
    %421 = vector.extract_strided_slice %383 {offsets = [0, 32], sizes = [7, 16], strides = [1, 1]} : vector<7x64xf32> to vector<7x16xf32>
    %422 = math.tanh %421 : vector<7x16xf32>
    %423 = vector.extract_strided_slice %383 {offsets = [0, 48], sizes = [7, 16], strides = [1, 1]} : vector<7x64xf32> to vector<7x16xf32>
    %424 = arith.negf %423 : vector<7x16xf32>
    %425 = math.exp %424 : vector<7x16xf32>
    %cst_120 = arith.constant 1.000000e+00 : f32
    %426 = vector.broadcast %cst_120 : f32 to vector<7x16xf32>
    %427 = arith.addf %426, %425 : vector<7x16xf32>
    %428 = arith.divf %426, %427 : vector<7x16xf32>
    %429 = arith.mulf %420, %364 : vector<7x16xf32>
    %430 = arith.mulf %414, %422 : vector<7x16xf32>
    %431 = arith.addf %429, %430 : vector<7x16xf32>
    %432 = math.tanh %431 : vector<7x16xf32>
    %433 = arith.mulf %428, %432 : vector<7x16xf32>
    %c4_i32_121 = arith.constant 4 : i32
    %434 = vector.broadcast %c4_i32_121 : i32 to vector<7x1xi32>
    %435 = arith.cmpi sgt, %0, %434 : vector<7x1xi32>
    %c0_i32_122 = arith.constant 0 : i32
    %436 = vector.broadcast %c0_i32_122 : i32 to vector<7x1xi32>
    %437 = arith.cmpi sgt, %0, %436 : vector<7x1xi32>
    %cst_123 = arith.constant 0.000000e+00 : f32
    %438 = vector.shape_cast %435 : vector<7x1xi1> to vector<7x1xi1>
    %439 = vector.broadcast %438 : vector<7x1xi1> to vector<7x16xi1>
    %440 = vector.broadcast %cst_123 : f32 to vector<7x16xf32>
    %441 = arith.select %439, %408, %440 : vector<7x16xi1>, vector<7x16xf32>
    %cst_124 = arith.constant 0.000000e+00 : f32
    %442 = vector.shape_cast %437 : vector<7x1xi1> to vector<7x1xi1>
    %443 = vector.broadcast %442 : vector<7x1xi1> to vector<7x16xi1>
    %444 = vector.broadcast %cst_124 : f32 to vector<7x16xf32>
    %445 = arith.select %443, %433, %444 : vector<7x16xi1>, vector<7x16xf32>
    %c4_125 = arith.constant 4 : index
    %c0_126 = arith.constant 0 : index
    %c0_127 = arith.constant 0 : index
    %446 = vector.load %arg30[%c4_125, %c0_126, %c0_127] : memref<5x7x16xf32, #tpu.memory_space<vmem>>, vector<1x7x16xf32>
    %447 = vector.shape_cast %446 : vector<1x7x16xf32> to vector<7x16xf32>
    %448 = vector.shape_cast %441 : vector<7x16xf32> to vector<1x7x16xf32>
    tpu.vector_store %arg30[%c4_125, %c0_126, %c0_127], %448 {strides = array<i32>} : memref<5x7x16xf32, #tpu.memory_space<vmem>>, vector<1x7x16xf32>,
    %c0_128 = arith.constant 0 : index
    %c0_129 = arith.constant 0 : index
    %c0_130 = arith.constant 0 : index
    %449 = vector.load %arg31[%c0_128, %c0_129, %c0_130] : memref<5x7x16xf32, #tpu.memory_space<vmem>>, vector<1x7x16xf32>
    %450 = vector.shape_cast %449 : vector<1x7x16xf32> to vector<7x16xf32>
    %451 = vector.shape_cast %445 : vector<7x16xf32> to vector<1x7x16xf32>
    tpu.vector_store %arg31[%c0_128, %c0_129, %c0_130], %451 {strides = array<i32>} : memref<5x7x16xf32, #tpu.memory_space<vmem>>, vector<1x7x16xf32>,
    %c0_131 = arith.constant 0 : index
    %c0_132 = arith.constant 0 : index
    %c0_133 = arith.constant 0 : index
    %452 = vector.load %arg30[%c0_131, %c0_132, %c0_133] : memref<5x7x16xf32, #tpu.memory_space<vmem>>, vector<5x7x16xf32>
    %c0_134 = arith.constant 0 : index
    %c0_135 = arith.constant 0 : index
    %c0_136 = arith.constant 0 : index
    %453 = vector.load %arg31[%c0_134, %c0_135, %c0_136] : memref<5x7x16xf32, #tpu.memory_space<vmem>>, vector<5x7x16xf32>
    %454 = tpu.concatenate %452, %453 in 2 : vector<5x7x16xf32>, vector<5x7x16xf32> -> vector<5x7x32xf32>
    %455 = arith.truncf %454 : vector<5x7x32xf32> to vector<5x7x32xbf16>
    %c0_137 = arith.constant 0 : index
    %c0_138 = arith.constant 0 : index
    %456 = vector.load %arg11[%c0_137, %c0_138] : memref<32x128xbf16, #tpu.memory_space<vmem>>, vector<32x128xbf16>
    "tpu.trace_start"() <{level = 10 : i32, message = "tbd,de->tbe"}> : () -> ()
    %cst_139 = arith.constant dense<0.000000e+00> : vector<5x7x128xf32>
    %457 = tpu.matmul %455, %456, %cst_139 {dimension_numbers = #tpu.dot_dimension_numbers<[2], [0], [0, 1], [1], [0, 0, 0, 1, 1, 1], [], []>} : vector<5x7x32xbf16>, vector<32x128xbf16>, vector<5x7x128xf32> -> vector<5x7x128xf32>
    "tpu.trace_stop"() : () -> ()
    %c0_140 = arith.constant 0 : index
    %c0_141 = arith.constant 0 : index
    %458 = vector.load %arg13[%c0_140, %c0_141] : memref<1x128xf32, #tpu.memory_space<vmem>>, vector<1x128xf32>
    %459 = vector.shape_cast %458 : vector<1x128xf32> to vector<1x1x128xf32>
    %460 = vector.broadcast %459 : vector<1x1x128xf32> to vector<5x7x128xf32>
    %461 = arith.addf %457, %460 : vector<5x7x128xf32>
    %c0_142 = arith.constant 0 : index
    %c0_143 = arith.constant 0 : index
    %c0_144 = arith.constant 0 : index
    %462 = vector.load %arg29[%c0_142, %c0_143, %c0_144] : memref<5x7x128xf32, #tpu.memory_space<vmem>>, vector<5x7x128xf32>
    tpu.vector_store %arg29[%c0_142, %c0_143, %c0_144], %461 {strides = array<i32>} : memref<5x7x128xf32, #tpu.memory_space<vmem>>, vector<5x7x128xf32>,
    %c0_145 = arith.constant 0 : index
    %c0_146 = arith.constant 0 : index
    %463 = vector.load %arg12[%c0_145, %c0_146] : memref<32x128xbf16, #tpu.memory_space<vmem>>, vector<32x128xbf16>
    %cst_147 = arith.constant 0.000000e+00 : f32
    %464 = vector.broadcast %cst_147 : f32 to vector<7x16xf32>
    %cst_148 = arith.constant 0.000000e+00 : f32
    %465 = vector.broadcast %cst_148 : f32 to vector<7x16xf32>
    %cst_149 = arith.constant 0.000000e+00 : f32
    %466 = vector.broadcast %cst_149 : f32 to vector<7x16xf32>
    %cst_150 = arith.constant 0.000000e+00 : f32
    %467 = vector.broadcast %cst_150 : f32 to vector<7x16xf32>
    %468 = tpu.concatenate %464, %466 in 1 : vector<7x16xf32>, vector<7x16xf32> -> vector<7x32xf32>
    %469 = arith.truncf %468 : vector<7x32xf32> to vector<7x32xbf16>
    %cst_151 = arith.constant dense<0.000000e+00> : vector<7x128xf32>
    %470 = tpu.matmul %469, %463, %cst_151 {dimension_numbers = #tpu.dot_dimension_numbers<[1], [0], [0], [1], [0, 0, 1, 1], [], []>} : vector<7x32xbf16>, vector<32x128xbf16>, vector<7x128xf32> -> vector<7x128xf32>
    %c0_152 = arith.constant 0 : index
    %c0_153 = arith.constant 0 : index
    %c0_154 = arith.constant 0 : index
    %471 = vector.load %arg29[%c0_152, %c0_153, %c0_154] : memref<5x7x128xf32, #tpu.memory_space<vmem>>, vector<1x7x128xf32>
    %472 = vector.shape_cast %471 : vector<1x7x128xf32> to vector<7x128xf32>
    %473 = vector.extract_strided_slice %472 {offsets = [0, 0], sizes = [7, 64], strides = [1, 1]} : vector<7x128xf32> to vector<7x64xf32>
    %474 = vector.extract_strided_slice %470 {offsets = [0, 0], sizes = [7, 64], strides = [1, 1]} : vector<7x128xf32> to vector<7x64xf32>
    %475 = arith.addf %473, %474 : vector<7x64xf32>
    %c4_155 = arith.constant 4 : index
    %c0_156 = arith.constant 0 : index
    %c0_157 = arith.constant 0 : index
    %476 = vector.load %arg29[%c4_155, %c0_156, %c0_157] : memref<5x7x128xf32, #tpu.memory_space<vmem>>, vector<1x7x128xf32>
    %477 = vector.shape_cast %476 : vector<1x7x128xf32> to vector<7x128xf32>
    %478 = vector.extract_strided_slice %477 {offsets = [0, 64], sizes = [7, 64], strides = [1, 1]} : vector<7x128xf32> to vector<7x64xf32>
    %479 = vector.extract_strided_slice %470 {offsets = [0, 64], sizes = [7, 64], strides = [1, 1]} : vector<7x128xf32> to vector<7x64xf32>
    %480 = arith.addf %478, %479 : vector<7x64xf32>
    %481 = vector.extract_strided_slice %475 {offsets = [0, 0], sizes = [7, 16], strides = [1, 1]} : vector<7x64xf32> to vector<7x16xf32>
    %482 = arith.negf %481 : vector<7x16xf32>
    %483 = math.exp %482 : vector<7x16xf32>
    %cst_158 = arith.constant 1.000000e+00 : f32
    %484 = vector.broadcast %cst_158 : f32 to vector<7x16xf32>
    %485 = arith.addf %484, %483 : vector<7x16xf32>
    %486 = arith.divf %484, %485 : vector<7x16xf32>
    %487 = vector.extract_strided_slice %475 {offsets = [0, 16], sizes = [7, 16], strides = [1, 1]} : vector<7x64xf32> to vector<7x16xf32>
    %488 = arith.negf %487 : vector<7x16xf32>
    %489 = math.exp %488 : vector<7x16xf32>
    %cst_159 = arith.constant 1.000000e+00 : f32
    %490 = vector.broadcast %cst_159 : f32 to vector<7x16xf32>
    %491 = arith.addf %490, %489 : vector<7x16xf32>
    %492 = arith.divf %490, %491 : vector<7x16xf32>
    %493 = vector.extract_strided_slice %475 {offsets = [0, 32], sizes = [7, 16], strides = [1, 1]} : vector<7x64xf32> to vector<7x16xf32>
    %494 = math.tanh %493 : vector<7x16xf32>
    %495 = vector.extract_strided_slice %475 {offsets = [0, 48], sizes = [7, 16], strides = [1, 1]} : vector<7x64xf32> to vector<7x16xf32>
    %496 = arith.negf %495 : vector<7x16xf32>
    %497 = math.exp %496 : vector<7x16xf32>
    %cst_160 = arith.constant 1.000000e+00 : f32
    %498 = vector.broadcast %cst_160 : f32 to vector<7x16xf32>
    %499 = arith.addf %498, %497 : vector<7x16xf32>
    %500 = arith.divf %498, %499 : vector<7x16xf32>
    %501 = arith.mulf %492, %465 : vector<7x16xf32>
    %502 = arith.mulf %486, %494 : vector<7x16xf32>
    %503 = arith.addf %501, %502 : vector<7x16xf32>
    %504 = math.tanh %503 : vector<7x16xf32>
    %505 = arith.mulf %500, %504 : vector<7x16xf32>
    %506 = vector.extract_strided_slice %480 {offsets = [0, 0], sizes = [7, 16], strides = [1, 1]} : vector<7x64xf32> to vector<7x16xf32>
    %507 = arith.negf %506 : vector<7x16xf32>
    %508 = math.exp %507 : vector<7x16xf32>
    %cst_161 = arith.constant 1.000000e+00 : f32
    %509 = vector.broadcast %cst_161 : f32 to vector<7x16xf32>
    %510 = arith.addf %509, %508 : vector<7x16xf32>
    %511 = arith.divf %509, %510 : vector<7x16xf32>
    %512 = vector.extract_strided_slice %480 {offsets = [0, 16], sizes = [7, 16], strides = [1, 1]} : vector<7x64xf32> to vector<7x16xf32>
    %513 = arith.negf %512 : vector<7x16xf32>
    %514 = math.exp %513 : vector<7x16xf32>
    %cst_162 = arith.constant 1.000000e+00 : f32
    %515 = vector.broadcast %cst_162 : f32 to vector<7x16xf32>
    %516 = arith.addf %515, %514 : vector<7x16xf32>
    %517 = arith.divf %515, %516 : vector<7x16xf32>
    %518 = vector.extract_strided_slice %480 {offsets = [0, 32], sizes = [7, 16], strides = [1, 1]} : vector<7x64xf32> to vector<7x16xf32>
    %519 = math.tanh %518 : vector<7x16xf32>
    %520 = vector.extract_strided_slice %480 {offsets = [0, 48], sizes = [7, 16], strides = [1, 1]} : vector<7x64xf32> to vector<7x16xf32>
    %521 = arith.negf %520 : vector<7x16xf32>
    %522 = math.exp %521 : vector<7x16xf32>
    %cst_163 = arith.constant 1.000000e+00 : f32
    %523 = vector.broadcast %cst_163 : f32 to vector<7x16xf32>
    %524 = arith.addf %523, %522 : vector<7x16xf32>
    %525 = arith.divf %523, %524 : vector<7x16xf32>
    %526 = arith.mulf %517, %467 : vector<7x16xf32>
    %527 = arith.mulf %511, %519 : vector<7x16xf32>
    %528 = arith.addf %526, %527 : vector<7x16xf32>
    %529 = math.tanh %528 : vector<7x16xf32>
    %530 = arith.mulf %525, %529 : vector<7x16xf32>
    %c0_i32_164 = arith.constant 0 : i32
    %531 = vector.broadcast %c0_i32_164 : i32 to vector<7x1xi32>
    %532 = arith.cmpi sgt, %0, %531 : vector<7x1xi32>
    %c4_i32_165 = arith.constant 4 : i32
    %533 = vector.broadcast %c4_i32_165 : i32 to vector<7x1xi32>
    %534 = arith.cmpi sgt, %0, %533 : vector<7x1xi32>
    %cst_166 = arith.constant 0.000000e+00 : f32
    %535 = vector.shape_cast %532 : vector<7x1xi1> to vector<7x1xi1>
    %536 = vector.broadcast %535 : vector<7x1xi1> to vector<7x16xi1>
    %537 = vector.broadcast %cst_166 : f32 to vector<7x16xf32>
    %538 = arith.select %536, %505, %537 : vector<7x16xi1>, vector<7x16xf32>
    %cst_167 = arith.constant 0.000000e+00 : f32
    %539 = vector.shape_cast %532 : vector<7x1xi1> to vector<7x1xi1>
    %540 = vector.broadcast %539 : vector<7x1xi1> to vector<7x16xi1>
    %541 = vector.broadcast %cst_167 : f32 to vector<7x16xf32>
    %542 = arith.select %540, %503, %541 : vector<7x16xi1>, vector<7x16xf32>
    %cst_168 = arith.constant 0.000000e+00 : f32
    %543 = vector.shape_cast %534 : vector<7x1xi1> to vector<7x1xi1>
    %544 = vector.broadcast %543 : vector<7x1xi1> to vector<7x16xi1>
    %545 = vector.broadcast %cst_168 : f32 to vector<7x16xf32>
    %546 = arith.select %544, %530, %545 : vector<7x16xi1>, vector<7x16xf32>
    %cst_169 = arith.constant 0.000000e+00 : f32
    %547 = vector.shape_cast %534 : vector<7x1xi1> to vector<7x1xi1>
    %548 = vector.broadcast %547 : vector<7x1xi1> to vector<7x16xi1>
    %549 = vector.broadcast %cst_169 : f32 to vector<7x16xf32>
    %550 = arith.select %548, %528, %549 : vector<7x16xi1>, vector<7x16xf32>
    %c0_170 = arith.constant 0 : index
    %c0_171 = arith.constant 0 : index
    %c0_172 = arith.constant 0 : index
    %551 = vector.load %arg30[%c0_170, %c0_171, %c0_172] : memref<5x7x16xf32, #tpu.memory_space<vmem>>, vector<1x7x16xf32>
    %552 = vector.shape_cast %551 : vector<1x7x16xf32> to vector<7x16xf32>
    %553 = vector.shape_cast %538 : vector<7x16xf32> to vector<1x7x16xf32>
    tpu.vector_store %arg30[%c0_170, %c0_171, %c0_172], %553 {strides = array<i32>} : memref<5x7x16xf32, #tpu.memory_space<vmem>>, vector<1x7x16xf32>,
    %c4_173 = arith.constant 4 : index
    %c0_174 = arith.constant 0 : index
    %c0_175 = arith.constant 0 : index
    %554 = vector.load %arg31[%c4_173, %c0_174, %c0_175] : memref<5x7x16xf32, #tpu.memory_space<vmem>>, vector<1x7x16xf32>
    %555 = vector.shape_cast %554 : vector<1x7x16xf32> to vector<7x16xf32>
    %556 = vector.shape_cast %546 : vector<7x16xf32> to vector<1x7x16xf32>
    tpu.vector_store %arg31[%c4_173, %c0_174, %c0_175], %556 {strides = array<i32>} : memref<5x7x16xf32, #tpu.memory_space<vmem>>, vector<1x7x16xf32>,
    %557 = tpu.concatenate %538, %546 in 1 : vector<7x16xf32>, vector<7x16xf32> -> vector<7x32xf32>
    %558 = arith.truncf %557 : vector<7x32xf32> to vector<7x32xbf16>
    %cst_176 = arith.constant dense<0.000000e+00> : vector<7x128xf32>
    %559 = tpu.matmul %558, %463, %cst_176 {dimension_numbers = #tpu.dot_dimension_numbers<[1], [0], [0], [1], [0, 0, 1, 1], [], []>} : vector<7x32xbf16>, vector<32x128xbf16>, vector<7x128xf32> -> vector<7x128xf32>
    %c1_177 = arith.constant 1 : index
    %c0_178 = arith.constant 0 : index
    %c0_179 = arith.constant 0 : index
    %560 = vector.load %arg29[%c1_177, %c0_178, %c0_179] : memref<5x7x128xf32, #tpu.memory_space<vmem>>, vector<1x7x128xf32>
    %561 = vector.shape_cast %560 : vector<1x7x128xf32> to vector<7x128xf32>
    %562 = vector.extract_strided_slice %561 {offsets = [0, 0], sizes = [7, 64], strides = [1, 1]} : vector<7x128xf32> to vector<7x64xf32>
    %563 = vector.extract_strided_slice %559 {offsets = [0, 0], sizes = [7, 64], strides = [1, 1]} : vector<7x128xf32> to vector<7x64xf32>
    %564 = arith.addf %562, %563 : vector<7x64xf32>
    %c3_180 = arith.constant 3 : index
    %c0_181 = arith.constant 0 : index
    %c0_182 = arith.constant 0 : index
    %565 = vector.load %arg29[%c3_180, %c0_181, %c0_182] : memref<5x7x128xf32, #tpu.memory_space<vmem>>, vector<1x7x128xf32>
    %566 = vector.shape_cast %565 : vector<1x7x128xf32> to vector<7x128xf32>
    %567 = vector.extract_strided_slice %566 {offsets = [0, 64], sizes = [7, 64], strides = [1, 1]} : vector<7x128xf32> to vector<7x64xf32>
    %568 = vector.extract_strided_slice %559 {offsets = [0, 64], sizes = [7, 64], strides = [1, 1]} : vector<7x128xf32> to vector<7x64xf32>
    %569 = arith.addf %567, %568 : vector<7x64xf32>
    %570 = vector.extract_strided_slice %564 {offsets = [0, 0], sizes = [7, 16], strides = [1, 1]} : vector<7x64xf32> to vector<7x16xf32>
    %571 = arith.negf %570 : vector<7x16xf32>
    %572 = math.exp %571 : vector<7x16xf32>
    %cst_183 = arith.constant 1.000000e+00 : f32
    %573 = vector.broadcast %cst_183 : f32 to vector<7x16xf32>
    %574 = arith.addf %573, %572 : vector<7x16xf32>
    %575 = arith.divf %573, %574 : vector<7x16xf32>
    %576 = vector.extract_strided_slice %564 {offsets = [0, 16], sizes = [7, 16], strides = [1, 1]} : vector<7x64xf32> to vector<7x16xf32>
    %577 = arith.negf %576 : vector<7x16xf32>
    %578 = math.exp %577 : vector<7x16xf32>
    %cst_184 = arith.constant 1.000000e+00 : f32
    %579 = vector.broadcast %cst_184 : f32 to vector<7x16xf32>
    %580 = arith.addf %579, %578 : vector<7x16xf32>
    %581 = arith.divf %579, %580 : vector<7x16xf32>
    %582 = vector.extract_strided_slice %564 {offsets = [0, 32], sizes = [7, 16], strides = [1, 1]} : vector<7x64xf32> to vector<7x16xf32>
    %583 = math.tanh %582 : vector<7x16xf32>
    %584 = vector.extract_strided_slice %564 {offsets = [0, 48], sizes = [7, 16], strides = [1, 1]} : vector<7x64xf32> to vector<7x16xf32>
    %585 = arith.negf %584 : vector<7x16xf32>
    %586 = math.exp %585 : vector<7x16xf32>
    %cst_185 = arith.constant 1.000000e+00 : f32
    %587 = vector.broadcast %cst_185 : f32 to vector<7x16xf32>
    %588 = arith.addf %587, %586 : vector<7x16xf32>
    %589 = arith.divf %587, %588 : vector<7x16xf32>
    %590 = arith.mulf %581, %542 : vector<7x16xf32>
    %591 = arith.mulf %575, %583 : vector<7x16xf32>
    %592 = arith.addf %590, %591 : vector<7x16xf32>
    %593 = math.tanh %592 : vector<7x16xf32>
    %594 = arith.mulf %589, %593 : vector<7x16xf32>
    %595 = vector.extract_strided_slice %569 {offsets = [0, 0], sizes = [7, 16], strides = [1, 1]} : vector<7x64xf32> to vector<7x16xf32>
    %596 = arith.negf %595 : vector<7x16xf32>
    %597 = math.exp %596 : vector<7x16xf32>
    %cst_186 = arith.constant 1.000000e+00 : f32
    %598 = vector.broadcast %cst_186 : f32 to vector<7x16xf32>
    %599 = arith.addf %598, %597 : vector<7x16xf32>
    %600 = arith.divf %598, %599 : vector<7x16xf32>
    %601 = vector.extract_strided_slice %569 {offsets = [0, 16], sizes = [7, 16], strides = [1, 1]} : vector<7x64xf32> to vector<7x16xf32>
    %602 = arith.negf %601 : vector<7x16xf32>
    %603 = math.exp %602 : vector<7x16xf32>
    %cst_187 = arith.constant 1.000000e+00 : f32
    %604 = vector.broadcast %cst_187 : f32 to vector<7x16xf32>
    %605 = arith.addf %604, %603 : vector<7x16xf32>
    %606 = arith.divf %604, %605 : vector<7x16xf32>
    %607 = vector.extract_strided_slice %569 {offsets = [0, 32], sizes = [7, 16], strides = [1, 1]} : vector<7x64xf32> to vector<7x16xf32>
    %608 = math.tanh %607 : vector<7x16xf32>
    %609 = vector.extract_strided_slice %569 {offsets = [0, 48], sizes = [7, 16], strides = [1, 1]} : vector<7x64xf32> to vector<7x16xf32>
    %610 = arith.negf %609 : vector<7x16xf32>
    %611 = math.exp %610 : vector<7x16xf32>
    %cst_188 = arith.constant 1.000000e+00 : f32
    %612 = vector.broadcast %cst_188 : f32 to vector<7x16xf32>
    %613 = arith.addf %612, %611 : vector<7x16xf32>
    %614 = arith.divf %612, %613 : vector<7x16xf32>
    %615 = arith.mulf %606, %550 : vector<7x16xf32>
    %616 = arith.mulf %600, %608 : vector<7x16xf32>
    %617 = arith.addf %615, %616 : vector<7x16xf32>
    %618 = math.tanh %617 : vector<7x16xf32>
    %619 = arith.mulf %614, %618 : vector<7x16xf32>
    %c1_i32_189 = arith.constant 1 : i32
    %620 = vector.broadcast %c1_i32_189 : i32 to vector<7x1xi32>
    %621 = arith.cmpi sgt, %0, %620 : vector<7x1xi32>
    %c3_i32_190 = arith.constant 3 : i32
    %622 = vector.broadcast %c3_i32_190 : i32 to vector<7x1xi32>
    %623 = arith.cmpi sgt, %0, %622 : vector<7x1xi32>
    %cst_191 = arith.constant 0.000000e+00 : f32
    %624 = vector.shape_cast %621 : vector<7x1xi1> to vector<7x1xi1>
    %625 = vector.broadcast %624 : vector<7x1xi1> to vector<7x16xi1>
    %626 = vector.broadcast %cst_191 : f32 to vector<7x16xf32>
    %627 = arith.select %625, %594, %626 : vector<7x16xi1>, vector<7x16xf32>
    %cst_192 = arith.constant 0.000000e+00 : f32
    %628 = vector.shape_cast %621 : vector<7x1xi1> to vector<7x1xi1>
    %629 = vector.broadcast %628 : vector<7x1xi1> to vector<7x16xi1>
    %630 = vector.broadcast %cst_192 : f32 to vector<7x16xf32>
    %631 = arith.select %629, %592, %630 : vector<7x16xi1>, vector<7x16xf32>
    %cst_193 = arith.constant 0.000000e+00 : f32
    %632 = vector.shape_cast %623 : vector<7x1xi1> to vector<7x1xi1>
    %633 = vector.broadcast %632 : vector<7x1xi1> to vector<7x16xi1>
    %634 = vector.broadcast %cst_193 : f32 to vector<7x16xf32>
    %635 = arith.select %633, %619, %634 : vector<7x16xi1>, vector<7x16xf32>
    %cst_194 = arith.constant 0.000000e+00 : f32
    %636 = vector.shape_cast %623 : vector<7x1xi1> to vector<7x1xi1>
    %637 = vector.broadcast %636 : vector<7x1xi1> to vector<7x16xi1>
    %638 = vector.broadcast %cst_194 : f32 to vector<7x16xf32>
    %639 = arith.select %637, %617, %638 : vector<7x16xi1>, vector<7x16xf32>
    %c1_195 = arith.constant 1 : index
    %c0_196 = arith.constant 0 : index
    %c0_197 = arith.constant 0 : index
    %640 = vector.load %arg30[%c1_195, %c0_196, %c0_197] : memref<5x7x16xf32, #tpu.memory_space<vmem>>, vector<1x7x16xf32>
    %641 = vector.shape_cast %640 : vector<1x7x16xf32> to vector<7x16xf32>
    %642 = vector.shape_cast %627 : vector<7x16xf32> to vector<1x7x16xf32>
    tpu.vector_store %arg30[%c1_195, %c0_196, %c0_197], %642 {strides = array<i32>} : memref<5x7x16xf32, #tpu.memory_space<vmem>>, vector<1x7x16xf32>,
    %c3_198 = arith.constant 3 : index
    %c0_199 = arith.constant 0 : index
    %c0_200 = arith.constant 0 : index
    %643 = vector.load %arg31[%c3_198, %c0_199, %c0_200] : memref<5x7x16xf32, #tpu.memory_space<vmem>>, vector<1x7x16xf32>
    %644 = vector.shape_cast %643 : vector<1x7x16xf32> to vector<7x16xf32>
    %645 = vector.shape_cast %635 : vector<7x16xf32> to vector<1x7x16xf32>
    tpu.vector_store %arg31[%c3_198, %c0_199, %c0_200], %645 {strides = array<i32>} : memref<5x7x16xf32, #tpu.memory_space<vmem>>, vector<1x7x16xf32>,
    %646 = tpu.concatenate %627, %635 in 1 : vector<7x16xf32>, vector<7x16xf32> -> vector<7x32xf32>
    %647 = arith.truncf %646 : vector<7x32xf32> to vector<7x32xbf16>
    %cst_201 = arith.constant dense<0.000000e+00> : vector<7x128xf32>
    %648 = tpu.matmul %647, %463, %cst_201 {dimension_numbers = #tpu.dot_dimension_numbers<[1], [0], [0], [1], [0, 0, 1, 1], [], []>} : vector<7x32xbf16>, vector<32x128xbf16>, vector<7x128xf32> -> vector<7x128xf32>
    %c2_202 = arith.constant 2 : index
    %c0_203 = arith.constant 0 : index
    %c0_204 = arith.constant 0 : index
    %649 = vector.load %arg29[%c2_202, %c0_203, %c0_204] : memref<5x7x128xf32, #tpu.memory_space<vmem>>, vector<1x7x128xf32>
    %650 = vector.shape_cast %649 : vector<1x7x128xf32> to vector<7x128xf32>
    %651 = vector.extract_strided_slice %650 {offsets = [0, 0], sizes = [7, 64], strides = [1, 1]} : vector<7x128xf32> to vector<7x64xf32>
    %652 = vector.extract_strided_slice %648 {offsets = [0, 0], sizes = [7, 64], strides = [1, 1]} : vector<7x128xf32> to vector<7x64xf32>
    %653 = arith.addf %651, %652 : vector<7x64xf32>
    %c2_205 = arith.constant 2 : index
    %c0_206 = arith.constant 0 : index
    %c0_207 = arith.constant 0 : index
    %654 = vector.load %arg29[%c2_205, %c0_206, %c0_207] : memref<5x7x128xf32, #tpu.memory_space<vmem>>, vector<1x7x128xf32>
    %655 = vector.shape_cast %654 : vector<1x7x128xf32> to vector<7x128xf32>
    %656 = vector.extract_strided_slice %655 {offsets = [0, 64], sizes = [7, 64], strides = [1, 1]} : vector<7x128xf32> to vector<7x64xf32>
    %657 = vector.extract_strided_slice %648 {offsets = [0, 64], sizes = [7, 64], strides = [1, 1]} : vector<7x128xf32> to vector<7x64xf32>
    %658 = arith.addf %656, %657 : vector<7x64xf32>
    %659 = vector.extract_strided_slice %653 {offsets = [0, 0], sizes = [7, 16], strides = [1, 1]} : vector<7x64xf32> to vector<7x16xf32>
    %660 = arith.negf %659 : vector<7x16xf32>
    %661 = math.exp %660 : vector<7x16xf32>
    %cst_208 = arith.constant 1.000000e+00 : f32
    %662 = vector.broadcast %cst_208 : f32 to vector<7x16xf32>
    %663 = arith.addf %662, %661 : vector<7x16xf32>
    %664 = arith.divf %662, %663 : vector<7x16xf32>
    %665 = vector.extract_strided_slice %653 {offsets = [0, 16], sizes = [7, 16], strides = [1, 1]} : vector<7x64xf32> to vector<7x16xf32>
    %666 = arith.negf %665 : vector<7x16xf32>
    %667 = math.exp %666 : vector<7x16xf32>
    %cst_209 = arith.constant 1.000000e+00 : f32
    %668 = vector.broadcast %cst_209 : f32 to vector<7x16xf32>
    %669 = arith.addf %668, %667 : vector<7x16xf32>
    %670 = arith.divf %668, %669 : vector<7x16xf32>
    %671 = vector.extract_strided_slice %653 {offsets = [0, 32], sizes = [7, 16], strides = [1, 1]} : vector<7x64xf32> to vector<7x16xf32>
    %672 = math.tanh %671 : vector<7x16xf32>
    %673 = vector.extract_strided_slice %653 {offsets = [0, 48], sizes = [7, 16], strides = [1, 1]} : vector<7x64xf32> to vector<7x16xf32>
    %674 = arith.negf %673 : vector<7x16xf32>
    %675 = math.exp %674 : vector<7x16xf32>
    %cst_210 = arith.constant 1.000000e+00 : f32
    %676 = vector.broadcast %cst_210 : f32 to vector<7x16xf32>
    %677 = arith.addf %676, %675 : vector<7x16xf32>
    %678 = arith.divf %676, %677 : vector<7x16xf32>
    %679 = arith.mulf %670, %631 : vector<7x16xf32>
    %680 = arith.mulf %664, %672 : vector<7x16xf32>
    %681 = arith.addf %679, %680 : vector<7x16xf32>
    %682 = math.tanh %681 : vector<7x16xf32>
    %683 = arith.mulf %678, %682 : vector<7x16xf32>
    %684 = vector.extract_strided_slice %658 {offsets = [0, 0], sizes = [7, 16], strides = [1, 1]} : vector<7x64xf32> to vector<7x16xf32>
    %685 = arith.negf %684 : vector<7x16xf32>
    %686 = math.exp %685 : vector<7x16xf32>
    %cst_211 = arith.constant 1.000000e+00 : f32
    %687 = vector.broadcast %cst_211 : f32 to vector<7x16xf32>
    %688 = arith.addf %687, %686 : vector<7x16xf32>
    %689 = arith.divf %687, %688 : vector<7x16xf32>
    %690 = vector.extract_strided_slice %658 {offsets = [0, 16], sizes = [7, 16], strides = [1, 1]} : vector<7x64xf32> to vector<7x16xf32>
    %691 = arith.negf %690 : vector<7x16xf32>
    %692 = math.exp %691 : vector<7x16xf32>
    %cst_212 = arith.constant 1.000000e+00 : f32
    %693 = vector.broadcast %cst_212 : f32 to vector<7x16xf32>
    %694 = arith.addf %693, %692 : vector<7x16xf32>
    %695 = arith.divf %693, %694 : vector<7x16xf32>
    %696 = vector.extract_strided_slice %658 {offsets = [0, 32], sizes = [7, 16], strides = [1, 1]} : vector<7x64xf32> to vector<7x16xf32>
    %697 = math.tanh %696 : vector<7x16xf32>
    %698 = vector.extract_strided_slice %658 {offsets = [0, 48], sizes = [7, 16], strides = [1, 1]} : vector<7x64xf32> to vector<7x16xf32>
    %699 = arith.negf %698 : vector<7x16xf32>
    %700 = math.exp %699 : vector<7x16xf32>
    %cst_213 = arith.constant 1.000000e+00 : f32
    %701 = vector.broadcast %cst_213 : f32 to vector<7x16xf32>
    %702 = arith.addf %701, %700 : vector<7x16xf32>
    %703 = arith.divf %701, %702 : vector<7x16xf32>
    %704 = arith.mulf %695, %639 : vector<7x16xf32>
    %705 = arith.mulf %689, %697 : vector<7x16xf32>
    %706 = arith.addf %704, %705 : vector<7x16xf32>
    %707 = math.tanh %706 : vector<7x16xf32>
    %708 = arith.mulf %703, %707 : vector<7x16xf32>
    %c2_i32_214 = arith.constant 2 : i32
    %709 = vector.broadcast %c2_i32_214 : i32 to vector<7x1xi32>
    %710 = arith.cmpi sgt, %0, %709 : vector<7x1xi32>
    %c2_i32_215 = arith.constant 2 : i32
    %711 = vector.broadcast %c2_i32_215 : i32 to vector<7x1xi32>
    %712 = arith.cmpi sgt, %0, %711 : vector<7x1xi32>
    %cst_216 = arith.constant 0.000000e+00 : f32
    %713 = vector.shape_cast %710 : vector<7x1xi1> to vector<7x1xi1>
    %714 = vector.broadcast %713 : vector<7x1xi1> to vector<7x16xi1>
    %715 = vector.broadcast %cst_216 : f32 to vector<7x16xf32>
    %716 = arith.select %714, %683, %715 : vector<7x16xi1>, vector<7x16xf32>
    %cst_217 = arith.constant 0.000000e+00 : f32
    %717 = vector.shape_cast %710 : vector<7x1xi1> to vector<7x1xi1>
    %718 = vector.broadcast %717 : vector<7x1xi1> to vector<7x16xi1>
    %719 = vector.broadcast %cst_217 : f32 to vector<7x16xf32>
    %720 = arith.select %718, %681, %719 : vector<7x16xi1>, vector<7x16xf32>
    %cst_218 = arith.constant 0.000000e+00 : f32
    %721 = vector.shape_cast %712 : vector<7x1xi1> to vector<7x1xi1>
    %722 = vector.broadcast %721 : vector<7x1xi1> to vector<7x16xi1>
    %723 = vector.broadcast %cst_218 : f32 to vector<7x16xf32>
    %724 = arith.select %722, %708, %723 : vector<7x16xi1>, vector<7x16xf32>
    %cst_219 = arith.constant 0.000000e+00 : f32
    %725 = vector.shape_cast %712 : vector<7x1xi1> to vector<7x1xi1>
    %726 = vector.broadcast %725 : vector<7x1xi1> to vector<7x16xi1>
    %727 = vector.broadcast %cst_219 : f32 to vector<7x16xf32>
    %728 = arith.select %726, %706, %727 : vector<7x16xi1>, vector<7x16xf32>
    %c2_220 = arith.constant 2 : index
    %c0_221 = arith.constant 0 : index
    %c0_222 = arith.constant 0 : index
    %729 = vector.load %arg30[%c2_220, %c0_221, %c0_222] : memref<5x7x16xf32, #tpu.memory_space<vmem>>, vector<1x7x16xf32>
    %730 = vector.shape_cast %729 : vector<1x7x16xf32> to vector<7x16xf32>
    %731 = vector.shape_cast %716 : vector<7x16xf32> to vector<1x7x16xf32>
    tpu.vector_store %arg30[%c2_220, %c0_221, %c0_222], %731 {strides = array<i32>} : memref<5x7x16xf32, #tpu.memory_space<vmem>>, vector<1x7x16xf32>,
    %c2_223 = arith.constant 2 : index
    %c0_224 = arith.constant 0 : index
    %c0_225 = arith.constant 0 : index
    %732 = vector.load %arg31[%c2_223, %c0_224, %c0_225] : memref<5x7x16xf32, #tpu.memory_space<vmem>>, vector<1x7x16xf32>
    %733 = vector.shape_cast %732 : vector<1x7x16xf32> to vector<7x16xf32>
    %734 = vector.shape_cast %724 : vector<7x16xf32> to vector<1x7x16xf32>
    tpu.vector_store %arg31[%c2_223, %c0_224, %c0_225], %734 {strides = array<i32>} : memref<5x7x16xf32, #tpu.memory_space<vmem>>, vector<1x7x16xf32>,
    %735 = tpu.concatenate %716, %724 in 1 : vector<7x16xf32>, vector<7x16xf32> -> vector<7x32xf32>
    %736 = arith.truncf %735 : vector<7x32xf32> to vector<7x32xbf16>
    %cst_226 = arith.constant dense<0.000000e+00> : vector<7x128xf32>
    %737 = tpu.matmul %736, %463, %cst_226 {dimension_numbers = #tpu.dot_dimension_numbers<[1], [0], [0], [1], [0, 0, 1, 1], [], []>} : vector<7x32xbf16>, vector<32x128xbf16>, vector<7x128xf32> -> vector<7x128xf32>
    %c3_227 = arith.constant 3 : index
    %c0_228 = arith.constant 0 : index
    %c0_229 = arith.constant 0 : index
    %738 = vector.load %arg29[%c3_227, %c0_228, %c0_229] : memref<5x7x128xf32, #tpu.memory_space<vmem>>, vector<1x7x128xf32>
    %739 = vector.shape_cast %738 : vector<1x7x128xf32> to vector<7x128xf32>
    %740 = vector.extract_strided_slice %739 {offsets = [0, 0], sizes = [7, 64], strides = [1, 1]} : vector<7x128xf32> to vector<7x64xf32>
    %741 = vector.extract_strided_slice %737 {offsets = [0, 0], sizes = [7, 64], strides = [1, 1]} : vector<7x128xf32> to vector<7x64xf32>
    %742 = arith.addf %740, %741 : vector<7x64xf32>
    %c1_230 = arith.constant 1 : index
    %c0_231 = arith.constant 0 : index
    %c0_232 = arith.constant 0 : index
    %743 = vector.load %arg29[%c1_230, %c0_231, %c0_232] : memref<5x7x128xf32, #tpu.memory_space<vmem>>, vector<1x7x128xf32>
    %744 = vector.shape_cast %743 : vector<1x7x128xf32> to vector<7x128xf32>
    %745 = vector.extract_strided_slice %744 {offsets = [0, 64], sizes = [7, 64], strides = [1, 1]} : vector<7x128xf32> to vector<7x64xf32>
    %746 = vector.extract_strided_slice %737 {offsets = [0, 64], sizes = [7, 64], strides = [1, 1]} : vector<7x128xf32> to vector<7x64xf32>
    %747 = arith.addf %745, %746 : vector<7x64xf32>
    %748 = vector.extract_strided_slice %742 {offsets = [0, 0], sizes = [7, 16], strides = [1, 1]} : vector<7x64xf32> to vector<7x16xf32>
    %749 = arith.negf %748 : vector<7x16xf32>
    %750 = math.exp %749 : vector<7x16xf32>
    %cst_233 = arith.constant 1.000000e+00 : f32
    %751 = vector.broadcast %cst_233 : f32 to vector<7x16xf32>
    %752 = arith.addf %751, %750 : vector<7x16xf32>
    %753 = arith.divf %751, %752 : vector<7x16xf32>
    %754 = vector.extract_strided_slice %742 {offsets = [0, 16], sizes = [7, 16], strides = [1, 1]} : vector<7x64xf32> to vector<7x16xf32>
    %755 = arith.negf %754 : vector<7x16xf32>
    %756 = math.exp %755 : vector<7x16xf32>
    %cst_234 = arith.constant 1.000000e+00 : f32
    %757 = vector.broadcast %cst_234 : f32 to vector<7x16xf32>
    %758 = arith.addf %757, %756 : vector<7x16xf32>
    %759 = arith.divf %757, %758 : vector<7x16xf32>
    %760 = vector.extract_strided_slice %742 {offsets = [0, 32], sizes = [7, 16], strides = [1, 1]} : vector<7x64xf32> to vector<7x16xf32>
    %761 = math.tanh %760 : vector<7x16xf32>
    %762 = vector.extract_strided_slice %742 {offsets = [0, 48], sizes = [7, 16], strides = [1, 1]} : vector<7x64xf32> to vector<7x16xf32>
    %763 = arith.negf %762 : vector<7x16xf32>
    %764 = math.exp %763 : vector<7x16xf32>
    %cst_235 = arith.constant 1.000000e+00 : f32
    %765 = vector.broadcast %cst_235 : f32 to vector<7x16xf32>
    %766 = arith.addf %765, %764 : vector<7x16xf32>
    %767 = arith.divf %765, %766 : vector<7x16xf32>
    %768 = arith.mulf %759, %720 : vector<7x16xf32>
    %769 = arith.mulf %753, %761 : vector<7x16xf32>
    %770 = arith.addf %768, %769 : vector<7x16xf32>
    %771 = math.tanh %770 : vector<7x16xf32>
    %772 = arith.mulf %767, %771 : vector<7x16xf32>
    %773 = vector.extract_strided_slice %747 {offsets = [0, 0], sizes = [7, 16], strides = [1, 1]} : vector<7x64xf32> to vector<7x16xf32>
    %774 = arith.negf %773 : vector<7x16xf32>
    %775 = math.exp %774 : vector<7x16xf32>
    %cst_236 = arith.constant 1.000000e+00 : f32
    %776 = vector.broadcast %cst_236 : f32 to vector<7x16xf32>
    %777 = arith.addf %776, %775 : vector<7x16xf32>
    %778 = arith.divf %776, %777 : vector<7x16xf32>
    %779 = vector.extract_strided_slice %747 {offsets = [0, 16], sizes = [7, 16], strides = [1, 1]} : vector<7x64xf32> to vector<7x16xf32>
    %780 = arith.negf %779 : vector<7x16xf32>
    %781 = math.exp %780 : vector<7x16xf32>
    %cst_237 = arith.constant 1.000000e+00 : f32
    %782 = vector.broadcast %cst_237 : f32 to vector<7x16xf32>
    %783 = arith.addf %782, %781 : vector<7x16xf32>
    %784 = arith.divf %782, %783 : vector<7x16xf32>
    %785 = vector.extract_strided_slice %747 {offsets = [0, 32], sizes = [7, 16], strides = [1, 1]} : vector<7x64xf32> to vector<7x16xf32>
    %786 = math.tanh %785 : vector<7x16xf32>
    %787 = vector.extract_strided_slice %747 {offsets = [0, 48], sizes = [7, 16], strides = [1, 1]} : vector<7x64xf32> to vector<7x16xf32>
    %788 = arith.negf %787 : vector<7x16xf32>
    %789 = math.exp %788 : vector<7x16xf32>
    %cst_238 = arith.constant 1.000000e+00 : f32
    %790 = vector.broadcast %cst_238 : f32 to vector<7x16xf32>
    %791 = arith.addf %790, %789 : vector<7x16xf32>
    %792 = arith.divf %790, %791 : vector<7x16xf32>
    %793 = arith.mulf %784, %728 : vector<7x16xf32>
    %794 = arith.mulf %778, %786 : vector<7x16xf32>
    %795 = arith.addf %793, %794 : vector<7x16xf32>
    %796 = math.tanh %795 : vector<7x16xf32>
    %797 = arith.mulf %792, %796 : vector<7x16xf32>
    %c3_i32_239 = arith.constant 3 : i32
    %798 = vector.broadcast %c3_i32_239 : i32 to vector<7x1xi32>
    %799 = arith.cmpi sgt, %0, %798 : vector<7x1xi32>
    %c1_i32_240 = arith.constant 1 : i32
    %800 = vector.broadcast %c1_i32_240 : i32 to vector<7x1xi32>
    %801 = arith.cmpi sgt, %0, %800 : vector<7x1xi32>
    %cst_241 = arith.constant 0.000000e+00 : f32
    %802 = vector.shape_cast %799 : vector<7x1xi1> to vector<7x1xi1>
    %803 = vector.broadcast %802 : vector<7x1xi1> to vector<7x16xi1>
    %804 = vector.broadcast %cst_241 : f32 to vector<7x16xf32>
    %805 = arith.select %803, %772, %804 : vector<7x16xi1>, vector<7x16xf32>
    %cst_242 = arith.constant 0.000000e+00 : f32
    %806 = vector.shape_cast %799 : vector<7x1xi1> to vector<7x1xi1>
    %807 = vector.broadcast %806 : vector<7x1xi1> to vector<7x16xi1>
    %808 = vector.broadcast %cst_242 : f32 to vector<7x16xf32>
    %809 = arith.select %807, %770, %808 : vector<7x16xi1>, vector<7x16xf32>
    %cst_243 = arith.constant 0.000000e+00 : f32
    %810 = vector.shape_cast %801 : vector<7x1xi1> to vector<7x1xi1>
    %811 = vector.broadcast %810 : vector<7x1xi1> to vector<7x16xi1>
    %812 = vector.broadcast %cst_243 : f32 to vector<7x16xf32>
    %813 = arith.select %811, %797, %812 : vector<7x16xi1>, vector<7x16xf32>
    %cst_244 = arith.constant 0.000000e+00 : f32
    %814 = vector.shape_cast %801 : vector<7x1xi1> to vector<7x1xi1>
    %815 = vector.broadcast %814 : vector<7x1xi1> to vector<7x16xi1>
    %816 = vector.broadcast %cst_244 : f32 to vector<7x16xf32>
    %817 = arith.select %815, %795, %816 : vector<7x16xi1>, vector<7x16xf32>
    %c3_245 = arith.constant 3 : index
    %c0_246 = arith.constant 0 : index
    %c0_247 = arith.constant 0 : index
    %818 = vector.load %arg30[%c3_245, %c0_246, %c0_247] : memref<5x7x16xf32, #tpu.memory_space<vmem>>, vector<1x7x16xf32>
    %819 = vector.shape_cast %818 : vector<1x7x16xf32> to vector<7x16xf32>
    %820 = vector.shape_cast %805 : vector<7x16xf32> to vector<1x7x16xf32>
    tpu.vector_store %arg30[%c3_245, %c0_246, %c0_247], %820 {strides = array<i32>} : memref<5x7x16xf32, #tpu.memory_space<vmem>>, vector<1x7x16xf32>,
    %c1_248 = arith.constant 1 : index
    %c0_249 = arith.constant 0 : index
    %c0_250 = arith.constant 0 : index
    %821 = vector.load %arg31[%c1_248, %c0_249, %c0_250] : memref<5x7x16xf32, #tpu.memory_space<vmem>>, vector<1x7x16xf32>
    %822 = vector.shape_cast %821 : vector<1x7x16xf32> to vector<7x16xf32>
    %823 = vector.shape_cast %813 : vector<7x16xf32> to vector<1x7x16xf32>
    tpu.vector_store %arg31[%c1_248, %c0_249, %c0_250], %823 {strides = array<i32>} : memref<5x7x16xf32, #tpu.memory_space<vmem>>, vector<1x7x16xf32>,
    %824 = tpu.concatenate %805, %813 in 1 : vector<7x16xf32>, vector<7x16xf32> -> vector<7x32xf32>
    %825 = arith.truncf %824 : vector<7x32xf32> to vector<7x32xbf16>
    %cst_251 = arith.constant dense<0.000000e+00> : vector<7x128xf32>
    %826 = tpu.matmul %825, %463, %cst_251 {dimension_numbers = #tpu.dot_dimension_numbers<[1], [0], [0], [1], [0, 0, 1, 1], [], []>} : vector<7x32xbf16>, vector<32x128xbf16>, vector<7x128xf32> -> vector<7x128xf32>
    %c4_252 = arith.constant 4 : index
    %c0_253 = arith.constant 0 : index
    %c0_254 = arith.constant 0 : index
    %827 = vector.load %arg29[%c4_252, %c0_253, %c0_254] : memref<5x7x128xf32, #tpu.memory_space<vmem>>, vector<1x7x128xf32>
    %828 = vector.shape_cast %827 : vector<1x7x128xf32> to vector<7x128xf32>
    %829 = vector.extract_strided_slice %828 {offsets = [0, 0], sizes = [7, 64], strides = [1, 1]} : vector<7x128xf32> to vector<7x64xf32>
    %830 = vector.extract_strided_slice %826 {offsets = [0, 0], sizes = [7, 64], strides = [1, 1]} : vector<7x128xf32> to vector<7x64xf32>
    %831 = arith.addf %829, %830 : vector<7x64xf32>
    %c0_255 = arith.constant 0 : index
    %c0_256 = arith.constant 0 : index
    %c0_257 = arith.constant 0 : index
    %832 = vector.load %arg29[%c0_255, %c0_256, %c0_257] : memref<5x7x128xf32, #tpu.memory_space<vmem>>, vector<1x7x128xf32>
    %833 = vector.shape_cast %832 : vector<1x7x128xf32> to vector<7x128xf32>
    %834 = vector.extract_strided_slice %833 {offsets = [0, 64], sizes = [7, 64], strides = [1, 1]} : vector<7x128xf32> to vector<7x64xf32>
    %835 = vector.extract_strided_slice %826 {offsets = [0, 64], sizes = [7, 64], strides = [1, 1]} : vector<7x128xf32> to vector<7x64xf32>
    %836 = arith.addf %834, %835 : vector<7x64xf32>
    %837 = vector.extract_strided_slice %831 {offsets = [0, 0], sizes = [7, 16], strides = [1, 1]} : vector<7x64xf32> to vector<7x16xf32>
    %838 = arith.negf %837 : vector<7x16xf32>
    %839 = math.exp %838 : vector<7x16xf32>
    %cst_258 = arith.constant 1.000000e+00 : f32
    %840 = vector.broadcast %cst_258 : f32 to vector<7x16xf32>
    %841 = arith.addf %840, %839 : vector<7x16xf32>
    %842 = arith.divf %840, %841 : vector<7x16xf32>
    %843 = vector.extract_strided_slice %831 {offsets = [0, 16], sizes = [7, 16], strides = [1, 1]} : vector<7x64xf32> to vector<7x16xf32>
    %844 = arith.negf %843 : vector<7x16xf32>
    %845 = math.exp %844 : vector<7x16xf32>
    %cst_259 = arith.constant 1.000000e+00 : f32
    %846 = vector.broadcast %cst_259 : f32 to vector<7x16xf32>
    %847 = arith.addf %846, %845 : vector<7x16xf32>
    %848 = arith.divf %846, %847 : vector<7x16xf32>
    %849 = vector.extract_strided_slice %831 {offsets = [0, 32], sizes = [7, 16], strides = [1, 1]} : vector<7x64xf32> to vector<7x16xf32>
    %850 = math.tanh %849 : vector<7x16xf32>
    %851 = vector.extract_strided_slice %831 {offsets = [0, 48], sizes = [7, 16], strides = [1, 1]} : vector<7x64xf32> to vector<7x16xf32>
    %852 = arith.negf %851 : vector<7x16xf32>
    %853 = math.exp %852 : vector<7x16xf32>
    %cst_260 = arith.constant 1.000000e+00 : f32
    %854 = vector.broadcast %cst_260 : f32 to vector<7x16xf32>
    %855 = arith.addf %854, %853 : vector<7x16xf32>
    %856 = arith.divf %854, %855 : vector<7x16xf32>
    %857 = arith.mulf %848, %809 : vector<7x16xf32>
    %858 = arith.mulf %842, %850 : vector<7x16xf32>
    %859 = arith.addf %857, %858 : vector<7x16xf32>
    %860 = math.tanh %859 : vector<7x16xf32>
    %861 = arith.mulf %856, %860 : vector<7x16xf32>
    %862 = vector.extract_strided_slice %836 {offsets = [0, 0], sizes = [7, 16], strides = [1, 1]} : vector<7x64xf32> to vector<7x16xf32>
    %863 = arith.negf %862 : vector<7x16xf32>
    %864 = math.exp %863 : vector<7x16xf32>
    %cst_261 = arith.constant 1.000000e+00 : f32
    %865 = vector.broadcast %cst_261 : f32 to vector<7x16xf32>
    %866 = arith.addf %865, %864 : vector<7x16xf32>
    %867 = arith.divf %865, %866 : vector<7x16xf32>
    %868 = vector.extract_strided_slice %836 {offsets = [0, 16], sizes = [7, 16], strides = [1, 1]} : vector<7x64xf32> to vector<7x16xf32>
    %869 = arith.negf %868 : vector<7x16xf32>
    %870 = math.exp %869 : vector<7x16xf32>
    %cst_262 = arith.constant 1.000000e+00 : f32
    %871 = vector.broadcast %cst_262 : f32 to vector<7x16xf32>
    %872 = arith.addf %871, %870 : vector<7x16xf32>
    %873 = arith.divf %871, %872 : vector<7x16xf32>
    %874 = vector.extract_strided_slice %836 {offsets = [0, 32], sizes = [7, 16], strides = [1, 1]} : vector<7x64xf32> to vector<7x16xf32>
    %875 = math.tanh %874 : vector<7x16xf32>
    %876 = vector.extract_strided_slice %836 {offsets = [0, 48], sizes = [7, 16], strides = [1, 1]} : vector<7x64xf32> to vector<7x16xf32>
    %877 = arith.negf %876 : vector<7x16xf32>
    %878 = math.exp %877 : vector<7x16xf32>
    %cst_263 = arith.constant 1.000000e+00 : f32
    %879 = vector.broadcast %cst_263 : f32 to vector<7x16xf32>
    %880 = arith.addf %879, %878 : vector<7x16xf32>
    %881 = arith.divf %879, %880 : vector<7x16xf32>
    %882 = arith.mulf %873, %817 : vector<7x16xf32>
    %883 = arith.mulf %867, %875 : vector<7x16xf32>
    %884 = arith.addf %882, %883 : vector<7x16xf32>
    %885 = math.tanh %884 : vector<7x16xf32>
    %886 = arith.mulf %881, %885 : vector<7x16xf32>
    %c4_i32_264 = arith.constant 4 : i32
    %887 = vector.broadcast %c4_i32_264 : i32 to vector<7x1xi32>
    %888 = arith.cmpi sgt, %0, %887 : vector<7x1xi32>
    %c0_i32_265 = arith.constant 0 : i32
    %889 = vector.broadcast %c0_i32_265 : i32 to vector<7x1xi32>
    %890 = arith.cmpi sgt, %0, %889 : vector<7x1xi32>
    %cst_266 = arith.constant 0.000000e+00 : f32
    %891 = vector.shape_cast %888 : vector<7x1xi1> to vector<7x1xi1>
    %892 = vector.broadcast %891 : vector<7x1xi1> to vector<7x16xi1>
    %893 = vector.broadcast %cst_266 : f32 to vector<7x16xf32>
    %894 = arith.select %892, %861, %893 : vector<7x16xi1>, vector<7x16xf32>
    %cst_267 = arith.constant 0.000000e+00 : f32
    %895 = vector.shape_cast %890 : vector<7x1xi1> to vector<7x1xi1>
    %896 = vector.broadcast %895 : vector<7x1xi1> to vector<7x16xi1>
    %897 = vector.broadcast %cst_267 : f32 to vector<7x16xf32>
    %898 = arith.select %896, %886, %897 : vector<7x16xi1>, vector<7x16xf32>
    %c4_268 = arith.constant 4 : index
    %c0_269 = arith.constant 0 : index
    %c0_270 = arith.constant 0 : index
    %899 = vector.load %arg30[%c4_268, %c0_269, %c0_270] : memref<5x7x16xf32, #tpu.memory_space<vmem>>, vector<1x7x16xf32>
    %900 = vector.shape_cast %899 : vector<1x7x16xf32> to vector<7x16xf32>
    %901 = vector.shape_cast %894 : vector<7x16xf32> to vector<1x7x16xf32>
    tpu.vector_store %arg30[%c4_268, %c0_269, %c0_270], %901 {strides = array<i32>} : memref<5x7x16xf32, #tpu.memory_space<vmem>>, vector<1x7x16xf32>,
    %c0_271 = arith.constant 0 : index
    %c0_272 = arith.constant 0 : index
    %c0_273 = arith.constant 0 : index
    %902 = vector.load %arg31[%c0_271, %c0_272, %c0_273] : memref<5x7x16xf32, #tpu.memory_space<vmem>>, vector<1x7x16xf32>
    %903 = vector.shape_cast %902 : vector<1x7x16xf32> to vector<7x16xf32>
    %904 = vector.shape_cast %898 : vector<7x16xf32> to vector<1x7x16xf32>
    tpu.vector_store %arg31[%c0_271, %c0_272, %c0_273], %904 {strides = array<i32>} : memref<5x7x16xf32, #tpu.memory_space<vmem>>, vector<1x7x16xf32>,
    %905 = tpu.iota {dimensions = array<i32: 0>} : vector<5x7xi32>
    %c0_274 = arith.constant 0 : index
    %c0_275 = arith.constant 0 : index
    %906 = vector.load %arg1[%c0_274, %c0_275] : memref<1x7xi32, #tpu.memory_space<vmem>>, vector<1x7xi32>
    %c1_i32_276 = arith.constant 1 : i32
    %907 = vector.broadcast %c1_i32_276 : i32 to vector<1x7xi32>
    %908 = arith.subi %906, %907 : vector<1x7xi32>
    %909 = vector.broadcast %908 : vector<1x7xi32> to vector<5x7xi32>
    %910 = arith.cmpi eq, %905, %909 : vector<5x7xi32>
    %911 = arith.extui %910 : vector<5x7xi1> to vector<5x7xi32>
    %912 = arith.sitofp %911 : vector<5x7xi32> to vector<5x7xf32>
    %913 = vector.shape_cast %912 : vector<5x7xf32> to vector<5x7x1xf32>
    %c0_277 = arith.constant 0 : index
    %c0_278 = arith.constant 0 : index
    %c0_279 = arith.constant 0 : index
    %914 = vector.load %arg30[%c0_277, %c0_278, %c0_279] : memref<5x7x16xf32, #tpu.memory_space<vmem>>, vector<5x7x16xf32>
    %915 = vector.broadcast %913 : vector<5x7x1xf32> to vector<5x7x16xf32>
    %916 = arith.mulf %915, %914 : vector<5x7x16xf32>
    %cst_280 = arith.constant dense<0.000000e+00> : vector<7x16xf32>
    %917 = vector.multi_reduction <add>, %916, %cst_280 [0] : vector<5x7x16xf32> to vector<7x16xf32>
    %918 = vector.shape_cast %912 : vector<5x7xf32> to vector<5x7x1xf32>
    %c0_281 = arith.constant 0 : index
    %c0_282 = arith.constant 0 : index
    %c0_283 = arith.constant 0 : index
    %919 = vector.load %arg31[%c0_281, %c0_282, %c0_283] : memref<5x7x16xf32, #tpu.memory_space<vmem>>, vector<5x7x16xf32>
    %920 = vector.broadcast %918 : vector<5x7x1xf32> to vector<5x7x16xf32>
    %921 = arith.mulf %920, %919 : vector<5x7x16xf32>
    %cst_284 = arith.constant dense<0.000000e+00> : vector<7x16xf32>
    %922 = vector.multi_reduction <add>, %921, %cst_284 [0] : vector<5x7x16xf32> to vector<7x16xf32>
    %923 = tpu.concatenate %917, %922 in 1 : vector<7x16xf32>, vector<7x16xf32> -> vector<7x32xf32>
    %c0_285 = arith.constant 0 : index
    %c0_286 = arith.constant 0 : index
    %c0_287 = arith.constant 0 : index
    %924 = vector.load %arg5[%c0_285, %c0_286, %c0_287] : memref<2x4x7xf32, #tpu.memory_space<vmem>>, vector<2x4x7xf32>
    %925 = vector.shape_cast %924 : vector<2x4x7xf32> to vector<2x4x7x1xf32>
    %926 = vector.shape_cast %923 : vector<7x32xf32> to vector<1x1x7x32xf32>
    %927 = vector.broadcast %925 : vector<2x4x7x1xf32> to vector<2x4x7x32xf32>
    %928 = vector.broadcast %926 : vector<1x1x7x32xf32> to vector<2x4x7x32xf32>
    %929 = arith.mulf %927, %928 : vector<2x4x7x32xf32>
    %cst_288 = arith.constant dense<0.000000e+00> : vector<2x4x32xf32>
    %930 = vector.multi_reduction <add>, %929, %cst_288 [2] : vector<2x4x7x32xf32> to vector<2x4x32xf32>
    %c0_289 = arith.constant 0 : index
    %c0_290 = arith.constant 0 : index
    %931 = vector.load %arg2[%c0_289, %c0_290] : memref<2x1xi32, #tpu.memory_space<vmem>>, vector<2x1xi32>
    %c0_291 = arith.constant 0 : index
    %c0_292 = arith.constant 0 : index
    %c0_293 = arith.constant 0 : index
    %932 = vector.load %arg7[%c0_291, %c0_292, %c0_293] : memref<8x2x16xf32, #tpu.memory_space<vmem>>, vector<8x2x16xf32>
    %933 = arith.truncf %932 : vector<8x2x16xf32> to vector<8x2x16xbf16>
    %c0_294 = arith.constant 0 : index
    %c0_295 = arith.constant 0 : index
    %934 = vector.load %arg14[%c0_294, %c0_295] : memref<16x128xbf16, #tpu.memory_space<vmem>>, vector<16x128xbf16>
    "tpu.trace_start"() <{level = 10 : i32, message = "tbd,de->tbe"}> : () -> ()
    %cst_296 = arith.constant dense<0.000000e+00> : vector<8x2x128xf32>
    %935 = tpu.matmul %933, %934, %cst_296 {dimension_numbers = #tpu.dot_dimension_numbers<[2], [0], [0, 1], [1], [0, 0, 0, 1, 1, 1], [], []>} : vector<8x2x16xbf16>, vector<16x128xbf16>, vector<8x2x128xf32> -> vector<8x2x128xf32>
    "tpu.trace_stop"() : () -> ()
    %c0_297 = arith.constant 0 : index
    %c0_298 = arith.constant 0 : index
    %936 = vector.load %arg16[%c0_297, %c0_298] : memref<1x128xf32, #tpu.memory_space<vmem>>, vector<1x128xf32>
    %937 = vector.shape_cast %936 : vector<1x128xf32> to vector<1x1x128xf32>
    %938 = vector.broadcast %937 : vector<1x1x128xf32> to vector<8x2x128xf32>
    %939 = arith.addf %935, %938 : vector<8x2x128xf32>
    %c0_299 = arith.constant 0 : index
    %c0_300 = arith.constant 0 : index
    %c0_301 = arith.constant 0 : index
    %940 = vector.load %arg32[%c0_299, %c0_300, %c0_301] : memref<8x2x128xf32, #tpu.memory_space<vmem>>, vector<8x2x128xf32>
    tpu.vector_store %arg32[%c0_299, %c0_300, %c0_301], %939 {strides = array<i32>} : memref<8x2x128xf32, #tpu.memory_space<vmem>>, vector<8x2x128xf32>,
    %c0_302 = arith.constant 0 : index
    %c0_303 = arith.constant 0 : index
    %941 = vector.load %arg15[%c0_302, %c0_303] : memref<32x128xbf16, #tpu.memory_space<vmem>>, vector<32x128xbf16>
    %cst_304 = arith.constant 0.000000e+00 : f32
    %942 = vector.broadcast %cst_304 : f32 to vector<2x16xf32>
    %cst_305 = arith.constant 0.000000e+00 : f32
    %943 = vector.broadcast %cst_305 : f32 to vector<2x16xf32>
    %cst_306 = arith.constant 0.000000e+00 : f32
    %944 = vector.broadcast %cst_306 : f32 to vector<2x16xf32>
    %cst_307 = arith.constant 0.000000e+00 : f32
    %945 = vector.broadcast %cst_307 : f32 to vector<2x16xf32>
    %946 = tpu.concatenate %942, %944 in 1 : vector<2x16xf32>, vector<2x16xf32> -> vector<2x32xf32>
    %947 = arith.truncf %946 : vector<2x32xf32> to vector<2x32xbf16>
    %cst_308 = arith.constant dense<0.000000e+00> : vector<2x128xf32>
    %948 = tpu.matmul %947, %941, %cst_308 {dimension_numbers = #tpu.dot_dimension_numbers<[1], [0], [0], [1], [0, 0, 1, 1], [], []>} : vector<2x32xbf16>, vector<32x128xbf16>, vector<2x128xf32> -> vector<2x128xf32>
    %c0_309 = arith.constant 0 : index
    %c0_310 = arith.constant 0 : index
    %c0_311 = arith.constant 0 : index
    %949 = vector.load %arg32[%c0_309, %c0_310, %c0_311] : memref<8x2x128xf32, #tpu.memory_space<vmem>>, vector<1x2x128xf32>
    %950 = vector.shape_cast %949 : vector<1x2x128xf32> to vector<2x128xf32>
    %951 = vector.extract_strided_slice %950 {offsets = [0, 0], sizes = [2, 64], strides = [1, 1]} : vector<2x128xf32> to vector<2x64xf32>
    %952 = vector.extract_strided_slice %948 {offsets = [0, 0], sizes = [2, 64], strides = [1, 1]} : vector<2x128xf32> to vector<2x64xf32>
    %953 = arith.addf %951, %952 : vector<2x64xf32>
    %c7 = arith.constant 7 : index
    %c0_312 = arith.constant 0 : index
    %c0_313 = arith.constant 0 : index
    %954 = vector.load %arg32[%c7, %c0_312, %c0_313] : memref<8x2x128xf32, #tpu.memory_space<vmem>>, vector<1x2x128xf32>
    %955 = vector.shape_cast %954 : vector<1x2x128xf32> to vector<2x128xf32>
    %956 = vector.extract_strided_slice %955 {offsets = [0, 64], sizes = [2, 64], strides = [1, 1]} : vector<2x128xf32> to vector<2x64xf32>
    %957 = vector.extract_strided_slice %948 {offsets = [0, 64], sizes = [2, 64], strides = [1, 1]} : vector<2x128xf32> to vector<2x64xf32>
    %958 = arith.addf %956, %957 : vector<2x64xf32>
    %959 = vector.extract_strided_slice %953 {offsets = [0, 0], sizes = [2, 16], strides = [1, 1]} : vector<2x64xf32> to vector<2x16xf32>
    %960 = arith.negf %959 : vector<2x16xf32>
    %961 = math.exp %960 : vector<2x16xf32>
    %cst_314 = arith.constant 1.000000e+00 : f32
    %962 = vector.broadcast %cst_314 : f32 to vector<2x16xf32>
    %963 = arith.addf %962, %961 : vector<2x16xf32>
    %964 = arith.divf %962, %963 : vector<2x16xf32>
    %965 = vector.extract_strided_slice %953 {offsets = [0, 16], sizes = [2, 16], strides = [1, 1]} : vector<2x64xf32> to vector<2x16xf32>
    %966 = arith.negf %965 : vector<2x16xf32>
    %967 = math.exp %966 : vector<2x16xf32>
    %cst_315 = arith.constant 1.000000e+00 : f32
    %968 = vector.broadcast %cst_315 : f32 to vector<2x16xf32>
    %969 = arith.addf %968, %967 : vector<2x16xf32>
    %970 = arith.divf %968, %969 : vector<2x16xf32>
    %971 = vector.extract_strided_slice %953 {offsets = [0, 32], sizes = [2, 16], strides = [1, 1]} : vector<2x64xf32> to vector<2x16xf32>
    %972 = math.tanh %971 : vector<2x16xf32>
    %973 = vector.extract_strided_slice %953 {offsets = [0, 48], sizes = [2, 16], strides = [1, 1]} : vector<2x64xf32> to vector<2x16xf32>
    %974 = arith.negf %973 : vector<2x16xf32>
    %975 = math.exp %974 : vector<2x16xf32>
    %cst_316 = arith.constant 1.000000e+00 : f32
    %976 = vector.broadcast %cst_316 : f32 to vector<2x16xf32>
    %977 = arith.addf %976, %975 : vector<2x16xf32>
    %978 = arith.divf %976, %977 : vector<2x16xf32>
    %979 = arith.mulf %970, %943 : vector<2x16xf32>
    %980 = arith.mulf %964, %972 : vector<2x16xf32>
    %981 = arith.addf %979, %980 : vector<2x16xf32>
    %982 = math.tanh %981 : vector<2x16xf32>
    %983 = arith.mulf %978, %982 : vector<2x16xf32>
    %984 = vector.extract_strided_slice %958 {offsets = [0, 0], sizes = [2, 16], strides = [1, 1]} : vector<2x64xf32> to vector<2x16xf32>
    %985 = arith.negf %984 : vector<2x16xf32>
    %986 = math.exp %985 : vector<2x16xf32>
    %cst_317 = arith.constant 1.000000e+00 : f32
    %987 = vector.broadcast %cst_317 : f32 to vector<2x16xf32>
    %988 = arith.addf %987, %986 : vector<2x16xf32>
    %989 = arith.divf %987, %988 : vector<2x16xf32>
    %990 = vector.extract_strided_slice %958 {offsets = [0, 16], sizes = [2, 16], strides = [1, 1]} : vector<2x64xf32> to vector<2x16xf32>
    %991 = arith.negf %990 : vector<2x16xf32>
    %992 = math.exp %991 : vector<2x16xf32>
    %cst_318 = arith.constant 1.000000e+00 : f32
    %993 = vector.broadcast %cst_318 : f32 to vector<2x16xf32>
    %994 = arith.addf %993, %992 : vector<2x16xf32>
    %995 = arith.divf %993, %994 : vector<2x16xf32>
    %996 = vector.extract_strided_slice %958 {offsets = [0, 32], sizes = [2, 16], strides = [1, 1]} : vector<2x64xf32> to vector<2x16xf32>
    %997 = math.tanh %996 : vector<2x16xf32>
    %998 = vector.extract_strided_slice %958 {offsets = [0, 48], sizes = [2, 16], strides = [1, 1]} : vector<2x64xf32> to vector<2x16xf32>
    %999 = arith.negf %998 : vector<2x16xf32>
    %1000 = math.exp %999 : vector<2x16xf32>
    %cst_319 = arith.constant 1.000000e+00 : f32
    %1001 = vector.broadcast %cst_319 : f32 to vector<2x16xf32>
    %1002 = arith.addf %1001, %1000 : vector<2x16xf32>
    %1003 = arith.divf %1001, %1002 : vector<2x16xf32>
    %1004 = arith.mulf %995, %945 : vector<2x16xf32>
    %1005 = arith.mulf %989, %997 : vector<2x16xf32>
    %1006 = arith.addf %1004, %1005 : vector<2x16xf32>
    %1007 = math.tanh %1006 : vector<2x16xf32>
    %1008 = arith.mulf %1003, %1007 : vector<2x16xf32>
    %c0_i32_320 = arith.constant 0 : i32
    %1009 = vector.broadcast %c0_i32_320 : i32 to vector<2x1xi32>
    %1010 = arith.cmpi sgt, %931, %1009 : vector<2x1xi32>
    %c7_i32 = arith.constant 7 : i32
    %1011 = vector.broadcast %c7_i32 : i32 to vector<2x1xi32>
    %1012 = arith.cmpi sgt, %931, %1011 : vector<2x1xi32>
    %cst_321 = arith.constant 0.000000e+00 : f32
    %1013 = vector.shape_cast %1010 : vector<2x1xi1> to vector<2x1xi1>
    %1014 = vector.broadcast %1013 : vector<2x1xi1> to vector<2x16xi1>
    %1015 = vector.broadcast %cst_321 : f32 to vector<2x16xf32>
    %1016 = arith.select %1014, %983, %1015 : vector<2x16xi1>, vector<2x16xf32>
    %cst_322 = arith.constant 0.000000e+00 : f32
    %1017 = vector.shape_cast %1010 : vector<2x1xi1> to vector<2x1xi1>
    %1018 = vector.broadcast %1017 : vector<2x1xi1> to vector<2x16xi1>
    %1019 = vector.broadcast %cst_322 : f32 to vector<2x16xf32>
    %1020 = arith.select %1018, %981, %1019 : vector<2x16xi1>, vector<2x16xf32>
    %cst_323 = arith.constant 0.000000e+00 : f32
    %1021 = vector.shape_cast %1012 : vector<2x1xi1> to vector<2x1xi1>
    %1022 = vector.broadcast %1021 : vector<2x1xi1> to vector<2x16xi1>
    %1023 = vector.broadcast %cst_323 : f32 to vector<2x16xf32>
    %1024 = arith.select %1022, %1008, %1023 : vector<2x16xi1>, vector<2x16xf32>
    %cst_324 = arith.constant 0.000000e+00 : f32
    %1025 = vector.shape_cast %1012 : vector<2x1xi1> to vector<2x1xi1>
    %1026 = vector.broadcast %1025 : vector<2x1xi1> to vector<2x16xi1>
    %1027 = vector.broadcast %cst_324 : f32 to vector<2x16xf32>
    %1028 = arith.select %1026, %1006, %1027 : vector<2x16xi1>, vector<2x16xf32>
    %c0_325 = arith.constant 0 : index
    %c0_326 = arith.constant 0 : index
    %c0_327 = arith.constant 0 : index
    %1029 = vector.load %arg33[%c0_325, %c0_326, %c0_327] : memref<8x2x16xf32, #tpu.memory_space<vmem>>, vector<1x2x16xf32>
    %1030 = vector.shape_cast %1029 : vector<1x2x16xf32> to vector<2x16xf32>
    %1031 = vector.shape_cast %1016 : vector<2x16xf32> to vector<1x2x16xf32>
    tpu.vector_store %arg33[%c0_325, %c0_326, %c0_327], %1031 {strides = array<i32>} : memref<8x2x16xf32, #tpu.memory_space<vmem>>, vector<1x2x16xf32>,
    %c7_328 = arith.constant 7 : index
    %c0_329 = arith.constant 0 : index
    %c0_330 = arith.constant 0 : index
    %1032 = vector.load %arg34[%c7_328, %c0_329, %c0_330] : memref<8x2x16xf32, #tpu.memory_space<vmem>>, vector<1x2x16xf32>
    %1033 = vector.shape_cast %1032 : vector<1x2x16xf32> to vector<2x16xf32>
    %1034 = vector.shape_cast %1024 : vector<2x16xf32> to vector<1x2x16xf32>
    tpu.vector_store %arg34[%c7_328, %c0_329, %c0_330], %1034 {strides = array<i32>} : memref<8x2x16xf32, #tpu.memory_space<vmem>>, vector<1x2x16xf32>,
    %1035 = tpu.concatenate %1016, %1024 in 1 : vector<2x16xf32>, vector<2x16xf32> -> vector<2x32xf32>
    %1036 = arith.truncf %1035 : vector<2x32xf32> to vector<2x32xbf16>
    %cst_331 = arith.constant dense<0.000000e+00> : vector<2x128xf32>
    %1037 = tpu.matmul %1036, %941, %cst_331 {dimension_numbers = #tpu.dot_dimension_numbers<[1], [0], [0], [1], [0, 0, 1, 1], [], []>} : vector<2x32xbf16>, vector<32x128xbf16>, vector<2x128xf32> -> vector<2x128xf32>
    %c1_332 = arith.constant 1 : index
    %c0_333 = arith.constant 0 : index
    %c0_334 = arith.constant 0 : index
    %1038 = vector.load %arg32[%c1_332, %c0_333, %c0_334] : memref<8x2x128xf32, #tpu.memory_space<vmem>>, vector<1x2x128xf32>
    %1039 = vector.shape_cast %1038 : vector<1x2x128xf32> to vector<2x128xf32>
    %1040 = vector.extract_strided_slice %1039 {offsets = [0, 0], sizes = [2, 64], strides = [1, 1]} : vector<2x128xf32> to vector<2x64xf32>
    %1041 = vector.extract_strided_slice %1037 {offsets = [0, 0], sizes = [2, 64], strides = [1, 1]} : vector<2x128xf32> to vector<2x64xf32>
    %1042 = arith.addf %1040, %1041 : vector<2x64xf32>
    %c6 = arith.constant 6 : index
    %c0_335 = arith.constant 0 : index
    %c0_336 = arith.constant 0 : index
    %1043 = vector.load %arg32[%c6, %c0_335, %c0_336] : memref<8x2x128xf32, #tpu.memory_space<vmem>>, vector<1x2x128xf32>
    %1044 = vector.shape_cast %1043 : vector<1x2x128xf32> to vector<2x128xf32>
    %1045 = vector.extract_strided_slice %1044 {offsets = [0, 64], sizes = [2, 64], strides = [1, 1]} : vector<2x128xf32> to vector<2x64xf32>
    %1046 = vector.extract_strided_slice %1037 {offsets = [0, 64], sizes = [2, 64], strides = [1, 1]} : vector<2x128xf32> to vector<2x64xf32>
    %1047 = arith.addf %1045, %1046 : vector<2x64xf32>
    %1048 = vector.extract_strided_slice %1042 {offsets = [0, 0], sizes = [2, 16], strides = [1, 1]} : vector<2x64xf32> to vector<2x16xf32>
    %1049 = arith.negf %1048 : vector<2x16xf32>
    %1050 = math.exp %1049 : vector<2x16xf32>
    %cst_337 = arith.constant 1.000000e+00 : f32
    %1051 = vector.broadcast %cst_337 : f32 to vector<2x16xf32>
    %1052 = arith.addf %1051, %1050 : vector<2x16xf32>
    %1053 = arith.divf %1051, %1052 : vector<2x16xf32>
    %1054 = vector.extract_strided_slice %1042 {offsets = [0, 16], sizes = [2, 16], strides = [1, 1]} : vector<2x64xf32> to vector<2x16xf32>
    %1055 = arith.negf %1054 : vector<2x16xf32>
    %1056 = math.exp %1055 : vector<2x16xf32>
    %cst_338 = arith.constant 1.000000e+00 : f32
    %1057 = vector.broadcast %cst_338 : f32 to vector<2x16xf32>
    %1058 = arith.addf %1057, %1056 : vector<2x16xf32>
    %1059 = arith.divf %1057, %1058 : vector<2x16xf32>
    %1060 = vector.extract_strided_slice %1042 {offsets = [0, 32], sizes = [2, 16], strides = [1, 1]} : vector<2x64xf32> to vector<2x16xf32>
    %1061 = math.tanh %1060 : vector<2x16xf32>
    %1062 = vector.extract_strided_slice %1042 {offsets = [0, 48], sizes = [2, 16], strides = [1, 1]} : vector<2x64xf32> to vector<2x16xf32>
    %1063 = arith.negf %1062 : vector<2x16xf32>
    %1064 = math.exp %1063 : vector<2x16xf32>
    %cst_339 = arith.constant 1.000000e+00 : f32
    %1065 = vector.broadcast %cst_339 : f32 to vector<2x16xf32>
    %1066 = arith.addf %1065, %1064 : vector<2x16xf32>
    %1067 = arith.divf %1065, %1066 : vector<2x16xf32>
    %1068 = arith.mulf %1059, %1020 : vector<2x16xf32>
    %1069 = arith.mulf %1053, %1061 : vector<2x16xf32>
    %1070 = arith.addf %1068, %1069 : vector<2x16xf32>
    %1071 = math.tanh %1070 : vector<2x16xf32>
    %1072 = arith.mulf %1067, %1071 : vector<2x16xf32>
    %1073 = vector.extract_strided_slice %1047 {offsets = [0, 0], sizes = [2, 16], strides = [1, 1]} : vector<2x64xf32> to vector<2x16xf32>
    %1074 = arith.negf %1073 : vector<2x16xf32>
    %1075 = math.exp %1074 : vector<2x16xf32>
    %cst_340 = arith.constant 1.000000e+00 : f32
    %1076 = vector.broadcast %cst_340 : f32 to vector<2x16xf32>
    %1077 = arith.addf %1076, %1075 : vector<2x16xf32>
    %1078 = arith.divf %1076, %1077 : vector<2x16xf32>
    %1079 = vector.extract_strided_slice %1047 {offsets = [0, 16], sizes = [2, 16], strides = [1, 1]} : vector<2x64xf32> to vector<2x16xf32>
    %1080 = arith.negf %1079 : vector<2x16xf32>
    %1081 = math.exp %1080 : vector<2x16xf32>
    %cst_341 = arith.constant 1.000000e+00 : f32
    %1082 = vector.broadcast %cst_341 : f32 to vector<2x16xf32>
    %1083 = arith.addf %1082, %1081 : vector<2x16xf32>
    %1084 = arith.divf %1082, %1083 : vector<2x16xf32>
    %1085 = vector.extract_strided_slice %1047 {offsets = [0, 32], sizes = [2, 16], strides = [1, 1]} : vector<2x64xf32> to vector<2x16xf32>
    %1086 = math.tanh %1085 : vector<2x16xf32>
    %1087 = vector.extract_strided_slice %1047 {offsets = [0, 48], sizes = [2, 16], strides = [1, 1]} : vector<2x64xf32> to vector<2x16xf32>
    %1088 = arith.negf %1087 : vector<2x16xf32>
    %1089 = math.exp %1088 : vector<2x16xf32>
    %cst_342 = arith.constant 1.000000e+00 : f32
    %1090 = vector.broadcast %cst_342 : f32 to vector<2x16xf32>
    %1091 = arith.addf %1090, %1089 : vector<2x16xf32>
    %1092 = arith.divf %1090, %1091 : vector<2x16xf32>
    %1093 = arith.mulf %1084, %1028 : vector<2x16xf32>
    %1094 = arith.mulf %1078, %1086 : vector<2x16xf32>
    %1095 = arith.addf %1093, %1094 : vector<2x16xf32>
    %1096 = math.tanh %1095 : vector<2x16xf32>
    %1097 = arith.mulf %1092, %1096 : vector<2x16xf32>
    %c1_i32_343 = arith.constant 1 : i32
    %1098 = vector.broadcast %c1_i32_343 : i32 to vector<2x1xi32>
    %1099 = arith.cmpi sgt, %931, %1098 : vector<2x1xi32>
    %c6_i32 = arith.constant 6 : i32
    %1100 = vector.broadcast %c6_i32 : i32 to vector<2x1xi32>
    %1101 = arith.cmpi sgt, %931, %1100 : vector<2x1xi32>
    %cst_344 = arith.constant 0.000000e+00 : f32
    %1102 = vector.shape_cast %1099 : vector<2x1xi1> to vector<2x1xi1>
    %1103 = vector.broadcast %1102 : vector<2x1xi1> to vector<2x16xi1>
    %1104 = vector.broadcast %cst_344 : f32 to vector<2x16xf32>
    %1105 = arith.select %1103, %1072, %1104 : vector<2x16xi1>, vector<2x16xf32>
    %cst_345 = arith.constant 0.000000e+00 : f32
    %1106 = vector.shape_cast %1099 : vector<2x1xi1> to vector<2x1xi1>
    %1107 = vector.broadcast %1106 : vector<2x1xi1> to vector<2x16xi1>
    %1108 = vector.broadcast %cst_345 : f32 to vector<2x16xf32>
    %1109 = arith.select %1107, %1070, %1108 : vector<2x16xi1>, vector<2x16xf32>
    %cst_346 = arith.constant 0.000000e+00 : f32
    %1110 = vector.shape_cast %1101 : vector<2x1xi1> to vector<2x1xi1>
    %1111 = vector.broadcast %1110 : vector<2x1xi1> to vector<2x16xi1>
    %1112 = vector.broadcast %cst_346 : f32 to vector<2x16xf32>
    %1113 = arith.select %1111, %1097, %1112 : vector<2x16xi1>, vector<2x16xf32>
    %cst_347 = arith.constant 0.000000e+00 : f32
    %1114 = vector.shape_cast %1101 : vector<2x1xi1> to vector<2x1xi1>
    %1115 = vector.broadcast %1114 : vector<2x1xi1> to vector<2x16xi1>
    %1116 = vector.broadcast %cst_347 : f32 to vector<2x16xf32>
    %1117 = arith.select %1115, %1095, %1116 : vector<2x16xi1>, vector<2x16xf32>
    %c1_348 = arith.constant 1 : index
    %c0_349 = arith.constant 0 : index
    %c0_350 = arith.constant 0 : index
    %1118 = vector.load %arg33[%c1_348, %c0_349, %c0_350] : memref<8x2x16xf32, #tpu.memory_space<vmem>>, vector<1x2x16xf32>
    %1119 = vector.shape_cast %1118 : vector<1x2x16xf32> to vector<2x16xf32>
    %1120 = vector.shape_cast %1105 : vector<2x16xf32> to vector<1x2x16xf32>
    tpu.vector_store %arg33[%c1_348, %c0_349, %c0_350], %1120 {strides = array<i32>} : memref<8x2x16xf32, #tpu.memory_space<vmem>>, vector<1x2x16xf32>,
    %c6_351 = arith.constant 6 : index
    %c0_352 = arith.constant 0 : index
    %c0_353 = arith.constant 0 : index
    %1121 = vector.load %arg34[%c6_351, %c0_352, %c0_353] : memref<8x2x16xf32, #tpu.memory_space<vmem>>, vector<1x2x16xf32>
    %1122 = vector.shape_cast %1121 : vector<1x2x16xf32> to vector<2x16xf32>
    %1123 = vector.shape_cast %1113 : vector<2x16xf32> to vector<1x2x16xf32>
    tpu.vector_store %arg34[%c6_351, %c0_352, %c0_353], %1123 {strides = array<i32>} : memref<8x2x16xf32, #tpu.memory_space<vmem>>, vector<1x2x16xf32>,
    %1124 = tpu.concatenate %1105, %1113 in 1 : vector<2x16xf32>, vector<2x16xf32> -> vector<2x32xf32>
    %1125 = arith.truncf %1124 : vector<2x32xf32> to vector<2x32xbf16>
    %cst_354 = arith.constant dense<0.000000e+00> : vector<2x128xf32>
    %1126 = tpu.matmul %1125, %941, %cst_354 {dimension_numbers = #tpu.dot_dimension_numbers<[1], [0], [0], [1], [0, 0, 1, 1], [], []>} : vector<2x32xbf16>, vector<32x128xbf16>, vector<2x128xf32> -> vector<2x128xf32>
    %c2_355 = arith.constant 2 : index
    %c0_356 = arith.constant 0 : index
    %c0_357 = arith.constant 0 : index
    %1127 = vector.load %arg32[%c2_355, %c0_356, %c0_357] : memref<8x2x128xf32, #tpu.memory_space<vmem>>, vector<1x2x128xf32>
    %1128 = vector.shape_cast %1127 : vector<1x2x128xf32> to vector<2x128xf32>
    %1129 = vector.extract_strided_slice %1128 {offsets = [0, 0], sizes = [2, 64], strides = [1, 1]} : vector<2x128xf32> to vector<2x64xf32>
    %1130 = vector.extract_strided_slice %1126 {offsets = [0, 0], sizes = [2, 64], strides = [1, 1]} : vector<2x128xf32> to vector<2x64xf32>
    %1131 = arith.addf %1129, %1130 : vector<2x64xf32>
    %c5 = arith.constant 5 : index
    %c0_358 = arith.constant 0 : index
    %c0_359 = arith.constant 0 : index
    %1132 = vector.load %arg32[%c5, %c0_358, %c0_359] : memref<8x2x128xf32, #tpu.memory_space<vmem>>, vector<1x2x128xf32>
    %1133 = vector.shape_cast %1132 : vector<1x2x128xf32> to vector<2x128xf32>
    %1134 = vector.extract_strided_slice %1133 {offsets = [0, 64], sizes = [2, 64], strides = [1, 1]} : vector<2x128xf32> to vector<2x64xf32>
    %1135 = vector.extract_strided_slice %1126 {offsets = [0, 64], sizes = [2, 64], strides = [1, 1]} : vector<2x128xf32> to vector<2x64xf32>
    %1136 = arith.addf %1134, %1135 : vector<2x64xf32>
    %1137 = vector.extract_strided_slice %1131 {offsets = [0, 0], sizes = [2, 16], strides = [1, 1]} : vector<2x64xf32> to vector<2x16xf32>
    %1138 = arith.negf %1137 : vector<2x16xf32>
    %1139 = math.exp %1138 : vector<2x16xf32>
    %cst_360 = arith.constant 1.000000e+00 : f32
    %1140 = vector.broadcast %cst_360 : f32 to vector<2x16xf32>
    %1141 = arith.addf %1140, %1139 : vector<2x16xf32>
    %1142 = arith.divf %1140, %1141 : vector<2x16xf32>
    %1143 = vector.extract_strided_slice %1131 {offsets = [0, 16], sizes = [2, 16], strides = [1, 1]} : vector<2x64xf32> to vector<2x16xf32>
    %1144 = arith.negf %1143 : vector<2x16xf32>
    %1145 = math.exp %1144 : vector<2x16xf32>
    %cst_361 = arith.constant 1.000000e+00 : f32
    %1146 = vector.broadcast %cst_361 : f32 to vector<2x16xf32>
    %1147 = arith.addf %1146, %1145 : vector<2x16xf32>
    %1148 = arith.divf %1146, %1147 : vector<2x16xf32>
    %1149 = vector.extract_strided_slice %1131 {offsets = [0, 32], sizes = [2, 16], strides = [1, 1]} : vector<2x64xf32> to vector<2x16xf32>
    %1150 = math.tanh %1149 : vector<2x16xf32>
    %1151 = vector.extract_strided_slice %1131 {offsets = [0, 48], sizes = [2, 16], strides = [1, 1]} : vector<2x64xf32> to vector<2x16xf32>
    %1152 = arith.negf %1151 : vector<2x16xf32>
    %1153 = math.exp %1152 : vector<2x16xf32>
    %cst_362 = arith.constant 1.000000e+00 : f32
    %1154 = vector.broadcast %cst_362 : f32 to vector<2x16xf32>
    %1155 = arith.addf %1154, %1153 : vector<2x16xf32>
    %1156 = arith.divf %1154, %1155 : vector<2x16xf32>
    %1157 = arith.mulf %1148, %1109 : vector<2x16xf32>
    %1158 = arith.mulf %1142, %1150 : vector<2x16xf32>
    %1159 = arith.addf %1157, %1158 : vector<2x16xf32>
    %1160 = math.tanh %1159 : vector<2x16xf32>
    %1161 = arith.mulf %1156, %1160 : vector<2x16xf32>
    %1162 = vector.extract_strided_slice %1136 {offsets = [0, 0], sizes = [2, 16], strides = [1, 1]} : vector<2x64xf32> to vector<2x16xf32>
    %1163 = arith.negf %1162 : vector<2x16xf32>
    %1164 = math.exp %1163 : vector<2x16xf32>
    %cst_363 = arith.constant 1.000000e+00 : f32
    %1165 = vector.broadcast %cst_363 : f32 to vector<2x16xf32>
    %1166 = arith.addf %1165, %1164 : vector<2x16xf32>
    %1167 = arith.divf %1165, %1166 : vector<2x16xf32>
    %1168 = vector.extract_strided_slice %1136 {offsets = [0, 16], sizes = [2, 16], strides = [1, 1]} : vector<2x64xf32> to vector<2x16xf32>
    %1169 = arith.negf %1168 : vector<2x16xf32>
    %1170 = math.exp %1169 : vector<2x16xf32>
    %cst_364 = arith.constant 1.000000e+00 : f32
    %1171 = vector.broadcast %cst_364 : f32 to vector<2x16xf32>
    %1172 = arith.addf %1171, %1170 : vector<2x16xf32>
    %1173 = arith.divf %1171, %1172 : vector<2x16xf32>
    %1174 = vector.extract_strided_slice %1136 {offsets = [0, 32], sizes = [2, 16], strides = [1, 1]} : vector<2x64xf32> to vector<2x16xf32>
    %1175 = math.tanh %1174 : vector<2x16xf32>
    %1176 = vector.extract_strided_slice %1136 {offsets = [0, 48], sizes = [2, 16], strides = [1, 1]} : vector<2x64xf32> to vector<2x16xf32>
    %1177 = arith.negf %1176 : vector<2x16xf32>
    %1178 = math.exp %1177 : vector<2x16xf32>
    %cst_365 = arith.constant 1.000000e+00 : f32
    %1179 = vector.broadcast %cst_365 : f32 to vector<2x16xf32>
    %1180 = arith.addf %1179, %1178 : vector<2x16xf32>
    %1181 = arith.divf %1179, %1180 : vector<2x16xf32>
    %1182 = arith.mulf %1173, %1117 : vector<2x16xf32>
    %1183 = arith.mulf %1167, %1175 : vector<2x16xf32>
    %1184 = arith.addf %1182, %1183 : vector<2x16xf32>
    %1185 = math.tanh %1184 : vector<2x16xf32>
    %1186 = arith.mulf %1181, %1185 : vector<2x16xf32>
    %c2_i32_366 = arith.constant 2 : i32
    %1187 = vector.broadcast %c2_i32_366 : i32 to vector<2x1xi32>
    %1188 = arith.cmpi sgt, %931, %1187 : vector<2x1xi32>
    %c5_i32 = arith.constant 5 : i32
    %1189 = vector.broadcast %c5_i32 : i32 to vector<2x1xi32>
    %1190 = arith.cmpi sgt, %931, %1189 : vector<2x1xi32>
    %cst_367 = arith.constant 0.000000e+00 : f32
    %1191 = vector.shape_cast %1188 : vector<2x1xi1> to vector<2x1xi1>
    %1192 = vector.broadcast %1191 : vector<2x1xi1> to vector<2x16xi1>
    %1193 = vector.broadcast %cst_367 : f32 to vector<2x16xf32>
    %1194 = arith.select %1192, %1161, %1193 : vector<2x16xi1>, vector<2x16xf32>
    %cst_368 = arith.constant 0.000000e+00 : f32
    %1195 = vector.shape_cast %1188 : vector<2x1xi1> to vector<2x1xi1>
    %1196 = vector.broadcast %1195 : vector<2x1xi1> to vector<2x16xi1>
    %1197 = vector.broadcast %cst_368 : f32 to vector<2x16xf32>
    %1198 = arith.select %1196, %1159, %1197 : vector<2x16xi1>, vector<2x16xf32>
    %cst_369 = arith.constant 0.000000e+00 : f32
    %1199 = vector.shape_cast %1190 : vector<2x1xi1> to vector<2x1xi1>
    %1200 = vector.broadcast %1199 : vector<2x1xi1> to vector<2x16xi1>
    %1201 = vector.broadcast %cst_369 : f32 to vector<2x16xf32>
    %1202 = arith.select %1200, %1186, %1201 : vector<2x16xi1>, vector<2x16xf32>
    %cst_370 = arith.constant 0.000000e+00 : f32
    %1203 = vector.shape_cast %1190 : vector<2x1xi1> to vector<2x1xi1>
    %1204 = vector.broadcast %1203 : vector<2x1xi1> to vector<2x16xi1>
    %1205 = vector.broadcast %cst_370 : f32 to vector<2x16xf32>
    %1206 = arith.select %1204, %1184, %1205 : vector<2x16xi1>, vector<2x16xf32>
    %c2_371 = arith.constant 2 : index
    %c0_372 = arith.constant 0 : index
    %c0_373 = arith.constant 0 : index
    %1207 = vector.load %arg33[%c2_371, %c0_372, %c0_373] : memref<8x2x16xf32, #tpu.memory_space<vmem>>, vector<1x2x16xf32>
    %1208 = vector.shape_cast %1207 : vector<1x2x16xf32> to vector<2x16xf32>
    %1209 = vector.shape_cast %1194 : vector<2x16xf32> to vector<1x2x16xf32>
    tpu.vector_store %arg33[%c2_371, %c0_372, %c0_373], %1209 {strides = array<i32>} : memref<8x2x16xf32, #tpu.memory_space<vmem>>, vector<1x2x16xf32>,
    %c5_374 = arith.constant 5 : index
    %c0_375 = arith.constant 0 : index
    %c0_376 = arith.constant 0 : index
    %1210 = vector.load %arg34[%c5_374, %c0_375, %c0_376] : memref<8x2x16xf32, #tpu.memory_space<vmem>>, vector<1x2x16xf32>
    %1211 = vector.shape_cast %1210 : vector<1x2x16xf32> to vector<2x16xf32>
    %1212 = vector.shape_cast %1202 : vector<2x16xf32> to vector<1x2x16xf32>
    tpu.vector_store %arg34[%c5_374, %c0_375, %c0_376], %1212 {strides = array<i32>} : memref<8x2x16xf32, #tpu.memory_space<vmem>>, vector<1x2x16xf32>,
    %1213 = tpu.concatenate %1194, %1202 in 1 : vector<2x16xf32>, vector<2x16xf32> -> vector<2x32xf32>
    %1214 = arith.truncf %1213 : vector<2x32xf32> to vector<2x32xbf16>
    %cst_377 = arith.constant dense<0.000000e+00> : vector<2x128xf32>
    %1215 = tpu.matmul %1214, %941, %cst_377 {dimension_numbers = #tpu.dot_dimension_numbers<[1], [0], [0], [1], [0, 0, 1, 1], [], []>} : vector<2x32xbf16>, vector<32x128xbf16>, vector<2x128xf32> -> vector<2x128xf32>
    %c3_378 = arith.constant 3 : index
    %c0_379 = arith.constant 0 : index
    %c0_380 = arith.constant 0 : index
    %1216 = vector.load %arg32[%c3_378, %c0_379, %c0_380] : memref<8x2x128xf32, #tpu.memory_space<vmem>>, vector<1x2x128xf32>
    %1217 = vector.shape_cast %1216 : vector<1x2x128xf32> to vector<2x128xf32>
    %1218 = vector.extract_strided_slice %1217 {offsets = [0, 0], sizes = [2, 64], strides = [1, 1]} : vector<2x128xf32> to vector<2x64xf32>
    %1219 = vector.extract_strided_slice %1215 {offsets = [0, 0], sizes = [2, 64], strides = [1, 1]} : vector<2x128xf32> to vector<2x64xf32>
    %1220 = arith.addf %1218, %1219 : vector<2x64xf32>
    %c4_381 = arith.constant 4 : index
    %c0_382 = arith.constant 0 : index
    %c0_383 = arith.constant 0 : index
    %1221 = vector.load %arg32[%c4_381, %c0_382, %c0_383] : memref<8x2x128xf32, #tpu.memory_space<vmem>>, vector<1x2x128xf32>
    %1222 = vector.shape_cast %1221 : vector<1x2x128xf32> to vector<2x128xf32>
    %1223 = vector.extract_strided_slice %1222 {offsets = [0, 64], sizes = [2, 64], strides = [1, 1]} : vector<2x128xf32> to vector<2x64xf32>
    %1224 = vector.extract_strided_slice %1215 {offsets = [0, 64], sizes = [2, 64], strides = [1, 1]} : vector<2x128xf32> to vector<2x64xf32>
    %1225 = arith.addf %1223, %1224 : vector<2x64xf32>
    %1226 = vector.extract_strided_slice %1220 {offsets = [0, 0], sizes = [2, 16], strides = [1, 1]} : vector<2x64xf32> to vector<2x16xf32>
    %1227 = arith.negf %1226 : vector<2x16xf32>
    %1228 = math.exp %1227 : vector<2x16xf32>
    %cst_384 = arith.constant 1.000000e+00 : f32
    %1229 = vector.broadcast %cst_384 : f32 to vector<2x16xf32>
    %1230 = arith.addf %1229, %1228 : vector<2x16xf32>
    %1231 = arith.divf %1229, %1230 : vector<2x16xf32>
    %1232 = vector.extract_strided_slice %1220 {offsets = [0, 16], sizes = [2, 16], strides = [1, 1]} : vector<2x64xf32> to vector<2x16xf32>
    %1233 = arith.negf %1232 : vector<2x16xf32>
    %1234 = math.exp %1233 : vector<2x16xf32>
    %cst_385 = arith.constant 1.000000e+00 : f32
    %1235 = vector.broadcast %cst_385 : f32 to vector<2x16xf32>
    %1236 = arith.addf %1235, %1234 : vector<2x16xf32>
    %1237 = arith.divf %1235, %1236 : vector<2x16xf32>
    %1238 = vector.extract_strided_slice %1220 {offsets = [0, 32], sizes = [2, 16], strides = [1, 1]} : vector<2x64xf32> to vector<2x16xf32>
    %1239 = math.tanh %1238 : vector<2x16xf32>
    %1240 = vector.extract_strided_slice %1220 {offsets = [0, 48], sizes = [2, 16], strides = [1, 1]} : vector<2x64xf32> to vector<2x16xf32>
    %1241 = arith.negf %1240 : vector<2x16xf32>
    %1242 = math.exp %1241 : vector<2x16xf32>
    %cst_386 = arith.constant 1.000000e+00 : f32
    %1243 = vector.broadcast %cst_386 : f32 to vector<2x16xf32>
    %1244 = arith.addf %1243, %1242 : vector<2x16xf32>
    %1245 = arith.divf %1243, %1244 : vector<2x16xf32>
    %1246 = arith.mulf %1237, %1198 : vector<2x16xf32>
    %1247 = arith.mulf %1231, %1239 : vector<2x16xf32>
    %1248 = arith.addf %1246, %1247 : vector<2x16xf32>
    %1249 = math.tanh %1248 : vector<2x16xf32>
    %1250 = arith.mulf %1245, %1249 : vector<2x16xf32>
    %1251 = vector.extract_strided_slice %1225 {offsets = [0, 0], sizes = [2, 16], strides = [1, 1]} : vector<2x64xf32> to vector<2x16xf32>
    %1252 = arith.negf %1251 : vector<2x16xf32>
    %1253 = math.exp %1252 : vector<2x16xf32>
    %cst_387 = arith.constant 1.000000e+00 : f32
    %1254 = vector.broadcast %cst_387 : f32 to vector<2x16xf32>
    %1255 = arith.addf %1254, %1253 : vector<2x16xf32>
    %1256 = arith.divf %1254, %1255 : vector<2x16xf32>
    %1257 = vector.extract_strided_slice %1225 {offsets = [0, 16], sizes = [2, 16], strides = [1, 1]} : vector<2x64xf32> to vector<2x16xf32>
    %1258 = arith.negf %1257 : vector<2x16xf32>
    %1259 = math.exp %1258 : vector<2x16xf32>
    %cst_388 = arith.constant 1.000000e+00 : f32
    %1260 = vector.broadcast %cst_388 : f32 to vector<2x16xf32>
    %1261 = arith.addf %1260, %1259 : vector<2x16xf32>
    %1262 = arith.divf %1260, %1261 : vector<2x16xf32>
    %1263 = vector.extract_strided_slice %1225 {offsets = [0, 32], sizes = [2, 16], strides = [1, 1]} : vector<2x64xf32> to vector<2x16xf32>
    %1264 = math.tanh %1263 : vector<2x16xf32>
    %1265 = vector.extract_strided_slice %1225 {offsets = [0, 48], sizes = [2, 16], strides = [1, 1]} : vector<2x64xf32> to vector<2x16xf32>
    %1266 = arith.negf %1265 : vector<2x16xf32>
    %1267 = math.exp %1266 : vector<2x16xf32>
    %cst_389 = arith.constant 1.000000e+00 : f32
    %1268 = vector.broadcast %cst_389 : f32 to vector<2x16xf32>
    %1269 = arith.addf %1268, %1267 : vector<2x16xf32>
    %1270 = arith.divf %1268, %1269 : vector<2x16xf32>
    %1271 = arith.mulf %1262, %1206 : vector<2x16xf32>
    %1272 = arith.mulf %1256, %1264 : vector<2x16xf32>
    %1273 = arith.addf %1271, %1272 : vector<2x16xf32>
    %1274 = math.tanh %1273 : vector<2x16xf32>
    %1275 = arith.mulf %1270, %1274 : vector<2x16xf32>
    %c3_i32_390 = arith.constant 3 : i32
    %1276 = vector.broadcast %c3_i32_390 : i32 to vector<2x1xi32>
    %1277 = arith.cmpi sgt, %931, %1276 : vector<2x1xi32>
    %c4_i32_391 = arith.constant 4 : i32
    %1278 = vector.broadcast %c4_i32_391 : i32 to vector<2x1xi32>
    %1279 = arith.cmpi sgt, %931, %1278 : vector<2x1xi32>
    %cst_392 = arith.constant 0.000000e+00 : f32
    %1280 = vector.shape_cast %1277 : vector<2x1xi1> to vector<2x1xi1>
    %1281 = vector.broadcast %1280 : vector<2x1xi1> to vector<2x16xi1>
    %1282 = vector.broadcast %cst_392 : f32 to vector<2x16xf32>
    %1283 = arith.select %1281, %1250, %1282 : vector<2x16xi1>, vector<2x16xf32>
    %cst_393 = arith.constant 0.000000e+00 : f32
    %1284 = vector.shape_cast %1277 : vector<2x1xi1> to vector<2x1xi1>
    %1285 = vector.broadcast %1284 : vector<2x1xi1> to vector<2x16xi1>
    %1286 = vector.broadcast %cst_393 : f32 to vector<2x16xf32>
    %1287 = arith.select %1285, %1248, %1286 : vector<2x16xi1>, vector<2x16xf32>
    %cst_394 = arith.constant 0.000000e+00 : f32
    %1288 = vector.shape_cast %1279 : vector<2x1xi1> to vector<2x1xi1>
    %1289 = vector.broadcast %1288 : vector<2x1xi1> to vector<2x16xi1>
    %1290 = vector.broadcast %cst_394 : f32 to vector<2x16xf32>
    %1291 = arith.select %1289, %1275, %1290 : vector<2x16xi1>, vector<2x16xf32>
    %cst_395 = arith.constant 0.000000e+00 : f32
    %1292 = vector.shape_cast %1279 : vector<2x1xi1> to vector<2x1xi1>
    %1293 = vector.broadcast %1292 : vector<2x1xi1> to vector<2x16xi1>
    %1294 = vector.broadcast %cst_395 : f32 to vector<2x16xf32>
    %1295 = arith.select %1293, %1273, %1294 : vector<2x16xi1>, vector<2x16xf32>
    %c3_396 = arith.constant 3 : index
    %c0_397 = arith.constant 0 : index
    %c0_398 = arith.constant 0 : index
    %1296 = vector.load %arg33[%c3_396, %c0_397, %c0_398] : memref<8x2x16xf32, #tpu.memory_space<vmem>>, vector<1x2x16xf32>
    %1297 = vector.shape_cast %1296 : vector<1x2x16xf32> to vector<2x16xf32>
    %1298 = vector.shape_cast %1283 : vector<2x16xf32> to vector<1x2x16xf32>
    tpu.vector_store %arg33[%c3_396, %c0_397, %c0_398], %1298 {strides = array<i32>} : memref<8x2x16xf32, #tpu.memory_space<vmem>>, vector<1x2x16xf32>,
    %c4_399 = arith.constant 4 : index
    %c0_400 = arith.constant 0 : index
    %c0_401 = arith.constant 0 : index
    %1299 = vector.load %arg34[%c4_399, %c0_400, %c0_401] : memref<8x2x16xf32, #tpu.memory_space<vmem>>, vector<1x2x16xf32>
    %1300 = vector.shape_cast %1299 : vector<1x2x16xf32> to vector<2x16xf32>
    %1301 = vector.shape_cast %1291 : vector<2x16xf32> to vector<1x2x16xf32>
    tpu.vector_store %arg34[%c4_399, %c0_400, %c0_401], %1301 {strides = array<i32>} : memref<8x2x16xf32, #tpu.memory_space<vmem>>, vector<1x2x16xf32>,
    %1302 = tpu.concatenate %1283, %1291 in 1 : vector<2x16xf32>, vector<2x16xf32> -> vector<2x32xf32>
    %1303 = arith.truncf %1302 : vector<2x32xf32> to vector<2x32xbf16>
    %cst_402 = arith.constant dense<0.000000e+00> : vector<2x128xf32>
    %1304 = tpu.matmul %1303, %941, %cst_402 {dimension_numbers = #tpu.dot_dimension_numbers<[1], [0], [0], [1], [0, 0, 1, 1], [], []>} : vector<2x32xbf16>, vector<32x128xbf16>, vector<2x128xf32> -> vector<2x128xf32>
    %c4_403 = arith.constant 4 : index
    %c0_404 = arith.constant 0 : index
    %c0_405 = arith.constant 0 : index
    %1305 = vector.load %arg32[%c4_403, %c0_404, %c0_405] : memref<8x2x128xf32, #tpu.memory_space<vmem>>, vector<1x2x128xf32>
    %1306 = vector.shape_cast %1305 : vector<1x2x128xf32> to vector<2x128xf32>
    %1307 = vector.extract_strided_slice %1306 {offsets = [0, 0], sizes = [2, 64], strides = [1, 1]} : vector<2x128xf32> to vector<2x64xf32>
    %1308 = vector.extract_strided_slice %1304 {offsets = [0, 0], sizes = [2, 64], strides = [1, 1]} : vector<2x128xf32> to vector<2x64xf32>
    %1309 = arith.addf %1307, %1308 : vector<2x64xf32>
    %c3_406 = arith.constant 3 : index
    %c0_407 = arith.constant 0 : index
    %c0_408 = arith.constant 0 : index
    %1310 = vector.load %arg32[%c3_406, %c0_407, %c0_408] : memref<8x2x128xf32, #tpu.memory_space<vmem>>, vector<1x2x128xf32>
    %1311 = vector.shape_cast %1310 : vector<1x2x128xf32> to vector<2x128xf32>
    %1312 = vector.extract_strided_slice %1311 {offsets = [0, 64], sizes = [2, 64], strides = [1, 1]} : vector<2x128xf32> to vector<2x64xf32>
    %1313 = vector.extract_strided_slice %1304 {offsets = [0, 64], sizes = [2, 64], strides = [1, 1]} : vector<2x128xf32> to vector<2x64xf32>
    %1314 = arith.addf %1312, %1313 : vector<2x64xf32>
    %1315 = vector.extract_strided_slice %1309 {offsets = [0, 0], sizes = [2, 16], strides = [1, 1]} : vector<2x64xf32> to vector<2x16xf32>
    %1316 = arith.negf %1315 : vector<2x16xf32>
    %1317 = math.exp %1316 : vector<2x16xf32>
    %cst_409 = arith.constant 1.000000e+00 : f32
    %1318 = vector.broadcast %cst_409 : f32 to vector<2x16xf32>
    %1319 = arith.addf %1318, %1317 : vector<2x16xf32>
    %1320 = arith.divf %1318, %1319 : vector<2x16xf32>
    %1321 = vector.extract_strided_slice %1309 {offsets = [0, 16], sizes = [2, 16], strides = [1, 1]} : vector<2x64xf32> to vector<2x16xf32>
    %1322 = arith.negf %1321 : vector<2x16xf32>
    %1323 = math.exp %1322 : vector<2x16xf32>
    %cst_410 = arith.constant 1.000000e+00 : f32
    %1324 = vector.broadcast %cst_410 : f32 to vector<2x16xf32>
    %1325 = arith.addf %1324, %1323 : vector<2x16xf32>
    %1326 = arith.divf %1324, %1325 : vector<2x16xf32>
    %1327 = vector.extract_strided_slice %1309 {offsets = [0, 32], sizes = [2, 16], strides = [1, 1]} : vector<2x64xf32> to vector<2x16xf32>
    %1328 = math.tanh %1327 : vector<2x16xf32>
    %1329 = vector.extract_strided_slice %1309 {offsets = [0, 48], sizes = [2, 16], strides = [1, 1]} : vector<2x64xf32> to vector<2x16xf32>
    %1330 = arith.negf %1329 : vector<2x16xf32>
    %1331 = math.exp %1330 : vector<2x16xf32>
    %cst_411 = arith.constant 1.000000e+00 : f32
    %1332 = vector.broadcast %cst_411 : f32 to vector<2x16xf32>
    %1333 = arith.addf %1332, %1331 : vector<2x16xf32>
    %1334 = arith.divf %1332, %1333 : vector<2x16xf32>
    %1335 = arith.mulf %1326, %1287 : vector<2x16xf32>
    %1336 = arith.mulf %1320, %1328 : vector<2x16xf32>
    %1337 = arith.addf %1335, %1336 : vector<2x16xf32>
    %1338 = math.tanh %1337 : vector<2x16xf32>
    %1339 = arith.mulf %1334, %1338 : vector<2x16xf32>
    %1340 = vector.extract_strided_slice %1314 {offsets = [0, 0], sizes = [2, 16], strides = [1, 1]} : vector<2x64xf32> to vector<2x16xf32>
    %1341 = arith.negf %1340 : vector<2x16xf32>
    %1342 = math.exp %1341 : vector<2x16xf32>
    %cst_412 = arith.constant 1.000000e+00 : f32
    %1343 = vector.broadcast %cst_412 : f32 to vector<2x16xf32>
    %1344 = arith.addf %1343, %1342 : vector<2x16xf32>
    %1345 = arith.divf %1343, %1344 : vector<2x16xf32>
    %1346 = vector.extract_strided_slice %1314 {offsets = [0, 16], sizes = [2, 16], strides = [1, 1]} : vector<2x64xf32> to vector<2x16xf32>
    %1347 = arith.negf %1346 : vector<2x16xf32>
    %1348 = math.exp %1347 : vector<2x16xf32>
    %cst_413 = arith.constant 1.000000e+00 : f32
    %1349 = vector.broadcast %cst_413 : f32 to vector<2x16xf32>
    %1350 = arith.addf %1349, %1348 : vector<2x16xf32>
    %1351 = arith.divf %1349, %1350 : vector<2x16xf32>
    %1352 = vector.extract_strided_slice %1314 {offsets = [0, 32], sizes = [2, 16], strides = [1, 1]} : vector<2x64xf32> to vector<2x16xf32>
    %1353 = math.tanh %1352 : vector<2x16xf32>
    %1354 = vector.extract_strided_slice %1314 {offsets = [0, 48], sizes = [2, 16], strides = [1, 1]} : vector<2x64xf32> to vector<2x16xf32>
    %1355 = arith.negf %1354 : vector<2x16xf32>
    %1356 = math.exp %1355 : vector<2x16xf32>
    %cst_414 = arith.constant 1.000000e+00 : f32
    %1357 = vector.broadcast %cst_414 : f32 to vector<2x16xf32>
    %1358 = arith.addf %1357, %1356 : vector<2x16xf32>
    %1359 = arith.divf %1357, %1358 : vector<2x16xf32>
    %1360 = arith.mulf %1351, %1295 : vector<2x16xf32>
    %1361 = arith.mulf %1345, %1353 : vector<2x16xf32>
    %1362 = arith.addf %1360, %1361 : vector<2x16xf32>
    %1363 = math.tanh %1362 : vector<2x16xf32>
    %1364 = arith.mulf %1359, %1363 : vector<2x16xf32>
    %c4_i32_415 = arith.constant 4 : i32
    %1365 = vector.broadcast %c4_i32_415 : i32 to vector<2x1xi32>
    %1366 = arith.cmpi sgt, %931, %1365 : vector<2x1xi32>
    %c3_i32_416 = arith.constant 3 : i32
    %1367 = vector.broadcast %c3_i32_416 : i32 to vector<2x1xi32>
    %1368 = arith.cmpi sgt, %931, %1367 : vector<2x1xi32>
    %cst_417 = arith.constant 0.000000e+00 : f32
    %1369 = vector.shape_cast %1366 : vector<2x1xi1> to vector<2x1xi1>
    %1370 = vector.broadcast %1369 : vector<2x1xi1> to vector<2x16xi1>
    %1371 = vector.broadcast %cst_417 : f32 to vector<2x16xf32>
    %1372 = arith.select %1370, %1339, %1371 : vector<2x16xi1>, vector<2x16xf32>
    %cst_418 = arith.constant 0.000000e+00 : f32
    %1373 = vector.shape_cast %1366 : vector<2x1xi1> to vector<2x1xi1>
    %1374 = vector.broadcast %1373 : vector<2x1xi1> to vector<2x16xi1>
    %1375 = vector.broadcast %cst_418 : f32 to vector<2x16xf32>
    %1376 = arith.select %1374, %1337, %1375 : vector<2x16xi1>, vector<2x16xf32>
    %cst_419 = arith.constant 0.000000e+00 : f32
    %1377 = vector.shape_cast %1368 : vector<2x1xi1> to vector<2x1xi1>
    %1378 = vector.broadcast %1377 : vector<2x1xi1> to vector<2x16xi1>
    %1379 = vector.broadcast %cst_419 : f32 to vector<2x16xf32>
    %1380 = arith.select %1378, %1364, %1379 : vector<2x16xi1>, vector<2x16xf32>
    %cst_420 = arith.constant 0.000000e+00 : f32
    %1381 = vector.shape_cast %1368 : vector<2x1xi1> to vector<2x1xi1>
    %1382 = vector.broadcast %1381 : vector<2x1xi1> to vector<2x16xi1>
    %1383 = vector.broadcast %cst_420 : f32 to vector<2x16xf32>
    %1384 = arith.select %1382, %1362, %1383 : vector<2x16xi1>, vector<2x16xf32>
    %c4_421 = arith.constant 4 : index
    %c0_422 = arith.constant 0 : index
    %c0_423 = arith.constant 0 : index
    %1385 = vector.load %arg33[%c4_421, %c0_422, %c0_423] : memref<8x2x16xf32, #tpu.memory_space<vmem>>, vector<1x2x16xf32>
    %1386 = vector.shape_cast %1385 : vector<1x2x16xf32> to vector<2x16xf32>
    %1387 = vector.shape_cast %1372 : vector<2x16xf32> to vector<1x2x16xf32>
    tpu.vector_store %arg33[%c4_421, %c0_422, %c0_423], %1387 {strides = array<i32>} : memref<8x2x16xf32, #tpu.memory_space<vmem>>, vector<1x2x16xf32>,
    %c3_424 = arith.constant 3 : index
    %c0_425 = arith.constant 0 : index
    %c0_426 = arith.constant 0 : index
    %1388 = vector.load %arg34[%c3_424, %c0_425, %c0_426] : memref<8x2x16xf32, #tpu.memory_space<vmem>>, vector<1x2x16xf32>
    %1389 = vector.shape_cast %1388 : vector<1x2x16xf32> to vector<2x16xf32>
    %1390 = vector.shape_cast %1380 : vector<2x16xf32> to vector<1x2x16xf32>
    tpu.vector_store %arg34[%c3_424, %c0_425, %c0_426], %1390 {strides = array<i32>} : memref<8x2x16xf32, #tpu.memory_space<vmem>>, vector<1x2x16xf32>,
    %1391 = tpu.concatenate %1372, %1380 in 1 : vector<2x16xf32>, vector<2x16xf32> -> vector<2x32xf32>
    %1392 = arith.truncf %1391 : vector<2x32xf32> to vector<2x32xbf16>
    %cst_427 = arith.constant dense<0.000000e+00> : vector<2x128xf32>
    %1393 = tpu.matmul %1392, %941, %cst_427 {dimension_numbers = #tpu.dot_dimension_numbers<[1], [0], [0], [1], [0, 0, 1, 1], [], []>} : vector<2x32xbf16>, vector<32x128xbf16>, vector<2x128xf32> -> vector<2x128xf32>
    %c5_428 = arith.constant 5 : index
    %c0_429 = arith.constant 0 : index
    %c0_430 = arith.constant 0 : index
    %1394 = vector.load %arg32[%c5_428, %c0_429, %c0_430] : memref<8x2x128xf32, #tpu.memory_space<vmem>>, vector<1x2x128xf32>
    %1395 = vector.shape_cast %1394 : vector<1x2x128xf32> to vector<2x128xf32>
    %1396 = vector.extract_strided_slice %1395 {offsets = [0, 0], sizes = [2, 64], strides = [1, 1]} : vector<2x128xf32> to vector<2x64xf32>
    %1397 = vector.extract_strided_slice %1393 {offsets = [0, 0], sizes = [2, 64], strides = [1, 1]} : vector<2x128xf32> to vector<2x64xf32>
    %1398 = arith.addf %1396, %1397 : vector<2x64xf32>
    %c2_431 = arith.constant 2 : index
    %c0_432 = arith.constant 0 : index
    %c0_433 = arith.constant 0 : index
    %1399 = vector.load %arg32[%c2_431, %c0_432, %c0_433] : memref<8x2x128xf32, #tpu.memory_space<vmem>>, vector<1x2x128xf32>
    %1400 = vector.shape_cast %1399 : vector<1x2x128xf32> to vector<2x128xf32>
    %1401 = vector.extract_strided_slice %1400 {offsets = [0, 64], sizes = [2, 64], strides = [1, 1]} : vector<2x128xf32> to vector<2x64xf32>
    %1402 = vector.extract_strided_slice %1393 {offsets = [0, 64], sizes = [2, 64], strides = [1, 1]} : vector<2x128xf32> to vector<2x64xf32>
    %1403 = arith.addf %1401, %1402 : vector<2x64xf32>
    %1404 = vector.extract_strided_slice %1398 {offsets = [0, 0], sizes = [2, 16], strides = [1, 1]} : vector<2x64xf32> to vector<2x16xf32>
    %1405 = arith.negf %1404 : vector<2x16xf32>
    %1406 = math.exp %1405 : vector<2x16xf32>
    %cst_434 = arith.constant 1.000000e+00 : f32
    %1407 = vector.broadcast %cst_434 : f32 to vector<2x16xf32>
    %1408 = arith.addf %1407, %1406 : vector<2x16xf32>
    %1409 = arith.divf %1407, %1408 : vector<2x16xf32>
    %1410 = vector.extract_strided_slice %1398 {offsets = [0, 16], sizes = [2, 16], strides = [1, 1]} : vector<2x64xf32> to vector<2x16xf32>
    %1411 = arith.negf %1410 : vector<2x16xf32>
    %1412 = math.exp %1411 : vector<2x16xf32>
    %cst_435 = arith.constant 1.000000e+00 : f32
    %1413 = vector.broadcast %cst_435 : f32 to vector<2x16xf32>
    %1414 = arith.addf %1413, %1412 : vector<2x16xf32>
    %1415 = arith.divf %1413, %1414 : vector<2x16xf32>
    %1416 = vector.extract_strided_slice %1398 {offsets = [0, 32], sizes = [2, 16], strides = [1, 1]} : vector<2x64xf32> to vector<2x16xf32>
    %1417 = math.tanh %1416 : vector<2x16xf32>
    %1418 = vector.extract_strided_slice %1398 {offsets = [0, 48], sizes = [2, 16], strides = [1, 1]} : vector<2x64xf32> to vector<2x16xf32>
    %1419 = arith.negf %1418 : vector<2x16xf32>
    %1420 = math.exp %1419 : vector<2x16xf32>
    %cst_436 = arith.constant 1.000000e+00 : f32
    %1421 = vector.broadcast %cst_436 : f32 to vector<2x16xf32>
    %1422 = arith.addf %1421, %1420 : vector<2x16xf32>
    %1423 = arith.divf %1421, %1422 : vector<2x16xf32>
    %1424 = arith.mulf %1415, %1376 : vector<2x16xf32>
    %1425 = arith.mulf %1409, %1417 : vector<2x16xf32>
    %1426 = arith.addf %1424, %1425 : vector<2x16xf32>
    %1427 = math.tanh %1426 : vector<2x16xf32>
    %1428 = arith.mulf %1423, %1427 : vector<2x16xf32>
    %1429 = vector.extract_strided_slice %1403 {offsets = [0, 0], sizes = [2, 16], strides = [1, 1]} : vector<2x64xf32> to vector<2x16xf32>
    %1430 = arith.negf %1429 : vector<2x16xf32>
    %1431 = math.exp %1430 : vector<2x16xf32>
    %cst_437 = arith.constant 1.000000e+00 : f32
    %1432 = vector.broadcast %cst_437 : f32 to vector<2x16xf32>
    %1433 = arith.addf %1432, %1431 : vector<2x16xf32>
    %1434 = arith.divf %1432, %1433 : vector<2x16xf32>
    %1435 = vector.extract_strided_slice %1403 {offsets = [0, 16], sizes = [2, 16], strides = [1, 1]} : vector<2x64xf32> to vector<2x16xf32>
    %1436 = arith.negf %1435 : vector<2x16xf32>
    %1437 = math.exp %1436 : vector<2x16xf32>
    %cst_438 = arith.constant 1.000000e+00 : f32
    %1438 = vector.broadcast %cst_438 : f32 to vector<2x16xf32>
    %1439 = arith.addf %1438, %1437 : vector<2x16xf32>
    %1440 = arith.divf %1438, %1439 : vector<2x16xf32>
    %1441 = vector.extract_strided_slice %1403 {offsets = [0, 32], sizes = [2, 16], strides = [1, 1]} : vector<2x64xf32> to vector<2x16xf32>
    %1442 = math.tanh %1441 : vector<2x16xf32>
    %1443 = vector.extract_strided_slice %1403 {offsets = [0, 48], sizes = [2, 16], strides = [1, 1]} : vector<2x64xf32> to vector<2x16xf32>
    %1444 = arith.negf %1443 : vector<2x16xf32>
    %1445 = math.exp %1444 : vector<2x16xf32>
    %cst_439 = arith.constant 1.000000e+00 : f32
    %1446 = vector.broadcast %cst_439 : f32 to vector<2x16xf32>
    %1447 = arith.addf %1446, %1445 : vector<2x16xf32>
    %1448 = arith.divf %1446, %1447 : vector<2x16xf32>
    %1449 = arith.mulf %1440, %1384 : vector<2x16xf32>
    %1450 = arith.mulf %1434, %1442 : vector<2x16xf32>
    %1451 = arith.addf %1449, %1450 : vector<2x16xf32>
    %1452 = math.tanh %1451 : vector<2x16xf32>
    %1453 = arith.mulf %1448, %1452 : vector<2x16xf32>
    %c5_i32_440 = arith.constant 5 : i32
    %1454 = vector.broadcast %c5_i32_440 : i32 to vector<2x1xi32>
    %1455 = arith.cmpi sgt, %931, %1454 : vector<2x1xi32>
    %c2_i32_441 = arith.constant 2 : i32
    %1456 = vector.broadcast %c2_i32_441 : i32 to vector<2x1xi32>
    %1457 = arith.cmpi sgt, %931, %1456 : vector<2x1xi32>
    %cst_442 = arith.constant 0.000000e+00 : f32
    %1458 = vector.shape_cast %1455 : vector<2x1xi1> to vector<2x1xi1>
    %1459 = vector.broadcast %1458 : vector<2x1xi1> to vector<2x16xi1>
    %1460 = vector.broadcast %cst_442 : f32 to vector<2x16xf32>
    %1461 = arith.select %1459, %1428, %1460 : vector<2x16xi1>, vector<2x16xf32>
    %cst_443 = arith.constant 0.000000e+00 : f32
    %1462 = vector.shape_cast %1455 : vector<2x1xi1> to vector<2x1xi1>
    %1463 = vector.broadcast %1462 : vector<2x1xi1> to vector<2x16xi1>
    %1464 = vector.broadcast %cst_443 : f32 to vector<2x16xf32>
    %1465 = arith.select %1463, %1426, %1464 : vector<2x16xi1>, vector<2x16xf32>
    %cst_444 = arith.constant 0.000000e+00 : f32
    %1466 = vector.shape_cast %1457 : vector<2x1xi1> to vector<2x1xi1>
    %1467 = vector.broadcast %1466 : vector<2x1xi1> to vector<2x16xi1>
    %1468 = vector.broadcast %cst_444 : f32 to vector<2x16xf32>
    %1469 = arith.select %1467, %1453, %1468 : vector<2x16xi1>, vector<2x16xf32>
    %cst_445 = arith.constant 0.000000e+00 : f32
    %1470 = vector.shape_cast %1457 : vector<2x1xi1> to vector<2x1xi1>
    %1471 = vector.broadcast %1470 : vector<2x1xi1> to vector<2x16xi1>
    %1472 = vector.broadcast %cst_445 : f32 to vector<2x16xf32>
    %1473 = arith.select %1471, %1451, %1472 : vector<2x16xi1>, vector<2x16xf32>
    %c5_446 = arith.constant 5 : index
    %c0_447 = arith.constant 0 : index
    %c0_448 = arith.constant 0 : index
    %1474 = vector.load %arg33[%c5_446, %c0_447, %c0_448] : memref<8x2x16xf32, #tpu.memory_space<vmem>>, vector<1x2x16xf32>
    %1475 = vector.shape_cast %1474 : vector<1x2x16xf32> to vector<2x16xf32>
    %1476 = vector.shape_cast %1461 : vector<2x16xf32> to vector<1x2x16xf32>
    tpu.vector_store %arg33[%c5_446, %c0_447, %c0_448], %1476 {strides = array<i32>} : memref<8x2x16xf32, #tpu.memory_space<vmem>>, vector<1x2x16xf32>,
    %c2_449 = arith.constant 2 : index
    %c0_450 = arith.constant 0 : index
    %c0_451 = arith.constant 0 : index
    %1477 = vector.load %arg34[%c2_449, %c0_450, %c0_451] : memref<8x2x16xf32, #tpu.memory_space<vmem>>, vector<1x2x16xf32>
    %1478 = vector.shape_cast %1477 : vector<1x2x16xf32> to vector<2x16xf32>
    %1479 = vector.shape_cast %1469 : vector<2x16xf32> to vector<1x2x16xf32>
    tpu.vector_store %arg34[%c2_449, %c0_450, %c0_451], %1479 {strides = array<i32>} : memref<8x2x16xf32, #tpu.memory_space<vmem>>, vector<1x2x16xf32>,
    %1480 = tpu.concatenate %1461, %1469 in 1 : vector<2x16xf32>, vector<2x16xf32> -> vector<2x32xf32>
    %1481 = arith.truncf %1480 : vector<2x32xf32> to vector<2x32xbf16>
    %cst_452 = arith.constant dense<0.000000e+00> : vector<2x128xf32>
    %1482 = tpu.matmul %1481, %941, %cst_452 {dimension_numbers = #tpu.dot_dimension_numbers<[1], [0], [0], [1], [0, 0, 1, 1], [], []>} : vector<2x32xbf16>, vector<32x128xbf16>, vector<2x128xf32> -> vector<2x128xf32>
    %c6_453 = arith.constant 6 : index
    %c0_454 = arith.constant 0 : index
    %c0_455 = arith.constant 0 : index
    %1483 = vector.load %arg32[%c6_453, %c0_454, %c0_455] : memref<8x2x128xf32, #tpu.memory_space<vmem>>, vector<1x2x128xf32>
    %1484 = vector.shape_cast %1483 : vector<1x2x128xf32> to vector<2x128xf32>
    %1485 = vector.extract_strided_slice %1484 {offsets = [0, 0], sizes = [2, 64], strides = [1, 1]} : vector<2x128xf32> to vector<2x64xf32>
    %1486 = vector.extract_strided_slice %1482 {offsets = [0, 0], sizes = [2, 64], strides = [1, 1]} : vector<2x128xf32> to vector<2x64xf32>
    %1487 = arith.addf %1485, %1486 : vector<2x64xf32>
    %c1_456 = arith.constant 1 : index
    %c0_457 = arith.constant 0 : index
    %c0_458 = arith.constant 0 : index
    %1488 = vector.load %arg32[%c1_456, %c0_457, %c0_458] : memref<8x2x128xf32, #tpu.memory_space<vmem>>, vector<1x2x128xf32>
    %1489 = vector.shape_cast %1488 : vector<1x2x128xf32> to vector<2x128xf32>
    %1490 = vector.extract_strided_slice %1489 {offsets = [0, 64], sizes = [2, 64], strides = [1, 1]} : vector<2x128xf32> to vector<2x64xf32>
    %1491 = vector.extract_strided_slice %1482 {offsets = [0, 64], sizes = [2, 64], strides = [1, 1]} : vector<2x128xf32> to vector<2x64xf32>
    %1492 = arith.addf %1490, %1491 : vector<2x64xf32>
    %1493 = vector.extract_strided_slice %1487 {offsets = [0, 0], sizes = [2, 16], strides = [1, 1]} : vector<2x64xf32> to vector<2x16xf32>
    %1494 = arith.negf %1493 : vector<2x16xf32>
    %1495 = math.exp %1494 : vector<2x16xf32>
    %cst_459 = arith.constant 1.000000e+00 : f32
    %1496 = vector.broadcast %cst_459 : f32 to vector<2x16xf32>
    %1497 = arith.addf %1496, %1495 : vector<2x16xf32>
    %1498 = arith.divf %1496, %1497 : vector<2x16xf32>
    %1499 = vector.extract_strided_slice %1487 {offsets = [0, 16], sizes = [2, 16], strides = [1, 1]} : vector<2x64xf32> to vector<2x16xf32>
    %1500 = arith.negf %1499 : vector<2x16xf32>
    %1501 = math.exp %1500 : vector<2x16xf32>
    %cst_460 = arith.constant 1.000000e+00 : f32
    %1502 = vector.broadcast %cst_460 : f32 to vector<2x16xf32>
    %1503 = arith.addf %1502, %1501 : vector<2x16xf32>
    %1504 = arith.divf %1502, %1503 : vector<2x16xf32>
    %1505 = vector.extract_strided_slice %1487 {offsets = [0, 32], sizes = [2, 16], strides = [1, 1]} : vector<2x64xf32> to vector<2x16xf32>
    %1506 = math.tanh %1505 : vector<2x16xf32>
    %1507 = vector.extract_strided_slice %1487 {offsets = [0, 48], sizes = [2, 16], strides = [1, 1]} : vector<2x64xf32> to vector<2x16xf32>
    %1508 = arith.negf %1507 : vector<2x16xf32>
    %1509 = math.exp %1508 : vector<2x16xf32>
    %cst_461 = arith.constant 1.000000e+00 : f32
    %1510 = vector.broadcast %cst_461 : f32 to vector<2x16xf32>
    %1511 = arith.addf %1510, %1509 : vector<2x16xf32>
    %1512 = arith.divf %1510, %1511 : vector<2x16xf32>
    %1513 = arith.mulf %1504, %1465 : vector<2x16xf32>
    %1514 = arith.mulf %1498, %1506 : vector<2x16xf32>
    %1515 = arith.addf %1513, %1514 : vector<2x16xf32>
    %1516 = math.tanh %1515 : vector<2x16xf32>
    %1517 = arith.mulf %1512, %1516 : vector<2x16xf32>
    %1518 = vector.extract_strided_slice %1492 {offsets = [0, 0], sizes = [2, 16], strides = [1, 1]} : vector<2x64xf32> to vector<2x16xf32>
    %1519 = arith.negf %1518 : vector<2x16xf32>
    %1520 = math.exp %1519 : vector<2x16xf32>
    %cst_462 = arith.constant 1.000000e+00 : f32
    %1521 = vector.broadcast %cst_462 : f32 to vector<2x16xf32>
    %1522 = arith.addf %1521, %1520 : vector<2x16xf32>
    %1523 = arith.divf %1521, %1522 : vector<2x16xf32>
    %1524 = vector.extract_strided_slice %1492 {offsets = [0, 16], sizes = [2, 16], strides = [1, 1]} : vector<2x64xf32> to vector<2x16xf32>
    %1525 = arith.negf %1524 : vector<2x16xf32>
    %1526 = math.exp %1525 : vector<2x16xf32>
    %cst_463 = arith.constant 1.000000e+00 : f32
    %1527 = vector.broadcast %cst_463 : f32 to vector<2x16xf32>
    %1528 = arith.addf %1527, %1526 : vector<2x16xf32>
    %1529 = arith.divf %1527, %1528 : vector<2x16xf32>
    %1530 = vector.extract_strided_slice %1492 {offsets = [0, 32], sizes = [2, 16], strides = [1, 1]} : vector<2x64xf32> to vector<2x16xf32>
    %1531 = math.tanh %1530 : vector<2x16xf32>
    %1532 = vector.extract_strided_slice %1492 {offsets = [0, 48], sizes = [2, 16], strides = [1, 1]} : vector<2x64xf32> to vector<2x16xf32>
    %1533 = arith.negf %1532 : vector<2x16xf32>
    %1534 = math.exp %1533 : vector<2x16xf32>
    %cst_464 = arith.constant 1.000000e+00 : f32
    %1535 = vector.broadcast %cst_464 : f32 to vector<2x16xf32>
    %1536 = arith.addf %1535, %1534 : vector<2x16xf32>
    %1537 = arith.divf %1535, %1536 : vector<2x16xf32>
    %1538 = arith.mulf %1529, %1473 : vector<2x16xf32>
    %1539 = arith.mulf %1523, %1531 : vector<2x16xf32>
    %1540 = arith.addf %1538, %1539 : vector<2x16xf32>
    %1541 = math.tanh %1540 : vector<2x16xf32>
    %1542 = arith.mulf %1537, %1541 : vector<2x16xf32>
    %c6_i32_465 = arith.constant 6 : i32
    %1543 = vector.broadcast %c6_i32_465 : i32 to vector<2x1xi32>
    %1544 = arith.cmpi sgt, %931, %1543 : vector<2x1xi32>
    %c1_i32_466 = arith.constant 1 : i32
    %1545 = vector.broadcast %c1_i32_466 : i32 to vector<2x1xi32>
    %1546 = arith.cmpi sgt, %931, %1545 : vector<2x1xi32>
    %cst_467 = arith.constant 0.000000e+00 : f32
    %1547 = vector.shape_cast %1544 : vector<2x1xi1> to vector<2x1xi1>
    %1548 = vector.broadcast %1547 : vector<2x1xi1> to vector<2x16xi1>
    %1549 = vector.broadcast %cst_467 : f32 to vector<2x16xf32>
    %1550 = arith.select %1548, %1517, %1549 : vector<2x16xi1>, vector<2x16xf32>
    %cst_468 = arith.constant 0.000000e+00 : f32
    %1551 = vector.shape_cast %1544 : vector<2x1xi1> to vector<2x1xi1>
    %1552 = vector.broadcast %1551 : vector<2x1xi1> to vector<2x16xi1>
    %1553 = vector.broadcast %cst_468 : f32 to vector<2x16xf32>
    %1554 = arith.select %1552, %1515, %1553 : vector<2x16xi1>, vector<2x16xf32>
    %cst_469 = arith.constant 0.000000e+00 : f32
    %1555 = vector.shape_cast %1546 : vector<2x1xi1> to vector<2x1xi1>
    %1556 = vector.broadcast %1555 : vector<2x1xi1> to vector<2x16xi1>
    %1557 = vector.broadcast %cst_469 : f32 to vector<2x16xf32>
    %1558 = arith.select %1556, %1542, %1557 : vector<2x16xi1>, vector<2x16xf32>
    %cst_470 = arith.constant 0.000000e+00 : f32
    %1559 = vector.shape_cast %1546 : vector<2x1xi1> to vector<2x1xi1>
    %1560 = vector.broadcast %1559 : vector<2x1xi1> to vector<2x16xi1>
    %1561 = vector.broadcast %cst_470 : f32 to vector<2x16xf32>
    %1562 = arith.select %1560, %1540, %1561 : vector<2x16xi1>, vector<2x16xf32>
    %c6_471 = arith.constant 6 : index
    %c0_472 = arith.constant 0 : index
    %c0_473 = arith.constant 0 : index
    %1563 = vector.load %arg33[%c6_471, %c0_472, %c0_473] : memref<8x2x16xf32, #tpu.memory_space<vmem>>, vector<1x2x16xf32>
    %1564 = vector.shape_cast %1563 : vector<1x2x16xf32> to vector<2x16xf32>
    %1565 = vector.shape_cast %1550 : vector<2x16xf32> to vector<1x2x16xf32>
    tpu.vector_store %arg33[%c6_471, %c0_472, %c0_473], %1565 {strides = array<i32>} : memref<8x2x16xf32, #tpu.memory_space<vmem>>, vector<1x2x16xf32>,
    %c1_474 = arith.constant 1 : index
    %c0_475 = arith.constant 0 : index
    %c0_476 = arith.constant 0 : index
    %1566 = vector.load %arg34[%c1_474, %c0_475, %c0_476] : memref<8x2x16xf32, #tpu.memory_space<vmem>>, vector<1x2x16xf32>
    %1567 = vector.shape_cast %1566 : vector<1x2x16xf32> to vector<2x16xf32>
    %1568 = vector.shape_cast %1558 : vector<2x16xf32> to vector<1x2x16xf32>
    tpu.vector_store %arg34[%c1_474, %c0_475, %c0_476], %1568 {strides = array<i32>} : memref<8x2x16xf32, #tpu.memory_space<vmem>>, vector<1x2x16xf32>,
    %1569 = tpu.concatenate %1550, %1558 in 1 : vector<2x16xf32>, vector<2x16xf32> -> vector<2x32xf32>
    %1570 = arith.truncf %1569 : vector<2x32xf32> to vector<2x32xbf16>
    %cst_477 = arith.constant dense<0.000000e+00> : vector<2x128xf32>
    %1571 = tpu.matmul %1570, %941, %cst_477 {dimension_numbers = #tpu.dot_dimension_numbers<[1], [0], [0], [1], [0, 0, 1, 1], [], []>} : vector<2x32xbf16>, vector<32x128xbf16>, vector<2x128xf32> -> vector<2x128xf32>
    %c7_478 = arith.constant 7 : index
    %c0_479 = arith.constant 0 : index
    %c0_480 = arith.constant 0 : index
    %1572 = vector.load %arg32[%c7_478, %c0_479, %c0_480] : memref<8x2x128xf32, #tpu.memory_space<vmem>>, vector<1x2x128xf32>
    %1573 = vector.shape_cast %1572 : vector<1x2x128xf32> to vector<2x128xf32>
    %1574 = vector.extract_strided_slice %1573 {offsets = [0, 0], sizes = [2, 64], strides = [1, 1]} : vector<2x128xf32> to vector<2x64xf32>
    %1575 = vector.extract_strided_slice %1571 {offsets = [0, 0], sizes = [2, 64], strides = [1, 1]} : vector<2x128xf32> to vector<2x64xf32>
    %1576 = arith.addf %1574, %1575 : vector<2x64xf32>
    %c0_481 = arith.constant 0 : index
    %c0_482 = arith.constant 0 : index
    %c0_483 = arith.constant 0 : index
    %1577 = vector.load %arg32[%c0_481, %c0_482, %c0_483] : memref<8x2x128xf32, #tpu.memory_space<vmem>>, vector<1x2x128xf32>
    %1578 = vector.shape_cast %1577 : vector<1x2x128xf32> to vector<2x128xf32>
    %1579 = vector.extract_strided_slice %1578 {offsets = [0, 64], sizes = [2, 64], strides = [1, 1]} : vector<2x128xf32> to vector<2x64xf32>
    %1580 = vector.extract_strided_slice %1571 {offsets = [0, 64], sizes = [2, 64], strides = [1, 1]} : vector<2x128xf32> to vector<2x64xf32>
    %1581 = arith.addf %1579, %1580 : vector<2x64xf32>
    %1582 = vector.extract_strided_slice %1576 {offsets = [0, 0], sizes = [2, 16], strides = [1, 1]} : vector<2x64xf32> to vector<2x16xf32>
    %1583 = arith.negf %1582 : vector<2x16xf32>
    %1584 = math.exp %1583 : vector<2x16xf32>
    %cst_484 = arith.constant 1.000000e+00 : f32
    %1585 = vector.broadcast %cst_484 : f32 to vector<2x16xf32>
    %1586 = arith.addf %1585, %1584 : vector<2x16xf32>
    %1587 = arith.divf %1585, %1586 : vector<2x16xf32>
    %1588 = vector.extract_strided_slice %1576 {offsets = [0, 16], sizes = [2, 16], strides = [1, 1]} : vector<2x64xf32> to vector<2x16xf32>
    %1589 = arith.negf %1588 : vector<2x16xf32>
    %1590 = math.exp %1589 : vector<2x16xf32>
    %cst_485 = arith.constant 1.000000e+00 : f32
    %1591 = vector.broadcast %cst_485 : f32 to vector<2x16xf32>
    %1592 = arith.addf %1591, %1590 : vector<2x16xf32>
    %1593 = arith.divf %1591, %1592 : vector<2x16xf32>
    %1594 = vector.extract_strided_slice %1576 {offsets = [0, 32], sizes = [2, 16], strides = [1, 1]} : vector<2x64xf32> to vector<2x16xf32>
    %1595 = math.tanh %1594 : vector<2x16xf32>
    %1596 = vector.extract_strided_slice %1576 {offsets = [0, 48], sizes = [2, 16], strides = [1, 1]} : vector<2x64xf32> to vector<2x16xf32>
    %1597 = arith.negf %1596 : vector<2x16xf32>
    %1598 = math.exp %1597 : vector<2x16xf32>
    %cst_486 = arith.constant 1.000000e+00 : f32
    %1599 = vector.broadcast %cst_486 : f32 to vector<2x16xf32>
    %1600 = arith.addf %1599, %1598 : vector<2x16xf32>
    %1601 = arith.divf %1599, %1600 : vector<2x16xf32>
    %1602 = arith.mulf %1593, %1554 : vector<2x16xf32>
    %1603 = arith.mulf %1587, %1595 : vector<2x16xf32>
    %1604 = arith.addf %1602, %1603 : vector<2x16xf32>
    %1605 = math.tanh %1604 : vector<2x16xf32>
    %1606 = arith.mulf %1601, %1605 : vector<2x16xf32>
    %1607 = vector.extract_strided_slice %1581 {offsets = [0, 0], sizes = [2, 16], strides = [1, 1]} : vector<2x64xf32> to vector<2x16xf32>
    %1608 = arith.negf %1607 : vector<2x16xf32>
    %1609 = math.exp %1608 : vector<2x16xf32>
    %cst_487 = arith.constant 1.000000e+00 : f32
    %1610 = vector.broadcast %cst_487 : f32 to vector<2x16xf32>
    %1611 = arith.addf %1610, %1609 : vector<2x16xf32>
    %1612 = arith.divf %1610, %1611 : vector<2x16xf32>
    %1613 = vector.extract_strided_slice %1581 {offsets = [0, 16], sizes = [2, 16], strides = [1, 1]} : vector<2x64xf32> to vector<2x16xf32>
    %1614 = arith.negf %1613 : vector<2x16xf32>
    %1615 = math.exp %1614 : vector<2x16xf32>
    %cst_488 = arith.constant 1.000000e+00 : f32
    %1616 = vector.broadcast %cst_488 : f32 to vector<2x16xf32>
    %1617 = arith.addf %1616, %1615 : vector<2x16xf32>
    %1618 = arith.divf %1616, %1617 : vector<2x16xf32>
    %1619 = vector.extract_strided_slice %1581 {offsets = [0, 32], sizes = [2, 16], strides = [1, 1]} : vector<2x64xf32> to vector<2x16xf32>
    %1620 = math.tanh %1619 : vector<2x16xf32>
    %1621 = vector.extract_strided_slice %1581 {offsets = [0, 48], sizes = [2, 16], strides = [1, 1]} : vector<2x64xf32> to vector<2x16xf32>
    %1622 = arith.negf %1621 : vector<2x16xf32>
    %1623 = math.exp %1622 : vector<2x16xf32>
    %cst_489 = arith.constant 1.000000e+00 : f32
    %1624 = vector.broadcast %cst_489 : f32 to vector<2x16xf32>
    %1625 = arith.addf %1624, %1623 : vector<2x16xf32>
    %1626 = arith.divf %1624, %1625 : vector<2x16xf32>
    %1627 = arith.mulf %1618, %1562 : vector<2x16xf32>
    %1628 = arith.mulf %1612, %1620 : vector<2x16xf32>
    %1629 = arith.addf %1627, %1628 : vector<2x16xf32>
    %1630 = math.tanh %1629 : vector<2x16xf32>
    %1631 = arith.mulf %1626, %1630 : vector<2x16xf32>
    %c7_i32_490 = arith.constant 7 : i32
    %1632 = vector.broadcast %c7_i32_490 : i32 to vector<2x1xi32>
    %1633 = arith.cmpi sgt, %931, %1632 : vector<2x1xi32>
    %c0_i32_491 = arith.constant 0 : i32
    %1634 = vector.broadcast %c0_i32_491 : i32 to vector<2x1xi32>
    %1635 = arith.cmpi sgt, %931, %1634 : vector<2x1xi32>
    %cst_492 = arith.constant 0.000000e+00 : f32
    %1636 = vector.shape_cast %1633 : vector<2x1xi1> to vector<2x1xi1>
    %1637 = vector.broadcast %1636 : vector<2x1xi1> to vector<2x16xi1>
    %1638 = vector.broadcast %cst_492 : f32 to vector<2x16xf32>
    %1639 = arith.select %1637, %1606, %1638 : vector<2x16xi1>, vector<2x16xf32>
    %cst_493 = arith.constant 0.000000e+00 : f32
    %1640 = vector.shape_cast %1635 : vector<2x1xi1> to vector<2x1xi1>
    %1641 = vector.broadcast %1640 : vector<2x1xi1> to vector<2x16xi1>
    %1642 = vector.broadcast %cst_493 : f32 to vector<2x16xf32>
    %1643 = arith.select %1641, %1631, %1642 : vector<2x16xi1>, vector<2x16xf32>
    %c7_494 = arith.constant 7 : index
    %c0_495 = arith.constant 0 : index
    %c0_496 = arith.constant 0 : index
    %1644 = vector.load %arg33[%c7_494, %c0_495, %c0_496] : memref<8x2x16xf32, #tpu.memory_space<vmem>>, vector<1x2x16xf32>
    %1645 = vector.shape_cast %1644 : vector<1x2x16xf32> to vector<2x16xf32>
    %1646 = vector.shape_cast %1639 : vector<2x16xf32> to vector<1x2x16xf32>
    tpu.vector_store %arg33[%c7_494, %c0_495, %c0_496], %1646 {strides = array<i32>} : memref<8x2x16xf32, #tpu.memory_space<vmem>>, vector<1x2x16xf32>,
    %c0_497 = arith.constant 0 : index
    %c0_498 = arith.constant 0 : index
    %c0_499 = arith.constant 0 : index
    %1647 = vector.load %arg34[%c0_497, %c0_498, %c0_499] : memref<8x2x16xf32, #tpu.memory_space<vmem>>, vector<1x2x16xf32>
    %1648 = vector.shape_cast %1647 : vector<1x2x16xf32> to vector<2x16xf32>
    %1649 = vector.shape_cast %1643 : vector<2x16xf32> to vector<1x2x16xf32>
    tpu.vector_store %arg34[%c0_497, %c0_498, %c0_499], %1649 {strides = array<i32>} : memref<8x2x16xf32, #tpu.memory_space<vmem>>, vector<1x2x16xf32>,
    %c0_500 = arith.constant 0 : index
    %c0_501 = arith.constant 0 : index
    %c0_502 = arith.constant 0 : index
    %1650 = vector.load %arg33[%c0_500, %c0_501, %c0_502] : memref<8x2x16xf32, #tpu.memory_space<vmem>>, vector<8x2x16xf32>
    %c0_503 = arith.constant 0 : index
    %c0_504 = arith.constant 0 : index
    %c0_505 = arith.constant 0 : index
    %1651 = vector.load %arg34[%c0_503, %c0_504, %c0_505] : memref<8x2x16xf32, #tpu.memory_space<vmem>>, vector<8x2x16xf32>
    %1652 = tpu.concatenate %1650, %1651 in 2 : vector<8x2x16xf32>, vector<8x2x16xf32> -> vector<8x2x32xf32>
    %1653 = arith.truncf %1652 : vector<8x2x32xf32> to vector<8x2x32xbf16>
    %c0_506 = arith.constant 0 : index
    %c0_507 = arith.constant 0 : index
    %1654 = vector.load %arg17[%c0_506, %c0_507] : memref<32x128xbf16, #tpu.memory_space<vmem>>, vector<32x128xbf16>
    "tpu.trace_start"() <{level = 10 : i32, message = "tbd,de->tbe"}> : () -> ()
    %cst_508 = arith.constant dense<0.000000e+00> : vector<8x2x128xf32>
    %1655 = tpu.matmul %1653, %1654, %cst_508 {dimension_numbers = #tpu.dot_dimension_numbers<[2], [0], [0, 1], [1], [0, 0, 0, 1, 1, 1], [], []>} : vector<8x2x32xbf16>, vector<32x128xbf16>, vector<8x2x128xf32> -> vector<8x2x128xf32>
    "tpu.trace_stop"() : () -> ()
    %c0_509 = arith.constant 0 : index
    %c0_510 = arith.constant 0 : index
    %1656 = vector.load %arg19[%c0_509, %c0_510] : memref<1x128xf32, #tpu.memory_space<vmem>>, vector<1x128xf32>
    %1657 = vector.shape_cast %1656 : vector<1x128xf32> to vector<1x1x128xf32>
    %1658 = vector.broadcast %1657 : vector<1x1x128xf32> to vector<8x2x128xf32>
    %1659 = arith.addf %1655, %1658 : vector<8x2x128xf32>
    %c0_511 = arith.constant 0 : index
    %c0_512 = arith.constant 0 : index
    %c0_513 = arith.constant 0 : index
    %1660 = vector.load %arg32[%c0_511, %c0_512, %c0_513] : memref<8x2x128xf32, #tpu.memory_space<vmem>>, vector<8x2x128xf32>
    tpu.vector_store %arg32[%c0_511, %c0_512, %c0_513], %1659 {strides = array<i32>} : memref<8x2x128xf32, #tpu.memory_space<vmem>>, vector<8x2x128xf32>,
    %c0_514 = arith.constant 0 : index
    %c0_515 = arith.constant 0 : index
    %1661 = vector.load %arg18[%c0_514, %c0_515] : memref<32x128xbf16, #tpu.memory_space<vmem>>, vector<32x128xbf16>
    %cst_516 = arith.constant 0.000000e+00 : f32
    %1662 = vector.broadcast %cst_516 : f32 to vector<2x16xf32>
    %cst_517 = arith.constant 0.000000e+00 : f32
    %1663 = vector.broadcast %cst_517 : f32 to vector<2x16xf32>
    %cst_518 = arith.constant 0.000000e+00 : f32
    %1664 = vector.broadcast %cst_518 : f32 to vector<2x16xf32>
    %cst_519 = arith.constant 0.000000e+00 : f32
    %1665 = vector.broadcast %cst_519 : f32 to vector<2x16xf32>
    %1666 = tpu.concatenate %1662, %1664 in 1 : vector<2x16xf32>, vector<2x16xf32> -> vector<2x32xf32>
    %1667 = arith.truncf %1666 : vector<2x32xf32> to vector<2x32xbf16>
    %cst_520 = arith.constant dense<0.000000e+00> : vector<2x128xf32>
    %1668 = tpu.matmul %1667, %1661, %cst_520 {dimension_numbers = #tpu.dot_dimension_numbers<[1], [0], [0], [1], [0, 0, 1, 1], [], []>} : vector<2x32xbf16>, vector<32x128xbf16>, vector<2x128xf32> -> vector<2x128xf32>
    %c0_521 = arith.constant 0 : index
    %c0_522 = arith.constant 0 : index
    %c0_523 = arith.constant 0 : index
    %1669 = vector.load %arg32[%c0_521, %c0_522, %c0_523] : memref<8x2x128xf32, #tpu.memory_space<vmem>>, vector<1x2x128xf32>
    %1670 = vector.shape_cast %1669 : vector<1x2x128xf32> to vector<2x128xf32>
    %1671 = vector.extract_strided_slice %1670 {offsets = [0, 0], sizes = [2, 64], strides = [1, 1]} : vector<2x128xf32> to vector<2x64xf32>
    %1672 = vector.extract_strided_slice %1668 {offsets = [0, 0], sizes = [2, 64], strides = [1, 1]} : vector<2x128xf32> to vector<2x64xf32>
    %1673 = arith.addf %1671, %1672 : vector<2x64xf32>
    %c7_524 = arith.constant 7 : index
    %c0_525 = arith.constant 0 : index
    %c0_526 = arith.constant 0 : index
    %1674 = vector.load %arg32[%c7_524, %c0_525, %c0_526] : memref<8x2x128xf32, #tpu.memory_space<vmem>>, vector<1x2x128xf32>
    %1675 = vector.shape_cast %1674 : vector<1x2x128xf32> to vector<2x128xf32>
    %1676 = vector.extract_strided_slice %1675 {offsets = [0, 64], sizes = [2, 64], strides = [1, 1]} : vector<2x128xf32> to vector<2x64xf32>
    %1677 = vector.extract_strided_slice %1668 {offsets = [0, 64], sizes = [2, 64], strides = [1, 1]} : vector<2x128xf32> to vector<2x64xf32>
    %1678 = arith.addf %1676, %1677 : vector<2x64xf32>
    %1679 = vector.extract_strided_slice %1673 {offsets = [0, 0], sizes = [2, 16], strides = [1, 1]} : vector<2x64xf32> to vector<2x16xf32>
    %1680 = arith.negf %1679 : vector<2x16xf32>
    %1681 = math.exp %1680 : vector<2x16xf32>
    %cst_527 = arith.constant 1.000000e+00 : f32
    %1682 = vector.broadcast %cst_527 : f32 to vector<2x16xf32>
    %1683 = arith.addf %1682, %1681 : vector<2x16xf32>
    %1684 = arith.divf %1682, %1683 : vector<2x16xf32>
    %1685 = vector.extract_strided_slice %1673 {offsets = [0, 16], sizes = [2, 16], strides = [1, 1]} : vector<2x64xf32> to vector<2x16xf32>
    %1686 = arith.negf %1685 : vector<2x16xf32>
    %1687 = math.exp %1686 : vector<2x16xf32>
    %cst_528 = arith.constant 1.000000e+00 : f32
    %1688 = vector.broadcast %cst_528 : f32 to vector<2x16xf32>
    %1689 = arith.addf %1688, %1687 : vector<2x16xf32>
    %1690 = arith.divf %1688, %1689 : vector<2x16xf32>
    %1691 = vector.extract_strided_slice %1673 {offsets = [0, 32], sizes = [2, 16], strides = [1, 1]} : vector<2x64xf32> to vector<2x16xf32>
    %1692 = math.tanh %1691 : vector<2x16xf32>
    %1693 = vector.extract_strided_slice %1673 {offsets = [0, 48], sizes = [2, 16], strides = [1, 1]} : vector<2x64xf32> to vector<2x16xf32>
    %1694 = arith.negf %1693 : vector<2x16xf32>
    %1695 = math.exp %1694 : vector<2x16xf32>
    %cst_529 = arith.constant 1.000000e+00 : f32
    %1696 = vector.broadcast %cst_529 : f32 to vector<2x16xf32>
    %1697 = arith.addf %1696, %1695 : vector<2x16xf32>
    %1698 = arith.divf %1696, %1697 : vector<2x16xf32>
    %1699 = arith.mulf %1690, %1663 : vector<2x16xf32>
    %1700 = arith.mulf %1684, %1692 : vector<2x16xf32>
    %1701 = arith.addf %1699, %1700 : vector<2x16xf32>
    %1702 = math.tanh %1701 : vector<2x16xf32>
    %1703 = arith.mulf %1698, %1702 : vector<2x16xf32>
    %1704 = vector.extract_strided_slice %1678 {offsets = [0, 0], sizes = [2, 16], strides = [1, 1]} : vector<2x64xf32> to vector<2x16xf32>
    %1705 = arith.negf %1704 : vector<2x16xf32>
    %1706 = math.exp %1705 : vector<2x16xf32>
    %cst_530 = arith.constant 1.000000e+00 : f32
    %1707 = vector.broadcast %cst_530 : f32 to vector<2x16xf32>
    %1708 = arith.addf %1707, %1706 : vector<2x16xf32>
    %1709 = arith.divf %1707, %1708 : vector<2x16xf32>
    %1710 = vector.extract_strided_slice %1678 {offsets = [0, 16], sizes = [2, 16], strides = [1, 1]} : vector<2x64xf32> to vector<2x16xf32>
    %1711 = arith.negf %1710 : vector<2x16xf32>
    %1712 = math.exp %1711 : vector<2x16xf32>
    %cst_531 = arith.constant 1.000000e+00 : f32
    %1713 = vector.broadcast %cst_531 : f32 to vector<2x16xf32>
    %1714 = arith.addf %1713, %1712 : vector<2x16xf32>
    %1715 = arith.divf %1713, %1714 : vector<2x16xf32>
    %1716 = vector.extract_strided_slice %1678 {offsets = [0, 32], sizes = [2, 16], strides = [1, 1]} : vector<2x64xf32> to vector<2x16xf32>
    %1717 = math.tanh %1716 : vector<2x16xf32>
    %1718 = vector.extract_strided_slice %1678 {offsets = [0, 48], sizes = [2, 16], strides = [1, 1]} : vector<2x64xf32> to vector<2x16xf32>
    %1719 = arith.negf %1718 : vector<2x16xf32>
    %1720 = math.exp %1719 : vector<2x16xf32>
    %cst_532 = arith.constant 1.000000e+00 : f32
    %1721 = vector.broadcast %cst_532 : f32 to vector<2x16xf32>
    %1722 = arith.addf %1721, %1720 : vector<2x16xf32>
    %1723 = arith.divf %1721, %1722 : vector<2x16xf32>
    %1724 = arith.mulf %1715, %1665 : vector<2x16xf32>
    %1725 = arith.mulf %1709, %1717 : vector<2x16xf32>
    %1726 = arith.addf %1724, %1725 : vector<2x16xf32>
    %1727 = math.tanh %1726 : vector<2x16xf32>
    %1728 = arith.mulf %1723, %1727 : vector<2x16xf32>
    %c0_i32_533 = arith.constant 0 : i32
    %1729 = vector.broadcast %c0_i32_533 : i32 to vector<2x1xi32>
    %1730 = arith.cmpi sgt, %931, %1729 : vector<2x1xi32>
    %c7_i32_534 = arith.constant 7 : i32
    %1731 = vector.broadcast %c7_i32_534 : i32 to vector<2x1xi32>
    %1732 = arith.cmpi sgt, %931, %1731 : vector<2x1xi32>
    %cst_535 = arith.constant 0.000000e+00 : f32
    %1733 = vector.shape_cast %1730 : vector<2x1xi1> to vector<2x1xi1>
    %1734 = vector.broadcast %1733 : vector<2x1xi1> to vector<2x16xi1>
    %1735 = vector.broadcast %cst_535 : f32 to vector<2x16xf32>
    %1736 = arith.select %1734, %1703, %1735 : vector<2x16xi1>, vector<2x16xf32>
    %cst_536 = arith.constant 0.000000e+00 : f32
    %1737 = vector.shape_cast %1730 : vector<2x1xi1> to vector<2x1xi1>
    %1738 = vector.broadcast %1737 : vector<2x1xi1> to vector<2x16xi1>
    %1739 = vector.broadcast %cst_536 : f32 to vector<2x16xf32>
    %1740 = arith.select %1738, %1701, %1739 : vector<2x16xi1>, vector<2x16xf32>
    %cst_537 = arith.constant 0.000000e+00 : f32
    %1741 = vector.shape_cast %1732 : vector<2x1xi1> to vector<2x1xi1>
    %1742 = vector.broadcast %1741 : vector<2x1xi1> to vector<2x16xi1>
    %1743 = vector.broadcast %cst_537 : f32 to vector<2x16xf32>
    %1744 = arith.select %1742, %1728, %1743 : vector<2x16xi1>, vector<2x16xf32>
    %cst_538 = arith.constant 0.000000e+00 : f32
    %1745 = vector.shape_cast %1732 : vector<2x1xi1> to vector<2x1xi1>
    %1746 = vector.broadcast %1745 : vector<2x1xi1> to vector<2x16xi1>
    %1747 = vector.broadcast %cst_538 : f32 to vector<2x16xf32>
    %1748 = arith.select %1746, %1726, %1747 : vector<2x16xi1>, vector<2x16xf32>
    %c0_539 = arith.constant 0 : index
    %c0_540 = arith.constant 0 : index
    %c0_541 = arith.constant 0 : index
    %1749 = vector.load %arg33[%c0_539, %c0_540, %c0_541] : memref<8x2x16xf32, #tpu.memory_space<vmem>>, vector<1x2x16xf32>
    %1750 = vector.shape_cast %1749 : vector<1x2x16xf32> to vector<2x16xf32>
    %1751 = vector.shape_cast %1736 : vector<2x16xf32> to vector<1x2x16xf32>
    tpu.vector_store %arg33[%c0_539, %c0_540, %c0_541], %1751 {strides = array<i32>} : memref<8x2x16xf32, #tpu.memory_space<vmem>>, vector<1x2x16xf32>,
    %c7_542 = arith.constant 7 : index
    %c0_543 = arith.constant 0 : index
    %c0_544 = arith.constant 0 : index
    %1752 = vector.load %arg34[%c7_542, %c0_543, %c0_544] : memref<8x2x16xf32, #tpu.memory_space<vmem>>, vector<1x2x16xf32>
    %1753 = vector.shape_cast %1752 : vector<1x2x16xf32> to vector<2x16xf32>
    %1754 = vector.shape_cast %1744 : vector<2x16xf32> to vector<1x2x16xf32>
    tpu.vector_store %arg34[%c7_542, %c0_543, %c0_544], %1754 {strides = array<i32>} : memref<8x2x16xf32, #tpu.memory_space<vmem>>, vector<1x2x16xf32>,
    %1755 = tpu.concatenate %1736, %1744 in 1 : vector<2x16xf32>, vector<2x16xf32> -> vector<2x32xf32>
    %1756 = arith.truncf %1755 : vector<2x32xf32> to vector<2x32xbf16>
    %cst_545 = arith.constant dense<0.000000e+00> : vector<2x128xf32>
    %1757 = tpu.matmul %1756, %1661, %cst_545 {dimension_numbers = #tpu.dot_dimension_numbers<[1], [0], [0], [1], [0, 0, 1, 1], [], []>} : vector<2x32xbf16>, vector<32x128xbf16>, vector<2x128xf32> -> vector<2x128xf32>
    %c1_546 = arith.constant 1 : index
    %c0_547 = arith.constant 0 : index
    %c0_548 = arith.constant 0 : index
    %1758 = vector.load %arg32[%c1_546, %c0_547, %c0_548] : memref<8x2x128xf32, #tpu.memory_space<vmem>>, vector<1x2x128xf32>
    %1759 = vector.shape_cast %1758 : vector<1x2x128xf32> to vector<2x128xf32>
    %1760 = vector.extract_strided_slice %1759 {offsets = [0, 0], sizes = [2, 64], strides = [1, 1]} : vector<2x128xf32> to vector<2x64xf32>
    %1761 = vector.extract_strided_slice %1757 {offsets = [0, 0], sizes = [2, 64], strides = [1, 1]} : vector<2x128xf32> to vector<2x64xf32>
    %1762 = arith.addf %1760, %1761 : vector<2x64xf32>
    %c6_549 = arith.constant 6 : index
    %c0_550 = arith.constant 0 : index
    %c0_551 = arith.constant 0 : index
    %1763 = vector.load %arg32[%c6_549, %c0_550, %c0_551] : memref<8x2x128xf32, #tpu.memory_space<vmem>>, vector<1x2x128xf32>
    %1764 = vector.shape_cast %1763 : vector<1x2x128xf32> to vector<2x128xf32>
    %1765 = vector.extract_strided_slice %1764 {offsets = [0, 64], sizes = [2, 64], strides = [1, 1]} : vector<2x128xf32> to vector<2x64xf32>
    %1766 = vector.extract_strided_slice %1757 {offsets = [0, 64], sizes = [2, 64], strides = [1, 1]} : vector<2x128xf32> to vector<2x64xf32>
    %1767 = arith.addf %1765, %1766 : vector<2x64xf32>
    %1768 = vector.extract_strided_slice %1762 {offsets = [0, 0], sizes = [2, 16], strides = [1, 1]} : vector<2x64xf32> to vector<2x16xf32>
    %1769 = arith.negf %1768 : vector<2x16xf32>
    %1770 = math.exp %1769 : vector<2x16xf32>
    %cst_552 = arith.constant 1.000000e+00 : f32
    %1771 = vector.broadcast %cst_552 : f32 to vector<2x16xf32>
    %1772 = arith.addf %1771, %1770 : vector<2x16xf32>
    %1773 = arith.divf %1771, %1772 : vector<2x16xf32>
    %1774 = vector.extract_strided_slice %1762 {offsets = [0, 16], sizes = [2, 16], strides = [1, 1]} : vector<2x64xf32> to vector<2x16xf32>
    %1775 = arith.negf %1774 : vector<2x16xf32>
    %1776 = math.exp %1775 : vector<2x16xf32>
    %cst_553 = arith.constant 1.000000e+00 : f32
    %1777 = vector.broadcast %cst_553 : f32 to vector<2x16xf32>
    %1778 = arith.addf %1777, %1776 : vector<2x16xf32>
    %1779 = arith.divf %1777, %1778 : vector<2x16xf32>
    %1780 = vector.extract_strided_slice %1762 {offsets = [0, 32], sizes = [2, 16], strides = [1, 1]} : vector<2x64xf32> to vector<2x16xf32>
    %1781 = math.tanh %1780 : vector<2x16xf32>
    %1782 = vector.extract_strided_slice %1762 {offsets = [0, 48], sizes = [2, 16], strides = [1, 1]} : vector<2x64xf32> to vector<2x16xf32>
    %1783 = arith.negf %1782 : vector<2x16xf32>
    %1784 = math.exp %1783 : vector<2x16xf32>
    %cst_554 = arith.constant 1.000000e+00 : f32
    %1785 = vector.broadcast %cst_554 : f32 to vector<2x16xf32>
    %1786 = arith.addf %1785, %1784 : vector<2x16xf32>
    %1787 = arith.divf %1785, %1786 : vector<2x16xf32>
    %1788 = arith.mulf %1779, %1740 : vector<2x16xf32>
    %1789 = arith.mulf %1773, %1781 : vector<2x16xf32>
    %1790 = arith.addf %1788, %1789 : vector<2x16xf32>
    %1791 = math.tanh %1790 : vector<2x16xf32>
    %1792 = arith.mulf %1787, %1791 : vector<2x16xf32>
    %1793 = vector.extract_strided_slice %1767 {offsets = [0, 0], sizes = [2, 16], strides = [1, 1]} : vector<2x64xf32> to vector<2x16xf32>
    %1794 = arith.negf %1793 : vector<2x16xf32>
    %1795 = math.exp %1794 : vector<2x16xf32>
    %cst_555 = arith.constant 1.000000e+00 : f32
    %1796 = vector.broadcast %cst_555 : f32 to vector<2x16xf32>
    %1797 = arith.addf %1796, %1795 : vector<2x16xf32>
    %1798 = arith.divf %1796, %1797 : vector<2x16xf32>
    %1799 = vector.extract_strided_slice %1767 {offsets = [0, 16], sizes = [2, 16], strides = [1, 1]} : vector<2x64xf32> to vector<2x16xf32>
    %1800 = arith.negf %1799 : vector<2x16xf32>
    %1801 = math.exp %1800 : vector<2x16xf32>
    %cst_556 = arith.constant 1.000000e+00 : f32
    %1802 = vector.broadcast %cst_556 : f32 to vector<2x16xf32>
    %1803 = arith.addf %1802, %1801 : vector<2x16xf32>
    %1804 = arith.divf %1802, %1803 : vector<2x16xf32>
    %1805 = vector.extract_strided_slice %1767 {offsets = [0, 32], sizes = [2, 16], strides = [1, 1]} : vector<2x64xf32> to vector<2x16xf32>
    %1806 = math.tanh %1805 : vector<2x16xf32>
    %1807 = vector.extract_strided_slice %1767 {offsets = [0, 48], sizes = [2, 16], strides = [1, 1]} : vector<2x64xf32> to vector<2x16xf32>
    %1808 = arith.negf %1807 : vector<2x16xf32>
    %1809 = math.exp %1808 : vector<2x16xf32>
    %cst_557 = arith.constant 1.000000e+00 : f32
    %1810 = vector.broadcast %cst_557 : f32 to vector<2x16xf32>
    %1811 = arith.addf %1810, %1809 : vector<2x16xf32>
    %1812 = arith.divf %1810, %1811 : vector<2x16xf32>
    %1813 = arith.mulf %1804, %1748 : vector<2x16xf32>
    %1814 = arith.mulf %1798, %1806 : vector<2x16xf32>
    %1815 = arith.addf %1813, %1814 : vector<2x16xf32>
    %1816 = math.tanh %1815 : vector<2x16xf32>
    %1817 = arith.mulf %1812, %1816 : vector<2x16xf32>
    %c1_i32_558 = arith.constant 1 : i32
    %1818 = vector.broadcast %c1_i32_558 : i32 to vector<2x1xi32>
    %1819 = arith.cmpi sgt, %931, %1818 : vector<2x1xi32>
    %c6_i32_559 = arith.constant 6 : i32
    %1820 = vector.broadcast %c6_i32_559 : i32 to vector<2x1xi32>
    %1821 = arith.cmpi sgt, %931, %1820 : vector<2x1xi32>
    %cst_560 = arith.constant 0.000000e+00 : f32
    %1822 = vector.shape_cast %1819 : vector<2x1xi1> to vector<2x1xi1>
    %1823 = vector.broadcast %1822 : vector<2x1xi1> to vector<2x16xi1>
    %1824 = vector.broadcast %cst_560 : f32 to vector<2x16xf32>
    %1825 = arith.select %1823, %1792, %1824 : vector<2x16xi1>, vector<2x16xf32>
    %cst_561 = arith.constant 0.000000e+00 : f32
    %1826 = vector.shape_cast %1819 : vector<2x1xi1> to vector<2x1xi1>
    %1827 = vector.broadcast %1826 : vector<2x1xi1> to vector<2x16xi1>
    %1828 = vector.broadcast %cst_561 : f32 to vector<2x16xf32>
    %1829 = arith.select %1827, %1790, %1828 : vector<2x16xi1>, vector<2x16xf32>
    %cst_562 = arith.constant 0.000000e+00 : f32
    %1830 = vector.shape_cast %1821 : vector<2x1xi1> to vector<2x1xi1>
    %1831 = vector.broadcast %1830 : vector<2x1xi1> to vector<2x16xi1>
    %1832 = vector.broadcast %cst_562 : f32 to vector<2x16xf32>
    %1833 = arith.select %1831, %1817, %1832 : vector<2x16xi1>, vector<2x16xf32>
    %cst_563 = arith.constant 0.000000e+00 : f32
    %1834 = vector.shape_cast %1821 : vector<2x1xi1> to vector<2x1xi1>
    %1835 = vector.broadcast %1834 : vector<2x1xi1> to vector<2x16xi1>
    %1836 = vector.broadcast %cst_563 : f32 to vector<2x16xf32>
    %1837 = arith.select %1835, %1815, %1836 : vector<2x16xi1>, vector<2x16xf32>
    %c1_564 = arith.constant 1 : index
    %c0_565 = arith.constant 0 : index
    %c0_566 = arith.constant 0 : index
    %1838 = vector.load %arg33[%c1_564, %c0_565, %c0_566] : memref<8x2x16xf32, #tpu.memory_space<vmem>>, vector<1x2x16xf32>
    %1839 = vector.shape_cast %1838 : vector<1x2x16xf32> to vector<2x16xf32>
    %1840 = vector.shape_cast %1825 : vector<2x16xf32> to vector<1x2x16xf32>
    tpu.vector_store %arg33[%c1_564, %c0_565, %c0_566], %1840 {strides = array<i32>} : memref<8x2x16xf32, #tpu.memory_space<vmem>>, vector<1x2x16xf32>,
    %c6_567 = arith.constant 6 : index
    %c0_568 = arith.constant 0 : index
    %c0_569 = arith.constant 0 : index
    %1841 = vector.load %arg34[%c6_567, %c0_568, %c0_569] : memref<8x2x16xf32, #tpu.memory_space<vmem>>, vector<1x2x16xf32>
    %1842 = vector.shape_cast %1841 : vector<1x2x16xf32> to vector<2x16xf32>
    %1843 = vector.shape_cast %1833 : vector<2x16xf32> to vector<1x2x16xf32>
    tpu.vector_store %arg34[%c6_567, %c0_568, %c0_569], %1843 {strides = array<i32>} : memref<8x2x16xf32, #tpu.memory_space<vmem>>, vector<1x2x16xf32>,
    %1844 = tpu.concatenate %1825, %1833 in 1 : vector<2x16xf32>, vector<2x16xf32> -> vector<2x32xf32>
    %1845 = arith.truncf %1844 : vector<2x32xf32> to vector<2x32xbf16>
    %cst_570 = arith.constant dense<0.000000e+00> : vector<2x128xf32>
    %1846 = tpu.matmul %1845, %1661, %cst_570 {dimension_numbers = #tpu.dot_dimension_numbers<[1], [0], [0], [1], [0, 0, 1, 1], [], []>} : vector<2x32xbf16>, vector<32x128xbf16>, vector<2x128xf32> -> vector<2x128xf32>
    %c2_571 = arith.constant 2 : index
    %c0_572 = arith.constant 0 : index
    %c0_573 = arith.constant 0 : index
    %1847 = vector.load %arg32[%c2_571, %c0_572, %c0_573] : memref<8x2x128xf32, #tpu.memory_space<vmem>>, vector<1x2x128xf32>
    %1848 = vector.shape_cast %1847 : vector<1x2x128xf32> to vector<2x128xf32>
    %1849 = vector.extract_strided_slice %1848 {offsets = [0, 0], sizes = [2, 64], strides = [1, 1]} : vector<2x128xf32> to vector<2x64xf32>
    %1850 = vector.extract_strided_slice %1846 {offsets = [0, 0], sizes = [2, 64], strides = [1, 1]} : vector<2x128xf32> to vector<2x64xf32>
    %1851 = arith.addf %1849, %1850 : vector<2x64xf32>
    %c5_574 = arith.constant 5 : index
    %c0_575 = arith.constant 0 : index
    %c0_576 = arith.constant 0 : index
    %1852 = vector.load %arg32[%c5_574, %c0_575, %c0_576] : memref<8x2x128xf32, #tpu.memory_space<vmem>>, vector<1x2x128xf32>
    %1853 = vector.shape_cast %1852 : vector<1x2x128xf32> to vector<2x128xf32>
    %1854 = vector.extract_strided_slice %1853 {offsets = [0, 64], sizes = [2, 64], strides = [1, 1]} : vector<2x128xf32> to vector<2x64xf32>
    %1855 = vector.extract_strided_slice %1846 {offsets = [0, 64], sizes = [2, 64], strides = [1, 1]} : vector<2x128xf32> to vector<2x64xf32>
    %1856 = arith.addf %1854, %1855 : vector<2x64xf32>
    %1857 = vector.extract_strided_slice %1851 {offsets = [0, 0], sizes = [2, 16], strides = [1, 1]} : vector<2x64xf32> to vector<2x16xf32>
    %1858 = arith.negf %1857 : vector<2x16xf32>
    %1859 = math.exp %1858 : vector<2x16xf32>
    %cst_577 = arith.constant 1.000000e+00 : f32
    %1860 = vector.broadcast %cst_577 : f32 to vector<2x16xf32>
    %1861 = arith.addf %1860, %1859 : vector<2x16xf32>
    %1862 = arith.divf %1860, %1861 : vector<2x16xf32>
    %1863 = vector.extract_strided_slice %1851 {offsets = [0, 16], sizes = [2, 16], strides = [1, 1]} : vector<2x64xf32> to vector<2x16xf32>
    %1864 = arith.negf %1863 : vector<2x16xf32>
    %1865 = math.exp %1864 : vector<2x16xf32>
    %cst_578 = arith.constant 1.000000e+00 : f32
    %1866 = vector.broadcast %cst_578 : f32 to vector<2x16xf32>
    %1867 = arith.addf %1866, %1865 : vector<2x16xf32>
    %1868 = arith.divf %1866, %1867 : vector<2x16xf32>
    %1869 = vector.extract_strided_slice %1851 {offsets = [0, 32], sizes = [2, 16], strides = [1, 1]} : vector<2x64xf32> to vector<2x16xf32>
    %1870 = math.tanh %1869 : vector<2x16xf32>
    %1871 = vector.extract_strided_slice %1851 {offsets = [0, 48], sizes = [2, 16], strides = [1, 1]} : vector<2x64xf32> to vector<2x16xf32>
    %1872 = arith.negf %1871 : vector<2x16xf32>
    %1873 = math.exp %1872 : vector<2x16xf32>
    %cst_579 = arith.constant 1.000000e+00 : f32
    %1874 = vector.broadcast %cst_579 : f32 to vector<2x16xf32>
    %1875 = arith.addf %1874, %1873 : vector<2x16xf32>
    %1876 = arith.divf %1874, %1875 : vector<2x16xf32>
    %1877 = arith.mulf %1868, %1829 : vector<2x16xf32>
    %1878 = arith.mulf %1862, %1870 : vector<2x16xf32>
    %1879 = arith.addf %1877, %1878 : vector<2x16xf32>
    %1880 = math.tanh %1879 : vector<2x16xf32>
    %1881 = arith.mulf %1876, %1880 : vector<2x16xf32>
    %1882 = vector.extract_strided_slice %1856 {offsets = [0, 0], sizes = [2, 16], strides = [1, 1]} : vector<2x64xf32> to vector<2x16xf32>
    %1883 = arith.negf %1882 : vector<2x16xf32>
    %1884 = math.exp %1883 : vector<2x16xf32>
    %cst_580 = arith.constant 1.000000e+00 : f32
    %1885 = vector.broadcast %cst_580 : f32 to vector<2x16xf32>
    %1886 = arith.addf %1885, %1884 : vector<2x16xf32>
    %1887 = arith.divf %1885, %1886 : vector<2x16xf32>
    %1888 = vector.extract_strided_slice %1856 {offsets = [0, 16], sizes = [2, 16], strides = [1, 1]} : vector<2x64xf32> to vector<2x16xf32>
    %1889 = arith.negf %1888 : vector<2x16xf32>
    %1890 = math.exp %1889 : vector<2x16xf32>
    %cst_581 = arith.constant 1.000000e+00 : f32
    %1891 = vector.broadcast %cst_581 : f32 to vector<2x16xf32>
    %1892 = arith.addf %1891, %1890 : vector<2x16xf32>
    %1893 = arith.divf %1891, %1892 : vector<2x16xf32>
    %1894 = vector.extract_strided_slice %1856 {offsets = [0, 32], sizes = [2, 16], strides = [1, 1]} : vector<2x64xf32> to vector<2x16xf32>
    %1895 = math.tanh %1894 : vector<2x16xf32>
    %1896 = vector.extract_strided_slice %1856 {offsets = [0, 48], sizes = [2, 16], strides = [1, 1]} : vector<2x64xf32> to vector<2x16xf32>
    %1897 = arith.negf %1896 : vector<2x16xf32>
    %1898 = math.exp %1897 : vector<2x16xf32>
    %cst_582 = arith.constant 1.000000e+00 : f32
    %1899 = vector.broadcast %cst_582 : f32 to vector<2x16xf32>
    %1900 = arith.addf %1899, %1898 : vector<2x16xf32>
    %1901 = arith.divf %1899, %1900 : vector<2x16xf32>
    %1902 = arith.mulf %1893, %1837 : vector<2x16xf32>
    %1903 = arith.mulf %1887, %1895 : vector<2x16xf32>
    %1904 = arith.addf %1902, %1903 : vector<2x16xf32>
    %1905 = math.tanh %1904 : vector<2x16xf32>
    %1906 = arith.mulf %1901, %1905 : vector<2x16xf32>
    %c2_i32_583 = arith.constant 2 : i32
    %1907 = vector.broadcast %c2_i32_583 : i32 to vector<2x1xi32>
    %1908 = arith.cmpi sgt, %931, %1907 : vector<2x1xi32>
    %c5_i32_584 = arith.constant 5 : i32
    %1909 = vector.broadcast %c5_i32_584 : i32 to vector<2x1xi32>
    %1910 = arith.cmpi sgt, %931, %1909 : vector<2x1xi32>
    %cst_585 = arith.constant 0.000000e+00 : f32
    %1911 = vector.shape_cast %1908 : vector<2x1xi1> to vector<2x1xi1>
    %1912 = vector.broadcast %1911 : vector<2x1xi1> to vector<2x16xi1>
    %1913 = vector.broadcast %cst_585 : f32 to vector<2x16xf32>
    %1914 = arith.select %1912, %1881, %1913 : vector<2x16xi1>, vector<2x16xf32>
    %cst_586 = arith.constant 0.000000e+00 : f32
    %1915 = vector.shape_cast %1908 : vector<2x1xi1> to vector<2x1xi1>
    %1916 = vector.broadcast %1915 : vector<2x1xi1> to vector<2x16xi1>
    %1917 = vector.broadcast %cst_586 : f32 to vector<2x16xf32>
    %1918 = arith.select %1916, %1879, %1917 : vector<2x16xi1>, vector<2x16xf32>
    %cst_587 = arith.constant 0.000000e+00 : f32
    %1919 = vector.shape_cast %1910 : vector<2x1xi1> to vector<2x1xi1>
    %1920 = vector.broadcast %1919 : vector<2x1xi1> to vector<2x16xi1>
    %1921 = vector.broadcast %cst_587 : f32 to vector<2x16xf32>
    %1922 = arith.select %1920, %1906, %1921 : vector<2x16xi1>, vector<2x16xf32>
    %cst_588 = arith.constant 0.000000e+00 : f32
    %1923 = vector.shape_cast %1910 : vector<2x1xi1> to vector<2x1xi1>
    %1924 = vector.broadcast %1923 : vector<2x1xi1> to vector<2x16xi1>
    %1925 = vector.broadcast %cst_588 : f32 to vector<2x16xf32>
    %1926 = arith.select %1924, %1904, %1925 : vector<2x16xi1>, vector<2x16xf32>
    %c2_589 = arith.constant 2 : index
    %c0_590 = arith.constant 0 : index
    %c0_591 = arith.constant 0 : index
    %1927 = vector.load %arg33[%c2_589, %c0_590, %c0_591] : memref<8x2x16xf32, #tpu.memory_space<vmem>>, vector<1x2x16xf32>
    %1928 = vector.shape_cast %1927 : vector<1x2x16xf32> to vector<2x16xf32>
    %1929 = vector.shape_cast %1914 : vector<2x16xf32> to vector<1x2x16xf32>
    tpu.vector_store %arg33[%c2_589, %c0_590, %c0_591], %1929 {strides = array<i32>} : memref<8x2x16xf32, #tpu.memory_space<vmem>>, vector<1x2x16xf32>,
    %c5_592 = arith.constant 5 : index
    %c0_593 = arith.constant 0 : index
    %c0_594 = arith.constant 0 : index
    %1930 = vector.load %arg34[%c5_592, %c0_593, %c0_594] : memref<8x2x16xf32, #tpu.memory_space<vmem>>, vector<1x2x16xf32>
    %1931 = vector.shape_cast %1930 : vector<1x2x16xf32> to vector<2x16xf32>
    %1932 = vector.shape_cast %1922 : vector<2x16xf32> to vector<1x2x16xf32>
    tpu.vector_store %arg34[%c5_592, %c0_593, %c0_594], %1932 {strides = array<i32>} : memref<8x2x16xf32, #tpu.memory_space<vmem>>, vector<1x2x16xf32>,
    %1933 = tpu.concatenate %1914, %1922 in 1 : vector<2x16xf32>, vector<2x16xf32> -> vector<2x32xf32>
    %1934 = arith.truncf %1933 : vector<2x32xf32> to vector<2x32xbf16>
    %cst_595 = arith.constant dense<0.000000e+00> : vector<2x128xf32>
    %1935 = tpu.matmul %1934, %1661, %cst_595 {dimension_numbers = #tpu.dot_dimension_numbers<[1], [0], [0], [1], [0, 0, 1, 1], [], []>} : vector<2x32xbf16>, vector<32x128xbf16>, vector<2x128xf32> -> vector<2x128xf32>
    %c3_596 = arith.constant 3 : index
    %c0_597 = arith.constant 0 : index
    %c0_598 = arith.constant 0 : index
    %1936 = vector.load %arg32[%c3_596, %c0_597, %c0_598] : memref<8x2x128xf32, #tpu.memory_space<vmem>>, vector<1x2x128xf32>
    %1937 = vector.shape_cast %1936 : vector<1x2x128xf32> to vector<2x128xf32>
    %1938 = vector.extract_strided_slice %1937 {offsets = [0, 0], sizes = [2, 64], strides = [1, 1]} : vector<2x128xf32> to vector<2x64xf32>
    %1939 = vector.extract_strided_slice %1935 {offsets = [0, 0], sizes = [2, 64], strides = [1, 1]} : vector<2x128xf32> to vector<2x64xf32>
    %1940 = arith.addf %1938, %1939 : vector<2x64xf32>
    %c4_599 = arith.constant 4 : index
    %c0_600 = arith.constant 0 : index
    %c0_601 = arith.constant 0 : index
    %1941 = vector.load %arg32[%c4_599, %c0_600, %c0_601] : memref<8x2x128xf32, #tpu.memory_space<vmem>>, vector<1x2x128xf32>
    %1942 = vector.shape_cast %1941 : vector<1x2x128xf32> to vector<2x128xf32>
    %1943 = vector.extract_strided_slice %1942 {offsets = [0, 64], sizes = [2, 64], strides = [1, 1]} : vector<2x128xf32> to vector<2x64xf32>
    %1944 = vector.extract_strided_slice %1935 {offsets = [0, 64], sizes = [2, 64], strides = [1, 1]} : vector<2x128xf32> to vector<2x64xf32>
    %1945 = arith.addf %1943, %1944 : vector<2x64xf32>
    %1946 = vector.extract_strided_slice %1940 {offsets = [0, 0], sizes = [2, 16], strides = [1, 1]} : vector<2x64xf32> to vector<2x16xf32>
    %1947 = arith.negf %1946 : vector<2x16xf32>
    %1948 = math.exp %1947 : vector<2x16xf32>
    %cst_602 = arith.constant 1.000000e+00 : f32
    %1949 = vector.broadcast %cst_602 : f32 to vector<2x16xf32>
    %1950 = arith.addf %1949, %1948 : vector<2x16xf32>
    %1951 = arith.divf %1949, %1950 : vector<2x16xf32>
    %1952 = vector.extract_strided_slice %1940 {offsets = [0, 16], sizes = [2, 16], strides = [1, 1]} : vector<2x64xf32> to vector<2x16xf32>
    %1953 = arith.negf %1952 : vector<2x16xf32>
    %1954 = math.exp %1953 : vector<2x16xf32>
    %cst_603 = arith.constant 1.000000e+00 : f32
    %1955 = vector.broadcast %cst_603 : f32 to vector<2x16xf32>
    %1956 = arith.addf %1955, %1954 : vector<2x16xf32>
    %1957 = arith.divf %1955, %1956 : vector<2x16xf32>
    %1958 = vector.extract_strided_slice %1940 {offsets = [0, 32], sizes = [2, 16], strides = [1, 1]} : vector<2x64xf32> to vector<2x16xf32>
    %1959 = math.tanh %1958 : vector<2x16xf32>
    %1960 = vector.extract_strided_slice %1940 {offsets = [0, 48], sizes = [2, 16], strides = [1, 1]} : vector<2x64xf32> to vector<2x16xf32>
    %1961 = arith.negf %1960 : vector<2x16xf32>
    %1962 = math.exp %1961 : vector<2x16xf32>
    %cst_604 = arith.constant 1.000000e+00 : f32
    %1963 = vector.broadcast %cst_604 : f32 to vector<2x16xf32>
    %1964 = arith.addf %1963, %1962 : vector<2x16xf32>
    %1965 = arith.divf %1963, %1964 : vector<2x16xf32>
    %1966 = arith.mulf %1957, %1918 : vector<2x16xf32>
    %1967 = arith.mulf %1951, %1959 : vector<2x16xf32>
    %1968 = arith.addf %1966, %1967 : vector<2x16xf32>
    %1969 = math.tanh %1968 : vector<2x16xf32>
    %1970 = arith.mulf %1965, %1969 : vector<2x16xf32>
    %1971 = vector.extract_strided_slice %1945 {offsets = [0, 0], sizes = [2, 16], strides = [1, 1]} : vector<2x64xf32> to vector<2x16xf32>
    %1972 = arith.negf %1971 : vector<2x16xf32>
    %1973 = math.exp %1972 : vector<2x16xf32>
    %cst_605 = arith.constant 1.000000e+00 : f32
    %1974 = vector.broadcast %cst_605 : f32 to vector<2x16xf32>
    %1975 = arith.addf %1974, %1973 : vector<2x16xf32>
    %1976 = arith.divf %1974, %1975 : vector<2x16xf32>
    %1977 = vector.extract_strided_slice %1945 {offsets = [0, 16], sizes = [2, 16], strides = [1, 1]} : vector<2x64xf32> to vector<2x16xf32>
    %1978 = arith.negf %1977 : vector<2x16xf32>
    %1979 = math.exp %1978 : vector<2x16xf32>
    %cst_606 = arith.constant 1.000000e+00 : f32
    %1980 = vector.broadcast %cst_606 : f32 to vector<2x16xf32>
    %1981 = arith.addf %1980, %1979 : vector<2x16xf32>
    %1982 = arith.divf %1980, %1981 : vector<2x16xf32>
    %1983 = vector.extract_strided_slice %1945 {offsets = [0, 32], sizes = [2, 16], strides = [1, 1]} : vector<2x64xf32> to vector<2x16xf32>
    %1984 = math.tanh %1983 : vector<2x16xf32>
    %1985 = vector.extract_strided_slice %1945 {offsets = [0, 48], sizes = [2, 16], strides = [1, 1]} : vector<2x64xf32> to vector<2x16xf32>
    %1986 = arith.negf %1985 : vector<2x16xf32>
    %1987 = math.exp %1986 : vector<2x16xf32>
    %cst_607 = arith.constant 1.000000e+00 : f32
    %1988 = vector.broadcast %cst_607 : f32 to vector<2x16xf32>
    %1989 = arith.addf %1988, %1987 : vector<2x16xf32>
    %1990 = arith.divf %1988, %1989 : vector<2x16xf32>
    %1991 = arith.mulf %1982, %1926 : vector<2x16xf32>
    %1992 = arith.mulf %1976, %1984 : vector<2x16xf32>
    %1993 = arith.addf %1991, %1992 : vector<2x16xf32>
    %1994 = math.tanh %1993 : vector<2x16xf32>
    %1995 = arith.mulf %1990, %1994 : vector<2x16xf32>
    %c3_i32_608 = arith.constant 3 : i32
    %1996 = vector.broadcast %c3_i32_608 : i32 to vector<2x1xi32>
    %1997 = arith.cmpi sgt, %931, %1996 : vector<2x1xi32>
    %c4_i32_609 = arith.constant 4 : i32
    %1998 = vector.broadcast %c4_i32_609 : i32 to vector<2x1xi32>
    %1999 = arith.cmpi sgt, %931, %1998 : vector<2x1xi32>
    %cst_610 = arith.constant 0.000000e+00 : f32
    %2000 = vector.shape_cast %1997 : vector<2x1xi1> to vector<2x1xi1>
    %2001 = vector.broadcast %2000 : vector<2x1xi1> to vector<2x16xi1>
    %2002 = vector.broadcast %cst_610 : f32 to vector<2x16xf32>
    %2003 = arith.select %2001, %1970, %2002 : vector<2x16xi1>, vector<2x16xf32>
    %cst_611 = arith.constant 0.000000e+00 : f32
    %2004 = vector.shape_cast %1997 : vector<2x1xi1> to vector<2x1xi1>
    %2005 = vector.broadcast %2004 : vector<2x1xi1> to vector<2x16xi1>
    %2006 = vector.broadcast %cst_611 : f32 to vector<2x16xf32>
    %2007 = arith.select %2005, %1968, %2006 : vector<2x16xi1>, vector<2x16xf32>
    %cst_612 = arith.constant 0.000000e+00 : f32
    %2008 = vector.shape_cast %1999 : vector<2x1xi1> to vector<2x1xi1>
    %2009 = vector.broadcast %2008 : vector<2x1xi1> to vector<2x16xi1>
    %2010 = vector.broadcast %cst_612 : f32 to vector<2x16xf32>
    %2011 = arith.select %2009, %1995, %2010 : vector<2x16xi1>, vector<2x16xf32>
    %cst_613 = arith.constant 0.000000e+00 : f32
    %2012 = vector.shape_cast %1999 : vector<2x1xi1> to vector<2x1xi1>
    %2013 = vector.broadcast %2012 : vector<2x1xi1> to vector<2x16xi1>
    %2014 = vector.broadcast %cst_613 : f32 to vector<2x16xf32>
    %2015 = arith.select %2013, %1993, %2014 : vector<2x16xi1>, vector<2x16xf32>
    %c3_614 = arith.constant 3 : index
    %c0_615 = arith.constant 0 : index
    %c0_616 = arith.constant 0 : index
    %2016 = vector.load %arg33[%c3_614, %c0_615, %c0_616] : memref<8x2x16xf32, #tpu.memory_space<vmem>>, vector<1x2x16xf32>
    %2017 = vector.shape_cast %2016 : vector<1x2x16xf32> to vector<2x16xf32>
    %2018 = vector.shape_cast %2003 : vector<2x16xf32> to vector<1x2x16xf32>
    tpu.vector_store %arg33[%c3_614, %c0_615, %c0_616], %2018 {strides = array<i32>} : memref<8x2x16xf32, #tpu.memory_space<vmem>>, vector<1x2x16xf32>,
    %c4_617 = arith.constant 4 : index
    %c0_618 = arith.constant 0 : index
    %c0_619 = arith.constant 0 : index
    %2019 = vector.load %arg34[%c4_617, %c0_618, %c0_619] : memref<8x2x16xf32, #tpu.memory_space<vmem>>, vector<1x2x16xf32>
    %2020 = vector.shape_cast %2019 : vector<1x2x16xf32> to vector<2x16xf32>
    %2021 = vector.shape_cast %2011 : vector<2x16xf32> to vector<1x2x16xf32>
    tpu.vector_store %arg34[%c4_617, %c0_618, %c0_619], %2021 {strides = array<i32>} : memref<8x2x16xf32, #tpu.memory_space<vmem>>, vector<1x2x16xf32>,
    %2022 = tpu.concatenate %2003, %2011 in 1 : vector<2x16xf32>, vector<2x16xf32> -> vector<2x32xf32>
    %2023 = arith.truncf %2022 : vector<2x32xf32> to vector<2x32xbf16>
    %cst_620 = arith.constant dense<0.000000e+00> : vector<2x128xf32>
    %2024 = tpu.matmul %2023, %1661, %cst_620 {dimension_numbers = #tpu.dot_dimension_numbers<[1], [0], [0], [1], [0, 0, 1, 1], [], []>} : vector<2x32xbf16>, vector<32x128xbf16>, vector<2x128xf32> -> vector<2x128xf32>
    %c4_621 = arith.constant 4 : index
    %c0_622 = arith.constant 0 : index
    %c0_623 = arith.constant 0 : index
    %2025 = vector.load %arg32[%c4_621, %c0_622, %c0_623] : memref<8x2x128xf32, #tpu.memory_space<vmem>>, vector<1x2x128xf32>
    %2026 = vector.shape_cast %2025 : vector<1x2x128xf32> to vector<2x128xf32>
    %2027 = vector.extract_strided_slice %2026 {offsets = [0, 0], sizes = [2, 64], strides = [1, 1]} : vector<2x128xf32> to vector<2x64xf32>
    %2028 = vector.extract_strided_slice %2024 {offsets = [0, 0], sizes = [2, 64], strides = [1, 1]} : vector<2x128xf32> to vector<2x64xf32>
    %2029 = arith.addf %2027, %2028 : vector<2x64xf32>
    %c3_624 = arith.constant 3 : index
    %c0_625 = arith.constant 0 : index
    %c0_626 = arith.constant 0 : index
    %2030 = vector.load %arg32[%c3_624, %c0_625, %c0_626] : memref<8x2x128xf32, #tpu.memory_space<vmem>>, vector<1x2x128xf32>
    %2031 = vector.shape_cast %2030 : vector<1x2x128xf32> to vector<2x128xf32>
    %2032 = vector.extract_strided_slice %2031 {offsets = [0, 64], sizes = [2, 64], strides = [1, 1]} : vector<2x128xf32> to vector<2x64xf32>
    %2033 = vector.extract_strided_slice %2024 {offsets = [0, 64], sizes = [2, 64], strides = [1, 1]} : vector<2x128xf32> to vector<2x64xf32>
    %2034 = arith.addf %2032, %2033 : vector<2x64xf32>
    %2035 = vector.extract_strided_slice %2029 {offsets = [0, 0], sizes = [2, 16], strides = [1, 1]} : vector<2x64xf32> to vector<2x16xf32>
    %2036 = arith.negf %2035 : vector<2x16xf32>
    %2037 = math.exp %2036 : vector<2x16xf32>
    %cst_627 = arith.constant 1.000000e+00 : f32
    %2038 = vector.broadcast %cst_627 : f32 to vector<2x16xf32>
    %2039 = arith.addf %2038, %2037 : vector<2x16xf32>
    %2040 = arith.divf %2038, %2039 : vector<2x16xf32>
    %2041 = vector.extract_strided_slice %2029 {offsets = [0, 16], sizes = [2, 16], strides = [1, 1]} : vector<2x64xf32> to vector<2x16xf32>
    %2042 = arith.negf %2041 : vector<2x16xf32>
    %2043 = math.exp %2042 : vector<2x16xf32>
    %cst_628 = arith.constant 1.000000e+00 : f32
    %2044 = vector.broadcast %cst_628 : f32 to vector<2x16xf32>
    %2045 = arith.addf %2044, %2043 : vector<2x16xf32>
    %2046 = arith.divf %2044, %2045 : vector<2x16xf32>
    %2047 = vector.extract_strided_slice %2029 {offsets = [0, 32], sizes = [2, 16], strides = [1, 1]} : vector<2x64xf32> to vector<2x16xf32>
    %2048 = math.tanh %2047 : vector<2x16xf32>
    %2049 = vector.extract_strided_slice %2029 {offsets = [0, 48], sizes = [2, 16], strides = [1, 1]} : vector<2x64xf32> to vector<2x16xf32>
    %2050 = arith.negf %2049 : vector<2x16xf32>
    %2051 = math.exp %2050 : vector<2x16xf32>
    %cst_629 = arith.constant 1.000000e+00 : f32
    %2052 = vector.broadcast %cst_629 : f32 to vector<2x16xf32>
    %2053 = arith.addf %2052, %2051 : vector<2x16xf32>
    %2054 = arith.divf %2052, %2053 : vector<2x16xf32>
    %2055 = arith.mulf %2046, %2007 : vector<2x16xf32>
    %2056 = arith.mulf %2040, %2048 : vector<2x16xf32>
    %2057 = arith.addf %2055, %2056 : vector<2x16xf32>
    %2058 = math.tanh %2057 : vector<2x16xf32>
    %2059 = arith.mulf %2054, %2058 : vector<2x16xf32>
    %2060 = vector.extract_strided_slice %2034 {offsets = [0, 0], sizes = [2, 16], strides = [1, 1]} : vector<2x64xf32> to vector<2x16xf32>
    %2061 = arith.negf %2060 : vector<2x16xf32>
    %2062 = math.exp %2061 : vector<2x16xf32>
    %cst_630 = arith.constant 1.000000e+00 : f32
    %2063 = vector.broadcast %cst_630 : f32 to vector<2x16xf32>
    %2064 = arith.addf %2063, %2062 : vector<2x16xf32>
    %2065 = arith.divf %2063, %2064 : vector<2x16xf32>
    %2066 = vector.extract_strided_slice %2034 {offsets = [0, 16], sizes = [2, 16], strides = [1, 1]} : vector<2x64xf32> to vector<2x16xf32>
    %2067 = arith.negf %2066 : vector<2x16xf32>
    %2068 = math.exp %2067 : vector<2x16xf32>
    %cst_631 = arith.constant 1.000000e+00 : f32
    %2069 = vector.broadcast %cst_631 : f32 to vector<2x16xf32>
    %2070 = arith.addf %2069, %2068 : vector<2x16xf32>
    %2071 = arith.divf %2069, %2070 : vector<2x16xf32>
    %2072 = vector.extract_strided_slice %2034 {offsets = [0, 32], sizes = [2, 16], strides = [1, 1]} : vector<2x64xf32> to vector<2x16xf32>
    %2073 = math.tanh %2072 : vector<2x16xf32>
    %2074 = vector.extract_strided_slice %2034 {offsets = [0, 48], sizes = [2, 16], strides = [1, 1]} : vector<2x64xf32> to vector<2x16xf32>
    %2075 = arith.negf %2074 : vector<2x16xf32>
    %2076 = math.exp %2075 : vector<2x16xf32>
    %cst_632 = arith.constant 1.000000e+00 : f32
    %2077 = vector.broadcast %cst_632 : f32 to vector<2x16xf32>
    %2078 = arith.addf %2077, %2076 : vector<2x16xf32>
    %2079 = arith.divf %2077, %2078 : vector<2x16xf32>
    %2080 = arith.mulf %2071, %2015 : vector<2x16xf32>
    %2081 = arith.mulf %2065, %2073 : vector<2x16xf32>
    %2082 = arith.addf %2080, %2081 : vector<2x16xf32>
    %2083 = math.tanh %2082 : vector<2x16xf32>
    %2084 = arith.mulf %2079, %2083 : vector<2x16xf32>
    %c4_i32_633 = arith.constant 4 : i32
    %2085 = vector.broadcast %c4_i32_633 : i32 to vector<2x1xi32>
    %2086 = arith.cmpi sgt, %931, %2085 : vector<2x1xi32>
    %c3_i32_634 = arith.constant 3 : i32
    %2087 = vector.broadcast %c3_i32_634 : i32 to vector<2x1xi32>
    %2088 = arith.cmpi sgt, %931, %2087 : vector<2x1xi32>
    %cst_635 = arith.constant 0.000000e+00 : f32
    %2089 = vector.shape_cast %2086 : vector<2x1xi1> to vector<2x1xi1>
    %2090 = vector.broadcast %2089 : vector<2x1xi1> to vector<2x16xi1>
    %2091 = vector.broadcast %cst_635 : f32 to vector<2x16xf32>
    %2092 = arith.select %2090, %2059, %2091 : vector<2x16xi1>, vector<2x16xf32>
    %cst_636 = arith.constant 0.000000e+00 : f32
    %2093 = vector.shape_cast %2086 : vector<2x1xi1> to vector<2x1xi1>
    %2094 = vector.broadcast %2093 : vector<2x1xi1> to vector<2x16xi1>
    %2095 = vector.broadcast %cst_636 : f32 to vector<2x16xf32>
    %2096 = arith.select %2094, %2057, %2095 : vector<2x16xi1>, vector<2x16xf32>
    %cst_637 = arith.constant 0.000000e+00 : f32
    %2097 = vector.shape_cast %2088 : vector<2x1xi1> to vector<2x1xi1>
    %2098 = vector.broadcast %2097 : vector<2x1xi1> to vector<2x16xi1>
    %2099 = vector.broadcast %cst_637 : f32 to vector<2x16xf32>
    %2100 = arith.select %2098, %2084, %2099 : vector<2x16xi1>, vector<2x16xf32>
    %cst_638 = arith.constant 0.000000e+00 : f32
    %2101 = vector.shape_cast %2088 : vector<2x1xi1> to vector<2x1xi1>
    %2102 = vector.broadcast %2101 : vector<2x1xi1> to vector<2x16xi1>
    %2103 = vector.broadcast %cst_638 : f32 to vector<2x16xf32>
    %2104 = arith.select %2102, %2082, %2103 : vector<2x16xi1>, vector<2x16xf32>
    %c4_639 = arith.constant 4 : index
    %c0_640 = arith.constant 0 : index
    %c0_641 = arith.constant 0 : index
    %2105 = vector.load %arg33[%c4_639, %c0_640, %c0_641] : memref<8x2x16xf32, #tpu.memory_space<vmem>>, vector<1x2x16xf32>
    %2106 = vector.shape_cast %2105 : vector<1x2x16xf32> to vector<2x16xf32>
    %2107 = vector.shape_cast %2092 : vector<2x16xf32> to vector<1x2x16xf32>
    tpu.vector_store %arg33[%c4_639, %c0_640, %c0_641], %2107 {strides = array<i32>} : memref<8x2x16xf32, #tpu.memory_space<vmem>>, vector<1x2x16xf32>,
    %c3_642 = arith.constant 3 : index
    %c0_643 = arith.constant 0 : index
    %c0_644 = arith.constant 0 : index
    %2108 = vector.load %arg34[%c3_642, %c0_643, %c0_644] : memref<8x2x16xf32, #tpu.memory_space<vmem>>, vector<1x2x16xf32>
    %2109 = vector.shape_cast %2108 : vector<1x2x16xf32> to vector<2x16xf32>
    %2110 = vector.shape_cast %2100 : vector<2x16xf32> to vector<1x2x16xf32>
    tpu.vector_store %arg34[%c3_642, %c0_643, %c0_644], %2110 {strides = array<i32>} : memref<8x2x16xf32, #tpu.memory_space<vmem>>, vector<1x2x16xf32>,
    %2111 = tpu.concatenate %2092, %2100 in 1 : vector<2x16xf32>, vector<2x16xf32> -> vector<2x32xf32>
    %2112 = arith.truncf %2111 : vector<2x32xf32> to vector<2x32xbf16>
    %cst_645 = arith.constant dense<0.000000e+00> : vector<2x128xf32>
    %2113 = tpu.matmul %2112, %1661, %cst_645 {dimension_numbers = #tpu.dot_dimension_numbers<[1], [0], [0], [1], [0, 0, 1, 1], [], []>} : vector<2x32xbf16>, vector<32x128xbf16>, vector<2x128xf32> -> vector<2x128xf32>
    %c5_646 = arith.constant 5 : index
    %c0_647 = arith.constant 0 : index
    %c0_648 = arith.constant 0 : index
    %2114 = vector.load %arg32[%c5_646, %c0_647, %c0_648] : memref<8x2x128xf32, #tpu.memory_space<vmem>>, vector<1x2x128xf32>
    %2115 = vector.shape_cast %2114 : vector<1x2x128xf32> to vector<2x128xf32>
    %2116 = vector.extract_strided_slice %2115 {offsets = [0, 0], sizes = [2, 64], strides = [1, 1]} : vector<2x128xf32> to vector<2x64xf32>
    %2117 = vector.extract_strided_slice %2113 {offsets = [0, 0], sizes = [2, 64], strides = [1, 1]} : vector<2x128xf32> to vector<2x64xf32>
    %2118 = arith.addf %2116, %2117 : vector<2x64xf32>
    %c2_649 = arith.constant 2 : index
    %c0_650 = arith.constant 0 : index
    %c0_651 = arith.constant 0 : index
    %2119 = vector.load %arg32[%c2_649, %c0_650, %c0_651] : memref<8x2x128xf32, #tpu.memory_space<vmem>>, vector<1x2x128xf32>
    %2120 = vector.shape_cast %2119 : vector<1x2x128xf32> to vector<2x128xf32>
    %2121 = vector.extract_strided_slice %2120 {offsets = [0, 64], sizes = [2, 64], strides = [1, 1]} : vector<2x128xf32> to vector<2x64xf32>
    %2122 = vector.extract_strided_slice %2113 {offsets = [0, 64], sizes = [2, 64], strides = [1, 1]} : vector<2x128xf32> to vector<2x64xf32>
    %2123 = arith.addf %2121, %2122 : vector<2x64xf32>
    %2124 = vector.extract_strided_slice %2118 {offsets = [0, 0], sizes = [2, 16], strides = [1, 1]} : vector<2x64xf32> to vector<2x16xf32>
    %2125 = arith.negf %2124 : vector<2x16xf32>
    %2126 = math.exp %2125 : vector<2x16xf32>
    %cst_652 = arith.constant 1.000000e+00 : f32
    %2127 = vector.broadcast %cst_652 : f32 to vector<2x16xf32>
    %2128 = arith.addf %2127, %2126 : vector<2x16xf32>
    %2129 = arith.divf %2127, %2128 : vector<2x16xf32>
    %2130 = vector.extract_strided_slice %2118 {offsets = [0, 16], sizes = [2, 16], strides = [1, 1]} : vector<2x64xf32> to vector<2x16xf32>
    %2131 = arith.negf %2130 : vector<2x16xf32>
    %2132 = math.exp %2131 : vector<2x16xf32>
    %cst_653 = arith.constant 1.000000e+00 : f32
    %2133 = vector.broadcast %cst_653 : f32 to vector<2x16xf32>
    %2134 = arith.addf %2133, %2132 : vector<2x16xf32>
    %2135 = arith.divf %2133, %2134 : vector<2x16xf32>
    %2136 = vector.extract_strided_slice %2118 {offsets = [0, 32], sizes = [2, 16], strides = [1, 1]} : vector<2x64xf32> to vector<2x16xf32>
    %2137 = math.tanh %2136 : vector<2x16xf32>
    %2138 = vector.extract_strided_slice %2118 {offsets = [0, 48], sizes = [2, 16], strides = [1, 1]} : vector<2x64xf32> to vector<2x16xf32>
    %2139 = arith.negf %2138 : vector<2x16xf32>
    %2140 = math.exp %2139 : vector<2x16xf32>
    %cst_654 = arith.constant 1.000000e+00 : f32
    %2141 = vector.broadcast %cst_654 : f32 to vector<2x16xf32>
    %2142 = arith.addf %2141, %2140 : vector<2x16xf32>
    %2143 = arith.divf %2141, %2142 : vector<2x16xf32>
    %2144 = arith.mulf %2135, %2096 : vector<2x16xf32>
    %2145 = arith.mulf %2129, %2137 : vector<2x16xf32>
    %2146 = arith.addf %2144, %2145 : vector<2x16xf32>
    %2147 = math.tanh %2146 : vector<2x16xf32>
    %2148 = arith.mulf %2143, %2147 : vector<2x16xf32>
    %2149 = vector.extract_strided_slice %2123 {offsets = [0, 0], sizes = [2, 16], strides = [1, 1]} : vector<2x64xf32> to vector<2x16xf32>
    %2150 = arith.negf %2149 : vector<2x16xf32>
    %2151 = math.exp %2150 : vector<2x16xf32>
    %cst_655 = arith.constant 1.000000e+00 : f32
    %2152 = vector.broadcast %cst_655 : f32 to vector<2x16xf32>
    %2153 = arith.addf %2152, %2151 : vector<2x16xf32>
    %2154 = arith.divf %2152, %2153 : vector<2x16xf32>
    %2155 = vector.extract_strided_slice %2123 {offsets = [0, 16], sizes = [2, 16], strides = [1, 1]} : vector<2x64xf32> to vector<2x16xf32>
    %2156 = arith.negf %2155 : vector<2x16xf32>
    %2157 = math.exp %2156 : vector<2x16xf32>
    %cst_656 = arith.constant 1.000000e+00 : f32
    %2158 = vector.broadcast %cst_656 : f32 to vector<2x16xf32>
    %2159 = arith.addf %2158, %2157 : vector<2x16xf32>
    %2160 = arith.divf %2158, %2159 : vector<2x16xf32>
    %2161 = vector.extract_strided_slice %2123 {offsets = [0, 32], sizes = [2, 16], strides = [1, 1]} : vector<2x64xf32> to vector<2x16xf32>
    %2162 = math.tanh %2161 : vector<2x16xf32>
    %2163 = vector.extract_strided_slice %2123 {offsets = [0, 48], sizes = [2, 16], strides = [1, 1]} : vector<2x64xf32> to vector<2x16xf32>
    %2164 = arith.negf %2163 : vector<2x16xf32>
    %2165 = math.exp %2164 : vector<2x16xf32>
    %cst_657 = arith.constant 1.000000e+00 : f32
    %2166 = vector.broadcast %cst_657 : f32 to vector<2x16xf32>
    %2167 = arith.addf %2166, %2165 : vector<2x16xf32>
    %2168 = arith.divf %2166, %2167 : vector<2x16xf32>
    %2169 = arith.mulf %2160, %2104 : vector<2x16xf32>
    %2170 = arith.mulf %2154, %2162 : vector<2x16xf32>
    %2171 = arith.addf %2169, %2170 : vector<2x16xf32>
    %2172 = math.tanh %2171 : vector<2x16xf32>
    %2173 = arith.mulf %2168, %2172 : vector<2x16xf32>
    %c5_i32_658 = arith.constant 5 : i32
    %2174 = vector.broadcast %c5_i32_658 : i32 to vector<2x1xi32>
    %2175 = arith.cmpi sgt, %931, %2174 : vector<2x1xi32>
    %c2_i32_659 = arith.constant 2 : i32
    %2176 = vector.broadcast %c2_i32_659 : i32 to vector<2x1xi32>
    %2177 = arith.cmpi sgt, %931, %2176 : vector<2x1xi32>
    %cst_660 = arith.constant 0.000000e+00 : f32
    %2178 = vector.shape_cast %2175 : vector<2x1xi1> to vector<2x1xi1>
    %2179 = vector.broadcast %2178 : vector<2x1xi1> to vector<2x16xi1>
    %2180 = vector.broadcast %cst_660 : f32 to vector<2x16xf32>
    %2181 = arith.select %2179, %2148, %2180 : vector<2x16xi1>, vector<2x16xf32>
    %cst_661 = arith.constant 0.000000e+00 : f32
    %2182 = vector.shape_cast %2175 : vector<2x1xi1> to vector<2x1xi1>
    %2183 = vector.broadcast %2182 : vector<2x1xi1> to vector<2x16xi1>
    %2184 = vector.broadcast %cst_661 : f32 to vector<2x16xf32>
    %2185 = arith.select %2183, %2146, %2184 : vector<2x16xi1>, vector<2x16xf32>
    %cst_662 = arith.constant 0.000000e+00 : f32
    %2186 = vector.shape_cast %2177 : vector<2x1xi1> to vector<2x1xi1>
    %2187 = vector.broadcast %2186 : vector<2x1xi1> to vector<2x16xi1>
    %2188 = vector.broadcast %cst_662 : f32 to vector<2x16xf32>
    %2189 = arith.select %2187, %2173, %2188 : vector<2x16xi1>, vector<2x16xf32>
    %cst_663 = arith.constant 0.000000e+00 : f32
    %2190 = vector.shape_cast %2177 : vector<2x1xi1> to vector<2x1xi1>
    %2191 = vector.broadcast %2190 : vector<2x1xi1> to vector<2x16xi1>
    %2192 = vector.broadcast %cst_663 : f32 to vector<2x16xf32>
    %2193 = arith.select %2191, %2171, %2192 : vector<2x16xi1>, vector<2x16xf32>
    %c5_664 = arith.constant 5 : index
    %c0_665 = arith.constant 0 : index
    %c0_666 = arith.constant 0 : index
    %2194 = vector.load %arg33[%c5_664, %c0_665, %c0_666] : memref<8x2x16xf32, #tpu.memory_space<vmem>>, vector<1x2x16xf32>
    %2195 = vector.shape_cast %2194 : vector<1x2x16xf32> to vector<2x16xf32>
    %2196 = vector.shape_cast %2181 : vector<2x16xf32> to vector<1x2x16xf32>
    tpu.vector_store %arg33[%c5_664, %c0_665, %c0_666], %2196 {strides = array<i32>} : memref<8x2x16xf32, #tpu.memory_space<vmem>>, vector<1x2x16xf32>,
    %c2_667 = arith.constant 2 : index
    %c0_668 = arith.constant 0 : index
    %c0_669 = arith.constant 0 : index
    %2197 = vector.load %arg34[%c2_667, %c0_668, %c0_669] : memref<8x2x16xf32, #tpu.memory_space<vmem>>, vector<1x2x16xf32>
    %2198 = vector.shape_cast %2197 : vector<1x2x16xf32> to vector<2x16xf32>
    %2199 = vector.shape_cast %2189 : vector<2x16xf32> to vector<1x2x16xf32>
    tpu.vector_store %arg34[%c2_667, %c0_668, %c0_669], %2199 {strides = array<i32>} : memref<8x2x16xf32, #tpu.memory_space<vmem>>, vector<1x2x16xf32>,
    %2200 = tpu.concatenate %2181, %2189 in 1 : vector<2x16xf32>, vector<2x16xf32> -> vector<2x32xf32>
    %2201 = arith.truncf %2200 : vector<2x32xf32> to vector<2x32xbf16>
    %cst_670 = arith.constant dense<0.000000e+00> : vector<2x128xf32>
    %2202 = tpu.matmul %2201, %1661, %cst_670 {dimension_numbers = #tpu.dot_dimension_numbers<[1], [0], [0], [1], [0, 0, 1, 1], [], []>} : vector<2x32xbf16>, vector<32x128xbf16>, vector<2x128xf32> -> vector<2x128xf32>
    %c6_671 = arith.constant 6 : index
    %c0_672 = arith.constant 0 : index
    %c0_673 = arith.constant 0 : index
    %2203 = vector.load %arg32[%c6_671, %c0_672, %c0_673] : memref<8x2x128xf32, #tpu.memory_space<vmem>>, vector<1x2x128xf32>
    %2204 = vector.shape_cast %2203 : vector<1x2x128xf32> to vector<2x128xf32>
    %2205 = vector.extract_strided_slice %2204 {offsets = [0, 0], sizes = [2, 64], strides = [1, 1]} : vector<2x128xf32> to vector<2x64xf32>
    %2206 = vector.extract_strided_slice %2202 {offsets = [0, 0], sizes = [2, 64], strides = [1, 1]} : vector<2x128xf32> to vector<2x64xf32>
    %2207 = arith.addf %2205, %2206 : vector<2x64xf32>
    %c1_674 = arith.constant 1 : index
    %c0_675 = arith.constant 0 : index
    %c0_676 = arith.constant 0 : index
    %2208 = vector.load %arg32[%c1_674, %c0_675, %c0_676] : memref<8x2x128xf32, #tpu.memory_space<vmem>>, vector<1x2x128xf32>
    %2209 = vector.shape_cast %2208 : vector<1x2x128xf32> to vector<2x128xf32>
    %2210 = vector.extract_strided_slice %2209 {offsets = [0, 64], sizes = [2, 64], strides = [1, 1]} : vector<2x128xf32> to vector<2x64xf32>
    %2211 = vector.extract_strided_slice %2202 {offsets = [0, 64], sizes = [2, 64], strides = [1, 1]} : vector<2x128xf32> to vector<2x64xf32>
    %2212 = arith.addf %2210, %2211 : vector<2x64xf32>
    %2213 = vector.extract_strided_slice %2207 {offsets = [0, 0], sizes = [2, 16], strides = [1, 1]} : vector<2x64xf32> to vector<2x16xf32>
    %2214 = arith.negf %2213 : vector<2x16xf32>
    %2215 = math.exp %2214 : vector<2x16xf32>
    %cst_677 = arith.constant 1.000000e+00 : f32
    %2216 = vector.broadcast %cst_677 : f32 to vector<2x16xf32>
    %2217 = arith.addf %2216, %2215 : vector<2x16xf32>
    %2218 = arith.divf %2216, %2217 : vector<2x16xf32>
    %2219 = vector.extract_strided_slice %2207 {offsets = [0, 16], sizes = [2, 16], strides = [1, 1]} : vector<2x64xf32> to vector<2x16xf32>
    %2220 = arith.negf %2219 : vector<2x16xf32>
    %2221 = math.exp %2220 : vector<2x16xf32>
    %cst_678 = arith.constant 1.000000e+00 : f32
    %2222 = vector.broadcast %cst_678 : f32 to vector<2x16xf32>
    %2223 = arith.addf %2222, %2221 : vector<2x16xf32>
    %2224 = arith.divf %2222, %2223 : vector<2x16xf32>
    %2225 = vector.extract_strided_slice %2207 {offsets = [0, 32], sizes = [2, 16], strides = [1, 1]} : vector<2x64xf32> to vector<2x16xf32>
    %2226 = math.tanh %2225 : vector<2x16xf32>
    %2227 = vector.extract_strided_slice %2207 {offsets = [0, 48], sizes = [2, 16], strides = [1, 1]} : vector<2x64xf32> to vector<2x16xf32>
    %2228 = arith.negf %2227 : vector<2x16xf32>
    %2229 = math.exp %2228 : vector<2x16xf32>
    %cst_679 = arith.constant 1.000000e+00 : f32
    %2230 = vector.broadcast %cst_679 : f32 to vector<2x16xf32>
    %2231 = arith.addf %2230, %2229 : vector<2x16xf32>
    %2232 = arith.divf %2230, %2231 : vector<2x16xf32>
    %2233 = arith.mulf %2224, %2185 : vector<2x16xf32>
    %2234 = arith.mulf %2218, %2226 : vector<2x16xf32>
    %2235 = arith.addf %2233, %2234 : vector<2x16xf32>
    %2236 = math.tanh %2235 : vector<2x16xf32>
    %2237 = arith.mulf %2232, %2236 : vector<2x16xf32>
    %2238 = vector.extract_strided_slice %2212 {offsets = [0, 0], sizes = [2, 16], strides = [1, 1]} : vector<2x64xf32> to vector<2x16xf32>
    %2239 = arith.negf %2238 : vector<2x16xf32>
    %2240 = math.exp %2239 : vector<2x16xf32>
    %cst_680 = arith.constant 1.000000e+00 : f32
    %2241 = vector.broadcast %cst_680 : f32 to vector<2x16xf32>
    %2242 = arith.addf %2241, %2240 : vector<2x16xf32>
    %2243 = arith.divf %2241, %2242 : vector<2x16xf32>
    %2244 = vector.extract_strided_slice %2212 {offsets = [0, 16], sizes = [2, 16], strides = [1, 1]} : vector<2x64xf32> to vector<2x16xf32>
    %2245 = arith.negf %2244 : vector<2x16xf32>
    %2246 = math.exp %2245 : vector<2x16xf32>
    %cst_681 = arith.constant 1.000000e+00 : f32
    %2247 = vector.broadcast %cst_681 : f32 to vector<2x16xf32>
    %2248 = arith.addf %2247, %2246 : vector<2x16xf32>
    %2249 = arith.divf %2247, %2248 : vector<2x16xf32>
    %2250 = vector.extract_strided_slice %2212 {offsets = [0, 32], sizes = [2, 16], strides = [1, 1]} : vector<2x64xf32> to vector<2x16xf32>
    %2251 = math.tanh %2250 : vector<2x16xf32>
    %2252 = vector.extract_strided_slice %2212 {offsets = [0, 48], sizes = [2, 16], strides = [1, 1]} : vector<2x64xf32> to vector<2x16xf32>
    %2253 = arith.negf %2252 : vector<2x16xf32>
    %2254 = math.exp %2253 : vector<2x16xf32>
    %cst_682 = arith.constant 1.000000e+00 : f32
    %2255 = vector.broadcast %cst_682 : f32 to vector<2x16xf32>
    %2256 = arith.addf %2255, %2254 : vector<2x16xf32>
    %2257 = arith.divf %2255, %2256 : vector<2x16xf32>
    %2258 = arith.mulf %2249, %2193 : vector<2x16xf32>
    %2259 = arith.mulf %2243, %2251 : vector<2x16xf32>
    %2260 = arith.addf %2258, %2259 : vector<2x16xf32>
    %2261 = math.tanh %2260 : vector<2x16xf32>
    %2262 = arith.mulf %2257, %2261 : vector<2x16xf32>
    %c6_i32_683 = arith.constant 6 : i32
    %2263 = vector.broadcast %c6_i32_683 : i32 to vector<2x1xi32>
    %2264 = arith.cmpi sgt, %931, %2263 : vector<2x1xi32>
    %c1_i32_684 = arith.constant 1 : i32
    %2265 = vector.broadcast %c1_i32_684 : i32 to vector<2x1xi32>
    %2266 = arith.cmpi sgt, %931, %2265 : vector<2x1xi32>
    %cst_685 = arith.constant 0.000000e+00 : f32
    %2267 = vector.shape_cast %2264 : vector<2x1xi1> to vector<2x1xi1>
    %2268 = vector.broadcast %2267 : vector<2x1xi1> to vector<2x16xi1>
    %2269 = vector.broadcast %cst_685 : f32 to vector<2x16xf32>
    %2270 = arith.select %2268, %2237, %2269 : vector<2x16xi1>, vector<2x16xf32>
    %cst_686 = arith.constant 0.000000e+00 : f32
    %2271 = vector.shape_cast %2264 : vector<2x1xi1> to vector<2x1xi1>
    %2272 = vector.broadcast %2271 : vector<2x1xi1> to vector<2x16xi1>
    %2273 = vector.broadcast %cst_686 : f32 to vector<2x16xf32>
    %2274 = arith.select %2272, %2235, %2273 : vector<2x16xi1>, vector<2x16xf32>
    %cst_687 = arith.constant 0.000000e+00 : f32
    %2275 = vector.shape_cast %2266 : vector<2x1xi1> to vector<2x1xi1>
    %2276 = vector.broadcast %2275 : vector<2x1xi1> to vector<2x16xi1>
    %2277 = vector.broadcast %cst_687 : f32 to vector<2x16xf32>
    %2278 = arith.select %2276, %2262, %2277 : vector<2x16xi1>, vector<2x16xf32>
    %cst_688 = arith.constant 0.000000e+00 : f32
    %2279 = vector.shape_cast %2266 : vector<2x1xi1> to vector<2x1xi1>
    %2280 = vector.broadcast %2279 : vector<2x1xi1> to vector<2x16xi1>
    %2281 = vector.broadcast %cst_688 : f32 to vector<2x16xf32>
    %2282 = arith.select %2280, %2260, %2281 : vector<2x16xi1>, vector<2x16xf32>
    %c6_689 = arith.constant 6 : index
    %c0_690 = arith.constant 0 : index
    %c0_691 = arith.constant 0 : index
    %2283 = vector.load %arg33[%c6_689, %c0_690, %c0_691] : memref<8x2x16xf32, #tpu.memory_space<vmem>>, vector<1x2x16xf32>
    %2284 = vector.shape_cast %2283 : vector<1x2x16xf32> to vector<2x16xf32>
    %2285 = vector.shape_cast %2270 : vector<2x16xf32> to vector<1x2x16xf32>
    tpu.vector_store %arg33[%c6_689, %c0_690, %c0_691], %2285 {strides = array<i32>} : memref<8x2x16xf32, #tpu.memory_space<vmem>>, vector<1x2x16xf32>,
    %c1_692 = arith.constant 1 : index
    %c0_693 = arith.constant 0 : index
    %c0_694 = arith.constant 0 : index
    %2286 = vector.load %arg34[%c1_692, %c0_693, %c0_694] : memref<8x2x16xf32, #tpu.memory_space<vmem>>, vector<1x2x16xf32>
    %2287 = vector.shape_cast %2286 : vector<1x2x16xf32> to vector<2x16xf32>
    %2288 = vector.shape_cast %2278 : vector<2x16xf32> to vector<1x2x16xf32>
    tpu.vector_store %arg34[%c1_692, %c0_693, %c0_694], %2288 {strides = array<i32>} : memref<8x2x16xf32, #tpu.memory_space<vmem>>, vector<1x2x16xf32>,
    %2289 = tpu.concatenate %2270, %2278 in 1 : vector<2x16xf32>, vector<2x16xf32> -> vector<2x32xf32>
    %2290 = arith.truncf %2289 : vector<2x32xf32> to vector<2x32xbf16>
    %cst_695 = arith.constant dense<0.000000e+00> : vector<2x128xf32>
    %2291 = tpu.matmul %2290, %1661, %cst_695 {dimension_numbers = #tpu.dot_dimension_numbers<[1], [0], [0], [1], [0, 0, 1, 1], [], []>} : vector<2x32xbf16>, vector<32x128xbf16>, vector<2x128xf32> -> vector<2x128xf32>
    %c7_696 = arith.constant 7 : index
    %c0_697 = arith.constant 0 : index
    %c0_698 = arith.constant 0 : index
    %2292 = vector.load %arg32[%c7_696, %c0_697, %c0_698] : memref<8x2x128xf32, #tpu.memory_space<vmem>>, vector<1x2x128xf32>
    %2293 = vector.shape_cast %2292 : vector<1x2x128xf32> to vector<2x128xf32>
    %2294 = vector.extract_strided_slice %2293 {offsets = [0, 0], sizes = [2, 64], strides = [1, 1]} : vector<2x128xf32> to vector<2x64xf32>
    %2295 = vector.extract_strided_slice %2291 {offsets = [0, 0], sizes = [2, 64], strides = [1, 1]} : vector<2x128xf32> to vector<2x64xf32>
    %2296 = arith.addf %2294, %2295 : vector<2x64xf32>
    %c0_699 = arith.constant 0 : index
    %c0_700 = arith.constant 0 : index
    %c0_701 = arith.constant 0 : index
    %2297 = vector.load %arg32[%c0_699, %c0_700, %c0_701] : memref<8x2x128xf32, #tpu.memory_space<vmem>>, vector<1x2x128xf32>
    %2298 = vector.shape_cast %2297 : vector<1x2x128xf32> to vector<2x128xf32>
    %2299 = vector.extract_strided_slice %2298 {offsets = [0, 64], sizes = [2, 64], strides = [1, 1]} : vector<2x128xf32> to vector<2x64xf32>
    %2300 = vector.extract_strided_slice %2291 {offsets = [0, 64], sizes = [2, 64], strides = [1, 1]} : vector<2x128xf32> to vector<2x64xf32>
    %2301 = arith.addf %2299, %2300 : vector<2x64xf32>
    %2302 = vector.extract_strided_slice %2296 {offsets = [0, 0], sizes = [2, 16], strides = [1, 1]} : vector<2x64xf32> to vector<2x16xf32>
    %2303 = arith.negf %2302 : vector<2x16xf32>
    %2304 = math.exp %2303 : vector<2x16xf32>
    %cst_702 = arith.constant 1.000000e+00 : f32
    %2305 = vector.broadcast %cst_702 : f32 to vector<2x16xf32>
    %2306 = arith.addf %2305, %2304 : vector<2x16xf32>
    %2307 = arith.divf %2305, %2306 : vector<2x16xf32>
    %2308 = vector.extract_strided_slice %2296 {offsets = [0, 16], sizes = [2, 16], strides = [1, 1]} : vector<2x64xf32> to vector<2x16xf32>
    %2309 = arith.negf %2308 : vector<2x16xf32>
    %2310 = math.exp %2309 : vector<2x16xf32>
    %cst_703 = arith.constant 1.000000e+00 : f32
    %2311 = vector.broadcast %cst_703 : f32 to vector<2x16xf32>
    %2312 = arith.addf %2311, %2310 : vector<2x16xf32>
    %2313 = arith.divf %2311, %2312 : vector<2x16xf32>
    %2314 = vector.extract_strided_slice %2296 {offsets = [0, 32], sizes = [2, 16], strides = [1, 1]} : vector<2x64xf32> to vector<2x16xf32>
    %2315 = math.tanh %2314 : vector<2x16xf32>
    %2316 = vector.extract_strided_slice %2296 {offsets = [0, 48], sizes = [2, 16], strides = [1, 1]} : vector<2x64xf32> to vector<2x16xf32>
    %2317 = arith.negf %2316 : vector<2x16xf32>
    %2318 = math.exp %2317 : vector<2x16xf32>
    %cst_704 = arith.constant 1.000000e+00 : f32
    %2319 = vector.broadcast %cst_704 : f32 to vector<2x16xf32>
    %2320 = arith.addf %2319, %2318 : vector<2x16xf32>
    %2321 = arith.divf %2319, %2320 : vector<2x16xf32>
    %2322 = arith.mulf %2313, %2274 : vector<2x16xf32>
    %2323 = arith.mulf %2307, %2315 : vector<2x16xf32>
    %2324 = arith.addf %2322, %2323 : vector<2x16xf32>
    %2325 = math.tanh %2324 : vector<2x16xf32>
    %2326 = arith.mulf %2321, %2325 : vector<2x16xf32>
    %2327 = vector.extract_strided_slice %2301 {offsets = [0, 0], sizes = [2, 16], strides = [1, 1]} : vector<2x64xf32> to vector<2x16xf32>
    %2328 = arith.negf %2327 : vector<2x16xf32>
    %2329 = math.exp %2328 : vector<2x16xf32>
    %cst_705 = arith.constant 1.000000e+00 : f32
    %2330 = vector.broadcast %cst_705 : f32 to vector<2x16xf32>
    %2331 = arith.addf %2330, %2329 : vector<2x16xf32>
    %2332 = arith.divf %2330, %2331 : vector<2x16xf32>
    %2333 = vector.extract_strided_slice %2301 {offsets = [0, 16], sizes = [2, 16], strides = [1, 1]} : vector<2x64xf32> to vector<2x16xf32>
    %2334 = arith.negf %2333 : vector<2x16xf32>
    %2335 = math.exp %2334 : vector<2x16xf32>
    %cst_706 = arith.constant 1.000000e+00 : f32
    %2336 = vector.broadcast %cst_706 : f32 to vector<2x16xf32>
    %2337 = arith.addf %2336, %2335 : vector<2x16xf32>
    %2338 = arith.divf %2336, %2337 : vector<2x16xf32>
    %2339 = vector.extract_strided_slice %2301 {offsets = [0, 32], sizes = [2, 16], strides = [1, 1]} : vector<2x64xf32> to vector<2x16xf32>
    %2340 = math.tanh %2339 : vector<2x16xf32>
    %2341 = vector.extract_strided_slice %2301 {offsets = [0, 48], sizes = [2, 16], strides = [1, 1]} : vector<2x64xf32> to vector<2x16xf32>
    %2342 = arith.negf %2341 : vector<2x16xf32>
    %2343 = math.exp %2342 : vector<2x16xf32>
    %cst_707 = arith.constant 1.000000e+00 : f32
    %2344 = vector.broadcast %cst_707 : f32 to vector<2x16xf32>
    %2345 = arith.addf %2344, %2343 : vector<2x16xf32>
    %2346 = arith.divf %2344, %2345 : vector<2x16xf32>
    %2347 = arith.mulf %2338, %2282 : vector<2x16xf32>
    %2348 = arith.mulf %2332, %2340 : vector<2x16xf32>
    %2349 = arith.addf %2347, %2348 : vector<2x16xf32>
    %2350 = math.tanh %2349 : vector<2x16xf32>
    %2351 = arith.mulf %2346, %2350 : vector<2x16xf32>
    %c7_i32_708 = arith.constant 7 : i32
    %2352 = vector.broadcast %c7_i32_708 : i32 to vector<2x1xi32>
    %2353 = arith.cmpi sgt, %931, %2352 : vector<2x1xi32>
    %c0_i32_709 = arith.constant 0 : i32
    %2354 = vector.broadcast %c0_i32_709 : i32 to vector<2x1xi32>
    %2355 = arith.cmpi sgt, %931, %2354 : vector<2x1xi32>
    %cst_710 = arith.constant 0.000000e+00 : f32
    %2356 = vector.shape_cast %2353 : vector<2x1xi1> to vector<2x1xi1>
    %2357 = vector.broadcast %2356 : vector<2x1xi1> to vector<2x16xi1>
    %2358 = vector.broadcast %cst_710 : f32 to vector<2x16xf32>
    %2359 = arith.select %2357, %2326, %2358 : vector<2x16xi1>, vector<2x16xf32>
    %cst_711 = arith.constant 0.000000e+00 : f32
    %2360 = vector.shape_cast %2355 : vector<2x1xi1> to vector<2x1xi1>
    %2361 = vector.broadcast %2360 : vector<2x1xi1> to vector<2x16xi1>
    %2362 = vector.broadcast %cst_711 : f32 to vector<2x16xf32>
    %2363 = arith.select %2361, %2351, %2362 : vector<2x16xi1>, vector<2x16xf32>
    %c7_712 = arith.constant 7 : index
    %c0_713 = arith.constant 0 : index
    %c0_714 = arith.constant 0 : index
    %2364 = vector.load %arg33[%c7_712, %c0_713, %c0_714] : memref<8x2x16xf32, #tpu.memory_space<vmem>>, vector<1x2x16xf32>
    %2365 = vector.shape_cast %2364 : vector<1x2x16xf32> to vector<2x16xf32>
    %2366 = vector.shape_cast %2359 : vector<2x16xf32> to vector<1x2x16xf32>
    tpu.vector_store %arg33[%c7_712, %c0_713, %c0_714], %2366 {strides = array<i32>} : memref<8x2x16xf32, #tpu.memory_space<vmem>>, vector<1x2x16xf32>,
    %c0_715 = arith.constant 0 : index
    %c0_716 = arith.constant 0 : index
    %c0_717 = arith.constant 0 : index
    %2367 = vector.load %arg34[%c0_715, %c0_716, %c0_717] : memref<8x2x16xf32, #tpu.memory_space<vmem>>, vector<1x2x16xf32>
    %2368 = vector.shape_cast %2367 : vector<1x2x16xf32> to vector<2x16xf32>
    %2369 = vector.shape_cast %2363 : vector<2x16xf32> to vector<1x2x16xf32>
    tpu.vector_store %arg34[%c0_715, %c0_716, %c0_717], %2369 {strides = array<i32>} : memref<8x2x16xf32, #tpu.memory_space<vmem>>, vector<1x2x16xf32>,
    %c0_718 = arith.constant 0 : index
    %c0_719 = arith.constant 0 : index
    %c0_720 = arith.constant 0 : index
    %2370 = vector.load %arg33[%c0_718, %c0_719, %c0_720] : memref<8x2x16xf32, #tpu.memory_space<vmem>>, vector<8x2x16xf32>
    %c0_721 = arith.constant 0 : index
    %c0_722 = arith.constant 0 : index
    %c0_723 = arith.constant 0 : index
    %2371 = vector.load %arg34[%c0_721, %c0_722, %c0_723] : memref<8x2x16xf32, #tpu.memory_space<vmem>>, vector<8x2x16xf32>
    %2372 = tpu.concatenate %2370, %2371 in 2 : vector<8x2x16xf32>, vector<8x2x16xf32> -> vector<8x2x32xf32>
    %c0_724 = arith.constant 0 : index
    %c0_725 = arith.constant 0 : index
    %2373 = vector.load %arg20[%c0_724, %c0_725] : memref<1x32xf32, #tpu.memory_space<vmem>>, vector<1x32xf32>
    %2374 = vector.shape_cast %2373 : vector<1x32xf32> to vector<1x1x32xf32>
    %2375 = vector.broadcast %2374 : vector<1x1x32xf32> to vector<8x2x32xf32>
    %2376 = arith.mulf %2372, %2375 : vector<8x2x32xf32>
    %cst_726 = arith.constant dense<0.000000e+00> : vector<8x2xf32>
    %2377 = vector.multi_reduction <add>, %2376, %cst_726 [2] : vector<8x2x32xf32> to vector<8x2xf32>
    %c0_727 = arith.constant 0 : index
    %c0_728 = arith.constant 0 : index
    %2378 = vector.load %arg21[%c0_727, %c0_728] : memref<1x1xf32, #tpu.memory_space<vmem>>, vector<1x1xf32>
    %2379 = vector.broadcast %2378 : vector<1x1xf32> to vector<8x2xf32>
    %2380 = arith.addf %2377, %2379 : vector<8x2xf32>
    %2381 = tpu.iota {dimensions = array<i32: 0>} : vector<8x2xi32>
    %c0_729 = arith.constant 0 : index
    %c0_730 = arith.constant 0 : index
    %2382 = vector.load %arg3[%c0_729, %c0_730] : memref<1x2xi32, #tpu.memory_space<vmem>>, vector<1x2xi32>
    %2383 = vector.broadcast %2382 : vector<1x2xi32> to vector<8x2xi32>
    %2384 = arith.cmpi slt, %2381, %2383 : vector<8x2xi32>
    %cst_731 = arith.constant -1.000000e+02 : f32
    %2385 = vector.broadcast %cst_731 : f32 to vector<8x2xf32>
    %2386 = arith.select %2384, %2380, %2385 : vector<8x2xi1>, vector<8x2xf32>
    %cst_732 = arith.constant dense<0xFF800000> : vector<2xf32>
    %2387 = vector.multi_reduction <maximumf>, %2386, %cst_732 [0] : vector<8x2xf32> to vector<2xf32>
    %2388 = vector.shape_cast %2387 : vector<2xf32> to vector<1x2xf32>
    %2389 = vector.broadcast %2388 : vector<1x2xf32> to vector<8x2xf32>
    %2390 = arith.subf %2386, %2389 : vector<8x2xf32>
    %2391 = math.exp %2390 : vector<8x2xf32>
    %cst_733 = arith.constant dense<0.000000e+00> : vector<2xf32>
    %2392 = vector.multi_reduction <add>, %2391, %cst_733 [0] : vector<8x2xf32> to vector<2xf32>
    %2393 = vector.shape_cast %2392 : vector<2xf32> to vector<1x2xf32>
    %2394 = vector.broadcast %2393 : vector<1x2xf32> to vector<8x2xf32>
    %2395 = arith.divf %2391, %2394 : vector<8x2xf32>
    %2396 = vector.shape_cast %2395 : vector<8x2xf32> to vector<8x2x1xf32>
    %2397 = vector.broadcast %2396 : vector<8x2x1xf32> to vector<8x2x32xf32>
    %2398 = arith.mulf %2397, %2372 : vector<8x2x32xf32>
    %cst_734 = arith.constant dense<0.000000e+00> : vector<2x32xf32>
    %2399 = vector.multi_reduction <add>, %2398, %cst_734 [0] : vector<8x2x32xf32> to vector<2x32xf32>
    %2400 = arith.truncf %2399 : vector<2x32xf32> to vector<2x32xbf16>
    %c0_735 = arith.constant 0 : index
    %c0_736 = arith.constant 0 : index
    %2401 = vector.load %arg22[%c0_735, %c0_736] : memref<32x32xbf16, #tpu.memory_space<vmem>>, vector<32x32xbf16>
    %cst_737 = arith.constant dense<0.000000e+00> : vector<2x32xf32>
    %2402 = tpu.matmul %2400, %2401, %cst_737 {dimension_numbers = #tpu.dot_dimension_numbers<[1], [0], [0], [1], [0, 0, 1, 1], [], []>} : vector<2x32xbf16>, vector<32x32xbf16>, vector<2x32xf32> -> vector<2x32xf32>
    %c0_738 = arith.constant 0 : index
    %c0_739 = arith.constant 0 : index
    %2403 = vector.load %arg23[%c0_738, %c0_739] : memref<1x32xf32, #tpu.memory_space<vmem>>, vector<1x32xf32>
    %2404 = vector.broadcast %2403 : vector<1x32xf32> to vector<2x32xf32>
    %2405 = arith.addf %2402, %2404 : vector<2x32xf32>
    %2406 = arith.truncf %930 : vector<2x4x32xf32> to vector<2x4x32xbf16>
    %c0_740 = arith.constant 0 : index
    %c0_741 = arith.constant 0 : index
    %2407 = vector.load %arg24[%c0_740, %c0_741] : memref<32x32xbf16, #tpu.memory_space<vmem>>, vector<32x32xbf16>
    "tpu.trace_start"() <{level = 10 : i32, message = "bcd,de->bce"}> : () -> ()
    %cst_742 = arith.constant dense<0.000000e+00> : vector<2x4x32xf32>
    %2408 = tpu.matmul %2406, %2407, %cst_742 {dimension_numbers = #tpu.dot_dimension_numbers<[2], [0], [0, 1], [1], [0, 0, 0, 1, 1, 1], [], []>} : vector<2x4x32xbf16>, vector<32x32xbf16>, vector<2x4x32xf32> -> vector<2x4x32xf32>
    "tpu.trace_stop"() : () -> ()
    %c0_743 = arith.constant 0 : index
    %c0_744 = arith.constant 0 : index
    %2409 = vector.load %arg25[%c0_743, %c0_744] : memref<1x32xf32, #tpu.memory_space<vmem>>, vector<1x32xf32>
    %2410 = vector.shape_cast %2409 : vector<1x32xf32> to vector<1x1x32xf32>
    %2411 = vector.broadcast %2410 : vector<1x1x32xf32> to vector<2x4x32xf32>
    %2412 = arith.addf %2408, %2411 : vector<2x4x32xf32>
    %2413 = vector.shape_cast %2405 : vector<2x32xf32> to vector<2x1x32xf32>
    %2414 = vector.broadcast %2413 : vector<2x1x32xf32> to vector<2x4x32xf32>
    %2415 = arith.addf %2414, %2412 : vector<2x4x32xf32>
    %2416 = math.tanh %2415 : vector<2x4x32xf32>
    %c0_745 = arith.constant 0 : index
    %c0_746 = arith.constant 0 : index
    %2417 = vector.load %arg26[%c0_745, %c0_746] : memref<1x32xf32, #tpu.memory_space<vmem>>, vector<1x32xf32>
    %2418 = vector.shape_cast %2417 : vector<1x32xf32> to vector<1x1x32xf32>
    %2419 = vector.broadcast %2418 : vector<1x1x32xf32> to vector<2x4x32xf32>
    %2420 = arith.mulf %2416, %2419 : vector<2x4x32xf32>
    %cst_747 = arith.constant dense<0.000000e+00> : vector<2x4xf32>
    %2421 = vector.multi_reduction <add>, %2420, %cst_747 [2] : vector<2x4x32xf32> to vector<2x4xf32>
    %c0_748 = arith.constant 0 : index
    %c0_749 = arith.constant 0 : index
    %2422 = vector.load %arg27[%c0_748, %c0_749] : memref<1x1xf32, #tpu.memory_space<vmem>>, vector<1x1xf32>
    %2423 = vector.broadcast %2422 : vector<1x1xf32> to vector<2x4xf32>
    %2424 = arith.addf %2421, %2423 : vector<2x4xf32>
    %2425 = tpu.iota {dimensions = array<i32: 1>} : vector<2x4xi32>
    %c0_750 = arith.constant 0 : index
    %c0_751 = arith.constant 0 : index
    %2426 = vector.load %arg4[%c0_750, %c0_751] : memref<2x1xi32, #tpu.memory_space<vmem>>, vector<2x1xi32>
    %2427 = vector.broadcast %2426 : vector<2x1xi32> to vector<2x4xi32>
    %2428 = arith.cmpi slt, %2425, %2427 : vector<2x4xi32>
    %cst_752 = arith.constant -1.000000e+02 : f32
    %2429 = vector.broadcast %cst_752 : f32 to vector<2x4xf32>
    %2430 = arith.select %2428, %2424, %2429 : vector<2x4xi1>, vector<2x4xf32>
    %c0_753 = arith.constant 0 : index
    %c0_754 = arith.constant 0 : index
    %2431 = vector.load %arg28[%c0_753, %c0_754] : memref<2x4xf32, #tpu.memory_space<vmem>>, vector<2x4xf32>
    tpu.vector_store %arg28[%c0_753, %c0_754], %2430 {strides = array<i32>} : memref<2x4xf32, #tpu.memory_space<vmem>>, vector<2x4xf32>,
    return
  }
}

</mosaic_0001>

<bundles_post_ra>
// kernel: sel_predictor_forward.1
= control target key start
LH: loop header
LB: loop body
LE: loop exit
PB: predicated region body
PF: predicated region fallthrough
CT: control target
= control target key end

     0   :  { %s7491_s0 = inlined_call_operand.vmem [shape: s32[7,1], index: 0, kind: input, shape index: {}]   ;;  %s7492_s1 = inlined_call_operand.vmem [shape: s32[1,7], index: 1, kind: input, shape index: {}]   ;;  %s7493_s2 = inlined_call_operand.vmem [shape: s32[2,1], index: 2, kind: input, shape index: {}]   ;;  %s7494_s3 = inlined_call_operand.hbm [shape: s32[1,2], index: 3, kind: input, shape index: {}]   ;;  %s7495_s4 = inlined_call_operand.vmem [shape: s32[2,1], index: 4, kind: input, shape index: {}]   ;;  %s7496_s5 = inlined_call_operand.vmem [shape: f32[2,4,7], index: 5, kind: input, shape index: {}]   ;;  %s7497_s6 = inlined_call_operand.vmem [shape: f32[5,7,16], index: 6, kind: input, shape index: {}]   ;;  %s7498_s7 = inlined_call_operand.vmem [shape: f32[8,2,16], index: 7, kind: input, shape index: {}]   ;;  %s7499_s8 = inlined_call_operand.vmem [shape: bf16[16,128], index: 8, kind: input, shape index: {}]   ;;  %s7500_s9 = inlined_call_operand.vmem [shape: bf16[32,128], index: 9, kind: input, shape index: {}]   ;;  %s7501_s10 = inlined_call_operand.hbm [shape: f32[1,128], index: 10, kind: input, shape index: {}]   ;;  %s7502_s11 = inlined_call_operand.vmem [shape: bf16[32,128], index: 11, kind: input, shape index: {}]   ;;  %s7503_s12 = inlined_call_operand.vmem [shape: bf16[32,128], index: 12, kind: input, shape index: {}]   ;;  %s7504_s13 = inlined_call_operand.hbm [shape: f32[1,128], index: 13, kind: input, shape index: {}]   ;;  %s7505_s14 = inlined_call_operand.hbm [shape: bf16[16,128], index: 14, kind: input, shape index: {}]   ;;  %s7506_s15 = inlined_call_operand.hbm [shape: bf16[32,128], index: 15, kind: input, shape index: {}]   ;;  %s7507_s16 = inlined_call_operand.hbm [shape: f32[1,128], index: 16, kind: input, shape index: {}]   ;;  %s7508_s17 = inlined_call_operand.hbm [shape: bf16[32,128], index: 17, kind: input, shape index: {}]   ;;  %s7509_s18 = inlined_call_operand.hbm [shape: bf16[32,128], index: 18, kind: input, shape index: {}]   ;;  %s7510_s19 = inlined_call_operand.hbm [shape: f32[1,128], index: 19, kind: input, shape index: {}]   ;;  %s7511_s20 = inlined_call_operand.hbm [shape: f32[1,32], index: 20, kind: input, shape index: {}]   ;;  %s7512_s21 = inlined_call_operand.<no memory space> [shape: f32[1,1], index: 21, kind: input, shape index: {}]   ;;  %s7513_s22 = inlined_call_operand.vmem [shape: bf16[32,32], index: 22, kind: input, shape index: {}]   ;;  %s7514_s23 = inlined_call_operand.hbm [shape: f32[1,32], index: 23, kind: input, shape index: {}]   ;;  %s7515_s24 = inlined_call_operand.vmem [shape: bf16[32,32], index: 24, kind: input, shape index: {}]   ;;  %s7516_s25 = inlined_call_operand.hbm [shape: f32[1,32], index: 25, kind: input, shape index: {}]   ;;  %s7517_s26 = inlined_call_operand.hbm [shape: f32[1,32], index: 26, kind: input, shape index: {}]   ;;  %s7518_s28 = inlined_call_operand.hbm [shape: f32[2,4], index: 28, kind: output, shape index: {}]   ;;  %s7519_s27 = inlined_call_operand.<no memory space> [shape: f32[1,1], index: 27, kind: input, shape index: {}]  }
   0x1   :  { %7538 = sst [smem:[#allocation40_spill]] %s7491_s0  ;;  %v33_v0 = vstv %s7512_s21  ;;  %v35_v1 = vstv %s7519_s27 }
   0x2   :  { %7539 = sst [smem:[#allocation41_spill]] %s7492_s1  ;;  %34 = vst [vmem:[#allocation8] sm:$0x1] %v33_v0 }
   0x3   :  { %7540 = sst [smem:[#allocation42_spill]] %s7493_s2  ;;  %36 = vst [vmem:[#allocation9] sm:$0x1] %v35_v1 }
   0x4   :  { %7541 = sst [smem:[#allocation43_spill]] %s7494_s3 }
   0x5   :  { %7542 = sst [smem:[#allocation44_spill]] %s7495_s4 }
   0x6   :  { %7543 = sst [smem:[#allocation45_spill]] %s7496_s5 }
   0x7   :  { %7544 = sst [smem:[#allocation46_spill]] %s7497_s6 }
   0x8   :  { %7545 = sst [smem:[#allocation47_spill]] %s7498_s7 }
   0x9   :  { %7546 = sst [smem:[#allocation48_spill]] %s7499_s8 }
   0xa   :  { %7547 = sst [smem:[#allocation49_spill]] %s7500_s9 }
   0xb   :  { %7548 = sst [smem:[#allocation50_spill]] %s7501_s10 }
   0xc   :  { %7549 = sst [smem:[#allocation51_spill]] %s7502_s11 }
   0xd   :  { %7550 = sst [smem:[#allocation52_spill]] %s7503_s12 }
   0xe   :  { %37 = vsyncpa [#allocation11], 0 }
   0xf   :  { %38 = vsyncpa [#allocation14], 0 }
  0x10   :  { %39 = vsyncpa [#allocation17], 0 }
  0x11   :  { %40 = vsyncpa [#allocation20], 0 }
  0x12   :  { %41 = vsyncpa [#allocation23], 0 }
  0x13   :  { %42 = vsyncpa [#allocation26], 0 }
  0x14   :  { %43 = vsyncpa [#allocation29], 0  ;;  %s7551_s10 = sld [smem:[#allocation50_spill]] }
  0x1a   :  { %s79_s0 = sshll.u32 %s7551_s10, 4  ;;  %s80_s0 = int_to_ptr.hbm [resolvable:$true] %s79_s0 }
  0x1b   :  { %44 = vsyncpa [#allocation12], 0  ;;  %s6042_s21 = smov [#allocation13]   ;;  %s104_s2 = sshll.u32 %s7505_s14, 4  ;;  %s105_s2 = int_to_ptr.hbm [resolvable:$true] %s104_s2 }
  0x1c   :  { %s81_s11 = sshll.u32 %s6042_s21, 4  ;;  %s6043_s7 = smov [#allocation16]   ;;  %s82_s11 = int_to_ptr.vmem [resolvable:$true] %s81_s11 }
  0x1d   :  { %84 = dma.hbm_to_vmem [thread:$0]  %s80_s0, 16, %s82_s11, [#allocation14]  }
  0x1e   :  { %s106_s12 = sshll.u32 %s6043_s7, 4  ;;  %s6044_s1 = smov 64   ;;  %s107_s12 = int_to_ptr.vmem [resolvable:$true] %s106_s12 }
  0x1f   :  { %s6045_s4 = smov 4   ;;  %s131_s9 = sshll.u32 %s7507_s16, 4  ;;  %s132_s9 = int_to_ptr.hbm [resolvable:$true] %s131_s9 }
  0x20   :  { %112 = dma.hbm_to_vmem [thread:$0]  %s105_s2, 128, %s107_s12, [#allocation17], %s6044_s1, %s6044_s1, %s6045_s4  }
  0x21   :  { %s6046_s30 = smov [#allocation19]   ;;  %s154_s10 = sshll.u32 %s7509_s18, 4  ;;  %s155_s10 = int_to_ptr.hbm [resolvable:$true] %s154_s10 }
  0x22   :  { %s133_s3 = sshll.u32 %s6046_s30, 4  ;;  %s6047_s0 = smov [#allocation22]   ;;  %s134_s3 = int_to_ptr.vmem [resolvable:$true] %s133_s3 }
  0x23   :  { %136 = dma.hbm_to_vmem [thread:$0]  %s132_s9, 16, %s134_s3, [#allocation20]  }
  0x24   :  { %s156_s21 = sshll.u32 %s6047_s0, 4  ;;  %s179_s27 = sshll.u32 %s7511_s20, 4  ;;  %s157_s21 = int_to_ptr.vmem [resolvable:$true] %s156_s21  ;;  %s180_s27 = int_to_ptr.hbm [resolvable:$true] %s179_s27 }
  0x25   :  { %162 = dma.hbm_to_vmem [thread:$0]  %s155_s10, 256, %s157_s21, [#allocation23], %s6044_s1, %s6044_s1, %s6045_s4  }
  0x26   :  { %s207_s7 = sshll.u32 %s7516_s25, 4  ;;  %s6048_s12 = smov [#allocation25]   ;;  %s208_s7 = int_to_ptr.hbm [resolvable:$true] %s207_s7 }
  0x27   :  { %s181_s18 = sshll.u32 %s6048_s12, 4  ;;  %s6049_s8 = smov [#allocation28]   ;;  %s182_s18 = int_to_ptr.vmem [resolvable:$true] %s181_s18 }
  0x28   :  { %184 = dma.hbm_to_vmem [thread:$0]  %s180_s27, 16, %s182_s18, [#allocation26]  }
  0x29   :  { %s209_s5 = sshll.u32 %s6049_s8, 4  ;;  %s7552_s20 = sld [smem:[#allocation43_spill]]  ;;  %s210_s5 = int_to_ptr.vmem [resolvable:$true] %s209_s5 }
  0x2a   :  { %212 = dma.hbm_to_vmem [thread:$0]  %s208_s7, 16, %s210_s5, [#allocation29]  }
  0x2b   :  { %s94_s10 = sshll.u32 %s7504_s13, 4  ;;  %s6050_s0 = smov [#allocation10]   ;;  %s95_s10 = int_to_ptr.hbm [resolvable:$true] %s94_s10 }
  0x2c   :  { %s58_s25 = sshll.u32 %s6050_s0, 4  ;;  %s6051_s21 = smov [#allocation15]   ;;  %s59_s25 = int_to_ptr.vmem [resolvable:$true] %s58_s25 }
  0x2d   :  { %s96_s11 = sshll.u32 %s6051_s21, 4  ;;  %s117_s16 = sshll.u32 %s7506_s15, 4  ;;  %s97_s11 = int_to_ptr.vmem [resolvable:$true] %s96_s11  ;;  %s118_s16 = int_to_ptr.hbm [resolvable:$true] %s117_s16 }
  0x2e   :  { %99 = dma.hbm_to_vmem [thread:$0]  %s95_s10, 16, %s97_s11, [#allocation14]  }
  0x2f   :  { %s56_s3 = sshll.u32 %s7552_s20, 4  ;;  %s141_s12 = sshll.u32 %s7508_s17, 4  ;;  %s57_s3 = int_to_ptr.hbm [resolvable:$true] %s56_s3  ;;  %s142_s12 = int_to_ptr.hbm [resolvable:$true] %s141_s12 }
  0x30   :  { %61 = dma.hbm_to_vmem [thread:$0]  %s57_s3, 16, %s59_s25, [#allocation11]  }
  0x31   :  { %s6052_s18 = smov [#allocation18]   ;;  %s6053_s8 = smov [#allocation21]  }
  0x32   :  { %s119_s13 = sshll.u32 %s6052_s18, 4  ;;  %s143_s5 = sshll.u32 %s6053_s8, 4  ;;  %s120_s13 = int_to_ptr.vmem [resolvable:$true] %s119_s13  ;;  %s144_s5 = int_to_ptr.vmem [resolvable:$true] %s143_s5 }
  0x33   :  { %125 = dma.hbm_to_vmem [thread:$0]  %s118_s16, 256, %s120_s13, [#allocation17], %s6044_s1, %s6044_s1, %s6045_s4  }
  0x34   :  { %s168_s15 = sshll.u32 %s7510_s19, 4  ;;  %s194_s3 = sshll.u32 %s7514_s23, 4  ;;  %s169_s15 = int_to_ptr.hbm [resolvable:$true] %s168_s15  ;;  %s195_s3 = int_to_ptr.hbm [resolvable:$true] %s194_s3 }
  0x35   :  { %149 = dma.hbm_to_vmem [thread:$0]  %s142_s12, 256, %s144_s5, [#allocation20], %s6044_s1, %s6044_s1, %s6045_s4  }
  0x36   :  { %s6054_s14 = smov [#allocation24]   ;;  %s6055_s10 = smov [#allocation27]  }
  0x37   :  { %s170_s6 = sshll.u32 %s6054_s14, 4  ;;  %s196_s0 = sshll.u32 %s6055_s10, 4  ;;  %s171_s6 = int_to_ptr.vmem [resolvable:$true] %s170_s6  ;;  %s197_s0 = int_to_ptr.vmem [resolvable:$true] %s196_s0 }
  0x38   :  { %173 = dma.hbm_to_vmem [thread:$0]  %s169_s15, 16, %s171_s6, [#allocation23]  }
  0x39   :  { %s218_s19 = sshll.u32 %s7517_s26, 4  ;;  %s6056_s11 = smov [#allocation30]   ;;  %s219_s19 = int_to_ptr.hbm [resolvable:$true] %s218_s19 }
  0x3a   :  { %199 = dma.hbm_to_vmem [thread:$0]  %s195_s3, 16, %s197_s0, [#allocation26]  }
  0x3b   :  { %s220_s1 = sshll.u32 %s6056_s11, 4  ;;  %s221_s1 = int_to_ptr.vmem [resolvable:$true] %s220_s1 }
  0x3c   :  { %223 = dma.hbm_to_vmem [thread:$0]  %s219_s19, 16, %s221_s1, [#allocation29]  }
  0x3d   :  { %6026 = dma.done.wait [#allocation11], 16  }
  0x3e   :  { %6027 = vsyncadd [#allocation11], 4294967280 }
  0x3f   :  { %6028 = dma.done.wait [#allocation14], 32  }
  0x40   :  { %6029 = vsyncadd [#allocation14], 4294967264 }
  0x41   :  { %6030 = dma.done.wait [#allocation17], 384  }
  0x42   :  { %6031 = vsyncadd [#allocation17], 4294966912 }
  0x43   :  { %6032 = dma.done.wait [#allocation20], 272  }
  0x44   :  { %6033 = vsyncadd [#allocation20], 4294967024 }
  0x45   :  { %6034 = dma.done.wait [#allocation23], 272  }
  0x46   :  { %6035 = vsyncadd [#allocation23], 4294967024 }
  0x47   :  { %6036 = dma.done.wait [#allocation26], 32  }
  0x48   :  { %6037 = vsyncadd [#allocation26], 4294967264 }
  0x49   :  { %6038 = dma.done.wait [#allocation29], 32  }
  0x4a   :  { %6039 = vsyncadd [#allocation29], 4294967264  ;;  %s7553_s4 = sld [smem:[#allocation48_spill]]  ;;  %vm305_vm0 = vcmask 1040384   ;;  %vm7528_vm1 = vcmask 1041409   ;;  %vm7527_vm2 = vcmask 1042434  }
  0x4b   :  { %s7554_s16 = sld [smem:[#allocation46_spill]]  ;;  %vm7526_vm3 = vcmask 1043459   ;;  %v6057_v48 = vmov 0.0|0.0   ;;  %vm537_vm4 = vcmask 130048   ;;  %s6058_s14 = smov 96  }
  0x4c   :  { %s7555_s5 = sld [smem:[#allocation49_spill]]  ;;  %s6060_s25 = smov 16  }
  0x4d   :  { %s7556_s0 = sld [smem:[#allocation40_spill]]  ;;  %s6061_s21 = smov 32  }
  0x4e   :  { %s6062_s19 = smov 80   ;;  %s7560_s23 = sld [smem:[#allocation51_spill]] }
  0x4f   :  { %s7576_s13 = sld [smem:[#allocation47_spill]]  ;;  %s6064_s20 = smov [#allocation31]  }
  0x50   :  { %v5184_v2 = vld [vmem:[%s7553_s4] sm:$0xff]  ;;  %s7579_s29 = sld [smem:[#allocation42_spill]]  ;;  %s4994_s3 = sshll.u32 %s6064_s20, 4  ;;  %s4995_s3 = int_to_ptr.vmem [resolvable:$true] %s4994_s3 }
  0x51   :  { %v280_v3 = vld [vmem:[%s7554_s16] sm:$0x7f]  ;;  %v281_v4 = vld [vmem:[%s7554_s16 + $0x8] sm:$0x7f]  ;;  %v282_v5 = vld [vmem:[%s7554_s16 + $0x10] sm:$0x7f]  ;;  %551 = vmatpush.bf16.msra.mxu0 %v5184_v2 }
  0x52   :  { %v285_v6 = vpack.c.bf16 %v280_v3, %v280_v3  ;;  %v286_v7 = vpack.c.bf16 %v281_v4, %v281_v4  ;;  %v5186_v8 = vld [vmem:[%s7555_s5 + $0x8] sm:$0xff]  ;;  %v283_v9 = vld [vmem:[%s7554_s16 + $0x18] sm:$0x7f]  ;;  %v287_v10 = vpack.c.bf16 %v282_v5, %v282_v5  ;;  %v5185_v24 = vld [vmem:[%s7555_s5] sm:$0xff]  ;;  %s7618_s17 = sld [smem:[#allocation44_spill]] }
  0x53   :  { %v288_v11 = vpack.c.bf16 %v283_v9, %v283_v9  ;;  %685 = vmatpush.bf16.msra.mxu1 %v5186_v8  ;;  %813 = vmatpush.bf16.msra.mxu2 %v5186_v8  ;;  %v284_v39 = vld [vmem:[%s7554_s16 + $0x20] sm:$0x7f]  ;;  %v5267_v9 = vld [vmem:[#allocation13] ss:$0 sm:$0xff]  ;;  %s7567_s16 = sld [smem:[#allocation52_spill]] }
  0x54   :  { %v300_v12 = vrot.slane %v285_v6, 3  ;;  %v301_v13 = vrot.slane %v286_v7, 3  ;;  %v302_v14 = vrot.slane %v287_v10, 3  ;;  %942 = vmatpush.bf16.msra.mxu3 %v5186_v8  ;;  %v289_v43 = vpack.c.bf16 %v284_v39, %v284_v39 }
  0x55   :  { %v303_v15 = vrot.slane %v288_v11, 3 }
  0x56   :  { %v308_v16 = vsel %vm305_vm0, %v285_v6, %v300_v12  ;;  %v311_v17 = vsel %vm7528_vm1, %v285_v6, %v300_v12  ;;  %v315_v18 = vsel %vm7527_vm2, %v285_v6, %v300_v12  ;;  %v319_v19 = vsel %vm7526_vm3, %v285_v6, %v300_v12 }
  0x57   :  { %v313_v20 = vrot.slane %v311_v17, 1  ;;  %v317_v21 = vrot.slane %v315_v18, 2  ;;  %v321_v22 = vrot.slane %v319_v19, 3  ;;  %v324_v23 = vsel %vm305_vm0, %v286_v7, %v301_v13  ;;  %434 = vst [vmem:[#allocation1] ss:$9 sm:$0xff] %v308_v16  ;;  %686 = vmatpush.bf16.msra.mxu1 %v5185_v24  ;;  %814 = vmatpush.bf16.msra.mxu2 %v5185_v24 }
  0x58   :  { %v326_v25 = vsel %vm7528_vm1, %v286_v7, %v301_v13  ;;  %v329_v26 = vsel %vm7527_vm2, %v286_v7, %v301_v13  ;;  %v332_v27 = vsel %vm7526_vm3, %v286_v7, %v301_v13  ;;  %v337_v28 = vsel %vm305_vm0, %v287_v10, %v302_v14  ;;  %943 = vmatpush.bf16.msra.mxu3 %v5185_v24 }
  0x59   :  { %v328_v29 = vrot.slane %v326_v25, 1  ;;  %v331_v30 = vrot.slane %v329_v26, 2  ;;  %v334_v31 = vrot.slane %v332_v27, 3  ;;  %v382_v32 = vunpack.i.h.s16 %v324_v23  ;;  %437 = vst [vmem:[#allocation1 + $0x1] ss:$9 sm:$0xff] %v313_v20 }
  0x5a   :  { %v5012_v33 = vpack.i.b16 %v324_v23, %v321_v22  ;;  %440 = vst [vmem:[#allocation1 + $0x2] ss:$9 sm:$0xff] %v317_v21  ;;  %v352_v40 = vsel %vm7528_vm1, %v288_v11, %v303_v15  ;;  %v355_v41 = vsel %vm7527_vm2, %v288_v11, %v303_v15  ;;  %v345_v42 = vsel %vm7526_vm3, %v287_v10, %v302_v14 }
  0x5b   :  { %v384_v34 = vunpack.i.h.s16 %v328_v29  ;;  %v386_v35 = vunpack.i.h.s16 %v331_v30  ;;  %v5013_v36 = vpack.i.b16 %v328_v29, %v382_v32  ;;  %455 = vst [vmem:[#allocation1 + $0x7] ss:$9 sm:$0xff] %v337_v28  ;;  %1033 = vmatpush.bf16.msrb.mxu1 %v5186_v8  ;;  %1148 = vmatpush.bf16.msrb.mxu2 %v5186_v8  ;;  %v350_v44 = vsel %vm305_vm0, %v288_v11, %v303_v15 }
  0x5c   :  { %443 = vst [vmem:[#allocation1 + $0x3] ss:$9 sm:$0xff] %v5012_v33  ;;  %v354_v45 = vrot.slane %v352_v40, 1  ;;  %v339_v46 = vsel %vm7528_vm1, %v287_v10, %v302_v14  ;;  %v357_v47 = vrot.slane %v355_v41, 2  ;;  %687 = vmatmul.bf16.vlgmr.msra.gmra.mxu1 %v6057_v48  ;;  %v342_v49 = vsel %vm7527_vm2, %v287_v10, %v302_v14 }
  0x5d   :  { %v5014_v37 = vpack.i.b16 %v331_v30, %v384_v34  ;;  %v5015_v38 = vpack.i.b16 %v334_v31, %v386_v35  ;;  %446 = vst [vmem:[#allocation1 + $0x4] ss:$9 sm:$0xff] %v5013_v36  ;;  %v347_v50 = vrot.slane %v345_v42, 3  ;;  %v358_v51 = vsel %vm7526_vm3, %v288_v11, %v303_v15 }
  0x5e   :  { %v396_v52 = vunpack.i.h.s16 %v350_v44  ;;  %v304_v53 = vrot.slane %v289_v43, 3  ;;  %v341_v54 = vrot.slane %v339_v46, 1  ;;  %v398_v55 = vunpack.i.h.s16 %v354_v45 }
  0x5f   :  { %449 = vst [vmem:[#allocation1 + $0x5] ss:$9 sm:$0xff] %v5014_v37  ;;  %1034 = vmatpush.bf16.msrb.mxu1 %v5185_v24  ;;  %1149 = vmatpush.bf16.msrb.mxu2 %v5185_v24  ;;  %v344_v56 = vrot.slane %v342_v49, 2  ;;  %v360_v57 = vrot.slane %v358_v51, 3  ;;  %v400_v58 = vunpack.i.h.s16 %v357_v47  ;;  %v5016_v59 = vpack.i.b16 %v350_v44, %v347_v50 }
  0x60   :  { %452 = vst [vmem:[#allocation1 + $0x6] ss:$9 sm:$0xff] %v5015_v38  ;;  %v5017_v61 = vpack.i.b16 %v354_v45, %v396_v52  ;;  %v365_v62 = vsel %vm7528_vm1, %v289_v43, %v304_v53  ;;  %v5018_v63 = vpack.i.b16 %v357_v47, %v398_v55  ;;  %v363_v1 = vsel %vm305_vm0, %v289_v43, %v304_v53 }
  0x61   :  { %v5019_v0 = vpack.i.b16 %v360_v57, %v400_v58  ;;  %v367_v2 = vrot.slane %v365_v62, 1  ;;  %v371_v3 = vsel %vm7526_vm3, %v289_v43, %v304_v53  ;;  %v368_v4 = vsel %vm7527_vm2, %v289_v43, %v304_v53 }
  0x62   :  { %v373_v5 = vrot.slane %v371_v3, 3  ;;  %v370_v6 = vrot.slane %v368_v4, 2  ;;  %v409_v10 = vrot.slane %v5267_v9, 1  ;;  %v410_v11 = vrot.slane %v5267_v9, 2 }
  0x63   :  { %v411_v13 = vrot.slane %v5267_v9, 3  ;;  %v412_v14 = vrot.slane %v5267_v9, 4  ;;  %v413_v15 = vrot.slane %v5267_v9, 5  ;;  %v414_v16 = vrot.slane %v5267_v9, 6 }
  0x64   :  { %v408_v7 = vunpack.i.l.s16 %v373_v5 }
  0x67   :  { %v456_v60 = vld [vmem:[#allocation1] sm:$0xff] }
  0x68   :  { %5024 = vmatmul.msk.bf16.vlgmr.msra.gmra.mxu0 %vm537_vm4, %v456_v60  ;;  %458 = vst [vmem:[#allocation1] ss:$9 sm:$0xff] %v341_v54 }
  0x69   :  { %460 = vst [vmem:[#allocation1 + $0x1] ss:$9 sm:$0xff] %v344_v56 }
  0x6a   :  { %462 = vst [vmem:[#allocation1 + $0x2] ss:$9 sm:$0xff] %v5016_v59 }
  0x6b   :  { %464 = vst [vmem:[#allocation1 + $0x3] ss:$9 sm:$0xff] %v5017_v61 }
  0x6c   :  { %466 = vst [vmem:[#allocation1 + $0x4] ss:$9 sm:$0xff] %v5018_v63 }
  0x6d   :  { %468 = vst [vmem:[#allocation1 + $0x5] ss:$9 sm:$0xff] %v5019_v0 }
  0x6e   :  { %470 = vst [vmem:[#allocation1 + $0x6] ss:$9 sm:$0xff] %v363_v1 }
  0x6f   :  { %472 = vst [vmem:[#allocation1 + $0x7] ss:$9 sm:$0xff] %v367_v2 }
  0x76   :  { %v473_v8 = vld [vmem:[#allocation1] sm:$0xff] }
  0x77   :  { %475 = vst [vmem:[#allocation1] ss:$9 sm:$0xff] %v370_v6 }
  0x78   :  { %5025 = vmatmul.msk.bf16.gmra.mxu0 %vm537_vm4, %v473_v8  ;;  %477 = vst [vmem:[#allocation1 + $0x1] ss:$9 sm:$0xff] %v408_v7 }
  0x7f   :  { %v478_v12 = vld [vmem:[#allocation1] sm:$0xff] }
  0x80   :  { %485 = vst [vmem:[#allocation1] ss:$9 sm:$0xff] %v5267_v9 }
  0x81   :  { %487 = vst [vmem:[#allocation1 + $0x1] ss:$9 sm:$0xff] %v409_v10 }
  0x82   :  { %489 = vst [vmem:[#allocation1 + $0x2] ss:$9 sm:$0xff] %v410_v11 }
  0x83   :  { %491 = vst [vmem:[#allocation1 + $0x3] ss:$9 sm:$0xff] %v411_v13 }
  0x84   :  { %493 = vst [vmem:[#allocation1 + $0x4] ss:$9 sm:$0xff] %v412_v14 }
  0x85   :  { %495 = vst [vmem:[#allocation1 + $0x5] ss:$9 sm:$0xff] %v413_v15 }
  0x86   :  { %497 = vst [vmem:[#allocation1 + $0x6] ss:$9 sm:$0xff] %v414_v16 }
  0x87   :  { %499 = vst [vmem:[#allocation1 + $0x7] ss:$9 sm:$0xff] %v5267_v9 }
  0x88   :  { %5026 = vmatmul.msk.bf16.gmra.mxu0 %vm537_vm4, %v478_v12 }
  0x8e   :  { %v500_v17 = vld [vmem:[#allocation1] sm:$0xff] }
  0x8f   :  { %501 = vst [vmem:[#allocation1] ss:$9 sm:$0xff] %v409_v10 }
  0x90   :  { %502 = vst [vmem:[#allocation1 + $0x1] ss:$9 sm:$0xff] %v410_v11 }
  0x91   :  { %503 = vst [vmem:[#allocation1 + $0x2] ss:$9 sm:$0xff] %v411_v13 }
  0x92   :  { %504 = vst [vmem:[#allocation1 + $0x3] ss:$9 sm:$0xff] %v412_v14 }
  0x93   :  { %505 = vst [vmem:[#allocation1 + $0x4] ss:$9 sm:$0xff] %v413_v15 }
  0x94   :  { %506 = vst [vmem:[#allocation1 + $0x5] ss:$9 sm:$0xff] %v414_v16 }
  0x95   :  { %507 = vst [vmem:[#allocation1 + $0x6] ss:$9 sm:$0xff] %v5267_v9 }
  0x96   :  { %508 = vst [vmem:[#allocation1 + $0x7] ss:$9 sm:$0xff] %v409_v10 }
  0x9d   :  { %v509_v18 = vld [vmem:[#allocation1] sm:$0xff] }
  0x9e   :  { %510 = vst [vmem:[#allocation1] ss:$9 sm:$0xff] %v410_v11 }
  0x9f   :  { %511 = vst [vmem:[#allocation1 + $0x1] ss:$9 sm:$0xff] %v411_v13 }
  0xa0   :  { %512 = vst [vmem:[#allocation1 + $0x2] ss:$9 sm:$0xff] %v412_v14 }
  0xa1   :  { %513 = vst [vmem:[#allocation1 + $0x3] ss:$9 sm:$0xff] %v413_v15 }
  0xa2   :  { %514 = vst [vmem:[#allocation1 + $0x4] ss:$9 sm:$0xff] %v414_v16 }
  0xa3   :  { %515 = vst [vmem:[#allocation1 + $0x5] ss:$9 sm:$0xff] %v5267_v9 }
  0xa4   :  { %516 = vst [vmem:[#allocation1 + $0x6] ss:$9 sm:$0xff] %v409_v10 }
  0xa5   :  { %517 = vst [vmem:[#allocation1 + $0x7] ss:$9 sm:$0xff] %v410_v11 }
  0xac   :  { %v518_v19 = vld [vmem:[#allocation1] sm:$0xff] }
  0xad   :  { %519 = vst [vmem:[#allocation1] ss:$9 sm:$0xff] %v411_v13 }
  0xae   :  { %520 = vst [vmem:[#allocation1 + $0x1] ss:$9 sm:$0xff] %v412_v14 }
  0xaf   :  { %521 = vst [vmem:[#allocation1 + $0x2] ss:$9 sm:$0xff] %v413_v15 }
  0xb0   :  { %522 = vst [vmem:[#allocation1 + $0x3] ss:$9 sm:$0xff] %v414_v16 }
  0xb1   :  { %523 = vst [vmem:[#allocation1 + $0x4] ss:$9 sm:$0xff] %v5267_v9 }
  0xb2   :  { %524 = vst [vmem:[#allocation1 + $0x5] ss:$9 sm:$0xff] %v409_v10 }
  0xb3   :  { %525 = vst [vmem:[#allocation1 + $0x6] ss:$9 sm:$0xff] %v410_v11 }
  0xb4   :  { %526 = vst [vmem:[#allocation1 + $0x7] ss:$9 sm:$0xff] %v411_v13 }
  0xbb   :  { %v6315_v20 = vld [vmem:[#allocation1] sm:$0xff] }
  0xbc   :  { %528 = vst [vmem:[#allocation1] ss:$9 sm:$0xff] %v412_v14 }
  0xbd   :  { %529 = vst [vmem:[#allocation1 + $0x1] ss:$9 sm:$0xff] %v413_v15 }
  0xbe   :  { %530 = vst [vmem:[#allocation1 + $0x2] ss:$9 sm:$0xff] %v414_v16  ;;  %v6059_v16 = vmov 0  }
  0xbf   :  { %5225 = vset.pattern.permute.xlu0 %v6059_v16  ;;  %5226 = vset.pattern.permute.xlu1 %v6059_v16 }
  0xc0   :  { %5227 = vset.pattern.permute.xlu2 %v6059_v16 }
  0xc5   :  { %v6317_v21 = vld [vmem:[#allocation1] sm:$0xff] }
  0xd9   :  { %v6319_v31 = vpop.f32.mrf.mxu1 }
  0xe1   :  { %v690_v38 = vpop.f32.mrf.mxu1 }
  0xe5   :  { %v553_v22 = vpop.f32.mrf.mxu0 }
  0xe6   :  { %v554_v23 = vadd.f32 %v553_v22, %v500_v17  ;;  %v6333_v17 = vld [vmem:[%s7556_s0] sm:$0x7f]  ;;  %s4996_s0 = sshll.u32 %s7518_s28, 4  ;;  %s4997_s0 = int_to_ptr.hbm [resolvable:$true] %s4996_s0 }
  0xe7   :  { %vm771_vm5 = vcmp.gt.s32.totalorder %v6333_v17, 0  ;;  %vm772_vm14 = vcmp.gt.s32.totalorder %v6333_v17, 4 }
  0xe8   :  { %v572_v24 = vrot.slane %v554_v23, 1  ;;  %v573_v25 = vrot.slane %v554_v23, 2  ;;  %v574_v26 = vrot.slane %v554_v23, 3  ;;  %602 = vst [vmem:[#allocation1] ss:$9 sm:$0xff] %v554_v23  ;;  %v575_v27 = vrot.slane %v554_v23, 4 }
  0xe9   :  { %v576_v28 = vrot.slane %v554_v23, 5  ;;  %v577_v29 = vrot.slane %v554_v23, 6  ;;  %v578_v33 = vrot.slane %v554_v23, 7 }
  0xea   :  { %604 = vst [vmem:[#allocation1 + $0x1] ss:$9 sm:$0xff] %v572_v24 }
  0xeb   :  { %606 = vst [vmem:[#allocation1 + $0x2] ss:$9 sm:$0xff] %v573_v25 }
  0xec   :  { %608 = vst [vmem:[#allocation1 + $0x3] ss:$9 sm:$0xff] %v574_v26 }
  0xed   :  { %610 = vst [vmem:[#allocation1 + $0x4] ss:$9 sm:$0xff] %v575_v27  ;;  %v555_v30 = vpop.f32.mrf.mxu0 }
  0xee   :  { %612 = vst [vmem:[#allocation1 + $0x5] ss:$9 sm:$0xff] %v576_v28  ;;  %v556_v32 = vadd.f32 %v555_v30, %v509_v18  ;;  %v773_v18 = vsel %vm771_vm5, 1, %v6059_v16 }
  0xef   :  { %614 = vst [vmem:[#allocation1 + $0x6] ss:$9 sm:$0xff] %v577_v29 }
  0xf0   :  { %v579_v36 = vrot.slane %v556_v32, 1  ;;  %v580_v37 = vrot.slane %v556_v32, 2  ;;  %v581_v39 = vrot.slane %v556_v32, 3  ;;  %v582_v40 = vrot.slane %v556_v32, 4 }
  0xf1   :  { %v583_v41 = vrot.slane %v556_v32, 5  ;;  %v584_v46 = vrot.slane %v556_v32, 6  ;;  %v585_v47 = vrot.slane %v556_v32, 7 }
  0xf5   :  { %v558_v34 = vpop.f32.mrf.mxu0 }
  0xf6   :  { %v615_v35 = vld [vmem:[#allocation1] sm:$0xff]  ;;  %v559_v45 = vadd.f32 %v558_v34, %v518_v19 }
  0xf7   :  { %616 = vst [vmem:[#allocation1] ss:$9 sm:$0xff] %v578_v33 }
  0xf8   :  { %653 = vst [vmem:[#allocation2 + $0x8] sm:$0x7f] %v615_v35  ;;  %v586_v51 = vrot.slane %v559_v45, 1  ;;  %v587_v52 = vrot.slane %v559_v45, 2  ;;  %v588_v54 = vrot.slane %v559_v45, 3  ;;  %v589_v55 = vrot.slane %v559_v45, 4 }
  0xf9   :  { %617 = vst [vmem:[#allocation1 + $0x1] ss:$9 sm:$0xff] %v556_v32  ;;  %v590_v58 = vrot.slane %v559_v45, 5  ;;  %v591_v59 = vrot.slane %v559_v45, 6  ;;  %v592_v61 = vrot.slane %v559_v45, 7 }
  0xfa   :  { %618 = vst [vmem:[#allocation1 + $0x2] ss:$9 sm:$0xff] %v579_v36 }
  0xfb   :  { %619 = vst [vmem:[#allocation1 + $0x3] ss:$9 sm:$0xff] %v580_v37 }
  0xfc   :  { %620 = vst [vmem:[#allocation1 + $0x4] ss:$9 sm:$0xff] %v581_v39 }
  0xfd   :  { %621 = vst [vmem:[#allocation1 + $0x5] ss:$9 sm:$0xff] %v582_v40  ;;  %v560_v42 = vpop.f32.mrf.mxu0 }
  0xfe   :  { %622 = vst [vmem:[#allocation1 + $0x6] ss:$9 sm:$0xff] %v583_v41  ;;  %v561_v57 = vadd.f32 %v560_v42, %v6315_v20 }
  0xff   :  { %v692_v43 = vld [vmem:[#allocation2 + $0x8] sm:$0x7f] }
 0x100   :  { %v693_v44 = vadd.f32 %v692_v43, %v6319_v31  ;;  %v593_v62 = vrot.slane %v561_v57, 1  ;;  %v594_v63 = vrot.slane %v561_v57, 2  ;;  %v595_v0 = vrot.slane %v561_v57, 3 }
 0x101   :  { %v596_v1 = vrot.slane %v561_v57, 4  ;;  %v597_v3 = vrot.slane %v561_v57, 5  ;;  %v598_v5 = vrot.slane %v561_v57, 6  ;;  %v599_v6 = vrot.slane %v561_v57, 7 }
 0x102   :  { %5278 = vtanh.f32 %v693_v44  ;;  %v5035_v13 = vmul.f32 -1.442695, %v693_v44 }
 0x105   :  { %v623_v49 = vld [vmem:[#allocation1] sm:$0xff]  ;;  %v563_v50 = vpop.f32.mrf.mxu0 }
 0x106   :  { %624 = vst [vmem:[#allocation1] ss:$9 sm:$0xff] %v584_v46  ;;  %v564_v2 = vadd.f32 %v563_v50, %v6317_v21  ;;  %v780_v46 = vsel %vm772_vm14, 1, %v6059_v16 }
 0x107   :  { %625 = vst [vmem:[#allocation1 + $0x1] ss:$9 sm:$0xff] %v585_v47 }
 0x108   :  { %v5279_v53 = vpop.eup %5278  ;;  %654 = vst [vmem:[#allocation2] sm:$0x7f] %v623_v49  ;;  %v600_v7 = vrot.slane %v564_v2, 1  ;;  %v601_v8 = vrot.slane %v564_v2, 2 }
 0x109   :  { %626 = vst [vmem:[#allocation1 + $0x2] ss:$9 sm:$0xff] %v559_v45  ;;  %719 = vrot.lane.b32.xlu0 %v5279_v53, %s6058_s14 }
 0x10a   :  { %627 = vst [vmem:[#allocation1 + $0x3] ss:$9 sm:$0xff] %v586_v51 }
 0x10b   :  { %628 = vst [vmem:[#allocation1 + $0x4] ss:$9 sm:$0xff] %v587_v52 }
 0x10c   :  { %629 = vst [vmem:[#allocation1 + $0x5] ss:$9 sm:$0xff] %v588_v54 }
 0x10d   :  { %630 = vst [vmem:[#allocation1 + $0x6] ss:$9 sm:$0xff] %v589_v55  ;;  %v565_v56 = vpop.f32.mrf.mxu0 }
 0x114   :  { %v631_v60 = vld [vmem:[#allocation1] sm:$0xff] }
 0x115   :  { %632 = vst [vmem:[#allocation1] ss:$9 sm:$0xff] %v590_v58 }
 0x116   :  { %633 = vst [vmem:[#allocation1 + $0x1] ss:$9 sm:$0xff] %v591_v59 }
 0x117   :  { %634 = vst [vmem:[#allocation1 + $0x2] ss:$9 sm:$0xff] %v592_v61 }
 0x118   :  { %655 = vst [vmem:[#allocation2 + $0x20] sm:$0x7f] %v631_v60 }
 0x119   :  { %635 = vst [vmem:[#allocation1 + $0x3] ss:$9 sm:$0xff] %v561_v57 }
 0x11a   :  { %636 = vst [vmem:[#allocation1 + $0x4] ss:$9 sm:$0xff] %v593_v62 }
 0x11b   :  { %637 = vst [vmem:[#allocation1 + $0x5] ss:$9 sm:$0xff] %v594_v63 }
 0x11c   :  { %638 = vst [vmem:[#allocation1 + $0x6] ss:$9 sm:$0xff] %v595_v0 }
 0x123   :  { %v639_v4 = vld [vmem:[#allocation1] sm:$0xff] }
 0x124   :  { %640 = vst [vmem:[#allocation1] ss:$9 sm:$0xff] %v596_v1 }
 0x125   :  { %641 = vst [vmem:[#allocation1 + $0x1] ss:$9 sm:$0xff] %v597_v3 }
 0x126   :  { %642 = vst [vmem:[#allocation1 + $0x2] ss:$9 sm:$0xff] %v598_v5  ;;  %v821_v5 = vld [vmem:[#allocation2] sm:$0x7f] }
 0x127   :  { %643 = vst [vmem:[#allocation1 + $0x3] ss:$9 sm:$0xff] %v599_v6 }
 0x128   :  { %656 = vst [vmem:[#allocation2 + $0x10] sm:$0x7f] %v639_v4 }
 0x129   :  { %644 = vst [vmem:[#allocation1 + $0x4] ss:$9 sm:$0xff] %v564_v2 }
 0x12a   :  { %645 = vst [vmem:[#allocation1 + $0x5] ss:$9 sm:$0xff] %v600_v7 }
 0x12b   :  { %646 = vst [vmem:[#allocation1 + $0x6] ss:$9 sm:$0xff] %v601_v8 }
 0x12f   :  { %v824_v6 = vld [vmem:[#allocation2 + $0x10] sm:$0x7f] }
 0x132   :  { %v647_v9 = vld [vmem:[#allocation1] sm:$0xff] }
 0x133   :  { %657 = vst [vmem:[#allocation2 + $0x18] sm:$0x7f] %v647_v9 }
 0x13a   :  { %v695_v10 = vld [vmem:[#allocation2 + $0x18] sm:$0x7f] }
 0x13b   :  { %v696_v11 = vadd.f32 %v695_v10, %v6319_v31 }
 0x13d   :  { %5280 = vtanh.f32 %v696_v11  ;;  %v5036_v31 = vmul.f32 -1.442695, %v696_v11 }
 0x13e   :  { %5282 = vpow2.f32 %v5035_v13 }
 0x143   :  { %v5281_v12 = vpop.eup %5280 }
 0x144   :  { %756 = vrot.lane.b32.xlu0 %v5281_v12, %s6058_s14  ;;  %v5283_v14 = vpop.eup %5282 }
 0x145   :  { %v700_v15 = vadd.f32 1.0, %v5283_v14 }
 0x147   :  { %5284 = vrcp.f32 %v700_v15  ;;  %v712_v24 = vand.u32 2147483648, %v700_v15  ;;  %vm706_vm7 = vweird.f32 %v700_v15  ;;  %v710_v25 = vand.u32 2147483647, %v700_v15 }
 0x148   :  { %5286 = vpow2.f32 %v5036_v31 }
 0x149   :  { %v713_v27 = vor.u32 1.1754944e-38, %v712_v24  ;;  %vm711_vm9 = vcmp.eq.f32.partialorder %v710_v25, 8.507059e+37 }
 0x14c   :  { %775 = vperm.xlu0 %5225, %v773_v18  }
 0x14d   :  { %v5285_v19 = vpop.eup %5284 }
 0x14e   :  { %v702_v20 = vmul.f32 %v5285_v19, %v700_v15  ;;  %vm707_vm6 = vweird.f32 %v5285_v19  ;;  %v5287_v32 = vpop.eup %5286 }
 0x14f   :  { %vm708_vm8 = vmor %vm706_vm7, %vm707_vm6  ;;  %v737_v33 = vadd.f32 1.0, %v5287_v32  ;;  %vm7531_vm6 = vcmask 129024   ;;  %vm675_vm7 = vcmask 261120  }
 0x150   :  { %v703_v21 = vsub.f32 1.0, %v702_v20 }
 0x151   :  { %5288 = vrcp.f32 %v737_v33  ;;  %v749_v39 = vand.u32 2147483648, %v737_v33  ;;  %vm743_vm11 = vweird.f32 %v737_v33  ;;  %v747_v40 = vand.u32 2147483647, %v737_v33 }
 0x152   :  { %v704_v22 = vmul.f32 %v5285_v19, %v703_v21 }
 0x153   :  { %v750_v42 = vor.u32 1.1754944e-38, %v749_v39  ;;  %vm748_vm13 = vcmp.eq.f32.partialorder %v747_v40, 8.507059e+37 }
 0x154   :  { %v705_v23 = vadd.f32 %v5285_v19, %v704_v22 }
 0x156   :  { %v709_v26 = vsel %vm708_vm8, %v5285_v19, %v705_v23 }
 0x157   :  { %v714_v29 = vsel %vm711_vm9, %v713_v27, %v709_v26  ;;  %v5289_v34 = vpop.eup %5288 }
 0x158   :  { %v739_v35 = vmul.f32 %v5289_v34, %v737_v33  ;;  %vm744_vm10 = vweird.f32 %v5289_v34  ;;  %v717_v47 = vmul.f32 0.0, %v714_v29 }
 0x159   :  { %vm745_vm12 = vmor %vm743_vm11, %vm744_vm10 }
 0x15a   :  { %v740_v36 = vsub.f32 1.0, %v739_v35 }
 0x15c   :  { %v741_v37 = vmul.f32 %v5289_v34, %v740_v36 }
 0x15e   :  { %v742_v38 = vadd.f32 %v5289_v34, %v741_v37 }
 0x160   :  { %v746_v41 = vsel %vm745_vm12, %v5289_v34, %v742_v38 }
 0x161   :  { %v751_v44 = vsel %vm748_vm13, %v750_v42, %v746_v41 }
 0x162   :  { %v754_v52 = vmul.f32 0.0, %v751_v44 }
 0x17b   :  { %v720_v28 = vpop.permute.xlu0 %719 }
 0x17c   :  { %v722_v30 = vmul.f32 %v720_v28, %v714_v29 }
 0x17e   :  { %724 = vrot.lane.b32.xlu1 %v722_v30, %s6060_s25 }
 0x1b6   :  { %v757_v43 = vpop.permute.xlu0 %756 }
 0x1b7   :  { %v759_v45 = vmul.f32 %v757_v43, %v751_v44 }
 0x1b9   :  { %761 = vrot.lane.b32.xlu1 %v759_v45, %s6060_s25 }
 0x1be   :  { %v6349_v56 = vpop.permute.xlu0 %775 }
 0x1bf   :  { %vm7532_vm15 = vcmp.eq.s32.totalorder %v6349_v56, 1 }
 0x1c1   :  { %782 = vperm.xlu1 %5226, %v780_v46  }
 0x1f0   :  { %v725_v49 = vpop.permute.xlu1 %724 }
 0x1f1   :  { %v6341_v50 = vadd.f32 %v725_v49, %v717_v47 }
 0x1f3   :  { %5290 = vtanh.f32 %v6341_v50  ;;  %v779_v45 = vsel %vm7532_vm15, %v6341_v50, 0.0 }
 0x1f9   :  { %v5291_v51 = vpop.eup %5290 }
 0x1fa   :  { %730 = vrot.lane.b32.xlu2 %v5291_v51, %s6061_s21 }
 0x22b   :  { %v762_v53 = vpop.permute.xlu1 %761 }
 0x22c   :  { %v6345_v54 = vadd.f32 %v762_v53, %v754_v52 }
 0x22e   :  { %5292 = vtanh.f32 %v6345_v54 }
 0x233   :  { %v6355_v60 = vpop.permute.xlu1 %782 }
 0x234   :  { %v5293_v55 = vpop.eup %5292  ;;  %vm7530_vm5 = vcmp.eq.s32.totalorder %v6355_v60, 1 }
 0x235   :  { %767 = vrot.lane.b32.xlu2 %v5293_v55, %s6061_s21  ;;  %v786_v46 = vsel %vm7530_vm5, %v6345_v54, 0.0 }
 0x254   :  { %v731_v57 = vpop.permute.xlu2 %730 }
 0x255   :  { %v733_v58 = vmul.f32 %v731_v57, %v714_v29 }
 0x257   :  { %v778_v59 = vsel %vm7532_vm15, %v733_v58, 0.0 }
 0x258   :  { %788 = vrot.lane.b32.xlu2 %v778_v59, %s6062_s19 }
 0x28f   :  { %v768_v61 = vpop.permute.xlu2 %767 }
 0x290   :  { %v770_v62 = vmul.f32 %v768_v61, %v751_v44 }
 0x292   :  { %v6360_v63 = vsel %vm7530_vm5, %v770_v62, 0.0 }
 0x293   :  { %799 = vrot.lane.b32.xlu1 %v6360_v63, %s6061_s21 }
 0x2b2   :  { %v789_v0 = vpop.permute.xlu2 %788 }
 0x2b3   :  { %792 = vst.msk [vmem:[#allocation3] sm:$0x7f] %vm7531_vm6, %v789_v0 }
 0x305   :  { %v800_v1 = vpop.permute.xlu1 %799 }
 0x306   :  { %v802_v2 = vsel %vm537_vm4, %v789_v0, %v800_v1 }
 0x307   :  { %v803_v3 = vpack.c.bf16 %v802_v2, %v802_v2 }
 0x309   :  { %5037 = vmatmul.msk.bf16.vlgmr.msra.gmra.mxu2 %vm675_vm7, %v803_v3 }
 0x38c   :  { %v816_v4 = vpop.f32.mrf.mxu2 }
 0x38d   :  { %v822_v7 = vadd.f32 %v821_v5, %v816_v4  ;;  %v825_v8 = vadd.f32 %v824_v6, %v816_v4 }
 0x38f   :  { %5294 = vtanh.f32 %v822_v7  ;;  %v5038_v12 = vmul.f32 -1.442695, %v822_v7  ;;  %v5039_v18 = vmul.f32 -1.442695, %v825_v8 }
 0x390   :  { %5296 = vtanh.f32 %v825_v8 }
 0x391   :  { %5298 = vpow2.f32 %v5038_v12 }
 0x394   :  { %v818_v9 = vpop.f32.mrf.mxu2 }
 0x395   :  { %v5295_v10 = vpop.eup %5294  ;;  %v950_v9 = vld [vmem:[#allocation2 + $0x20] sm:$0x7f] }
 0x396   :  { %v5297_v11 = vpop.eup %5296  ;;  %848 = vrot.lane.b32.xlu2 %v5295_v10, %s6058_s14 }
 0x397   :  { %885 = vrot.lane.b32.xlu0 %v5297_v11, %s6058_s14  ;;  %v5299_v13 = vpop.eup %5298 }
 0x398   :  { %v829_v14 = vadd.f32 1.0, %v5299_v13 }
 0x39a   :  { %5300 = vrcp.f32 %v829_v14  ;;  %v841_v25 = vand.u32 2147483648, %v829_v14  ;;  %vm835_vm9 = vweird.f32 %v829_v14  ;;  %v839_v26 = vand.u32 2147483647, %v829_v14 }
 0x39b   :  { %5302 = vpow2.f32 %v5039_v18 }
 0x39c   :  { %v842_v28 = vor.u32 1.1754944e-38, %v841_v25  ;;  %vm840_vm11 = vcmp.eq.f32.partialorder %v839_v26, 8.507059e+37 }
 0x3a0   :  { %v5301_v15 = vpop.eup %5300 }
 0x3a1   :  { %v831_v19 = vmul.f32 %v5301_v15, %v829_v14  ;;  %v5303_v22 = vpop.eup %5302  ;;  %vm836_vm8 = vweird.f32 %v5301_v15 }
 0x3a2   :  { %v866_v23 = vadd.f32 1.0, %v5303_v22  ;;  %vm837_vm10 = vmor %vm835_vm9, %vm836_vm8  ;;  %vm900_vm9 = vcmp.gt.s32.totalorder %v6333_v17, 1 }
 0x3a3   :  { %v832_v20 = vsub.f32 1.0, %v831_v19  ;;  %v902_v44 = vsel %vm900_vm9, 1, %v6059_v16 }
 0x3a4   :  { %5304 = vrcp.f32 %v866_v23  ;;  %v878_v37 = vand.u32 2147483648, %v866_v23  ;;  %vm872_vm13 = vweird.f32 %v866_v23  ;;  %v876_v38 = vand.u32 2147483647, %v866_v23 }
 0x3a5   :  { %v833_v21 = vmul.f32 %v5301_v15, %v832_v20 }
 0x3a6   :  { %v879_v40 = vor.u32 1.1754944e-38, %v878_v37  ;;  %vm877_vm8 = vcmp.eq.f32.partialorder %v876_v38, 8.507059e+37 }
 0x3a7   :  { %v834_v24 = vadd.f32 %v5301_v15, %v833_v21 }
 0x3a9   :  { %v838_v27 = vsel %vm837_vm10, %v5301_v15, %v834_v24  ;;  %vm901_vm10 = vcmp.gt.s32.totalorder %v6333_v17, 3 }
 0x3aa   :  { %v843_v30 = vsel %vm840_vm11, %v842_v28, %v838_v27  ;;  %v5305_v32 = vpop.eup %5304  ;;  %v909_v50 = vsel %vm901_vm10, 1, %v6059_v16  ;;  %vm997_vm10 = vcmp.gt.s32.totalorder %v6333_v17, 2 }
 0x3ab   :  { %v868_v33 = vmul.f32 %v5305_v32, %v866_v23  ;;  %vm873_vm12 = vweird.f32 %v5305_v32  ;;  %v846_v47 = vmul.f32 %v843_v30, %v779_v45 }
 0x3ac   :  { %vm874_vm14 = vmor %vm872_vm13, %vm873_vm12 }
 0x3ad   :  { %v869_v34 = vsub.f32 1.0, %v868_v33 }
 0x3af   :  { %v870_v35 = vmul.f32 %v5305_v32, %v869_v34 }
 0x3b1   :  { %v871_v36 = vadd.f32 %v5305_v32, %v870_v35 }
 0x3b3   :  { %v875_v39 = vsel %vm874_vm14, %v5305_v32, %v871_v36 }
 0x3b4   :  { %v880_v42 = vsel %vm877_vm8, %v879_v40, %v875_v39 }
 0x3b5   :  { %v883_v49 = vmul.f32 %v880_v42, %v786_v46 }
 0x3f0   :  { %v849_v29 = vpop.permute.xlu2 %848 }
 0x3f1   :  { %v851_v31 = vmul.f32 %v849_v29, %v843_v30 }
 0x3f3   :  { %853 = vrot.lane.b32.xlu1 %v851_v31, %s6060_s25 }
 0x409   :  { %v886_v41 = vpop.permute.xlu0 %885 }
 0x40a   :  { %v888_v43 = vmul.f32 %v886_v41, %v880_v42 }
 0x40c   :  { %890 = vrot.lane.b32.xlu2 %v888_v43, %s6060_s25 }
 0x414   :  { %904 = vperm.xlu2 %5227, %v902_v44  }
 0x465   :  { %v854_v51 = vpop.permute.xlu1 %853 }
 0x466   :  { %v891_v52 = vpop.permute.xlu2 %890  ;;  %v856_v53 = vadd.f32 %v854_v51, %v846_v47 }
 0x467   :  { %v893_v55 = vadd.f32 %v891_v52, %v883_v49 }
 0x468   :  { %5306 = vtanh.f32 %v856_v53 }
 0x469   :  { %5308 = vtanh.f32 %v893_v55 }
 0x46e   :  { %v5307_v57 = vpop.eup %5306  ;;  %v6383_v54 = vpop.permute.xlu2 %904 }
 0x46f   :  { %v5309_v58 = vpop.eup %5308  ;;  %859 = vrot.lane.b32.xlu0 %v5307_v57, %s6061_s21  ;;  %vm7534_vm11 = vcmp.eq.s32.totalorder %v6383_v54, 1 }
 0x470   :  { %896 = vrot.lane.b32.xlu1 %v5309_v58, %s6061_s21  ;;  %v908_v31 = vsel %vm7534_vm11, %v856_v53, 0.0  ;;  %v1040_v53 = vld [vmem:[#allocation2 + $0x10] sm:$0x7f] }
 0x477   :  { %911 = vperm.xlu0 %5225, %v909_v50  }
 0x4e1   :  { %v860_v59 = vpop.permute.xlu0 %859 }
 0x4e2   :  { %v862_v61 = vmul.f32 %v860_v59, %v843_v30  ;;  %v897_v0 = vpop.permute.xlu1 %896  ;;  %v998_v30 = vsel %vm997_vm10, 1, %v6059_v16 }
 0x4e3   :  { %v899_v1 = vmul.f32 %v897_v0, %v880_v42 }
 0x4e4   :  { %v907_v62 = vsel %vm7534_vm11, %v862_v61, 0.0 }
 0x4e5   :  { %917 = vrot.lane.b32.xlu1 %v907_v62, %s6062_s19 }
 0x4e9   :  { %v6389_v2 = vpop.permute.xlu0 %911 }
 0x4ea   :  { %vm7533_vm12 = vcmp.eq.s32.totalorder %v6389_v2, 1 }
 0x4eb   :  { %v6394_v3 = vsel %vm7533_vm12, %v899_v1, 0.0  ;;  %v915_v32 = vsel %vm7533_vm12, %v893_v55, 0.0  ;;  %v1042_v55 = vld [vmem:[#allocation2] sm:$0x7f] }
 0x4ec   :  { %928 = vrot.lane.b32.xlu2 %v6394_v3, %s6061_s21 }
 0x546   :  { %v929_v4 = vpop.permute.xlu2 %928 }
 0x557   :  { %v918_v5 = vpop.permute.xlu1 %917 }
 0x558   :  { %921 = vst.msk [vmem:[#allocation3 + $0x8] sm:$0x7f] %vm7531_vm6, %v918_v5  ;;  %v931_v6 = vsel %vm537_vm4, %v918_v5, %v929_v4 }
 0x559   :  { %v932_v7 = vpack.c.bf16 %v931_v6, %v931_v6 }
 0x55b   :  { %5040 = vmatmul.msk.bf16.vlgmr.msra.gmra.mxu3 %vm675_vm7, %v932_v7 }
 0x5de   :  { %v945_v8 = vpop.f32.mrf.mxu3 }
 0x5df   :  { %v951_v10 = vadd.f32 %v950_v9, %v945_v8 }
 0x5e1   :  { %5310 = vtanh.f32 %v951_v10  ;;  %v5041_v13 = vmul.f32 -1.442695, %v951_v10 }
 0x5e3   :  { %5312 = vpow2.f32 %v5041_v13 }
 0x5e6   :  { %v947_v11 = vpop.f32.mrf.mxu3 }
 0x5e7   :  { %v5311_v12 = vpop.eup %5310 }
 0x5e8   :  { %974 = vrot.lane.b32.xlu0 %v5311_v12, %s6058_s14 }
 0x5e9   :  { %v5313_v14 = vpop.eup %5312 }
 0x5ea   :  { %v955_v15 = vadd.f32 1.0, %v5313_v14 }
 0x5ec   :  { %5314 = vrcp.f32 %v955_v15  ;;  %v967_v23 = vand.u32 2147483648, %v955_v15  ;;  %vm961_vm14 = vweird.f32 %v955_v15  ;;  %v965_v24 = vand.u32 2147483647, %v955_v15 }
 0x5ee   :  { %v968_v26 = vor.u32 1.1754944e-38, %v967_v23  ;;  %vm966_vm9 = vcmp.eq.f32.partialorder %v965_v24, 8.507059e+37 }
 0x5f2   :  { %v5315_v18 = vpop.eup %5314 }
 0x5f3   :  { %v957_v19 = vmul.f32 %v5315_v18, %v955_v15  ;;  %vm962_vm13 = vweird.f32 %v5315_v18 }
 0x5f4   :  { %vm963_vm8 = vmor %vm961_vm14, %vm962_vm13 }
 0x5f5   :  { %v958_v20 = vsub.f32 1.0, %v957_v19 }
 0x5f7   :  { %v959_v21 = vmul.f32 %v5315_v18, %v958_v20 }
 0x5f9   :  { %v960_v22 = vadd.f32 %v5315_v18, %v959_v21 }
 0x5fb   :  { %v964_v25 = vsel %vm963_vm8, %v5315_v18, %v960_v22 }
 0x5fc   :  { %v969_v28 = vsel %vm966_vm9, %v968_v26, %v964_v25 }
 0x5fd   :  { %v989_v33 = vmul.f32 %v969_v28, %v915_v32  ;;  %v972_v34 = vmul.f32 %v969_v28, %v908_v31 }
 0x65a   :  { %v975_v27 = vpop.permute.xlu0 %974 }
 0x65b   :  { %v977_v29 = vmul.f32 %v975_v27, %v969_v28 }
 0x65d   :  { %979 = vrot.lane.b32.xlu1 %v977_v29, %s6060_s25 }
 0x665   :  { %1000 = vperm.xlu1 %5226, %v998_v30  }
 0x6cf   :  { %v980_v35 = vpop.permute.xlu1 %979 }
 0x6d0   :  { %v6409_v36 = vadd.f32 %v980_v35, %v972_v34  ;;  %v6411_v37 = vadd.f32 %v989_v33, %v980_v35 }
 0x6d2   :  { %5316 = vtanh.f32 %v6409_v36 }
 0x6d3   :  { %5318 = vtanh.f32 %v6411_v37 }
 0x6d7   :  { %v6417_v39 = vpop.permute.xlu1 %1000 }
 0x6d8   :  { %v5317_v17 = vpop.eup %5316  ;;  %vm7529_vm13 = vcmp.eq.s32.totalorder %v6417_v39, 1 }
 0x6d9   :  { %v5319_v38 = vpop.eup %5318  ;;  %985 = vrot.lane.b32.xlu2 %v5317_v17, %s6061_s21  ;;  %v1006_v33 = vsel %vm7529_vm13, %v6411_v37, 0.0 }
 0x6da   :  { %993 = vrot.lane.b32.xlu0 %v5319_v38, %s6061_s21 }
 0x733   :  { %v986_v40 = vpop.permute.xlu2 %985 }
 0x734   :  { %v988_v41 = vmul.f32 %v986_v40, %v969_v28  ;;  %v1004_v40 = vsel %vm7529_vm13, %v6409_v36, 0.0 }
 0x736   :  { %v1003_v42 = vsel %vm7529_vm13, %v988_v41, 0.0 }
 0x737   :  { %1008 = vrot.lane.b32.xlu2 %v1003_v42, %s6062_s19 }
 0x74c   :  { %v994_v43 = vpop.permute.xlu0 %993 }
 0x74d   :  { %v996_v44 = vmul.f32 %v994_v43, %v969_v28 }
 0x74f   :  { %v6425_v45 = vsel %vm7529_vm13, %v996_v44, 0.0 }
 0x750   :  { %1019 = vrot.lane.b32.xlu0 %v6425_v45, %s6061_s21 }
 0x791   :  { %v1009_v46 = vpop.permute.xlu2 %1008 }
 0x792   :  { %1012 = vst.msk [vmem:[#allocation3 + $0x10] sm:$0x7f] %vm7531_vm6, %v1009_v46 }
 0x7c2   :  { %v1020_v47 = vpop.permute.xlu0 %1019 }
 0x7c3   :  { %v1022_v49 = vsel %vm537_vm4, %v1009_v46, %v1020_v47 }
 0x7c4   :  { %v1023_v51 = vpack.c.bf16 %v1022_v49, %v1022_v49 }
 0x7c6   :  { %5042 = vmatmul.msk.bf16.vlgmr.msrb.gmra.mxu1 %vm675_vm7, %v1023_v51 }
 0x843   :  { %v1036_v52 = vpop.f32.mrf.mxu1 }
 0x844   :  { %v1041_v57 = vadd.f32 %v1040_v53, %v1036_v52  ;;  %v1043_v58 = vadd.f32 %v1042_v55, %v1036_v52 }
 0x846   :  { %5320 = vtanh.f32 %v1041_v57  ;;  %v5044_v62 = vmul.f32 -1.442695, %v1043_v58  ;;  %v5043_v5 = vmul.f32 -1.442695, %v1041_v57 }
 0x847   :  { %5322 = vtanh.f32 %v1043_v58 }
 0x848   :  { %5324 = vpow2.f32 %v5044_v62 }
 0x84b   :  { %v1038_v50 = vpop.f32.mrf.mxu1 }
 0x84c   :  { %v5321_v59 = vpop.eup %5320  ;;  %v1155_v50 = vld [vmem:[#allocation2 + $0x18] sm:$0x7f] }
 0x84d   :  { %v5323_v61 = vpop.eup %5322  ;;  %1066 = vrot.lane.b32.xlu1 %v5321_v59, %s6058_s14  ;;  %v1157_v59 = vld [vmem:[#allocation2 + $0x8] sm:$0x7f] }
 0x84e   :  { %1103 = vrot.lane.b32.xlu2 %v5323_v61, %s6058_s14  ;;  %v5325_v0 = vpop.eup %5324 }
 0x84f   :  { %v1084_v1 = vadd.f32 1.0, %v5325_v0 }
 0x851   :  { %5326 = vrcp.f32 %v1084_v1  ;;  %v1096_v12 = vand.u32 2147483648, %v1084_v1  ;;  %vm1090_vm8 = vweird.f32 %v1084_v1  ;;  %v1094_v13 = vand.u32 2147483647, %v1084_v1 }
 0x852   :  { %5328 = vpow2.f32 %v5043_v5 }
 0x853   :  { %v1097_v15 = vor.u32 1.1754944e-38, %v1096_v12  ;;  %vm1095_vm10 = vcmp.eq.f32.partialorder %v1094_v13, 8.507059e+37 }
 0x857   :  { %v5327_v4 = vpop.eup %5326 }
 0x858   :  { %v1086_v6 = vmul.f32 %v5327_v4, %v1084_v1  ;;  %v5329_v8 = vpop.eup %5328  ;;  %vm1091_vm14 = vweird.f32 %v5327_v4 }
 0x859   :  { %v1047_v10 = vadd.f32 1.0, %v5329_v8  ;;  %vm1092_vm9 = vmor %vm1090_vm8, %vm1091_vm14 }
 0x85a   :  { %v1087_v7 = vsub.f32 1.0, %v1086_v6 }
 0x85b   :  { %5330 = vrcp.f32 %v1047_v10  ;;  %v1059_v26 = vand.u32 2147483648, %v1047_v10  ;;  %vm1053_vm2 = vweird.f32 %v1047_v10  ;;  %v1057_v27 = vand.u32 2147483647, %v1047_v10 }
 0x85c   :  { %v1088_v9 = vmul.f32 %v5327_v4, %v1087_v7 }
 0x85d   :  { %v1060_v29 = vor.u32 1.1754944e-38, %v1059_v26  ;;  %vm1058_vm14 = vcmp.eq.f32.partialorder %v1057_v27, 8.507059e+37 }
 0x85e   :  { %v1089_v11 = vadd.f32 %v5327_v4, %v1088_v9 }
 0x860   :  { %v1093_v14 = vsel %vm1092_vm9, %v5327_v4, %v1089_v11 }
 0x861   :  { %v1098_v19 = vsel %vm1095_vm10, %v1097_v15, %v1093_v14  ;;  %v5331_v20 = vpop.eup %5330 }
 0x862   :  { %v1049_v22 = vmul.f32 %v5331_v20, %v1047_v10  ;;  %vm1054_vm3 = vweird.f32 %v5331_v20  ;;  %v1101_v34 = vmul.f32 %v1098_v19, %v1006_v33 }
 0x863   :  { %vm1055_vm1 = vmor %vm1053_vm2, %vm1054_vm3 }
 0x864   :  { %v1050_v23 = vsub.f32 1.0, %v1049_v22 }
 0x866   :  { %v1051_v24 = vmul.f32 %v5331_v20, %v1050_v23 }
 0x868   :  { %v1052_v25 = vadd.f32 %v5331_v20, %v1051_v24 }
 0x86a   :  { %v1056_v28 = vsel %vm1055_vm1, %v5331_v20, %v1052_v25 }
 0x86b   :  { %v1061_v31 = vsel %vm1058_vm14, %v1060_v29, %v1056_v28 }
 0x86c   :  { %v1064_v41 = vmul.f32 %v1061_v31, %v1004_v40 }
 0x8a8   :  { %v1104_v18 = vpop.permute.xlu2 %1103 }
 0x8a9   :  { %v1106_v21 = vmul.f32 %v1104_v18, %v1098_v19 }
 0x8ab   :  { %1108 = vrot.lane.b32.xlu1 %v1106_v21, %s6060_s25 }
 0x8bf   :  { %v1067_v30 = vpop.permute.xlu1 %1066 }
 0x8c0   :  { %v1069_v32 = vmul.f32 %v1067_v30, %v1061_v31 }
 0x8c2   :  { %1071 = vrot.lane.b32.xlu0 %v1069_v32, %s6060_s25 }
 0x91d   :  { %v1109_v35 = vpop.permute.xlu1 %1108 }
 0x91e   :  { %v6439_v17 = vadd.f32 %v1109_v35, %v1101_v34 }
 0x920   :  { %5332 = vtanh.f32 %v6439_v17 }
 0x926   :  { %v5333_v38 = vpop.eup %5332 }
 0x927   :  { %1114 = vrot.lane.b32.xlu0 %v5333_v38, %s6061_s21 }
 0x934   :  { %v1072_v42 = vpop.permute.xlu0 %1071 }
 0x935   :  { %v6446_v43 = vadd.f32 %v1072_v42, %v1064_v41  ;;  %v1121_v41 = vsel %vm7534_vm11, %v6439_v17, 0.0 }
 0x937   :  { %5334 = vtanh.f32 %v6446_v43 }
 0x93d   :  { %v5335_v37 = vpop.eup %5334 }
 0x93e   :  { %1077 = vrot.lane.b32.xlu2 %v5335_v37, %s6061_s21 }
 0x998   :  { %v1078_v44 = vpop.permute.xlu2 %1077 }
 0x999   :  { %v1115_v46 = vpop.permute.xlu0 %1114  ;;  %v1080_v47 = vmul.f32 %v1078_v44, %v1061_v31 }
 0x99a   :  { %v1117_v49 = vmul.f32 %v1115_v46, %v1098_v19 }
 0x99b   :  { %v1118_v51 = vsel %vm7533_vm12, %v1080_v47, 0.0 }
 0x99c   :  { %v1120_v52 = vsel %vm7534_vm11, %v1117_v49, 0.0  ;;  %1123 = vrot.lane.b32.xlu1 %v1118_v51, %s6062_s19 }
 0x99d   :  { %1134 = vrot.lane.b32.xlu2 %v1120_v52, %s6061_s21 }
 0x9f7   :  { %v1135_v36 = vpop.permute.xlu2 %1134 }
 0xa0e   :  { %v1124_v53 = vpop.permute.xlu1 %1123 }
 0xa0f   :  { %1127 = vst.msk [vmem:[#allocation3 + $0x18] sm:$0x7f] %vm7531_vm6, %v1124_v53  ;;  %v1137_v55 = vsel %vm537_vm4, %v1124_v53, %v1135_v36 }
 0xa10   :  { %v1138_v57 = vpack.c.bf16 %v1137_v55, %v1137_v55 }
 0xa12   :  { %5045 = vmatmul.msk.bf16.vlgmr.msrb.gmra.mxu2 %vm675_vm7, %v1138_v57 }
 0xa95   :  { %v1151_v58 = vpop.f32.mrf.mxu2 }
 0xa96   :  { %v1156_v61 = vadd.f32 %v1155_v50, %v1151_v58  ;;  %v1158_v62 = vadd.f32 %v1157_v59, %v1151_v58 }
 0xa98   :  { %5336 = vtanh.f32 %v1156_v61  ;;  %v5047_v5 = vmul.f32 -1.442695, %v1158_v62  ;;  %v5046_v6 = vmul.f32 -1.442695, %v1156_v61 }
 0xa99   :  { %5338 = vtanh.f32 %v1158_v62 }
 0xa9a   :  { %5340 = vpow2.f32 %v5047_v5 }
 0xa9b   :  { %5342 = vpow2.f32 %v5046_v6 }
 0xa9d   :  { %v1153_v0 = vpop.f32.mrf.mxu2 }
 0xa9e   :  { %v5337_v1 = vpop.eup %5336 }
 0xa9f   :  { %v5339_v4 = vpop.eup %5338  ;;  %1181 = vrot.lane.b32.xlu2 %v5337_v1, %s6058_s14 }
 0xaa0   :  { %1218 = vrot.lane.b32.xlu0 %v5339_v4, %s6058_s14  ;;  %v5341_v7 = vpop.eup %5340  ;;  %v1248_v4 = vld [vmem:[#allocation3 + $0x10] sm:$0x7f] }
 0xaa1   :  { %v1199_v8 = vadd.f32 1.0, %v5341_v7  ;;  %v5343_v9 = vpop.eup %5342 }
 0xaa2   :  { %v1162_v11 = vadd.f32 1.0, %v5343_v9 }
 0xaa3   :  { %5344 = vrcp.f32 %v1199_v8  ;;  %v1211_v23 = vand.u32 2147483648, %v1199_v8  ;;  %vm1205_vm2 = vweird.f32 %v1199_v8  ;;  %v1209_v24 = vand.u32 2147483647, %v1199_v8 }
 0xaa4   :  { %5346 = vrcp.f32 %v1162_v11  ;;  %v1174_v32 = vand.u32 2147483648, %v1162_v11  ;;  %vm1168_vm10 = vweird.f32 %v1162_v11  ;;  %v1172_v33 = vand.u32 2147483647, %v1162_v11 }
 0xaa5   :  { %v1212_v27 = vor.u32 1.1754944e-38, %v1211_v23  ;;  %vm1210_vm8 = vcmp.eq.f32.partialorder %v1209_v24, 8.507059e+37 }
 0xaa6   :  { %v1175_v35 = vor.u32 1.1754944e-38, %v1174_v32  ;;  %vm1173_vm13 = vcmp.eq.f32.partialorder %v1172_v33, 8.507059e+37 }
 0xaa7   :  { %1129 = vrot.lane.b32.xlu2 %v1120_v52, %s6060_s25 }
 0xaa9   :  { %v5345_v12 = vpop.eup %5344 }
 0xaaa   :  { %v1201_v13 = vmul.f32 %v5345_v12, %v1199_v8  ;;  %v5347_v18 = vpop.eup %5346  ;;  %vm1206_vm1 = vweird.f32 %v5345_v12 }
 0xaab   :  { %v1164_v19 = vmul.f32 %v5347_v18, %v1162_v11  ;;  %vm1207_vm3 = vmor %vm1205_vm2, %vm1206_vm1  ;;  %vm1169_vm9 = vweird.f32 %v5347_v18  ;;  %vm7558_vm1 = vcmask 1042434   ;;  %vm7559_vm2 = vcmask 1043459  }
 0xaac   :  { %v1202_v15 = vsub.f32 1.0, %v1201_v13  ;;  %vm1170_vm14 = vmor %vm1168_vm10, %vm1169_vm9 }
 0xaad   :  { %v1165_v21 = vsub.f32 1.0, %v1164_v19  ;;  %vm7563_vm9 = vmmov %vm7559_vm2 }
 0xaaf   :  { %923 = vrot.lane.b32.xlu2 %v6394_v3, %s6060_s25  ;;  %v1203_v3 = vmul.f32 %v5345_v12, %v1202_v15  ;;  %v1166_v25 = vmul.f32 %v5347_v18, %v1165_v21  ;;  %v5187_v15 = vld [vmem:[%s7560_s23] sm:$0xff]  ;;  %v1246_v21 = vld [vmem:[#allocation3] sm:$0x7f] }
 0xab1   :  { %v1204_v22 = vadd.f32 %v5345_v12, %v1203_v3  ;;  %v1167_v30 = vadd.f32 %v5347_v18, %v1166_v25 }
 0xab3   :  { %v1208_v26 = vsel %vm1207_vm3, %v5345_v12, %v1204_v22  ;;  %v1171_v34 = vsel %vm1170_vm14, %v5347_v18, %v1167_v30  ;;  %vm7565_vm14 = vmmov %vm7558_vm1 }
 0xab4   :  { %v1213_v29 = vsel %vm1210_vm8, %v1212_v27, %v1208_v26  ;;  %v1176_v38 = vsel %vm1173_vm13, %v1175_v35, %v1171_v34  ;;  %vm7557_vm13 = vcmask 1041409   ;;  %vm7562_vm8 = vmmov %vm7558_vm1 }
 0xab5   :  { %v1216_v42 = vmul.f32 %v1213_v29, %v1121_v41  ;;  %vm7561_vm3 = vmmov %vm7557_vm13 }
 0xab6   :  { %vm7564_vm10 = vmmov %vm7561_vm3 }
 0xaf9   :  { %v1182_v10 = vpop.permute.xlu2 %1181 }
 0xafa   :  { %v1184_v40 = vmul.f32 %v1182_v10, %v1176_v38 }
 0xb01   :  { %v1130_v14 = vpop.permute.xlu2 %1129 }
 0xb02   :  { %1133 = vst.msk [vmem:[#allocation4 + $0x8] sm:$0x7f] %vm7531_vm6, %v1130_v14  ;;  %v5188_v14 = vld [vmem:[%s7560_s23 + $0x8] sm:$0xff] }
 0xb03   :  { %1549 = vmatpush.bf16.msrb.mxu3 %v5188_v14 }
 0xb07   :  { %1550 = vmatpush.bf16.msrb.mxu3 %v5187_v15 }
 0xb09   :  { %v924_v20 = vpop.permute.xlu2 %923  ;;  %v1252_v61 = vld [vmem:[#allocation4 + $0x8] sm:$0x7f] }
 0xb0a   :  { %927 = vst.msk [vmem:[#allocation4 + $0x18] sm:$0x7f] %vm7531_vm6, %v924_v20  ;;  %v1247_v20 = vld [vmem:[#allocation3 + $0x8] sm:$0x7f] }
 0xb11   :  { %v1254_v8 = vld [vmem:[#allocation4 + $0x18] sm:$0x7f] }
 0xb12   :  { %v1219_v28 = vpop.permute.xlu0 %1218 }
 0xb13   :  { %v1221_v31 = vmul.f32 %v1219_v28, %v1213_v29 }
 0xb15   :  { %1223 = vrot.lane.b32.xlu1 %v1221_v31, %s6060_s25 }
 0xb1d   :  { %1186 = vrot.lane.b32.xlu1 %v1184_v40, %s6060_s25 }
 0xb25   :  { %1014 = vrot.lane.b32.xlu1 %v6425_v45, %s6060_s25 }
 0xb2d   :  { %794 = vrot.lane.b32.xlu1 %v6360_v63, %s6060_s25  ;;  %v1119_v63 = vsel %vm7533_vm12, %v6446_v43, 0.0 }
 0xb2e   :  { %v1179_v45 = vmul.f32 %v1176_v38, %v1119_v63 }
 0xb87   :  { %v1224_v37 = vpop.permute.xlu1 %1223 }
 0xb88   :  { %v1226_v44 = vadd.f32 %v1224_v37, %v1216_v42 }
 0xb8a   :  { %5348 = vtanh.f32 %v1226_v44 }
 0xb8f   :  { %v1187_v46 = vpop.permute.xlu1 %1186 }
 0xb90   :  { %v5349_v47 = vpop.eup %5348  ;;  %v1189_v52 = vadd.f32 %v1187_v46, %v1179_v45 }
 0xb91   :  { %1229 = vrot.lane.b32.xlu0 %v5349_v47, %s6061_s21 }
 0xb92   :  { %5350 = vtanh.f32 %v1189_v52 }
 0xb97   :  { %v1015_v49 = vpop.permute.xlu1 %1014 }
 0xb98   :  { %1018 = vst.msk [vmem:[#allocation4 + $0x10] sm:$0x7f] %vm7531_vm6, %v1015_v49  ;;  %v5351_v55 = vpop.eup %5350  ;;  %v1249_v49 = vld [vmem:[#allocation3 + $0x18] sm:$0x7f] }
 0xb9f   :  { %v795_v51 = vpop.permute.xlu1 %794  ;;  %v1253_v57 = vld [vmem:[#allocation4 + $0x10] sm:$0x7f] }
 0xba0   :  { %798 = vst.msk [vmem:[#allocation4 + $0x20] sm:$0x7f] %vm7531_vm6, %v795_v51 }
 0xba7   :  { %v1255_v58 = vld [vmem:[#allocation4 + $0x20] sm:$0x7f] }
 0xc03   :  { %v1230_v17 = vpop.permute.xlu0 %1229 }
 0xc04   :  { %v1232_v36 = vmul.f32 %v1230_v17, %v1213_v29 }
 0xc06   :  { %v1234_v53 = vsel %vm7532_vm15, %v1232_v36, 0.0 }
 0xc07   :  { %1242 = vrot.lane.b32.xlu0 %v1234_v53, %s6060_s25 }
 0xc0f   :  { %1192 = vrot.lane.b32.xlu0 %v5351_v55, %s6061_s21 }
 0xc17   :  { %1265 = vrot.lane.b32.xlu0 %v1253_v57, %s6060_s25 }
 0xc1f   :  { %1269 = vrot.lane.b32.xlu0 %v1255_v58, %s6060_s25  ;;  %v5190_v58 = vld [vmem:[%s7567_s16 + $0x8] sm:$0xff] }
 0xc20   :  { %1679 = vmatpush.bf16.msra.mxu1 %v5190_v58  ;;  %1792 = vmatpush.bf16.msra.mxu2 %v5190_v58 }
 0xc21   :  { %1905 = vmatpush.bf16.msrb.mxu0 %v5190_v58 }
 0xc79   :  { %v1243_v43 = vpop.permute.xlu0 %1242 }
 0xc7a   :  { %1245 = vst.msk [vmem:[#allocation4] sm:$0x7f] %vm7531_vm6, %v1243_v43 }
 0xc81   :  { %v1193_v50 = vpop.permute.xlu0 %1192  ;;  %v1251_v59 = vld [vmem:[#allocation4] sm:$0x7f] }
 0xc82   :  { %v1195_v62 = vmul.f32 %v1193_v50, %v1176_v38  ;;  %v5228_v0 = vpack.i.bf16 %v1251_v59, %v1252_v61 }
 0xc84   :  { %5229 = vrot.lane.b32.xlu2 %v5228_v0, %s6060_s25  ;;  %v1233_v1 = vsel %vm7530_vm5, %v1195_v62, 0.0  ;;  %v5189_v62 = vld [vmem:[%s7567_s16] sm:$0xff]  ;;  %s7593_s16 = sld [smem:[#allocation41_spill]] }
 0xc85   :  { %1236 = vrot.lane.b32.xlu1 %v1233_v1, %s6062_s19  ;;  %1680 = vmatpush.bf16.msra.mxu1 %v5189_v62 }
 0xc86   :  { %1793 = vmatpush.bf16.msra.mxu2 %v5189_v62  ;;  %1906 = vmatpush.bf16.msrb.mxu0 %v5189_v62 }
 0xc88   :  { %1681 = vmatmul.bf16.vlgmr.msra.gmra.mxu1 %v6057_v48 }
 0xc89   :  { %v1266_v5 = vpop.permute.xlu0 %1265  ;;  %1987 = vmatpush.bf16.msrb.mxu1 %v5190_v58 }
 0xc8a   :  { %v1278_v6 = vsel %vm537_vm4, %v1248_v4, %v1266_v5  ;;  %2100 = vmatpush.bf16.msrb.mxu2 %v5190_v58 }
 0xc8b   :  { %v1283_v7 = vpack.c.bf16 %v1278_v6, %v1278_v6 }
 0xc8c   :  { %1267 = vrot.lane.b32.xlu2 %v1254_v8, %s6060_s25 }
 0xc8d   :  { %v1300_v9 = vrot.slane %v1283_v7, 3  ;;  %1988 = vmatpush.bf16.msrb.mxu1 %v5189_v62 }
 0xc8e   :  { %2101 = vmatpush.bf16.msrb.mxu2 %v5189_v62 }
 0xc8f   :  { %v1331_v10 = vsel %vm305_vm0, %v1283_v7, %v1300_v9  ;;  %v6496_v11 = vsel %vm7557_vm13, %v1283_v7, %v1300_v9  ;;  %v6499_v12 = vsel %vm7558_vm1, %v1283_v7, %v1300_v9  ;;  %v6502_v13 = vsel %vm7559_vm2, %v1283_v7, %v1300_v9  ;;  %vm7566_vm13 = vmmov %vm7559_vm2 }
 0xc90   :  { %1449 = vst [vmem:[#allocation1 + $0x7] ss:$9 sm:$0xff] %v1331_v10  ;;  %vm7568_vm1 = vmmov %vm7561_vm3  ;;  %v1335_v4 = vrot.slane %v6496_v11, 1  ;;  %v1341_v5 = vrot.slane %v6502_v13, 3  ;;  %v1338_v8 = vrot.slane %v6499_v12, 2 }
 0xc91   :  { %vm7569_vm2 = vmmov %vm7562_vm8  ;;  %v1270_v12 = vpop.permute.xlu0 %1269 }
 0xcde   :  { %v5230_v18 = vpop.permute.xlu2 %5229 }
 0xcdf   :  { %v5232_v19 = vunpack.i.h.bf16 %v5230_v18  ;;  %v5231_v3 = vunpack.i.l.bf16 %v5230_v18 }
 0xce1   :  { %v1276_v22 = vsel %vm537_vm4, %v1246_v21, %v5232_v19  ;;  %v1277_v23 = vsel %vm537_vm4, %v1247_v20, %v5231_v3 }
 0xce2   :  { %v1281_v24 = vpack.c.bf16 %v1276_v22, %v1276_v22  ;;  %v1282_v25 = vpack.c.bf16 %v1277_v23, %v1277_v23 }
 0xce4   :  { %v1298_v26 = vrot.slane %v1281_v24, 3  ;;  %v1299_v27 = vrot.slane %v1282_v25, 3 }
 0xce6   :  { %v1305_v28 = vsel %vm305_vm0, %v1281_v24, %v1298_v26  ;;  %v1307_v29 = vsel %vm7561_vm3, %v1281_v24, %v1298_v26  ;;  %v1310_v30 = vsel %vm7562_vm8, %v1281_v24, %v1298_v26  ;;  %v1313_v31 = vsel %vm7563_vm9, %v1281_v24, %v1298_v26  ;;  %v1268_v38 = vpop.permute.xlu2 %1267  ;;  %vm7570_vm3 = vmmov %vm7563_vm9 }
 0xce7   :  { %v1309_v32 = vrot.slane %v1307_v29, 1  ;;  %v1312_v33 = vrot.slane %v1310_v30, 2  ;;  %v1315_v34 = vrot.slane %v1313_v31, 3  ;;  %v1318_v35 = vsel %vm305_vm0, %v1282_v25, %v1299_v27  ;;  %1428 = vst [vmem:[#allocation1] ss:$9 sm:$0xff] %v1305_v28  ;;  %vm7571_vm8 = vmmov %vm7568_vm1 }
 0xce8   :  { %v1320_v40 = vsel %vm7564_vm10, %v1282_v25, %v1299_v27  ;;  %v1323_v41 = vsel %vm7565_vm14, %v1282_v25, %v1299_v27  ;;  %v1326_v42 = vsel %vm7566_vm13, %v1282_v25, %v1299_v27  ;;  %v1376_v37 = vunpack.i.h.s16 %v1318_v35  ;;  %vm7572_vm9 = vmmov %vm7570_vm3 }
 0xce9   :  { %v1322_v44 = vrot.slane %v1320_v40, 1  ;;  %v1325_v46 = vrot.slane %v1323_v41, 2  ;;  %v5048_v47 = vpack.i.b16 %v1318_v35, %v1315_v34  ;;  %1431 = vst [vmem:[#allocation1 + $0x1] ss:$9 sm:$0xff] %v1309_v32  ;;  %v1328_v51 = vrot.slane %v1326_v42, 3  ;;  %vm7573_vm10 = vmmov %vm7569_vm2 }
 0xcea   :  { %1434 = vst [vmem:[#allocation1 + $0x2] ss:$9 sm:$0xff] %v1312_v33  ;;  %v1279_v63 = vsel %vm537_vm4, %v1249_v49, %v1268_v38  ;;  %v5268_v32 = vld [vmem:[#allocation15] ss:$0 sm:$0xff] }
 0xceb   :  { %v1378_v45 = vunpack.i.h.s16 %v1322_v44  ;;  %v1380_v17 = vunpack.i.h.s16 %v1325_v46  ;;  %v5049_v52 = vpack.i.b16 %v1322_v44, %v1376_v37  ;;  %1437 = vst [vmem:[#allocation1 + $0x3] ss:$9 sm:$0xff] %v5048_v47  ;;  %v1284_v36 = vpack.c.bf16 %v1279_v63, %v1279_v63 }
 0xcec   :  { %v1403_v33 = vrot.slane %v5268_v32, 1  ;;  %v1404_v34 = vrot.slane %v5268_v32, 2  ;;  %v1405_v35 = vrot.slane %v5268_v32, 3  ;;  %v1406_v40 = vrot.slane %v5268_v32, 4 }
 0xced   :  { %v5050_v53 = vpack.i.b16 %v1325_v46, %v1378_v45  ;;  %v5051_v55 = vpack.i.b16 %v1328_v51, %v1380_v17  ;;  %1440 = vst [vmem:[#allocation1 + $0x4] ss:$9 sm:$0xff] %v5049_v52  ;;  %v1301_v57 = vrot.slane %v1284_v36, 3  ;;  %v1407_v41 = vrot.slane %v5268_v32, 5 }
 0xcee   :  { %v1408_v42 = vrot.slane %v5268_v32, 6 }
 0xcef   :  { %1443 = vst [vmem:[#allocation1 + $0x5] ss:$9 sm:$0xff] %v5050_v53  ;;  %v1346_v43 = vsel %vm7568_vm1, %v1284_v36, %v1301_v57  ;;  %v1349_v50 = vsel %vm7569_vm2, %v1284_v36, %v1301_v57  ;;  %v1344_v59 = vsel %vm305_vm0, %v1284_v36, %v1301_v57  ;;  %v1352_v6 = vsel %vm7570_vm3, %v1284_v36, %v1301_v57 }
 0xcf0   :  { %1446 = vst [vmem:[#allocation1 + $0x6] ss:$9 sm:$0xff] %v5051_v55  ;;  %v1348_v61 = vrot.slane %v1346_v43, 1  ;;  %v1351_v0 = vrot.slane %v1349_v50, 2  ;;  %v1390_v1 = vunpack.i.h.s16 %v1344_v59  ;;  %v5052_v14 = vpack.i.b16 %v1344_v59, %v1341_v5 }
 0xcf1   :  { %v1354_v15 = vrot.slane %v1352_v6, 3 }
 0xcf2   :  { %v1392_v7 = vunpack.i.h.s16 %v1348_v61  ;;  %v1394_v10 = vunpack.i.h.s16 %v1351_v0  ;;  %v5053_v18 = vpack.i.b16 %v1348_v61, %v1390_v1 }
 0xcf4   :  { %v5054_v11 = vpack.i.b16 %v1351_v0, %v1392_v7  ;;  %v5055_v13 = vpack.i.b16 %v1354_v15, %v1394_v10 }
 0xcf7   :  { %v1450_v9 = vld [vmem:[#allocation1] sm:$0xff]  ;;  %v1237_v19 = vpop.permute.xlu1 %1236 }
 0xcf8   :  { %1452 = vst [vmem:[#allocation1] ss:$9 sm:$0xff] %v1335_v4  ;;  %5064 = vmatmul.msk.bf16.vlgmr.msrb.gmra.mxu3 %vm675_vm7, %v1450_v9 }
 0xcf9   :  { %1454 = vst [vmem:[#allocation1 + $0x1] ss:$9 sm:$0xff] %v1338_v8 }
 0xcfa   :  { %1456 = vst [vmem:[#allocation1 + $0x2] ss:$9 sm:$0xff] %v5052_v14 }
 0xcfb   :  { %1458 = vst [vmem:[#allocation1 + $0x3] ss:$9 sm:$0xff] %v5053_v18 }
 0xcfc   :  { %1460 = vst [vmem:[#allocation1 + $0x4] ss:$9 sm:$0xff] %v5054_v11 }
 0xcfd   :  { %1462 = vst [vmem:[#allocation1 + $0x5] ss:$9 sm:$0xff] %v5055_v13 }
 0xcfe   :  { %1240 = vst.msk [vmem:[#allocation3 + $0x20] sm:$0x7f] %vm7531_vm6, %v1237_v19 }
 0xd05   :  { %v1250_v3 = vld [vmem:[#allocation3 + $0x20] sm:$0x7f]  ;;  %v6546_v45 = vpop.f32.mrf.mxu1 }
 0xd06   :  { %v1280_v20 = vsel %vm537_vm4, %v1250_v3, %v1270_v12 }
 0xd07   :  { %v1285_v21 = vpack.c.bf16 %v1280_v20, %v1280_v20 }
 0xd09   :  { %v1302_v22 = vrot.slane %v1285_v21, 3 }
 0xd0b   :  { %v1357_v23 = vsel %vm305_vm0, %v1285_v21, %v1302_v22  ;;  %v1359_v24 = vsel %vm7571_vm8, %v1285_v21, %v1302_v22  ;;  %v1365_v26 = vsel %vm7572_vm9, %v1285_v21, %v1302_v22  ;;  %v1362_v27 = vsel %vm7573_vm10, %v1285_v21, %v1302_v22 }
 0xd0c   :  { %v1361_v25 = vrot.slane %v1359_v24, 1  ;;  %1464 = vst [vmem:[#allocation1 + $0x6] ss:$9 sm:$0xff] %v1357_v23  ;;  %v1367_v28 = vrot.slane %v1365_v26, 3  ;;  %v1364_v29 = vrot.slane %v1362_v27, 2 }
 0xd0d   :  { %v1684_v43 = vpop.f32.mrf.mxu1 }
 0xd0e   :  { %1466 = vst [vmem:[#allocation1 + $0x7] ss:$9 sm:$0xff] %v1361_v25  ;;  %v1402_v30 = vunpack.i.l.s16 %v1367_v28 }
 0xd15   :  { %v1467_v31 = vld [vmem:[#allocation1] sm:$0xff] }
 0xd16   :  { %1469 = vst [vmem:[#allocation1] ss:$9 sm:$0xff] %v1364_v29  ;;  %5065 = vmatmul.msk.bf16.gmra.mxu3 %vm675_vm7, %v1467_v31 }
 0xd17   :  { %1471 = vst [vmem:[#allocation1 + $0x1] ss:$9 sm:$0xff] %v1402_v30 }
 0xd1e   :  { %v1472_v38 = vld [vmem:[#allocation1] sm:$0xff] }
 0xd1f   :  { %1485 = vst [vmem:[#allocation1] ss:$9 sm:$0xff] %v5268_v32 }
 0xd20   :  { %1487 = vst [vmem:[#allocation1 + $0x1] ss:$9 sm:$0xff] %v1403_v33 }
 0xd21   :  { %1489 = vst [vmem:[#allocation1 + $0x2] ss:$9 sm:$0xff] %v1404_v34 }
 0xd22   :  { %1491 = vst [vmem:[#allocation1 + $0x3] ss:$9 sm:$0xff] %v1405_v35 }
 0xd23   :  { %1493 = vst [vmem:[#allocation1 + $0x4] ss:$9 sm:$0xff] %v1406_v40 }
 0xd24   :  { %1495 = vst [vmem:[#allocation1 + $0x5] ss:$9 sm:$0xff] %v1407_v41 }
 0xd25   :  { %1497 = vst [vmem:[#allocation1 + $0x6] ss:$9 sm:$0xff] %v1408_v42 }
 0xd26   :  { %1499 = vst [vmem:[#allocation1 + $0x7] ss:$9 sm:$0xff] %v5268_v32  ;;  %5066 = vmatmul.msk.bf16.gmra.mxu3 %vm675_vm7, %v1472_v38 }
 0xd2d   :  { %v1500_v37 = vld [vmem:[#allocation1] sm:$0xff] }
 0xd2e   :  { %1501 = vst [vmem:[#allocation1] ss:$9 sm:$0xff] %v1403_v33 }
 0xd2f   :  { %1502 = vst [vmem:[#allocation1 + $0x1] ss:$9 sm:$0xff] %v1404_v34 }
 0xd30   :  { %1503 = vst [vmem:[#allocation1 + $0x2] ss:$9 sm:$0xff] %v1405_v35 }
 0xd31   :  { %1504 = vst [vmem:[#allocation1 + $0x3] ss:$9 sm:$0xff] %v1406_v40 }
 0xd32   :  { %1505 = vst [vmem:[#allocation1 + $0x4] ss:$9 sm:$0xff] %v1407_v41 }
 0xd33   :  { %1506 = vst [vmem:[#allocation1 + $0x5] ss:$9 sm:$0xff] %v1408_v42 }
 0xd34   :  { %1507 = vst [vmem:[#allocation1 + $0x6] ss:$9 sm:$0xff] %v5268_v32 }
 0xd35   :  { %1508 = vst [vmem:[#allocation1 + $0x7] ss:$9 sm:$0xff] %v1403_v33 }
 0xd3c   :  { %v1509_v44 = vld [vmem:[#allocation1] sm:$0xff] }
 0xd3d   :  { %1510 = vst [vmem:[#allocation1] ss:$9 sm:$0xff] %v1404_v34 }
 0xd3e   :  { %1511 = vst [vmem:[#allocation1 + $0x1] ss:$9 sm:$0xff] %v1405_v35 }
 0xd3f   :  { %1512 = vst [vmem:[#allocation1 + $0x2] ss:$9 sm:$0xff] %v1406_v40 }
 0xd40   :  { %1513 = vst [vmem:[#allocation1 + $0x3] ss:$9 sm:$0xff] %v1407_v41 }
 0xd41   :  { %1514 = vst [vmem:[#allocation1 + $0x4] ss:$9 sm:$0xff] %v1408_v42 }
 0xd42   :  { %1515 = vst [vmem:[#allocation1 + $0x5] ss:$9 sm:$0xff] %v5268_v32 }
 0xd43   :  { %1516 = vst [vmem:[#allocation1 + $0x6] ss:$9 sm:$0xff] %v1403_v33 }
 0xd44   :  { %1517 = vst [vmem:[#allocation1 + $0x7] ss:$9 sm:$0xff] %v1404_v34 }
 0xd4b   :  { %v1518_v46 = vld [vmem:[#allocation1] sm:$0xff] }
 0xd4c   :  { %1526 = vst [vmem:[#allocation1 + $0x7] ss:$9 sm:$0xff] %v1405_v35 }
 0xd4d   :  { %1519 = vst [vmem:[#allocation1] ss:$9 sm:$0xff] %v1405_v35 }
 0xd4e   :  { %1520 = vst [vmem:[#allocation1 + $0x1] ss:$9 sm:$0xff] %v1406_v40 }
 0xd4f   :  { %1521 = vst [vmem:[#allocation1 + $0x2] ss:$9 sm:$0xff] %v1407_v41 }
 0xd50   :  { %1522 = vst [vmem:[#allocation1 + $0x3] ss:$9 sm:$0xff] %v1408_v42 }
 0xd51   :  { %1523 = vst [vmem:[#allocation1 + $0x4] ss:$9 sm:$0xff] %v5268_v32 }
 0xd52   :  { %1524 = vst [vmem:[#allocation1 + $0x5] ss:$9 sm:$0xff] %v1403_v33 }
 0xd53   :  { %1525 = vst [vmem:[#allocation1 + $0x6] ss:$9 sm:$0xff] %v1404_v34 }
 0xd5a   :  { %v1527_v47 = vld [vmem:[#allocation1] sm:$0xff] }
 0xd5b   :  { %1528 = vst [vmem:[#allocation1] ss:$9 sm:$0xff] %v1406_v40 }
 0xd5c   :  { %1529 = vst [vmem:[#allocation1 + $0x1] ss:$9 sm:$0xff] %v1407_v41 }
 0xd5d   :  { %1530 = vst [vmem:[#allocation1 + $0x2] ss:$9 sm:$0xff] %v1408_v42 }
 0xd64   :  { %v6544_v49 = vld [vmem:[#allocation1] sm:$0xff] }
 0xd7b   :  { %v1552_v51 = vpop.f32.mrf.mxu3 }
 0xd7c   :  { %v1553_v63 = vadd.f32 %v1552_v51, %v1500_v37 }
 0xd7e   :  { %v1571_v17 = vrot.slane %v1553_v63, 1  ;;  %v1572_v52 = vrot.slane %v1553_v63, 2  ;;  %v1573_v36 = vrot.slane %v1553_v63, 3  ;;  %1601 = vst [vmem:[#allocation1] ss:$9 sm:$0xff] %v1553_v63  ;;  %v1574_v53 = vrot.slane %v1553_v63, 4 }
 0xd7f   :  { %v1575_v55 = vrot.slane %v1553_v63, 5  ;;  %v1576_v57 = vrot.slane %v1553_v63, 6  ;;  %v1577_v59 = vrot.slane %v1553_v63, 7 }
 0xd80   :  { %1603 = vst [vmem:[#allocation1 + $0x1] ss:$9 sm:$0xff] %v1571_v17 }
 0xd81   :  { %1605 = vst [vmem:[#allocation1 + $0x2] ss:$9 sm:$0xff] %v1572_v52 }
 0xd82   :  { %1607 = vst [vmem:[#allocation1 + $0x3] ss:$9 sm:$0xff] %v1573_v36 }
 0xd83   :  { %1609 = vst [vmem:[#allocation1 + $0x4] ss:$9 sm:$0xff] %v1574_v53  ;;  %v1554_v58 = vpop.f32.mrf.mxu3 }
 0xd84   :  { %1611 = vst [vmem:[#allocation1 + $0x5] ss:$9 sm:$0xff] %v1575_v55  ;;  %v1555_v50 = vadd.f32 %v1554_v58, %v1509_v44 }
 0xd85   :  { %1613 = vst [vmem:[#allocation1 + $0x6] ss:$9 sm:$0xff] %v1576_v57 }
 0xd86   :  { %v1578_v62 = vrot.slane %v1555_v50, 1  ;;  %v1579_v0 = vrot.slane %v1555_v50, 2  ;;  %v1580_v1 = vrot.slane %v1555_v50, 3  ;;  %v1581_v4 = vrot.slane %v1555_v50, 4 }
 0xd87   :  { %v1582_v5 = vrot.slane %v1555_v50, 5  ;;  %v1583_v9 = vrot.slane %v1555_v50, 6  ;;  %v1584_v14 = vrot.slane %v1555_v50, 7 }
 0xd8c   :  { %v1614_v61 = vld [vmem:[#allocation1] sm:$0xff] }
 0xd8d   :  { %1615 = vst [vmem:[#allocation1] ss:$9 sm:$0xff] %v1577_v59 }
 0xd8e   :  { %1652 = vst [vmem:[#allocation2 + $0x8] sm:$0x7f] %v1614_v61 }
 0xd8f   :  { %1616 = vst [vmem:[#allocation1 + $0x1] ss:$9 sm:$0xff] %v1555_v50 }
 0xd90   :  { %1617 = vst [vmem:[#allocation1 + $0x2] ss:$9 sm:$0xff] %v1578_v62 }
 0xd91   :  { %1618 = vst [vmem:[#allocation1 + $0x3] ss:$9 sm:$0xff] %v1579_v0 }
 0xd92   :  { %1619 = vst [vmem:[#allocation1 + $0x4] ss:$9 sm:$0xff] %v1580_v1 }
 0xd93   :  { %1620 = vst [vmem:[#allocation1 + $0x5] ss:$9 sm:$0xff] %v1581_v4 }
 0xd94   :  { %1621 = vst [vmem:[#allocation1 + $0x6] ss:$9 sm:$0xff] %v1582_v5 }
 0xd95   :  { %v1686_v6 = vld [vmem:[#allocation2 + $0x8] sm:$0x7f] }
 0xd96   :  { %v1687_v7 = vadd.f32 %v1686_v6, %v6546_v45 }
 0xd98   :  { %5352 = vtanh.f32 %v1687_v7 }
 0xd99   :  { %v1557_v8 = vpop.f32.mrf.mxu3 }
 0xd9a   :  { %v1558_v10 = vadd.f32 %v1557_v8, %v1518_v46  ;;  %v5075_v46 = vmul.f32 -1.442695, %v1687_v7 }
 0xd9b   :  { %v1622_v15 = vld [vmem:[#allocation1] sm:$0xff] }
 0xd9c   :  { %1623 = vst [vmem:[#allocation1] ss:$9 sm:$0xff] %v1583_v9  ;;  %v1585_v18 = vrot.slane %v1558_v10, 1  ;;  %v1586_v11 = vrot.slane %v1558_v10, 2  ;;  %v1587_v19 = vrot.slane %v1558_v10, 3  ;;  %v1588_v12 = vrot.slane %v1558_v10, 4 }
 0xd9d   :  { %1624 = vst [vmem:[#allocation1 + $0x1] ss:$9 sm:$0xff] %v1584_v14  ;;  %v1589_v21 = vrot.slane %v1558_v10, 5  ;;  %v1590_v23 = vrot.slane %v1558_v10, 6  ;;  %v1591_v25 = vrot.slane %v1558_v10, 7 }
 0xd9e   :  { %v5353_v13 = vpop.eup %5352  ;;  %1653 = vst [vmem:[#allocation2] sm:$0x7f] %v1622_v15 }
 0xd9f   :  { %1625 = vst [vmem:[#allocation1 + $0x2] ss:$9 sm:$0xff] %v1558_v10  ;;  %1712 = vrot.lane.b32.xlu1 %v5353_v13, %s6058_s14 }
 0xda0   :  { %1626 = vst [vmem:[#allocation1 + $0x3] ss:$9 sm:$0xff] %v1585_v18 }
 0xda1   :  { %1627 = vst [vmem:[#allocation1 + $0x4] ss:$9 sm:$0xff] %v1586_v11  ;;  %v1559_v3 = vpop.f32.mrf.mxu3 }
 0xda2   :  { %1628 = vst [vmem:[#allocation1 + $0x5] ss:$9 sm:$0xff] %v1587_v19  ;;  %v1560_v20 = vadd.f32 %v1559_v3, %v1527_v47 }
 0xda3   :  { %1629 = vst [vmem:[#allocation1 + $0x6] ss:$9 sm:$0xff] %v1588_v12 }
 0xda4   :  { %v1592_v26 = vrot.slane %v1560_v20, 1  ;;  %v1593_v27 = vrot.slane %v1560_v20, 2  ;;  %v1594_v28 = vrot.slane %v1560_v20, 3  ;;  %v1595_v31 = vrot.slane %v1560_v20, 4 }
 0xda5   :  { %v1596_v33 = vrot.slane %v1560_v20, 5  ;;  %v1597_v34 = vrot.slane %v1560_v20, 6  ;;  %v1598_v35 = vrot.slane %v1560_v20, 7 }
 0xda9   :  { %v1562_v22 = vpop.f32.mrf.mxu3 }
 0xdaa   :  { %v1630_v24 = vld [vmem:[#allocation1] sm:$0xff]  ;;  %v1563_v30 = vadd.f32 %v1562_v22, %v6544_v49 }
 0xdab   :  { %1631 = vst [vmem:[#allocation1] ss:$9 sm:$0xff] %v1589_v21 }
 0xdac   :  { %1632 = vst [vmem:[#allocation1 + $0x1] ss:$9 sm:$0xff] %v1590_v23  ;;  %v1599_v38 = vrot.slane %v1563_v30, 1  ;;  %v1600_v40 = vrot.slane %v1563_v30, 2 }
 0xdad   :  { %1633 = vst [vmem:[#allocation1 + $0x2] ss:$9 sm:$0xff] %v1591_v25 }
 0xdae   :  { %1654 = vst [vmem:[#allocation2 + $0x20] sm:$0x7f] %v1630_v24 }
 0xdaf   :  { %1634 = vst [vmem:[#allocation1 + $0x3] ss:$9 sm:$0xff] %v1560_v20 }
 0xdb0   :  { %1635 = vst [vmem:[#allocation1 + $0x4] ss:$9 sm:$0xff] %v1592_v26 }
 0xdb1   :  { %1636 = vst [vmem:[#allocation1 + $0x5] ss:$9 sm:$0xff] %v1593_v27  ;;  %v1564_v29 = vpop.f32.mrf.mxu3 }
 0xdb2   :  { %1637 = vst [vmem:[#allocation1 + $0x6] ss:$9 sm:$0xff] %v1594_v28 }
 0xdb9   :  { %v1638_v32 = vld [vmem:[#allocation1] sm:$0xff] }
 0xdba   :  { %1655 = vst [vmem:[#allocation2 + $0x10] sm:$0x7f] %v1638_v32 }
 0xdbb   :  { %1639 = vst [vmem:[#allocation1] ss:$9 sm:$0xff] %v1595_v31 }
 0xdbc   :  { %1640 = vst [vmem:[#allocation1 + $0x1] ss:$9 sm:$0xff] %v1596_v33 }
 0xdbd   :  { %1641 = vst [vmem:[#allocation1 + $0x2] ss:$9 sm:$0xff] %v1597_v34  ;;  %v1799_v34 = vld [vmem:[#allocation2] sm:$0x7f] }
 0xdbe   :  { %1642 = vst [vmem:[#allocation1 + $0x3] ss:$9 sm:$0xff] %v1598_v35 }
 0xdbf   :  { %1643 = vst [vmem:[#allocation1 + $0x4] ss:$9 sm:$0xff] %v1563_v30 }
 0xdc0   :  { %1644 = vst [vmem:[#allocation1 + $0x5] ss:$9 sm:$0xff] %v1599_v38 }
 0xdc1   :  { %1645 = vst [vmem:[#allocation1 + $0x6] ss:$9 sm:$0xff] %v1600_v40  ;;  %v1801_v35 = vld [vmem:[#allocation2 + $0x10] sm:$0x7f] }
 0xdc8   :  { %v1646_v41 = vld [vmem:[#allocation1] sm:$0xff] }
 0xdc9   :  { %1656 = vst [vmem:[#allocation2 + $0x18] sm:$0x7f] %v1646_v41 }
 0xdd0   :  { %v1688_v42 = vld [vmem:[#allocation2 + $0x18] sm:$0x7f] }
 0xdd1   :  { %v1689_v37 = vadd.f32 %v1688_v42, %v6546_v45 }
 0xdd3   :  { %5354 = vtanh.f32 %v1689_v37  ;;  %v5076_v36 = vmul.f32 -1.442695, %v1689_v37 }
 0xdd4   :  { %5356 = vpow2.f32 %v5075_v46 }
 0xdd9   :  { %v5355_v44 = vpop.eup %5354 }
 0xdda   :  { %1749 = vrot.lane.b32.xlu2 %v5355_v44, %s6058_s14  ;;  %v5357_v47 = vpop.eup %5356 }
 0xddb   :  { %v1693_v49 = vadd.f32 1.0, %v5357_v47 }
 0xddd   :  { %5358 = vrcp.f32 %v1693_v49  ;;  %v1705_v55 = vand.u32 2147483648, %v1693_v49  ;;  %vm1699_vm14 = vweird.f32 %v1693_v49  ;;  %v1703_v45 = vand.u32 2147483647, %v1693_v49 }
 0xdde   :  { %5360 = vpow2.f32 %v5076_v36 }
 0xddf   :  { %v1706_v58 = vor.u32 1.1754944e-38, %v1705_v55  ;;  %vm1704_vm1 = vcmp.eq.f32.partialorder %v1703_v45, 8.507059e+37 }
 0xde3   :  { %v5359_v51 = vpop.eup %5358 }
 0xde4   :  { %v1695_v63 = vmul.f32 %v5359_v51, %v1693_v49  ;;  %vm1700_vm0 = vweird.f32 %v5359_v51  ;;  %v5361_v43 = vpop.eup %5360 }
 0xde5   :  { %vm1701_vm13 = vmor %vm1699_vm14, %vm1700_vm0  ;;  %v1730_v62 = vadd.f32 1.0, %v5361_v43 }
 0xde6   :  { %v1696_v17 = vsub.f32 1.0, %v1695_v63 }
 0xde7   :  { %5362 = vrcp.f32 %v1730_v62  ;;  %v1742_v7 = vand.u32 2147483648, %v1730_v62  ;;  %vm1736_vm3 = vweird.f32 %v1730_v62  ;;  %v1740_v8 = vand.u32 2147483647, %v1730_v62 }
 0xde8   :  { %v1697_v52 = vmul.f32 %v5359_v51, %v1696_v17 }
 0xde9   :  { %v1743_v10 = vor.u32 1.1754944e-38, %v1742_v7  ;;  %vm1741_vm9 = vcmp.eq.f32.partialorder %v1740_v8, 8.507059e+37 }
 0xdea   :  { %v1698_v53 = vadd.f32 %v5359_v51, %v1697_v52 }
 0xdec   :  { %v1702_v57 = vsel %vm1701_vm13, %v5359_v51, %v1698_v53 }
 0xded   :  { %v1707_v59 = vsel %vm1704_vm1, %v1706_v58, %v1702_v57  ;;  %v5363_v0 = vpop.eup %5362 }
 0xdee   :  { %v1732_v1 = vmul.f32 %v5363_v0, %v1730_v62  ;;  %vm1737_vm2 = vweird.f32 %v5363_v0  ;;  %v1710_v11 = vmul.f32 0.0, %v1707_v59 }
 0xdef   :  { %vm1738_vm8 = vmor %vm1736_vm3, %vm1737_vm2 }
 0xdf0   :  { %v1733_v4 = vsub.f32 1.0, %v1732_v1 }
 0xdf2   :  { %v1734_v5 = vmul.f32 %v5363_v0, %v1733_v4 }
 0xdf4   :  { %v1735_v6 = vadd.f32 %v5363_v0, %v1734_v5 }
 0xdf6   :  { %v1739_v9 = vsel %vm1738_vm8, %v5363_v0, %v1735_v6 }
 0xdf7   :  { %v1744_v15 = vsel %vm1741_vm9, %v1743_v10, %v1739_v9 }
 0xdf8   :  { %v1747_v3 = vmul.f32 0.0, %v1744_v15 }
 0xe11   :  { %v1713_v50 = vpop.permute.xlu1 %1712 }
 0xe12   :  { %v1715_v61 = vmul.f32 %v1713_v50, %v1707_v59 }
 0xe14   :  { %1717 = vrot.lane.b32.xlu0 %v1715_v61, %s6060_s25 }
 0xe34   :  { %v1750_v14 = vpop.permute.xlu2 %1749 }
 0xe35   :  { %v1752_v18 = vmul.f32 %v1750_v14, %v1744_v15 }
 0xe37   :  { %1754 = vrot.lane.b32.xlu1 %v1752_v18, %s6060_s25 }
 0xe86   :  { %v1718_v13 = vpop.permute.xlu0 %1717 }
 0xe87   :  { %v6555_v19 = vadd.f32 %v1718_v13, %v1710_v11 }
 0xe89   :  { %5364 = vtanh.f32 %v6555_v19  ;;  %v1765_v18 = vsel %vm7532_vm15, %v6555_v19, 0.0 }
 0xe8f   :  { %v5365_v12 = vpop.eup %5364 }
 0xe90   :  { %1723 = vrot.lane.b32.xlu2 %v5365_v12, %s6061_s21 }
 0xea9   :  { %v1755_v20 = vpop.permute.xlu1 %1754 }
 0xeaa   :  { %v6559_v21 = vadd.f32 %v1755_v20, %v1747_v3 }
 0xeac   :  { %5366 = vtanh.f32 %v6559_v21  ;;  %v1767_v20 = vsel %vm7530_vm5, %v6559_v21, 0.0 }
 0xeb2   :  { %v5367_v22 = vpop.eup %5366 }
 0xeb3   :  { %1760 = vrot.lane.b32.xlu0 %v5367_v22, %s6061_s21 }
 0xeea   :  { %v1724_v23 = vpop.permute.xlu2 %1723 }
 0xeeb   :  { %v1726_v24 = vmul.f32 %v1724_v23, %v1707_v59 }
 0xeed   :  { %v1764_v25 = vsel %vm7532_vm15, %v1726_v24, 0.0 }
 0xeee   :  { %1769 = vrot.lane.b32.xlu1 %v1764_v25, %s6062_s19 }
 0xf25   :  { %v1761_v26 = vpop.permute.xlu0 %1760 }
 0xf26   :  { %v1763_v27 = vmul.f32 %v1761_v26, %v1744_v15 }
 0xf28   :  { %v6568_v28 = vsel %vm7530_vm5, %v1763_v27, 0.0 }
 0xf29   :  { %1778 = vrot.lane.b32.xlu2 %v6568_v28, %s6061_s21 }
 0xf60   :  { %v1770_v29 = vpop.permute.xlu1 %1769 }
 0xf61   :  { %1772 = vst.msk [vmem:[#allocation3] sm:$0x7f] %vm7531_vm6, %v1770_v29 }
 0xf83   :  { %v1779_v30 = vpop.permute.xlu2 %1778 }
 0xf84   :  { %v1781_v31 = vsel %vm537_vm4, %v1770_v29, %v1779_v30 }
 0xf85   :  { %v1782_v32 = vpack.c.bf16 %v1781_v31, %v1781_v31 }
 0xf87   :  { %5077 = vmatmul.msk.bf16.vlgmr.msra.gmra.mxu2 %vm675_vm7, %v1782_v32 }
0x100a   :  { %v1795_v33 = vpop.f32.mrf.mxu2 }
0x100b   :  { %v1800_v38 = vadd.f32 %v1799_v34, %v1795_v33  ;;  %v1802_v40 = vadd.f32 %v1801_v35, %v1795_v33 }
0x100d   :  { %5368 = vtanh.f32 %v1800_v38  ;;  %v5078_v44 = vmul.f32 -1.442695, %v1800_v38  ;;  %v5079_v46 = vmul.f32 -1.442695, %v1802_v40  ;;  %v1912_v38 = vld [vmem:[#allocation2 + $0x20] sm:$0x7f] }
0x100e   :  { %5370 = vtanh.f32 %v1802_v40 }
0x100f   :  { %5372 = vpow2.f32 %v5078_v44 }
0x1010   :  { %5374 = vpow2.f32 %v5079_v46 }
0x1012   :  { %v1797_v41 = vpop.f32.mrf.mxu2 }
0x1013   :  { %v5369_v42 = vpop.eup %5368 }
0x1014   :  { %v5371_v37 = vpop.eup %5370  ;;  %1825 = vrot.lane.b32.xlu0 %v5369_v42, %s6058_s14 }
0x1015   :  { %1862 = vrot.lane.b32.xlu1 %v5371_v37, %s6058_s14  ;;  %v5373_v47 = vpop.eup %5372 }
0x1016   :  { %v5375_v49 = vpop.eup %5374  ;;  %v1806_v51 = vadd.f32 1.0, %v5373_v47 }
0x1017   :  { %v1843_v63 = vadd.f32 1.0, %v5375_v49 }
0x1018   :  { %5376 = vrcp.f32 %v1806_v51  ;;  %v1818_v59 = vand.u32 2147483648, %v1806_v51  ;;  %vm1812_vm14 = vweird.f32 %v1806_v51  ;;  %v1816_v62 = vand.u32 2147483647, %v1806_v51 }
0x1019   :  { %5378 = vrcp.f32 %v1843_v63  ;;  %v1855_v61 = vand.u32 2147483648, %v1843_v63  ;;  %vm1849_vm13 = vweird.f32 %v1843_v63  ;;  %v1853_v0 = vand.u32 2147483647, %v1843_v63 }
0x101a   :  { %v1819_v5 = vor.u32 1.1754944e-38, %v1818_v59  ;;  %vm1817_vm3 = vcmp.eq.f32.partialorder %v1816_v62, 8.507059e+37 }
0x101b   :  { %v1856_v6 = vor.u32 1.1754944e-38, %v1855_v61  ;;  %vm1854_vm8 = vcmp.eq.f32.partialorder %v1853_v0, 8.507059e+37 }
0x101e   :  { %v5377_v17 = vpop.eup %5376 }
0x101f   :  { %v5379_v52 = vpop.eup %5378  ;;  %v1808_v36 = vmul.f32 %v5377_v17, %v1806_v51  ;;  %vm1813_vm10 = vweird.f32 %v5377_v17 }
0x1020   :  { %v1845_v53 = vmul.f32 %v5379_v52, %v1843_v63  ;;  %vm1850_vm0 = vweird.f32 %v5379_v52  ;;  %vm1814_vm1 = vmor %vm1812_vm14, %vm1813_vm10 }
0x1021   :  { %v1809_v55 = vsub.f32 1.0, %v1808_v36  ;;  %vm1851_vm2 = vmor %vm1849_vm13, %vm1850_vm0  ;;  %vm7574_vm13 = vcmp.eq.s32.totalorder %v6417_v39, 1 }
0x1022   :  { %v1846_v45 = vsub.f32 1.0, %v1845_v53 }
0x1023   :  { %v1810_v57 = vmul.f32 %v5377_v17, %v1809_v55 }
0x1024   :  { %v1847_v58 = vmul.f32 %v5379_v52, %v1846_v45 }
0x1025   :  { %v1811_v43 = vadd.f32 %v5377_v17, %v1810_v57 }
0x1026   :  { %v1848_v50 = vadd.f32 %v5379_v52, %v1847_v58 }
0x1027   :  { %v1815_v1 = vsel %vm1814_vm1, %v5377_v17, %v1811_v43  ;;  %vm7575_vm1 = vmmov %vm7574_vm13 }
0x1028   :  { %v1852_v4 = vsel %vm1851_vm2, %v5379_v52, %v1848_v50  ;;  %v1820_v8 = vsel %vm1817_vm3, %v1819_v5, %v1815_v1 }
0x1029   :  { %v1857_v10 = vsel %vm1854_vm8, %v1856_v6, %v1852_v4  ;;  %v1823_v11 = vmul.f32 %v1820_v8, %v1765_v18  ;;  %v2407_v18 = vld [vmem:[%s7576_s13] sm:$0x3] }
0x102a   :  { %v1860_v22 = vmul.f32 %v1857_v10, %v1767_v20  ;;  %v2415_v20 = vpack.c.bf16 %v2407_v18, %v2407_v18 }
0x102c   :  { %2429 = vst [vmem:[#allocation1] ss:$9 sm:$0xff] %v2415_v20 }
0x1086   :  { %v1826_v7 = vpop.permute.xlu0 %1825 }
0x1087   :  { %v1863_v9 = vpop.permute.xlu1 %1862  ;;  %v1828_v14 = vmul.f32 %v1826_v7, %v1820_v8 }
0x1088   :  { %v1865_v15 = vmul.f32 %v1863_v9, %v1857_v10 }
0x1089   :  { %1830 = vrot.lane.b32.xlu2 %v1828_v14, %s6060_s25 }
0x108a   :  { %1867 = vrot.lane.b32.xlu0 %v1865_v15, %s6060_s25  ;;  %v5191_v15 = vld [vmem:[#allocation16] sm:$0xff] }
0x108b   :  { %2486 = vmatpush.bf16.msra.mxu0 %v5191_v15 }
0x10e3   :  { %v1831_v13 = vpop.permute.xlu2 %1830 }
0x10e4   :  { %v1833_v12 = vadd.f32 %v1831_v13, %v1823_v11  ;;  %v2408_v11 = vld [vmem:[%s7576_s13 + $0x2] sm:$0x3]  ;;  %v2409_v13 = vld [vmem:[%s7576_s13 + $0x4] sm:$0x3] }
0x10e6   :  { %5380 = vtanh.f32 %v1833_v12  ;;  %v1878_v43 = vsel %vm7534_vm11, %v1833_v12, 0.0  ;;  %v2410_v12 = vld [vmem:[%s7576_s13 + $0x6] sm:$0x3] }
0x10ec   :  { %v5381_v3 = vpop.eup %5380 }
0x10ed   :  { %1836 = vrot.lane.b32.xlu1 %v5381_v3, %s6061_s21  ;;  %v2411_v3 = vld [vmem:[%s7576_s13 + $0x8] sm:$0x3] }
0x10fc   :  { %v1868_v23 = vpop.permute.xlu0 %1867 }
0x10fd   :  { %v1870_v24 = vadd.f32 %v1868_v23, %v1860_v22  ;;  %v2416_v22 = vpack.c.bf16 %v2408_v11, %v2408_v11  ;;  %v2412_v23 = vld [vmem:[%s7576_s13 + $0xa] sm:$0x3] }
0x10ff   :  { %5382 = vtanh.f32 %v1870_v24  ;;  %v1880_v50 = vsel %vm7533_vm12, %v1870_v24, 0.0  ;;  %v2413_v24 = vld [vmem:[%s7576_s13 + $0xc] sm:$0x3]  ;;  %2432 = vst [vmem:[#allocation1 + $0x1] ss:$9 sm:$0xff] %v2416_v22 }
0x1105   :  { %v5383_v25 = vpop.eup %5382 }
0x1106   :  { %1873 = vrot.lane.b32.xlu2 %v5383_v25, %s6061_s21  ;;  %v2417_v25 = vpack.c.bf16 %v2409_v13, %v2409_v13 }
0x1108   :  { %2435 = vst [vmem:[#allocation1 + $0x2] ss:$9 sm:$0xff] %v2417_v25 }
0x115f   :  { %v1837_v26 = vpop.permute.xlu1 %1836 }
0x1160   :  { %v1874_v19 = vpop.permute.xlu2 %1873  ;;  %v1839_v27 = vmul.f32 %v1837_v26, %v1820_v8  ;;  %v2418_v26 = vpack.c.bf16 %v2410_v12, %v2410_v12 }
0x1161   :  { %v1876_v29 = vmul.f32 %v1874_v19, %v1857_v10  ;;  %v2414_v19 = vld [vmem:[%s7576_s13 + $0xe] sm:$0x3] }
0x1162   :  { %v1877_v30 = vsel %vm7534_vm11, %v1839_v27, 0.0  ;;  %v2419_v27 = vpack.c.bf16 %v2411_v3, %v2411_v3  ;;  %2438 = vst [vmem:[#allocation1 + $0x3] ss:$9 sm:$0xff] %v2418_v26 }
0x1163   :  { %v6591_v31 = vsel %vm7533_vm12, %v1876_v29, 0.0  ;;  %1882 = vrot.lane.b32.xlu0 %v1877_v30, %s6062_s19  ;;  %v2420_v29 = vpack.c.bf16 %v2412_v23, %v2412_v23  ;;  %v2421_v30 = vpack.c.bf16 %v2413_v24, %v2413_v24 }
0x1164   :  { %1891 = vrot.lane.b32.xlu1 %v6591_v31, %s6061_s21  ;;  %2441 = vst [vmem:[#allocation1 + $0x4] ss:$9 sm:$0xff] %v2419_v27 }
0x1165   :  { %2444 = vst [vmem:[#allocation1 + $0x5] ss:$9 sm:$0xff] %v2420_v29 }
0x1166   :  { %2447 = vst [vmem:[#allocation1 + $0x6] ss:$9 sm:$0xff] %v2421_v30 }
0x11d5   :  { %v1883_v21 = vpop.permute.xlu0 %1882 }
0x11d6   :  { %1885 = vst.msk [vmem:[#allocation3 + $0x8] sm:$0x7f] %vm7531_vm6, %v1883_v21  ;;  %v1892_v32 = vpop.permute.xlu1 %1891 }
0x11d7   :  { %v1894_v33 = vsel %vm537_vm4, %v1883_v21, %v1892_v32  ;;  %v2422_v21 = vpack.c.bf16 %v2414_v19, %v2414_v19 }
0x11d8   :  { %v1895_v34 = vpack.c.bf16 %v1894_v33, %v1894_v33  ;;  %v6647_v33 = vld [vmem:[#allocation18 + $0x8] sm:$0xff] }
0x11d9   :  { %2450 = vst [vmem:[#allocation1 + $0x7] ss:$9 sm:$0xff] %v2422_v21  ;;  %2537 = vmatpush.bf16.msra.mxu1 %v6647_v33  ;;  %2665 = vmatpush.bf16.msra.mxu2 %v6647_v33 }
0x11da   :  { %5080 = vmatmul.msk.bf16.vlgmr.msrb.gmra.mxu0 %vm675_vm7, %v1895_v34  ;;  %v6650_v34 = vld [vmem:[#allocation18] sm:$0xff]  ;;  %2794 = vmatpush.bf16.msra.mxu3 %v6647_v33 }
0x11db   :  { %2923 = vmatpush.bf16.msrb.mxu0 %v6647_v33 }
0x11dd   :  { %2538 = vmatpush.bf16.msra.mxu1 %v6650_v34  ;;  %2666 = vmatpush.bf16.msra.mxu2 %v6650_v34 }
0x11de   :  { %2795 = vmatpush.bf16.msra.mxu3 %v6650_v34 }
0x11df   :  { %2924 = vmatpush.bf16.msrb.mxu0 %v6650_v34 }
0x11e0   :  { %v2451_v32 = vld [vmem:[#allocation1] sm:$0xff] }
0x11e2   :  { %3282 = vmatpush.bf16.msrb.mxu3 %v6647_v33 }
0x11e6   :  { %3283 = vmatpush.bf16.msrb.mxu3 %v6650_v34 }
0x11ea   :  { %5094 = vmatmul.msk.bf16.vlgmr.msra.gmra.mxu0 %vm537_vm4, %v2451_v32 }
0x11eb   :  { %3397 = vmatpush.bf16.msra.mxu0 %v6647_v33 }
0x11ef   :  { %3398 = vmatpush.bf16.msra.mxu0 %v6650_v34 }
0x1257   :  { %v1908_v35 = vpop.f32.mrf.mxu0 }
0x1258   :  { %v1913_v40 = vadd.f32 %v1912_v38, %v1908_v35  ;;  %v5269_v35 = vld [vmem:[#allocation19] ss:$0 sm:$0xff] }
0x1259   :  { %2458 = vst [vmem:[#allocation1] ss:$4 sm:$0xff] %v5269_v35 }
0x125a   :  { %5384 = vtanh.f32 %v1913_v40  ;;  %v5081_v37 = vmul.f32 -1.442695, %v1913_v40  ;;  %2460 = vst [vmem:[#allocation1 + $0x1] ss:$4 sm:$0xff] %v5269_v35 }
0x125b   :  { %2462 = vst [vmem:[#allocation1 + $0x2] ss:$4 sm:$0xff] %v5269_v35 }
0x125c   :  { %5386 = vpow2.f32 %v5081_v37  ;;  %2464 = vst [vmem:[#allocation1 + $0x3] ss:$4 sm:$0xff] %v5269_v35 }
0x125d   :  { %2466 = vst [vmem:[#allocation1 + $0x20] ss:$4 sm:$0xff] %v5269_v35 }
0x125e   :  { %2468 = vst [vmem:[#allocation1 + $0x21] ss:$4 sm:$0xff] %v5269_v35 }
0x125f   :  { %v1910_v41 = vpop.f32.mrf.mxu0  ;;  %2470 = vst [vmem:[#allocation1 + $0x22] ss:$4 sm:$0xff] %v5269_v35 }
0x1260   :  { %v5385_v42 = vpop.eup %5384  ;;  %2472 = vst [vmem:[#allocation1 + $0x23] ss:$4 sm:$0xff] %v5269_v35 }
0x1261   :  { %1936 = vrot.lane.b32.xlu2 %v5385_v42, %s6058_s14 }
0x1262   :  { %v5387_v44 = vpop.eup %5386 }
0x1263   :  { %v1917_v46 = vadd.f32 1.0, %v5387_v44  ;;  %v2473_v37 = vld.sshfl [vmem:[#allocation1] sm:$0xff pattern:$0x73625140] }
0x1265   :  { %5388 = vrcp.f32 %v1917_v46  ;;  %v1929_v52 = vand.u32 2147483648, %v1917_v46  ;;  %vm1923_vm10 = vweird.f32 %v1917_v46  ;;  %v1927_v36 = vand.u32 2147483647, %v1917_v46 }
0x1267   :  { %v1930_v55 = vor.u32 1.1754944e-38, %v1929_v52  ;;  %vm1928_vm14 = vcmp.eq.f32.partialorder %v1927_v36, 8.507059e+37  ;;  %v2488_v44 = vpop.f32.mrf.mxu0 }
0x126b   :  { %v5389_v47 = vpop.eup %5388 }
0x126c   :  { %v1919_v49 = vmul.f32 %v5389_v47, %v1917_v46  ;;  %vm1924_vm9 = vweird.f32 %v5389_v47  ;;  %v2489_v46 = vadd.f32 %v2488_v44, %v2473_v37 }
0x126d   :  { %vm1925_vm0 = vmor %vm1923_vm10, %vm1924_vm9 }
0x126e   :  { %v1920_v51 = vsub.f32 1.0, %v1919_v49  ;;  %v2496_v49 = vrot.slane %v2489_v46, 4  ;;  %2507 = vst [vmem:[#allocation5] sm:$0x3] %v2489_v46 }
0x1270   :  { %v1921_v63 = vmul.f32 %v5389_v47, %v1920_v51  ;;  %v2497_v51 = vrot.slane %v2489_v46, 6  ;;  %2509 = vst [vmem:[#allocation5 + $0x4] sm:$0x3] %v2496_v49 }
0x1272   :  { %v1922_v17 = vadd.f32 %v5389_v47, %v1921_v63  ;;  %2510 = vst [vmem:[#allocation5 + $0x6] sm:$0x3] %v2497_v51  ;;  %v2474_v63 = vld.sshfl [vmem:[#allocation1 + $0x20] sm:$0xff pattern:$0x73625140] }
0x1274   :  { %v1926_v53 = vsel %vm1925_vm0, %v5389_v47, %v1922_v17  ;;  %v2495_v47 = vrot.slane %v2489_v46, 2  ;;  %v2490_v17 = vpop.f32.mrf.mxu0 }
0x1275   :  { %v1931_v57 = vsel %vm1928_vm14, %v1930_v55, %v1926_v53  ;;  %v2491_v52 = vadd.f32 %v2490_v17, %v2474_v63 }
0x1276   :  { %v1951_v59 = vmul.f32 %v1931_v57, %v1880_v50  ;;  %v1934_v61 = vmul.f32 %v1931_v57, %v1878_v43  ;;  %2508 = vst [vmem:[#allocation5 + $0x2] sm:$0x3] %v2495_v47 }
0x1277   :  { %v2498_v36 = vrot.slane %v2491_v52, 2  ;;  %v2499_v53 = vrot.slane %v2491_v52, 4  ;;  %v2500_v55 = vrot.slane %v2491_v52, 6  ;;  %2511 = vst [vmem:[#allocation5 + $0x8] sm:$0x3] %v2491_v52 }
0x1279   :  { %2512 = vst [vmem:[#allocation5 + $0xa] sm:$0x3] %v2498_v36 }
0x127a   :  { %2513 = vst [vmem:[#allocation5 + $0xc] sm:$0x3] %v2499_v53 }
0x127b   :  { %2514 = vst [vmem:[#allocation5 + $0xe] sm:$0x3] %v2500_v55 }
0x12bb   :  { %v1937_v45 = vpop.permute.xlu2 %1936 }
0x12bc   :  { %v1939_v58 = vmul.f32 %v1937_v45, %v1931_v57 }
0x12be   :  { %1941 = vrot.lane.b32.xlu0 %v1939_v58, %s6060_s25  ;;  %v1996_v58 = vld [vmem:[#allocation2] sm:$0x7f] }
0x1330   :  { %v1942_v62 = vpop.permute.xlu0 %1941 }
0x1331   :  { %v6605_v0 = vadd.f32 %v1942_v62, %v1934_v61  ;;  %v6607_v1 = vadd.f32 %v1951_v59, %v1942_v62 }
0x1333   :  { %5390 = vtanh.f32 %v6605_v0 }
0x1334   :  { %5392 = vtanh.f32 %v6607_v1 }
0x1339   :  { %v5391_v4 = vpop.eup %5390 }
0x133a   :  { %v5393_v5 = vpop.eup %5392  ;;  %1947 = vrot.lane.b32.xlu1 %v5391_v4, %s6061_s21  ;;  %v2547_v4 = vld [vmem:[#allocation5 + $0xe] sm:$0x3] }
0x133b   :  { %1955 = vrot.lane.b32.xlu2 %v5393_v5, %s6061_s21 }
0x1395   :  { %v1956_v6 = vpop.permute.xlu2 %1955 }
0x1396   :  { %v1958_v7 = vmul.f32 %v1956_v6, %v1931_v57  ;;  %v2544_v6 = vld [vmem:[#allocation5] sm:$0x3] }
0x1398   :  { %v6615_v8 = vsel %vm7574_vm13, %v1958_v7, 0.0 }
0x1399   :  { %1973 = vrot.lane.b32.xlu1 %v6615_v8, %s6061_s21 }
0x13ac   :  { %v1948_v9 = vpop.permute.xlu1 %1947 }
0x13ad   :  { %v1950_v10 = vmul.f32 %v1948_v9, %v1931_v57  ;;  %v1994_v57 = vld [vmem:[#allocation2 + $0x10] sm:$0x7f] }
0x13af   :  { %v1959_v14 = vsel %vm7575_vm1, %v1950_v10, 0.0 }
0x13b0   :  { %1964 = vrot.lane.b32.xlu0 %v1959_v14, %s6062_s19 }
0x140b   :  { %v1974_v38 = vpop.permute.xlu1 %1973 }
0x1422   :  { %v1965_v40 = vpop.permute.xlu0 %1964 }
0x1423   :  { %1967 = vst.msk [vmem:[#allocation3 + $0x10] sm:$0x7f] %vm7531_vm6, %v1965_v40  ;;  %v1976_v41 = vsel %vm537_vm4, %v1965_v40, %v1974_v38 }
0x1424   :  { %v1977_v42 = vpack.c.bf16 %v1976_v41, %v1976_v41 }
0x1426   :  { %5082 = vmatmul.msk.bf16.vlgmr.msrb.gmra.mxu1 %vm675_vm7, %v1977_v42 }
0x1427   :  { %3052 = vmatpush.bf16.msrb.mxu1 %v6647_v33 }
0x142b   :  { %3053 = vmatpush.bf16.msrb.mxu1 %v6650_v34 }
0x1436   :  { %2539 = vmatmul.bf16.vlgmr.msra.gmra.mxu1 %v6057_v48 }
0x14a3   :  { %v1990_v45 = vpop.f32.mrf.mxu1 }
0x14a4   :  { %v1995_v43 = vadd.f32 %v1994_v57, %v1990_v45  ;;  %v1997_v50 = vadd.f32 %v1996_v58, %v1990_v45 }
0x14a6   :  { %5394 = vtanh.f32 %v1995_v43  ;;  %v5083_v18 = vmul.f32 -1.442695, %v1995_v43  ;;  %v5084_v20 = vmul.f32 -1.442695, %v1997_v50 }
0x14a7   :  { %5396 = vtanh.f32 %v1997_v50 }
0x14ab   :  { %v1992_v59 = vpop.f32.mrf.mxu1 }
0x14ac   :  { %v5395_v61 = vpop.eup %5394 }
0x14ad   :  { %v5397_v62 = vpop.eup %5396  ;;  %2020 = vrot.lane.b32.xlu2 %v5395_v61, %s6058_s14 }
0x14ae   :  { %2057 = vrot.lane.b32.xlu0 %v5397_v62, %s6058_s14 }
0x14b3   :  { %v2540_v5 = vpop.f32.mrf.mxu1 }
0x14b4   :  { %v2545_v7 = vadd.f32 %v2544_v6, %v2540_v5  ;;  %v2548_v9 = vadd.f32 %v2547_v4, %v2540_v5 }
0x14b6   :  { %5398 = vtanh.f32 %v2545_v7  ;;  %v5104_v12 = vmul.f32 -1.442695, %v2548_v9  ;;  %v5103_v32 = vmul.f32 -1.442695, %v2545_v7 }
0x14b7   :  { %5400 = vtanh.f32 %v2548_v9 }
0x14b8   :  { %5402 = vpow2.f32 %v5083_v18 }
0x14bb   :  { %v2542_v10 = vpop.f32.mrf.mxu1 }
0x14bc   :  { %v5399_v14 = vpop.eup %5398 }
0x14bd   :  { %v5401_v15 = vpop.eup %5400  ;;  %2571 = vrot.lane.b32.xlu1 %v5399_v14, %s6058_s14 }
0x14be   :  { %2608 = vrot.lane.b32.xlu2 %v5401_v15, %s6058_s14  ;;  %v5403_v11 = vpop.eup %5402 }
0x14bf   :  { %v2001_v13 = vadd.f32 1.0, %v5403_v11 }
0x14c1   :  { %5404 = vrcp.f32 %v2001_v13  ;;  %v2013_v30 = vand.u32 2147483648, %v2001_v13  ;;  %vm2007_vm3 = vweird.f32 %v2001_v13  ;;  %v2011_v35 = vand.u32 2147483647, %v2001_v13 }
0x14c2   :  { %5406 = vpow2.f32 %v5104_v12 }
0x14c3   :  { %5408 = vpow2.f32 %v5084_v20  ;;  %v2014_v40 = vor.u32 1.1754944e-38, %v2013_v30  ;;  %vm2012_vm9 = vcmp.eq.f32.partialorder %v2011_v35, 8.507059e+37 }
0x14c7   :  { %v5405_v3 = vpop.eup %5404 }
0x14c8   :  { %v2003_v22 = vmul.f32 %v5405_v3, %v2001_v13  ;;  %v5407_v23 = vpop.eup %5406  ;;  %vm2008_vm2 = vweird.f32 %v5405_v3 }
0x14c9   :  { %v2589_v24 = vadd.f32 1.0, %v5407_v23  ;;  %v5409_v19 = vpop.eup %5408  ;;  %vm2009_vm8 = vmor %vm2007_vm3, %vm2008_vm2 }
0x14ca   :  { %v2004_v25 = vsub.f32 1.0, %v2003_v22  ;;  %v2038_v27 = vadd.f32 1.0, %v5409_v19 }
0x14cb   :  { %5410 = vrcp.f32 %v2589_v24  ;;  %v2601_v53 = vand.u32 2147483648, %v2589_v24  ;;  %vm2595_vm0 = vweird.f32 %v2589_v24  ;;  %v2599_v55 = vand.u32 2147483647, %v2589_v24 }
0x14cc   :  { %v2005_v26 = vmul.f32 %v5405_v3, %v2004_v25  ;;  %5412 = vrcp.f32 %v2038_v27  ;;  %v2050_v4 = vand.u32 2147483648, %v2038_v27  ;;  %vm2044_vm2 = vweird.f32 %v2038_v27 }
0x14cd   :  { %5414 = vpow2.f32 %v5103_v32  ;;  %v2602_v58 = vor.u32 1.1754944e-38, %v2601_v53  ;;  %vm2600_vm13 = vcmp.eq.f32.partialorder %v2599_v55, 8.507059e+37  ;;  %v2048_v5 = vand.u32 2147483647, %v2038_v27 }
0x14ce   :  { %v2006_v29 = vadd.f32 %v5405_v3, %v2005_v26  ;;  %v2051_v9 = vor.u32 1.1754944e-38, %v2050_v4 }
0x14d0   :  { %v2010_v38 = vsel %vm2009_vm8, %v5405_v3, %v2006_v29  ;;  %vm2049_vm8 = vcmp.eq.f32.partialorder %v2048_v5, 8.507059e+37 }
0x14d1   :  { %v5411_v21 = vpop.eup %5410  ;;  %v6673_v37 = vsel %vm2012_vm9, %v2014_v40, %v2010_v38 }
0x14d2   :  { %v2591_v41 = vmul.f32 %v5411_v21, %v2589_v24  ;;  %v5413_v47 = vpop.eup %5412  ;;  %vm2596_vm10 = vweird.f32 %v5411_v21 }
0x14d3   :  { %v5415_v49 = vpop.eup %5414  ;;  %v2040_v63 = vmul.f32 %v5413_v47, %v2038_v27  ;;  %vm2597_vm14 = vmor %vm2595_vm0, %vm2596_vm10  ;;  %vm2045_vm1 = vweird.f32 %v5413_v47 }
0x14d4   :  { %v2592_v46 = vsub.f32 1.0, %v2591_v41  ;;  %v2552_v17 = vadd.f32 1.0, %v5415_v49  ;;  %vm2046_vm3 = vmor %vm2044_vm2, %vm2045_vm1 }
0x14d5   :  { %v2041_v36 = vsub.f32 1.0, %v2040_v63 }
0x14d6   :  { %v2593_v51 = vmul.f32 %v5411_v21, %v2592_v46  ;;  %5416 = vrcp.f32 %v2552_v17  ;;  %v2564_v12 = vand.u32 2147483648, %v2552_v17  ;;  %vm2558_vm10 = vweird.f32 %v2552_v17 }
0x14d7   :  { %v2042_v57 = vmul.f32 %v5413_v47, %v2041_v36  ;;  %v2562_v3 = vand.u32 2147483647, %v2552_v17 }
0x14d8   :  { %v2594_v52 = vadd.f32 %v5411_v21, %v2593_v51  ;;  %v2565_v22 = vor.u32 1.1754944e-38, %v2564_v12  ;;  %v2673_v12 = vld [vmem:[#allocation5 + $0x2] sm:$0x3] }
0x14d9   :  { %v2043_v62 = vadd.f32 %v5413_v47, %v2042_v57 }
0x14da   :  { %v2598_v45 = vsel %vm2597_vm14, %v5411_v21, %v2594_v52  ;;  %vm2563_vm14 = vcmp.eq.f32.partialorder %v2562_v3, 8.507059e+37  ;;  %v2676_v3 = vld [vmem:[#allocation5 + $0xc] sm:$0x3] }
0x14db   :  { %v6677_v50 = vsel %vm2600_vm13, %v2602_v58, %v2598_v45  ;;  %v2047_v7 = vsel %vm2046_vm3, %v5413_v47, %v2043_v62  ;;  %vm7577_vm13 = vcmp.eq.s32.totalorder %v6417_v39, 1  ;;  %v6704_v47 = vld [vmem:[%s7579_s29] sm:$0x3] }
0x14dc   :  { %v5417_v59 = vpop.eup %5416  ;;  %v2052_v14 = vsel %vm2049_vm8, %v2051_v9, %v2047_v7  ;;  %v1960_v26 = vsel %vm7577_vm13, %v6605_v0, 0.0  ;;  %v2606_v32 = vmul.f32 0.0, %v6677_v50  ;;  %vm7578_vm1 = vmmov %vm7577_vm13  ;;  %vm2624_vm2 = vcmp.gt.s32.totalorder %v6704_v47, 7 }
0x14dd   :  { %v2554_v6 = vmul.f32 %v5417_v59, %v2552_v17  ;;  %vm2559_vm9 = vweird.f32 %v5417_v59  ;;  %v2018_v19 = vmul.f32 %v6673_v37, %v1960_v26  ;;  %v1962_v0 = vsel %vm7578_vm1, %v6607_v1, 0.0 }
0x14de   :  { %vm2560_vm0 = vmor %vm2558_vm10, %vm2559_vm9  ;;  %v2632_v39 = vsel %vm2624_vm2, 1, %v6059_v16  ;;  %vm2623_vm3 = vcmp.gt.s32.totalorder %v6704_v47, 0  ;;  %vm2643_vm10 = vcmask 123904  }
0x14df   :  { %v2555_v15 = vsub.f32 1.0, %v2554_v6  ;;  %v2625_v63 = vsel %vm2623_vm3, 1, %v6059_v16 }
0x14e1   :  { %v2556_v11 = vmul.f32 %v5417_v59, %v2555_v15 }
0x14e3   :  { %v2557_v13 = vadd.f32 %v5417_v59, %v2556_v11 }
0x14e5   :  { %v2561_v20 = vsel %vm2560_vm0, %v5417_v59, %v2557_v13 }
0x14e6   :  { %v2566_v24 = vsel %vm2563_vm14, %v2565_v22, %v2561_v20 }
0x14e7   :  { %v2569_v21 = vmul.f32 0.0, %v2566_v24 }
0x1507   :  { %v2021_v42 = vpop.permute.xlu2 %2020 }
0x1508   :  { %v2023_v44 = vmul.f32 %v2021_v42, %v6673_v37  ;;  %v2055_v42 = vmul.f32 %v2052_v14, %v1962_v0 }
0x150a   :  { %2025 = vrot.lane.b32.xlu0 %v2023_v44, %s6060_s25 }
0x1518   :  { %v2609_v43 = vpop.permute.xlu2 %2608 }
0x1519   :  { %v2611_v61 = vmul.f32 %v2609_v43, %v6677_v50 }
0x151b   :  { %2613 = vrot.lane.b32.xlu0 %v2611_v61, %s6060_s25 }
0x1520   :  { %v2058_v10 = vpop.permute.xlu0 %2057 }
0x1521   :  { %v2060_v18 = vmul.f32 %v2058_v10, %v2052_v14 }
0x1523   :  { %2062 = vrot.lane.b32.xlu1 %v2060_v18, %s6060_s25 }
0x152f   :  { %v2572_v23 = vpop.permute.xlu1 %2571 }
0x1530   :  { %v2574_v25 = vmul.f32 %v2572_v23, %v2566_v24 }
0x1532   :  { %2576 = vrot.lane.b32.xlu2 %v2574_v25, %s6060_s25 }
0x157c   :  { %v2026_v27 = vpop.permute.xlu0 %2025 }
0x157d   :  { %v6687_v29 = vadd.f32 %v2026_v27, %v2018_v19 }
0x157f   :  { %5418 = vtanh.f32 %v6687_v29 }
0x1585   :  { %v5419_v30 = vpop.eup %5418 }
0x1586   :  { %2031 = vrot.lane.b32.xlu1 %v5419_v30, %s6061_s21 }
0x158c   :  { %v2577_v35 = vpop.permute.xlu2 %2576 }
0x158d   :  { %v2614_v38 = vpop.permute.xlu0 %2613  ;;  %v6692_v40 = vadd.f32 %v2577_v35, %v2569_v21 }
0x158e   :  { %v6694_v41 = vadd.f32 %v2614_v38, %v2606_v32 }
0x158f   :  { %5420 = vtanh.f32 %v6692_v40 }
0x1590   :  { %5422 = vtanh.f32 %v6694_v41 }
0x1595   :  { %v5421_v44 = vpop.eup %5420  ;;  %v2063_v46 = vpop.permute.xlu1 %2062 }
0x1596   :  { %v5423_v49 = vpop.eup %5422  ;;  %v6706_v51 = vadd.f32 %v2063_v46, %v2055_v42  ;;  %2582 = vrot.lane.b32.xlu0 %v5421_v44, %s6061_s21 }
0x1597   :  { %2619 = vrot.lane.b32.xlu1 %v5423_v49, %s6061_s21 }
0x1598   :  { %5424 = vtanh.f32 %v6706_v51 }
0x159e   :  { %v5425_v1 = vpop.eup %5424  ;;  %2634 = vperm.xlu0 %5225, %v2632_v39  }
0x159f   :  { %2068 = vrot.lane.b32.xlu2 %v5425_v1, %s6061_s21 }
0x15a7   :  { %2627 = vperm.xlu2 %5227, %v2625_v63  }
0x15f8   :  { %v2032_v17 = vpop.permute.xlu1 %2031 }
0x15f9   :  { %v2034_v52 = vmul.f32 %v2032_v17, %v6673_v37  ;;  %v2069_v36 = vpop.permute.xlu2 %2068 }
0x15fa   :  { %v2071_v53 = vmul.f32 %v2069_v36, %v2052_v14 }
0x15fb   :  { %v2072_v55 = vsel %vm7533_vm12, %v2034_v52, 0.0 }
0x15fc   :  { %2077 = vrot.lane.b32.xlu1 %v2072_v55, %s6062_s19  ;;  %v6722_v45 = vsel %vm7534_vm11, %v2071_v53, 0.0  ;;  %vm2881_vm11 = vcmp.gt.s32.totalorder %v6704_v47, 2 }
0x15fd   :  { %2086 = vrot.lane.b32.xlu2 %v6722_v45, %s6061_s21 }
0x1601   :  { %v6726_v57 = vpop.permute.xlu2 %2627 }
0x1602   :  { %vm7535_vm8 = vcmp.eq.s32.totalorder %v6726_v57, 1 }
0x1608   :  { %v2583_v58 = vpop.permute.xlu0 %2582 }
0x1609   :  { %v2585_v43 = vmul.f32 %v2583_v58, %v2566_v24  ;;  %v2620_v59 = vpop.permute.xlu1 %2619 }
0x160a   :  { %v2622_v61 = vmul.f32 %v2620_v59, %v6677_v50 }
0x160b   :  { %v2630_v37 = vsel %vm7535_vm8, %v2585_v43, 0.0 }
0x160c   :  { %2640 = vrot.lane.b32.xlu0 %v2630_v37, %s6062_s19 }
0x1610   :  { %v6733_v62 = vpop.permute.xlu0 %2634 }
0x1611   :  { %vm7536_vm9 = vcmp.eq.s32.totalorder %v6733_v62, 1 }
0x1612   :  { %v6738_v4 = vsel %vm7536_vm9, %v2622_v61, 0.0 }
0x1613   :  { %2651 = vrot.lane.b32.xlu1 %v6738_v4, %s6061_s21 }
0x1657   :  { %v2087_v5 = vpop.permute.xlu2 %2086 }
0x166e   :  { %v2078_v6 = vpop.permute.xlu1 %2077 }
0x166f   :  { %2080 = vst.msk [vmem:[#allocation3 + $0x18] sm:$0x7f] %vm7531_vm6, %v2078_v6  ;;  %v2089_v7 = vsel %vm537_vm4, %v2078_v6, %v2087_v5 }
0x1670   :  { %v2090_v9 = vpack.c.bf16 %v2089_v7, %v2089_v7 }
0x1672   :  { %5085 = vmatmul.msk.bf16.vlgmr.msrb.gmra.mxu2 %vm675_vm7, %v2090_v9  ;;  %v2631_v9 = vsel %vm7535_vm8, %v6692_v40, 0.0 }
0x1673   :  { %3167 = vmatpush.bf16.msrb.mxu2 %v6647_v33 }
0x1677   :  { %3168 = vmatpush.bf16.msrb.mxu2 %v6650_v34 }
0x167e   :  { %v2641_v50 = vpop.permute.xlu0 %2640 }
0x167f   :  { %2644 = vst.msk [vmem:[#allocation6] sm:$0x3] %vm2643_vm10, %v2641_v50 }
0x1685   :  { %v2652_v10 = vpop.permute.xlu1 %2651 }
0x1686   :  { %v2654_v14 = vsel %vm537_vm4, %v2641_v50, %v2652_v10  ;;  %v2638_v50 = vsel %vm7536_vm9, %v6694_v41, 0.0 }
0x1687   :  { %v2655_v15 = vpack.c.bf16 %v2654_v14, %v2654_v14 }
0x1689   :  { %5105 = vmatmul.msk.bf16.vlgmr.msra.gmra.mxu2 %vm675_vm7, %v2655_v15 }
0x16f5   :  { %v6750_v18 = vpop.f32.mrf.mxu2 }
0x16fd   :  { %v2105_v11 = vpop.f32.mrf.mxu2 }
0x170c   :  { %v2668_v13 = vpop.f32.mrf.mxu2 }
0x170d   :  { %v2674_v20 = vadd.f32 %v2673_v12, %v2668_v13  ;;  %v2677_v33 = vadd.f32 %v2676_v3, %v2668_v13 }
0x170f   :  { %5426 = vtanh.f32 %v2674_v20  ;;  %v5106_v24 = vmul.f32 -1.442695, %v2674_v20  ;;  %v5107_v27 = vmul.f32 -1.442695, %v2677_v33 }
0x1710   :  { %5428 = vtanh.f32 %v2677_v33 }
0x1711   :  { %5430 = vpow2.f32 %v5106_v24 }
0x1714   :  { %v2670_v34 = vpop.f32.mrf.mxu2 }
0x1715   :  { %v5427_v22 = vpop.eup %5426 }
0x1716   :  { %v5429_v23 = vpop.eup %5428  ;;  %2700 = vrot.lane.b32.xlu2 %v5427_v22, %s6058_s14 }
0x1717   :  { %2737 = vrot.lane.b32.xlu0 %v5429_v23, %s6058_s14  ;;  %v5431_v25 = vpop.eup %5430 }
0x1718   :  { %v2681_v26 = vadd.f32 1.0, %v5431_v25 }
0x171a   :  { %5432 = vrcp.f32 %v2681_v26  ;;  %v2693_v42 = vand.u32 2147483648, %v2681_v26  ;;  %vm2687_vm14 = vweird.f32 %v2681_v26  ;;  %v2691_v44 = vand.u32 2147483647, %v2681_v26 }
0x171b   :  { %5434 = vpow2.f32 %v5107_v27 }
0x171c   :  { %v2694_v49 = vor.u32 1.1754944e-38, %v2693_v42  ;;  %vm2692_vm1 = vcmp.eq.f32.partialorder %v2691_v44, 8.507059e+37 }
0x1720   :  { %v5433_v19 = vpop.eup %5432 }
0x1721   :  { %v2683_v30 = vmul.f32 %v5433_v19, %v2681_v26  ;;  %v5435_v35 = vpop.eup %5434  ;;  %vm2688_vm0 = vweird.f32 %v5433_v19 }
0x1722   :  { %v2718_v38 = vadd.f32 1.0, %v5435_v35  ;;  %vm2689_vm13 = vmor %vm2687_vm14, %vm2688_vm0  ;;  %vm2752_vm14 = vcmp.gt.s32.totalorder %v6704_v47, 1  ;;  %v2802_v35 = vld [vmem:[#allocation5 + $0x4] sm:$0x3] }
0x1723   :  { %v2684_v21 = vsub.f32 1.0, %v2683_v30  ;;  %v2754_v7 = vsel %vm2752_vm14, 1, %v6059_v16 }
0x1724   :  { %5436 = vrcp.f32 %v2718_v38  ;;  %v2730_v58 = vand.u32 2147483648, %v2718_v38  ;;  %vm2724_vm3 = vweird.f32 %v2718_v38  ;;  %v2728_v43 = vand.u32 2147483647, %v2718_v38 }
0x1725   :  { %v2685_v32 = vmul.f32 %v5433_v19, %v2684_v21 }
0x1726   :  { %v2731_v59 = vor.u32 1.1754944e-38, %v2730_v58  ;;  %vm2729_vm0 = vcmp.eq.f32.partialorder %v2728_v43, 8.507059e+37 }
0x1727   :  { %v2686_v0 = vadd.f32 %v5433_v19, %v2685_v32 }
0x1729   :  { %v2690_v46 = vsel %vm2689_vm13, %v5433_v19, %v2686_v0 }
0x172a   :  { %v2695_v1 = vsel %vm2692_vm1, %v2694_v49, %v2690_v46  ;;  %v5437_v17 = vpop.eup %5436 }
0x172b   :  { %v2720_v52 = vmul.f32 %v5437_v17, %v2718_v38  ;;  %vm2725_vm2 = vweird.f32 %v5437_v17  ;;  %v2698_v10 = vmul.f32 %v2695_v1, %v2631_v9  ;;  %v2805_v38 = vld [vmem:[#allocation5 + $0xa] sm:$0x3] }
0x172c   :  { %vm2726_vm5 = vmor %vm2724_vm3, %vm2725_vm2 }
0x172d   :  { %v2721_v36 = vsub.f32 1.0, %v2720_v52 }
0x172f   :  { %v2722_v53 = vmul.f32 %v5437_v17, %v2721_v36 }
0x1731   :  { %v2723_v55 = vadd.f32 %v5437_v17, %v2722_v53 }
0x1733   :  { %v2727_v37 = vsel %vm2726_vm5, %v5437_v17, %v2723_v55  ;;  %vm2753_vm5 = vcmp.gt.s32.totalorder %v6704_v47, 6 }
0x1734   :  { %v2732_v5 = vsel %vm2729_vm0, %v2731_v59, %v2727_v37  ;;  %v2761_v40 = vsel %vm2753_vm5, 1, %v6059_v16 }
0x1735   :  { %v2735_v14 = vmul.f32 %v2732_v5, %v2638_v50 }
0x1770   :  { %v2701_v39 = vpop.permute.xlu2 %2700 }
0x1771   :  { %v2703_v63 = vmul.f32 %v2701_v39, %v2695_v1 }
0x1773   :  { %2705 = vrot.lane.b32.xlu1 %v2703_v63, %s6060_s25 }
0x1789   :  { %v2738_v61 = vpop.permute.xlu0 %2737 }
0x178a   :  { %v2740_v6 = vmul.f32 %v2738_v61, %v2732_v5 }
0x178c   :  { %2742 = vrot.lane.b32.xlu2 %v2740_v6, %s6060_s25 }
0x1794   :  { %2756 = vperm.xlu2 %5227, %v2754_v7  }
0x17e5   :  { %v2706_v15 = vpop.permute.xlu1 %2705 }
0x17e6   :  { %v2743_v11 = vpop.permute.xlu2 %2742  ;;  %v6764_v13 = vadd.f32 %v2706_v15, %v2698_v10 }
0x17e7   :  { %v6766_v12 = vadd.f32 %v2743_v11, %v2735_v14 }
0x17e8   :  { %5438 = vtanh.f32 %v6764_v13 }
0x17e9   :  { %5440 = vtanh.f32 %v6766_v12 }
0x17ee   :  { %v5439_v3 = vpop.eup %5438  ;;  %v6774_v41 = vpop.permute.xlu2 %2756 }
0x17ef   :  { %v5441_v20 = vpop.eup %5440  ;;  %2711 = vrot.lane.b32.xlu0 %v5439_v3, %s6061_s21  ;;  %vm2758_vm13 = vcmp.eq.s32.totalorder %v6774_v41, 1  ;;  %v2107_v41 = vld [vmem:[#allocation2 + $0x18] sm:$0x7f] }
0x17f0   :  { %2748 = vrot.lane.b32.xlu1 %v5441_v20, %s6061_s21 }
0x17f7   :  { %2763 = vperm.xlu0 %5225, %v2761_v40  }
0x1861   :  { %v2712_v33 = vpop.permute.xlu0 %2711 }
0x1862   :  { %v2714_v34 = vmul.f32 %v2712_v33, %v2695_v1  ;;  %v2749_v23 = vpop.permute.xlu1 %2748 }
0x1863   :  { %v2751_v24 = vmul.f32 %v2749_v23, %v2732_v5 }
0x1864   :  { %v2759_v22 = vsel %vm2758_vm13, %v2714_v34, 0.0 }
0x1865   :  { %2769 = vrot.lane.b32.xlu1 %v2759_v22, %s6062_s19 }
0x1869   :  { %v6780_v25 = vpop.permute.xlu0 %2763 }
0x186a   :  { %vm2765_vm1 = vcmp.eq.s32.totalorder %v6780_v25, 1 }
0x186b   :  { %v6785_v26 = vsel %vm2765_vm1, %v2751_v24, 0.0 }
0x186c   :  { %2780 = vrot.lane.b32.xlu2 %v6785_v26, %s6061_s21 }
0x18c6   :  { %v2781_v19 = vpop.permute.xlu2 %2780 }
0x18d7   :  { %v2770_v27 = vpop.permute.xlu1 %2769 }
0x18d8   :  { %2773 = vst.msk [vmem:[#allocation6 + $0x2] sm:$0x3] %vm2643_vm10, %v2770_v27  ;;  %v2783_v30 = vsel %vm537_vm4, %v2770_v27, %v2781_v19  ;;  %v2883_v19 = vsel %vm2881_vm11, 1, %v6059_v16  ;;  %v2760_v27 = vsel %vm2758_vm13, %v6764_v13, 0.0 }
0x18d9   :  { %v2784_v21 = vpack.c.bf16 %v2783_v30, %v2783_v30 }
0x18db   :  { %5108 = vmatmul.msk.bf16.vlgmr.msra.gmra.mxu3 %vm675_vm7, %v2784_v21 }
0x195e   :  { %v2797_v32 = vpop.f32.mrf.mxu3 }
0x195f   :  { %v2803_v0 = vadd.f32 %v2802_v35, %v2797_v32  ;;  %v2806_v42 = vadd.f32 %v2805_v38, %v2797_v32 }
0x1961   :  { %5442 = vtanh.f32 %v2803_v0  ;;  %v5109_v39 = vmul.f32 -1.442695, %v2803_v0  ;;  %v5110_v1 = vmul.f32 -1.442695, %v2806_v42  ;;  %v2767_v0 = vsel %vm2765_vm1, %v6766_v12, 0.0 }
0x1962   :  { %5444 = vtanh.f32 %v2806_v42 }
0x1963   :  { %5446 = vpow2.f32 %v5109_v39 }
0x1964   :  { %5448 = vpow2.f32 %v5110_v1 }
0x1966   :  { %v2799_v44 = vpop.f32.mrf.mxu3 }
0x1967   :  { %v5443_v46 = vpop.eup %5442 }
0x1968   :  { %v5445_v49 = vpop.eup %5444  ;;  %2829 = vrot.lane.b32.xlu0 %v5443_v46, %s6058_s14 }
0x1969   :  { %2866 = vrot.lane.b32.xlu1 %v5445_v49, %s6058_s14  ;;  %v5447_v63 = vpop.eup %5446 }
0x196a   :  { %v5449_v17 = vpop.eup %5448  ;;  %v2810_v52 = vadd.f32 1.0, %v5447_v63 }
0x196b   :  { %v2847_v36 = vadd.f32 1.0, %v5449_v17 }
0x196c   :  { %5450 = vrcp.f32 %v2810_v52  ;;  %v2822_v9 = vand.u32 2147483648, %v2810_v52  ;;  %vm2816_vm0 = vweird.f32 %v2810_v52  ;;  %v2820_v10 = vand.u32 2147483647, %v2810_v52 }
0x196d   :  { %5452 = vrcp.f32 %v2847_v36  ;;  %v2859_v50 = vand.u32 2147483648, %v2847_v36  ;;  %vm2853_vm14 = vweird.f32 %v2847_v36  ;;  %v2857_v14 = vand.u32 2147483647, %v2847_v36 }
0x196e   :  { %v2823_v3 = vor.u32 1.1754944e-38, %v2822_v9  ;;  %vm2821_vm15 = vcmp.eq.f32.partialorder %v2820_v10, 8.507059e+37 }
0x196f   :  { %v2860_v20 = vor.u32 1.1754944e-38, %v2859_v50  ;;  %vm2858_vm12 = vcmp.eq.f32.partialorder %v2857_v14, 8.507059e+37 }
0x1972   :  { %v5451_v53 = vpop.eup %5450 }
0x1973   :  { %v5453_v55 = vpop.eup %5452  ;;  %v2812_v58 = vmul.f32 %v5451_v53, %v2810_v52  ;;  %vm2817_vm2 = vweird.f32 %v5451_v53 }
0x1974   :  { %v2849_v43 = vmul.f32 %v5453_v55, %v2847_v36  ;;  %vm2854_vm3 = vweird.f32 %v5453_v55  ;;  %vm2818_vm5 = vmor %vm2816_vm0, %vm2817_vm2 }
0x1975   :  { %v2813_v37 = vsub.f32 1.0, %v2812_v58  ;;  %vm2855_vm6 = vmor %vm2853_vm14, %vm2854_vm3  ;;  %vm3010_vm14 = vcmp.gt.s32.totalorder %v6704_v47, 3 }
0x1976   :  { %v2850_v59 = vsub.f32 1.0, %v2849_v43 }
0x1977   :  { %v2814_v61 = vmul.f32 %v5451_v53, %v2813_v37 }
0x1978   :  { %v2851_v5 = vmul.f32 %v5453_v55, %v2850_v59  ;;  %v2931_v59 = vld [vmem:[#allocation5 + $0x6] sm:$0x3] }
0x1979   :  { %v2815_v6 = vadd.f32 %v5451_v53, %v2814_v61  ;;  %v2934_v61 = vld [vmem:[#allocation5 + $0x8] sm:$0x3] }
0x197a   :  { %v2852_v7 = vadd.f32 %v5453_v55, %v2851_v5 }
0x197b   :  { %v2819_v15 = vsel %vm2818_vm5, %v5451_v53, %v2815_v6 }
0x197c   :  { %v2856_v11 = vsel %vm2855_vm6, %v5453_v55, %v2852_v7  ;;  %v2824_v33 = vsel %vm2821_vm15, %v2823_v3, %v2819_v15  ;;  %vm2882_vm15 = vcmp.gt.s32.totalorder %v6704_v47, 5 }
0x197d   :  { %v2861_v22 = vsel %vm2858_vm12, %v2860_v20, %v2856_v11  ;;  %v2827_v30 = vmul.f32 %v2824_v33, %v2760_v27  ;;  %v2890_v38 = vsel %vm2882_vm15, 1, %v6059_v16 }
0x197e   :  { %v2864_v42 = vmul.f32 %v2861_v22, %v2767_v0 }
0x19da   :  { %v2830_v40 = vpop.permute.xlu0 %2829 }
0x19db   :  { %v2867_v34 = vpop.permute.xlu1 %2866  ;;  %v2832_v23 = vmul.f32 %v2830_v40, %v2824_v33 }
0x19dc   :  { %v2869_v24 = vmul.f32 %v2867_v34, %v2861_v22 }
0x19dd   :  { %2834 = vrot.lane.b32.xlu2 %v2832_v23, %s6060_s25 }
0x19de   :  { %2871 = vrot.lane.b32.xlu0 %v2869_v24, %s6060_s25 }
0x19e6   :  { %2885 = vperm.xlu0 %5225, %v2883_v19  }
0x1a37   :  { %v2835_v21 = vpop.permute.xlu2 %2834 }
0x1a38   :  { %v6801_v32 = vadd.f32 %v2835_v21, %v2827_v30 }
0x1a3a   :  { %5454 = vtanh.f32 %v6801_v32 }
0x1a40   :  { %v5455_v35 = vpop.eup %5454 }
0x1a41   :  { %2840 = vrot.lane.b32.xlu1 %v5455_v35, %s6061_s21 }
0x1a49   :  { %2892 = vperm.xlu1 %5226, %v2890_v38  }
0x1a50   :  { %v2872_v13 = vpop.permute.xlu0 %2871 }
0x1a51   :  { %v6810_v44 = vadd.f32 %v2872_v13, %v2864_v42  ;;  %v3012_v13 = vsel %vm3010_vm14, 1, %v6059_v16 }
0x1a53   :  { %5456 = vtanh.f32 %v6810_v44 }
0x1a58   :  { %v6814_v49 = vpop.permute.xlu0 %2885 }
0x1a59   :  { %v5457_v46 = vpop.eup %5456  ;;  %vm2887_vm6 = vcmp.eq.s32.totalorder %v6814_v49, 1 }
0x1a5a   :  { %2877 = vrot.lane.b32.xlu2 %v5457_v46, %s6061_s21 }
0x1ab3   :  { %v2841_v39 = vpop.permute.xlu1 %2840 }
0x1ab4   :  { %v2843_v1 = vmul.f32 %v2841_v39, %v2824_v33  ;;  %v2878_v12 = vpop.permute.xlu2 %2877 }
0x1ab5   :  { %v2880_v17 = vmul.f32 %v2878_v12, %v2861_v22 }
0x1ab6   :  { %v2888_v63 = vsel %vm2887_vm6, %v2843_v1, 0.0 }
0x1ab7   :  { %2898 = vrot.lane.b32.xlu2 %v2888_v63, %s6062_s19 }
0x1abb   :  { %v6820_v52 = vpop.permute.xlu1 %2892 }
0x1abc   :  { %vm2894_vm11 = vcmp.eq.s32.totalorder %v6820_v52, 1 }
0x1abd   :  { %v6825_v36 = vsel %vm2894_vm11, %v2880_v17, 0.0 }
0x1abe   :  { %2909 = vrot.lane.b32.xlu0 %v6825_v36, %s6061_s21 }
0x1b11   :  { %v2899_v53 = vpop.permute.xlu2 %2898 }
0x1b12   :  { %2902 = vst.msk [vmem:[#allocation6 + $0x4] sm:$0x3] %vm2643_vm10, %v2899_v53 }
0x1b30   :  { %v2910_v55 = vpop.permute.xlu0 %2909 }
0x1b31   :  { %v2912_v58 = vsel %vm537_vm4, %v2899_v53, %v2910_v55 }
0x1b32   :  { %v2913_v43 = vpack.c.bf16 %v2912_v58, %v2912_v58 }
0x1b34   :  { %5111 = vmatmul.msk.bf16.vlgmr.msrb.gmra.mxu0 %vm675_vm7, %v2913_v43 }
0x1bb1   :  { %v2926_v37 = vpop.f32.mrf.mxu0 }
0x1bb2   :  { %v2932_v5 = vadd.f32 %v2931_v59, %v2926_v37  ;;  %v2935_v6 = vadd.f32 %v2934_v61, %v2926_v37  ;;  %v2896_v37 = vsel %vm2894_vm11, %v6810_v44, 0.0 }
0x1bb4   :  { %5458 = vtanh.f32 %v2932_v5  ;;  %v5113_v10 = vmul.f32 -1.442695, %v2935_v6  ;;  %v5112_v3 = vmul.f32 -1.442695, %v2932_v5 }
0x1bb5   :  { %5460 = vtanh.f32 %v2935_v6 }
0x1bb6   :  { %5462 = vpow2.f32 %v5113_v10 }
0x1bb9   :  { %v2928_v7 = vpop.f32.mrf.mxu0 }
0x1bba   :  { %v5459_v9 = vpop.eup %5458  ;;  %v2889_v7 = vsel %vm2887_vm6, %v6801_v32, 0.0 }
0x1bbb   :  { %v5461_v50 = vpop.eup %5460  ;;  %2958 = vrot.lane.b32.xlu1 %v5459_v9, %s6058_s14 }
0x1bbc   :  { %2995 = vrot.lane.b32.xlu2 %v5461_v50, %s6058_s14  ;;  %v5463_v14 = vpop.eup %5462 }
0x1bbd   :  { %v2976_v15 = vadd.f32 1.0, %v5463_v14 }
0x1bbf   :  { %5464 = vrcp.f32 %v2976_v15  ;;  %v2988_v24 = vand.u32 2147483648, %v2976_v15  ;;  %vm2982_vm2 = vweird.f32 %v2976_v15  ;;  %v2986_v19 = vand.u32 2147483647, %v2976_v15 }
0x1bc0   :  { %5466 = vpow2.f32 %v5112_v3 }
0x1bc1   :  { %v2989_v30 = vor.u32 1.1754944e-38, %v2988_v24  ;;  %vm2987_vm0 = vcmp.eq.f32.partialorder %v2986_v19, 8.507059e+37 }
0x1bc5   :  { %v5465_v11 = vpop.eup %5464 }
0x1bc6   :  { %v2978_v20 = vmul.f32 %v5465_v11, %v2976_v15  ;;  %v5467_v33 = vpop.eup %5466  ;;  %vm2983_vm12 = vweird.f32 %v5465_v11 }
0x1bc7   :  { %v2939_v22 = vadd.f32 1.0, %v5467_v33  ;;  %vm2984_vm3 = vmor %vm2982_vm2, %vm2983_vm12 }
0x1bc8   :  { %v2979_v40 = vsub.f32 1.0, %v2978_v20 }
0x1bc9   :  { %5468 = vrcp.f32 %v2939_v22  ;;  %v2951_v63 = vand.u32 2147483648, %v2939_v22  ;;  %vm2945_vm15 = vweird.f32 %v2939_v22  ;;  %v2949_v12 = vand.u32 2147483647, %v2939_v22 }
0x1bca   :  { %v2980_v34 = vmul.f32 %v5465_v11, %v2979_v40 }
0x1bcb   :  { %v2952_v53 = vor.u32 1.1754944e-38, %v2951_v63  ;;  %vm2950_vm2 = vcmp.eq.f32.partialorder %v2949_v12, 8.507059e+37 }
0x1bcc   :  { %v2981_v23 = vadd.f32 %v5465_v11, %v2980_v34 }
0x1bce   :  { %v2985_v27 = vsel %vm2984_vm3, %v5465_v11, %v2981_v23  ;;  %vm3011_vm3 = vcmp.gt.s32.totalorder %v6704_v47, 4 }
0x1bcf   :  { %v2990_v35 = vsel %vm2987_vm0, %v2989_v30, %v2985_v27  ;;  %v5469_v38 = vpop.eup %5468  ;;  %v3019_v14 = vsel %vm3011_vm3, 1, %v6059_v16  ;;  %v3059_v27 = vld [vmem:[#allocation5 + $0x8] sm:$0x3]  ;;  %v3061_v30 = vld [vmem:[#allocation5 + $0x6] sm:$0x3] }
0x1bd0   :  { %v2941_v42 = vmul.f32 %v5469_v38, %v2939_v22  ;;  %vm2946_vm5 = vweird.f32 %v5469_v38  ;;  %v2993_v59 = vmul.f32 %v2990_v35, %v2896_v37 }
0x1bd1   :  { %vm2947_vm12 = vmor %vm2945_vm15, %vm2946_vm5 }
0x1bd2   :  { %v2942_v46 = vsub.f32 1.0, %v2941_v42 }
0x1bd4   :  { %v2943_v39 = vmul.f32 %v5469_v38, %v2942_v46 }
0x1bd6   :  { %v2944_v1 = vadd.f32 %v5469_v38, %v2943_v39 }
0x1bd8   :  { %v2948_v17 = vsel %vm2947_vm12, %v5469_v38, %v2944_v1 }
0x1bd9   :  { %v2953_v58 = vsel %vm2950_vm2, %v2952_v53, %v2948_v17 }
0x1bda   :  { %v2956_v9 = vmul.f32 %v2953_v58, %v2889_v7 }
0x1c16   :  { %v2996_v21 = vpop.permute.xlu2 %2995 }
0x1c17   :  { %v2998_v0 = vmul.f32 %v2996_v21, %v2990_v35 }
0x1c19   :  { %3000 = vrot.lane.b32.xlu1 %v2998_v0, %s6060_s25 }
0x1c21   :  { %3014 = vperm.xlu1 %5226, %v3012_v13  }
0x1c2d   :  { %v2959_v55 = vpop.permute.xlu1 %2958 }
0x1c2e   :  { %v2961_v43 = vmul.f32 %v2959_v55, %v2953_v58 }
0x1c30   :  { %2963 = vrot.lane.b32.xlu0 %v2961_v43, %s6060_s25 }
0x1c8b   :  { %v3001_v61 = vpop.permute.xlu1 %3000 }
0x1c8c   :  { %v6841_v5 = vadd.f32 %v3001_v61, %v2993_v59 }
0x1c8e   :  { %5470 = vtanh.f32 %v6841_v5 }
0x1c93   :  { %v6854_v15 = vpop.permute.xlu1 %3014 }
0x1c94   :  { %v5471_v6 = vpop.eup %5470  ;;  %vm3016_vm0 = vcmp.eq.s32.totalorder %v6854_v15, 1 }
0x1c95   :  { %3006 = vrot.lane.b32.xlu0 %v5471_v6, %s6061_s21 }
0x1ca2   :  { %v2964_v50 = vpop.permute.xlu0 %2963 }
0x1ca3   :  { %v6848_v10 = vadd.f32 %v2964_v50, %v2956_v9 }
0x1ca5   :  { %5472 = vtanh.f32 %v6848_v10 }
0x1cab   :  { %v5473_v44 = vpop.eup %5472 }
0x1cac   :  { %2969 = vrot.lane.b32.xlu2 %v5473_v44, %s6061_s21 }
0x1cb4   :  { %3021 = vperm.xlu2 %5227, %v3019_v14  }
0x1d06   :  { %v2970_v11 = vpop.permute.xlu2 %2969 }
0x1d07   :  { %v2972_v3 = vmul.f32 %v2970_v11, %v2953_v58  ;;  %v3007_v20 = vpop.permute.xlu0 %3006 }
0x1d08   :  { %v3009_v40 = vmul.f32 %v3007_v20, %v2990_v35 }
0x1d09   :  { %v3017_v32 = vsel %vm3016_vm0, %v2972_v3, 0.0 }
0x1d0a   :  { %3027 = vrot.lane.b32.xlu0 %v3017_v32, %s6062_s19 }
0x1d0e   :  { %v6860_v33 = vpop.permute.xlu2 %3021 }
0x1d0f   :  { %vm7537_vm14 = vcmp.eq.s32.totalorder %v6860_v33, 1 }
0x1d10   :  { %v6865_v47 = vsel %vm7537_vm14, %v3009_v40, 0.0 }
0x1d11   :  { %3038 = vrot.lane.b32.xlu1 %v6865_v47, %s6061_s21 }
0x1d7c   :  { %v3028_v34 = vpop.permute.xlu0 %3027 }
0x1d7d   :  { %3031 = vst.msk [vmem:[#allocation6 + $0x6] sm:$0x3] %vm2643_vm10, %v3028_v34 }
0x1d83   :  { %v3039_v22 = vpop.permute.xlu1 %3038 }
0x1d84   :  { %v3041_v23 = vsel %vm537_vm4, %v3028_v34, %v3039_v22 }
0x1d85   :  { %v3042_v24 = vpack.c.bf16 %v3041_v23, %v3041_v23 }
0x1d87   :  { %5114 = vmatmul.msk.bf16.vlgmr.msrb.gmra.mxu1 %vm675_vm7, %v3042_v24 }
0x1e04   :  { %v3055_v19 = vpop.f32.mrf.mxu1 }
0x1e05   :  { %v3060_v21 = vadd.f32 %v3059_v27, %v3055_v19  ;;  %v3062_v35 = vadd.f32 %v3061_v30, %v3055_v19  ;;  %v3018_v27 = vsel %vm3016_vm0, %v6848_v10, 0.0  ;;  %v3025_v30 = vsel %vm7537_vm14, %v6841_v5, 0.0 }
0x1e07   :  { %5474 = vtanh.f32 %v3060_v21  ;;  %v5115_v13 = vmul.f32 -1.442695, %v3060_v21  ;;  %v5116_v63 = vmul.f32 -1.442695, %v3062_v35 }
0x1e08   :  { %5476 = vtanh.f32 %v3062_v35 }
0x1e09   :  { %5478 = vpow2.f32 %v5115_v13 }
0x1e0c   :  { %v3057_v38 = vpop.f32.mrf.mxu1 }
0x1e0d   :  { %v5475_v0 = vpop.eup %5474 }
0x1e0e   :  { %v5477_v42 = vpop.eup %5476  ;;  %3085 = vrot.lane.b32.xlu2 %v5475_v0, %s6058_s14 }
0x1e0f   :  { %3122 = vrot.lane.b32.xlu0 %v5477_v42, %s6058_s14  ;;  %v5479_v46 = vpop.eup %5478 }
0x1e10   :  { %v3066_v39 = vadd.f32 1.0, %v5479_v46 }
0x1e12   :  { %5480 = vrcp.f32 %v3066_v39  ;;  %v3078_v37 = vand.u32 2147483648, %v3066_v39  ;;  %vm3072_vm15 = vweird.f32 %v3066_v39  ;;  %v3076_v59 = vand.u32 2147483647, %v3066_v39 }
0x1e13   :  { %5482 = vpow2.f32 %v5116_v63 }
0x1e14   :  { %v3079_v6 = vor.u32 1.1754944e-38, %v3078_v37  ;;  %vm3077_vm2 = vcmp.eq.f32.partialorder %v3076_v59, 8.507059e+37  ;;  %v3174_v59 = vld [vmem:[#allocation5 + $0xa] sm:$0x3] }
0x1e18   :  { %v5481_v1 = vpop.eup %5480 }
0x1e19   :  { %v3068_v12 = vmul.f32 %v5481_v1, %v3066_v39  ;;  %v5483_v55 = vpop.eup %5482  ;;  %vm3073_vm5 = vweird.f32 %v5481_v1 }
0x1e1a   :  { %v3103_v58 = vadd.f32 1.0, %v5483_v55  ;;  %vm3074_vm12 = vmor %vm3072_vm15, %vm3073_vm5 }
0x1e1b   :  { %v3069_v17 = vsub.f32 1.0, %v3068_v12 }
0x1e1c   :  { %5484 = vrcp.f32 %v3103_v58  ;;  %v3115_v20 = vand.u32 2147483648, %v3103_v58  ;;  %vm3109_vm8 = vweird.f32 %v3103_v58  ;;  %v3113_v40 = vand.u32 2147483647, %v3103_v58 }
0x1e1d   :  { %v3070_v53 = vmul.f32 %v5481_v1, %v3069_v17 }
0x1e1e   :  { %v3116_v22 = vor.u32 1.1754944e-38, %v3115_v20  ;;  %vm3114_vm5 = vcmp.eq.f32.partialorder %v3113_v40, 8.507059e+37 }
0x1e1f   :  { %v3071_v43 = vadd.f32 %v5481_v1, %v3070_v53 }
0x1e21   :  { %v3075_v61 = vsel %vm3074_vm12, %v5481_v1, %v3071_v43 }
0x1e22   :  { %v3080_v9 = vsel %vm3077_vm2, %v3079_v6, %v3075_v61  ;;  %v5485_v44 = vpop.eup %5484  ;;  %v3176_v61 = vld [vmem:[#allocation5 + $0x4] sm:$0x3] }
0x1e23   :  { %v3105_v14 = vmul.f32 %v5485_v44, %v3103_v58  ;;  %vm3110_vm3 = vweird.f32 %v5485_v44  ;;  %v3083_v21 = vmul.f32 %v3080_v9, %v3018_v27 }
0x1e24   :  { %vm3111_vm9 = vmor %vm3109_vm8, %vm3110_vm3 }
0x1e25   :  { %v3106_v11 = vsub.f32 1.0, %v3105_v14 }
0x1e27   :  { %v3107_v3 = vmul.f32 %v5485_v44, %v3106_v11 }
0x1e29   :  { %v3108_v32 = vadd.f32 %v5485_v44, %v3107_v3 }
0x1e2b   :  { %v3112_v34 = vsel %vm3111_vm9, %v5485_v44, %v3108_v32 }
0x1e2c   :  { %v3117_v24 = vsel %vm3114_vm5, %v3116_v22, %v3112_v34 }
0x1e2d   :  { %v3120_v35 = vmul.f32 %v3117_v24, %v3025_v30 }
0x1e68   :  { %v3086_v7 = vpop.permute.xlu2 %3085 }
0x1e69   :  { %v3088_v50 = vmul.f32 %v3086_v7, %v3080_v9 }
0x1e6b   :  { %3090 = vrot.lane.b32.xlu1 %v3088_v50, %s6060_s25 }
0x1e81   :  { %v3123_v23 = vpop.permute.xlu0 %3122 }
0x1e82   :  { %v3125_v19 = vmul.f32 %v3123_v23, %v3117_v24 }
0x1e84   :  { %3127 = vrot.lane.b32.xlu2 %v3125_v19, %s6060_s25 }
0x1edd   :  { %v3091_v38 = vpop.permute.xlu1 %3090 }
0x1ede   :  { %v3128_v0 = vpop.permute.xlu2 %3127  ;;  %v6882_v42 = vadd.f32 %v3091_v38, %v3083_v21 }
0x1edf   :  { %v6884_v13 = vadd.f32 %v3128_v0, %v3120_v35 }
0x1ee0   :  { %5486 = vtanh.f32 %v6882_v42 }
0x1ee1   :  { %5488 = vtanh.f32 %v6884_v13 }
0x1ee6   :  { %v5487_v46 = vpop.eup %5486 }
0x1ee7   :  { %v5489_v39 = vpop.eup %5488  ;;  %3096 = vrot.lane.b32.xlu0 %v5487_v46, %s6061_s21 }
0x1ee8   :  { %3133 = vrot.lane.b32.xlu1 %v5489_v39, %s6061_s21 }
0x1f59   :  { %v3097_v10 = vpop.permute.xlu0 %3096 }
0x1f5a   :  { %v3134_v5 = vpop.permute.xlu1 %3133  ;;  %v3099_v1 = vmul.f32 %v3097_v10, %v3080_v9 }
0x1f5b   :  { %v3136_v63 = vmul.f32 %v3134_v5, %v3117_v24 }
0x1f5c   :  { %v3137_v12 = vsel %vm7537_vm14, %v3099_v1, 0.0 }
0x1f5d   :  { %v6894_v17 = vsel %vm3016_vm0, %v3136_v63, 0.0  ;;  %3142 = vrot.lane.b32.xlu2 %v3137_v12, %s6062_s19 }
0x1f5e   :  { %3153 = vrot.lane.b32.xlu0 %v6894_v17, %s6061_s21 }
0x1fb7   :  { %v3143_v53 = vpop.permute.xlu2 %3142 }
0x1fb8   :  { %3146 = vst.msk [vmem:[#allocation6 + $0x8] sm:$0x3] %vm2643_vm10, %v3143_v53 }
0x1fd0   :  { %v3154_v55 = vpop.permute.xlu0 %3153 }
0x1fd1   :  { %v3156_v58 = vsel %vm537_vm4, %v3143_v53, %v3154_v55 }
0x1fd2   :  { %v3157_v43 = vpack.c.bf16 %v3156_v58, %v3156_v58 }
0x1fd4   :  { %5117 = vmatmul.msk.bf16.vlgmr.msrb.gmra.mxu2 %vm675_vm7, %v3157_v43 }
0x2057   :  { %v3170_v37 = vpop.f32.mrf.mxu2 }
0x2058   :  { %v3175_v6 = vadd.f32 %v3174_v59, %v3170_v37  ;;  %v3177_v7 = vadd.f32 %v3176_v61, %v3170_v37  ;;  %v3140_v61 = vsel %vm3016_vm0, %v6884_v13, 0.0 }
0x205a   :  { %5490 = vtanh.f32 %v3175_v6  ;;  %v5119_v14 = vmul.f32 -1.442695, %v3177_v7  ;;  %v5118_v20 = vmul.f32 -1.442695, %v3175_v6 }
0x205b   :  { %5492 = vtanh.f32 %v3177_v7 }
0x205c   :  { %5494 = vpow2.f32 %v5119_v14 }
0x205f   :  { %v3172_v9 = vpop.f32.mrf.mxu2 }
0x2060   :  { %v5491_v50 = vpop.eup %5490 }
0x2061   :  { %v5493_v44 = vpop.eup %5492  ;;  %3200 = vrot.lane.b32.xlu1 %v5491_v50, %s6058_s14 }
0x2062   :  { %3237 = vrot.lane.b32.xlu2 %v5493_v44, %s6058_s14  ;;  %v5495_v11 = vpop.eup %5494  ;;  %v3138_v44 = vsel %vm7537_vm14, %v6882_v42, 0.0 }
0x2063   :  { %v3218_v3 = vadd.f32 1.0, %v5495_v11 }
0x2065   :  { %5496 = vrcp.f32 %v3218_v3  ;;  %v3230_v27 = vand.u32 2147483648, %v3218_v3  ;;  %vm3224_vm9 = vweird.f32 %v3218_v3  ;;  %v3228_v30 = vand.u32 2147483647, %v3218_v3 }
0x2066   :  { %5498 = vpow2.f32 %v5118_v20 }
0x2067   :  { %v3231_v35 = vor.u32 1.1754944e-38, %v3230_v27  ;;  %vm3229_vm12 = vcmp.eq.f32.partialorder %v3228_v30, 8.507059e+37 }
0x206b   :  { %v5497_v32 = vpop.eup %5496 }
0x206c   :  { %v3220_v40 = vmul.f32 %v5497_v32, %v3218_v3  ;;  %v5499_v22 = vpop.eup %5498  ;;  %vm3225_vm8 = vweird.f32 %v5497_v32 }
0x206d   :  { %v3181_v24 = vadd.f32 1.0, %v5499_v22  ;;  %vm3226_vm15 = vmor %vm3224_vm9, %vm3225_vm8 }
0x206e   :  { %v3221_v34 = vsub.f32 1.0, %v3220_v40 }
0x206f   :  { %5500 = vrcp.f32 %v3181_v24  ;;  %v3193_v12 = vand.u32 2147483648, %v3181_v24  ;;  %vm3187_vm3 = vweird.f32 %v3181_v24  ;;  %v3191_v53 = vand.u32 2147483647, %v3181_v24 }
0x2070   :  { %v3222_v23 = vmul.f32 %v5497_v32, %v3221_v34 }
0x2071   :  { %v3194_v58 = vor.u32 1.1754944e-38, %v3193_v12  ;;  %vm3192_vm8 = vcmp.eq.f32.partialorder %v3191_v53, 8.507059e+37 }
0x2072   :  { %v3223_v19 = vadd.f32 %v5497_v32, %v3222_v23 }
0x2074   :  { %v3227_v21 = vsel %vm3226_vm15, %v5497_v32, %v3223_v19 }
0x2075   :  { %v3232_v0 = vsel %vm3229_vm12, %v3231_v35, %v3227_v21  ;;  %v5501_v46 = vpop.eup %5500  ;;  %v3289_v21 = vld [vmem:[#allocation5 + $0xc] sm:$0x3]  ;;  %v3291_v35 = vld [vmem:[#allocation5 + $0x2] sm:$0x3] }
0x2076   :  { %v3183_v10 = vmul.f32 %v5501_v46, %v3181_v24  ;;  %vm3188_vm2 = vweird.f32 %v5501_v46  ;;  %v3235_v6 = vmul.f32 %v3232_v0, %v3140_v61 }
0x2077   :  { %vm3189_vm5 = vmor %vm3187_vm3, %vm3188_vm2 }
0x2078   :  { %v3184_v5 = vsub.f32 1.0, %v3183_v10 }
0x207a   :  { %v3185_v1 = vmul.f32 %v5501_v46, %v3184_v5 }
0x207c   :  { %v3186_v63 = vadd.f32 %v5501_v46, %v3185_v1 }
0x207e   :  { %v3190_v55 = vsel %vm3189_vm5, %v5501_v46, %v3186_v63 }
0x207f   :  { %v3195_v37 = vsel %vm3192_vm8, %v3194_v58, %v3190_v55 }
0x2080   :  { %v3198_v14 = vmul.f32 %v3195_v37, %v3138_v44 }
0x20bc   :  { %v3238_v38 = vpop.permute.xlu2 %3237 }
0x20bd   :  { %v3240_v39 = vmul.f32 %v3238_v38, %v3232_v0 }
0x20bf   :  { %3242 = vrot.lane.b32.xlu1 %v3240_v39, %s6060_s25 }
0x20d3   :  { %v3201_v43 = vpop.permute.xlu1 %3200 }
0x20d4   :  { %v3203_v59 = vmul.f32 %v3201_v43, %v3195_v37 }
0x20d6   :  { %3205 = vrot.lane.b32.xlu0 %v3203_v59, %s6060_s25 }
0x2131   :  { %v3243_v7 = vpop.permute.xlu1 %3242 }
0x2132   :  { %v6909_v9 = vadd.f32 %v3243_v7, %v3235_v6 }
0x2134   :  { %5502 = vtanh.f32 %v6909_v9 }
0x213a   :  { %v5503_v50 = vpop.eup %5502 }
0x213b   :  { %3248 = vrot.lane.b32.xlu0 %v5503_v50, %s6061_s21 }
0x2148   :  { %v3206_v11 = vpop.permute.xlu0 %3205 }
0x2149   :  { %v6916_v3 = vadd.f32 %v3206_v11, %v3198_v14 }
0x214b   :  { %5504 = vtanh.f32 %v6916_v3 }
0x2151   :  { %v5505_v13 = vpop.eup %5504 }
0x2152   :  { %3211 = vrot.lane.b32.xlu2 %v5505_v13, %s6061_s21 }
0x21ac   :  { %v3212_v32 = vpop.permute.xlu2 %3211 }
0x21ad   :  { %v3249_v20 = vpop.permute.xlu0 %3248  ;;  %v3214_v40 = vmul.f32 %v3212_v32, %v3195_v37 }
0x21ae   :  { %v3251_v34 = vmul.f32 %v3249_v20, %v3232_v0 }
0x21af   :  { %v3252_v22 = vsel %vm2894_vm11, %v3214_v40, 0.0 }
0x21b0   :  { %v6924_v23 = vsel %vm2887_vm6, %v3251_v34, 0.0  ;;  %3257 = vrot.lane.b32.xlu1 %v3252_v22, %s6062_s19 }
0x21b1   :  { %3268 = vrot.lane.b32.xlu2 %v6924_v23, %s6061_s21 }
0x220b   :  { %v3269_v42 = vpop.permute.xlu2 %3268 }
0x2222   :  { %v3258_v24 = vpop.permute.xlu1 %3257 }
0x2223   :  { %3261 = vst.msk [vmem:[#allocation6 + $0xa] sm:$0x3] %vm2643_vm10, %v3258_v24  ;;  %v3271_v19 = vsel %vm537_vm4, %v3258_v24, %v3269_v42 }
0x2224   :  { %v3272_v27 = vpack.c.bf16 %v3271_v19, %v3271_v19 }
0x2226   :  { %5120 = vmatmul.msk.bf16.vlgmr.msrb.gmra.mxu3 %vm675_vm7, %v3272_v27 }
0x22a9   :  { %v3285_v30 = vpop.f32.mrf.mxu3 }
0x22aa   :  { %v3290_v38 = vadd.f32 %v3289_v21, %v3285_v30  ;;  %v3292_v0 = vadd.f32 %v3291_v35, %v3285_v30 }
0x22ac   :  { %5506 = vtanh.f32 %v3290_v38  ;;  %v5121_v5 = vmul.f32 -1.442695, %v3290_v38  ;;  %v5122_v1 = vmul.f32 -1.442695, %v3292_v0  ;;  %v3253_v38 = vsel %vm2894_vm11, %v6916_v3, 0.0 }
0x22ad   :  { %5508 = vtanh.f32 %v3292_v0 }
0x22ae   :  { %5510 = vpow2.f32 %v5121_v5  ;;  %v3255_v5 = vsel %vm2887_vm6, %v6909_v9, 0.0 }
0x22af   :  { %5512 = vpow2.f32 %v5122_v1 }
0x22b1   :  { %v3287_v46 = vpop.f32.mrf.mxu3 }
0x22b2   :  { %v5507_v39 = vpop.eup %5506 }
0x22b3   :  { %v5509_v10 = vpop.eup %5508  ;;  %3315 = vrot.lane.b32.xlu0 %v5507_v39, %s6058_s14 }
0x22b4   :  { %3352 = vrot.lane.b32.xlu1 %v5509_v10, %s6058_s14  ;;  %v5511_v63 = vpop.eup %5510 }
0x22b5   :  { %v5513_v12 = vpop.eup %5512  ;;  %v3296_v53 = vadd.f32 1.0, %v5511_v63 }
0x22b6   :  { %v3333_v55 = vadd.f32 1.0, %v5513_v12 }
0x22b7   :  { %5514 = vrcp.f32 %v3296_v53  ;;  %v3308_v11 = vand.u32 2147483648, %v3296_v53  ;;  %vm3302_vm12 = vweird.f32 %v3296_v53  ;;  %v3306_v32 = vand.u32 2147483647, %v3296_v53 }
0x22b8   :  { %5516 = vrcp.f32 %v3333_v55  ;;  %v3345_v13 = vand.u32 2147483648, %v3333_v55  ;;  %vm3339_vm2 = vweird.f32 %v3333_v55  ;;  %v3343_v20 = vand.u32 2147483647, %v3333_v55 }
0x22b9   :  { %v3309_v22 = vor.u32 1.1754944e-38, %v3308_v11  ;;  %vm3307_vm8 = vcmp.eq.f32.partialorder %v3306_v32, 8.507059e+37 }
0x22ba   :  { %v3346_v42 = vor.u32 1.1754944e-38, %v3345_v13  ;;  %vm3344_vm14 = vcmp.eq.f32.partialorder %v3343_v20, 8.507059e+37 }
0x22bd   :  { %v5515_v58 = vpop.eup %5514 }
0x22be   :  { %v5517_v43 = vpop.eup %5516  ;;  %v3298_v37 = vmul.f32 %v5515_v58, %v3296_v53  ;;  %vm3303_vm9 = vweird.f32 %v5515_v58 }
0x22bf   :  { %v3335_v59 = vmul.f32 %v5517_v43, %v3333_v55  ;;  %vm3340_vm15 = vweird.f32 %v5517_v43  ;;  %vm3304_vm3 = vmor %vm3302_vm12, %vm3303_vm9 }
0x22c0   :  { %v3299_v61 = vsub.f32 1.0, %v3298_v37  ;;  %vm3341_vm5 = vmor %vm3339_vm2, %vm3340_vm15 }
0x22c1   :  { %v3336_v6 = vsub.f32 1.0, %v3335_v59 }
0x22c2   :  { %v3300_v7 = vmul.f32 %v5515_v58, %v3299_v61 }
0x22c3   :  { %v3337_v50 = vmul.f32 %v5517_v43, %v3336_v6 }
0x22c4   :  { %v3301_v44 = vadd.f32 %v5515_v58, %v3300_v7 }
0x22c5   :  { %v3338_v14 = vadd.f32 %v5517_v43, %v3337_v50 }
0x22c6   :  { %v3305_v40 = vsel %vm3304_vm3, %v5515_v58, %v3301_v44  ;;  %v3404_v44 = vld [vmem:[#allocation5 + $0xe] sm:$0x3] }
0x22c7   :  { %v3342_v34 = vsel %vm3341_vm5, %v5517_v43, %v3338_v14  ;;  %v3310_v19 = vsel %vm3307_vm8, %v3309_v22, %v3305_v40  ;;  %v3406_v14 = vld [vmem:[#allocation5] sm:$0x3] }
0x22c8   :  { %v3347_v30 = vsel %vm3344_vm14, %v3346_v42, %v3342_v34  ;;  %v3313_v0 = vmul.f32 %v3310_v19, %v3253_v38 }
0x22c9   :  { %v3350_v1 = vmul.f32 %v3347_v30, %v3255_v5 }
0x2325   :  { %v3316_v24 = vpop.permute.xlu0 %3315 }
0x2326   :  { %v3353_v27 = vpop.permute.xlu1 %3352  ;;  %v3318_v21 = vmul.f32 %v3316_v24, %v3310_v19 }
0x2327   :  { %v3355_v35 = vmul.f32 %v3353_v27, %v3347_v30 }
0x2328   :  { %3320 = vrot.lane.b32.xlu2 %v3318_v21, %s6060_s25 }
0x2329   :  { %3357 = vrot.lane.b32.xlu0 %v3355_v35, %s6060_s25 }
0x2382   :  { %v3321_v46 = vpop.permute.xlu2 %3320 }
0x2383   :  { %v6939_v39 = vadd.f32 %v3321_v46, %v3313_v0 }
0x2385   :  { %5518 = vtanh.f32 %v6939_v39 }
0x238b   :  { %v5519_v10 = vpop.eup %5518 }
0x238c   :  { %3326 = vrot.lane.b32.xlu1 %v5519_v10, %s6061_s21 }
0x239b   :  { %v3358_v63 = vpop.permute.xlu0 %3357 }
0x239c   :  { %v6946_v12 = vadd.f32 %v3358_v63, %v3350_v1 }
0x239e   :  { %5520 = vtanh.f32 %v6946_v12 }
0x23a4   :  { %v5521_v3 = vpop.eup %5520 }
0x23a5   :  { %3363 = vrot.lane.b32.xlu2 %v5521_v3, %s6061_s21 }
0x23fe   :  { %v3327_v53 = vpop.permute.xlu1 %3326 }
0x23ff   :  { %v3364_v55 = vpop.permute.xlu2 %3363  ;;  %v3329_v58 = vmul.f32 %v3327_v53, %v3310_v19 }
0x2400   :  { %v3366_v43 = vmul.f32 %v3364_v55, %v3347_v30 }
0x2401   :  { %v3367_v37 = vsel %vm2765_vm1, %v3329_v58, 0.0 }
0x2402   :  { %v6954_v59 = vsel %vm2758_vm13, %v3366_v43, 0.0  ;;  %3372 = vrot.lane.b32.xlu0 %v3367_v37, %s6062_s19 }
0x2403   :  { %3383 = vrot.lane.b32.xlu1 %v6954_v59, %s6061_s21 }
0x2474   :  { %v3373_v9 = vpop.permute.xlu0 %3372 }
0x2475   :  { %3376 = vst.msk [vmem:[#allocation6 + $0xc] sm:$0x3] %vm2643_vm10, %v3373_v9  ;;  %v3384_v61 = vpop.permute.xlu1 %3383 }
0x2476   :  { %v3386_v6 = vsel %vm537_vm4, %v3373_v9, %v3384_v61 }
0x2477   :  { %v3387_v7 = vpack.c.bf16 %v3386_v6, %v3386_v6 }
0x2479   :  { %5123 = vmatmul.msk.bf16.vlgmr.msra.gmra.mxu0 %vm675_vm7, %v3387_v7 }
0x24f6   :  { %v3400_v50 = vpop.f32.mrf.mxu0 }
0x24f7   :  { %v3405_v11 = vadd.f32 %v3404_v44, %v3400_v50  ;;  %v3407_v13 = vadd.f32 %v3406_v14, %v3400_v50 }
0x24f9   :  { %5522 = vtanh.f32 %v3405_v11  ;;  %v5125_v34 = vmul.f32 -1.442695, %v3407_v13  ;;  %v5124_v19 = vmul.f32 -1.442695, %v3405_v11 }
0x24fa   :  { %5524 = vtanh.f32 %v3407_v13  ;;  %v3370_v13 = vsel %vm2758_vm13, %v6946_v12, 0.0 }
0x24fb   :  { %5526 = vpow2.f32 %v5125_v34 }
0x24fe   :  { %v3402_v32 = vpop.f32.mrf.mxu0 }
0x24ff   :  { %v5523_v20 = vpop.eup %5522 }
0x2500   :  { %v5525_v40 = vpop.eup %5524  ;;  %3430 = vrot.lane.b32.xlu0 %v5523_v20, %s6058_s14 }
0x2501   :  { %3467 = vrot.lane.b32.xlu2 %v5525_v40, %s6058_s14  ;;  %v5527_v22 = vpop.eup %5526 }
0x2502   :  { %v3448_v42 = vadd.f32 1.0, %v5527_v22 }
0x2504   :  { %5528 = vrcp.f32 %v3448_v42  ;;  %v3460_v46 = vand.u32 2147483648, %v3448_v42  ;;  %vm3454_vm9 = vweird.f32 %v3448_v42  ;;  %v3458_v10 = vand.u32 2147483647, %v3448_v42 }
0x2505   :  { %5530 = vpow2.f32 %v5124_v19 }
0x2506   :  { %v3461_v1 = vor.u32 1.1754944e-38, %v3460_v46  ;;  %vm3459_vm12 = vcmp.eq.f32.partialorder %v3458_v10, 8.507059e+37 }
0x250a   :  { %v5529_v24 = vpop.eup %5528 }
0x250b   :  { %v3450_v27 = vmul.f32 %v5529_v24, %v3448_v42  ;;  %v5531_v21 = vpop.eup %5530  ;;  %vm3455_vm14 = vweird.f32 %v5529_v24 }
0x250c   :  { %v3411_v38 = vadd.f32 1.0, %v5531_v21  ;;  %vm3456_vm15 = vmor %vm3454_vm9, %vm3455_vm14  ;;  %vm7580_vm14 = vcmp.eq.s32.totalorder %v6733_v62, 1  ;;  %vm7581_vm9 = vcmp.eq.s32.totalorder %v6726_v57, 1 }
0x250d   :  { %v3451_v30 = vsub.f32 1.0, %v3450_v27 }
0x250e   :  { %5532 = vrcp.f32 %v3411_v38  ;;  %v3423_v61 = vand.u32 2147483648, %v3411_v38  ;;  %vm3417_vm3 = vweird.f32 %v3411_v38  ;;  %v3421_v6 = vand.u32 2147483647, %v3411_v38 }
0x250f   :  { %v3452_v35 = vmul.f32 %v5529_v24, %v3451_v30 }
0x2510   :  { %v3424_v50 = vor.u32 1.1754944e-38, %v3423_v61  ;;  %vm3422_vm8 = vcmp.eq.f32.partialorder %v3421_v6, 8.507059e+37  ;;  %v3499_v61 = vld [vmem:[#allocation6 + $0x8] sm:$0x3]  ;;  %v3500_v6 = vld [vmem:[#allocation6 + $0xa] sm:$0x3] }
0x2511   :  { %v3453_v0 = vadd.f32 %v5529_v24, %v3452_v35 }
0x2513   :  { %v3457_v5 = vsel %vm3456_vm15, %v5529_v24, %v3453_v0 }
0x2514   :  { %v3462_v3 = vsel %vm3459_vm12, %v3461_v1, %v3457_v5  ;;  %v5533_v53 = vpop.eup %5532 }
0x2515   :  { %v3413_v58 = vmul.f32 %v5533_v53, %v3411_v38  ;;  %vm3418_vm2 = vweird.f32 %v5533_v53  ;;  %v3465_v20 = vmul.f32 %v3462_v3, %v3370_v13 }
0x2516   :  { %vm3419_vm5 = vmor %vm3417_vm3, %vm3418_vm2 }
0x2517   :  { %v3414_v43 = vsub.f32 1.0, %v3413_v58 }
0x2519   :  { %v3415_v37 = vmul.f32 %v5533_v53, %v3414_v43 }
0x251b   :  { %v3416_v9 = vadd.f32 %v5533_v53, %v3415_v37 }
0x251d   :  { %v3420_v7 = vsel %vm3419_vm5, %v5533_v53, %v3416_v9 }
0x251e   :  { %v3425_v14 = vsel %vm3422_vm8, %v3424_v50, %v3420_v7 }
0x255b   :  { %v3468_v63 = vpop.permute.xlu2 %3467 }
0x255c   :  { %v3470_v55 = vmul.f32 %v3468_v63, %v3462_v3 }
0x255e   :  { %3472 = vrot.lane.b32.xlu1 %v3470_v55, %s6060_s25 }
0x2566   :  { %2904 = vrot.lane.b32.xlu1 %v6825_v36, %s6060_s25  ;;  %v3368_v36 = vsel %vm2765_vm1, %v6939_v39, 0.0 }
0x2567   :  { %v3428_v32 = vmul.f32 %v3425_v14, %v3368_v36 }
0x2572   :  { %v3431_v44 = vpop.permute.xlu0 %3430 }
0x2573   :  { %v3433_v11 = vmul.f32 %v3431_v44, %v3425_v14 }
0x2575   :  { %3435 = vrot.lane.b32.xlu2 %v3433_v11, %s6060_s25 }
0x257d   :  { %2646 = vrot.lane.b32.xlu2 %v6738_v4, %s6060_s25 }
0x2585   :  { %3033 = vrot.lane.b32.xlu2 %v6865_v47, %s6060_s25 }
0x258d   :  { %3378 = vrot.lane.b32.xlu2 %v6954_v59, %s6060_s25 }
0x25cf   :  { %v3436_v40 = vpop.permute.xlu2 %3435 }
0x25d0   :  { %v3473_v34 = vpop.permute.xlu1 %3472  ;;  %v3438_v22 = vadd.f32 %v3436_v40, %v3428_v32 }
0x25d1   :  { %v3475_v4 = vadd.f32 %v3473_v34, %v3465_v20 }
0x25d2   :  { %5534 = vtanh.f32 %v3438_v22  ;;  %v3497_v22 = vld [vmem:[#allocation6 + $0x4] sm:$0x3] }
0x25d3   :  { %5536 = vtanh.f32 %v3475_v4  ;;  %v3498_v4 = vld [vmem:[#allocation6 + $0x6] sm:$0x3] }
0x25d7   :  { %v2647_v47 = vpop.permute.xlu2 %2646 }
0x25d8   :  { %v5535_v42 = vpop.eup %5534  ;;  %v2905_v24 = vpop.permute.xlu1 %2904  ;;  %2650 = vst.msk [vmem:[#allocation7 + $0xe] sm:$0x3] %vm2643_vm10, %v2647_v47 }
0x25d9   :  { %v5537_v59 = vpop.eup %5536  ;;  %2908 = vst.msk [vmem:[#allocation7 + $0xa] sm:$0x3] %vm2643_vm10, %v2905_v24  ;;  %3441 = vrot.lane.b32.xlu1 %v5535_v42, %s6061_s21 }
0x25da   :  { %3478 = vrot.lane.b32.xlu0 %v5537_v59, %s6061_s21 }
0x25df   :  { %v3034_v39 = vpop.permute.xlu2 %3033  ;;  %v3510_v13 = vld [vmem:[#allocation7 + $0xe] sm:$0x3] }
0x25e0   :  { %3037 = vst.msk [vmem:[#allocation7 + $0x8] sm:$0x3] %vm2643_vm10, %v3034_v39  ;;  %v5195_v39 = vld [vmem:[#allocation21 + $0x8] sm:$0xff] }
0x25e1   :  { %3263 = vrot.lane.b32.xlu1 %v6924_v23, %s6060_s25  ;;  %3629 = vmatpush.bf16.msra.mxu1 %v5195_v39 }
0x25e2   :  { %2775 = vrot.lane.b32.xlu0 %v6785_v26, %s6060_s25 }
0x25e7   :  { %v3379_v12 = vpop.permute.xlu2 %3378  ;;  %v3507_v26 = vld [vmem:[#allocation7 + $0x8] sm:$0x3] }
0x25e8   :  { %3382 = vst.msk [vmem:[#allocation7 + $0x2] sm:$0x3] %vm2643_vm10, %v3379_v12  ;;  %v5194_v12 = vld [vmem:[#allocation21] sm:$0xff] }
0x25e9   :  { %3630 = vmatpush.bf16.msra.mxu1 %v5194_v12 }
0x25ea   :  { %3148 = vrot.lane.b32.xlu0 %v6894_v17, %s6060_s25  ;;  %v3508_v17 = vld [vmem:[#allocation7 + $0xa] sm:$0x3] }
0x25eb   :  { %v5238_v46 = vpack.i.bf16 %v3508_v17, %v3507_v26  ;;  %v3496_v26 = vld [vmem:[#allocation6 + $0x2] sm:$0x3] }
0x25ef   :  { %v3504_v9 = vld [vmem:[#allocation7 + $0x2] sm:$0x3] }
0x264b   :  { %v3442_v19 = vpop.permute.xlu1 %3441 }
0x264c   :  { %v3479_v27 = vpop.permute.xlu0 %3478  ;;  %v3444_v30 = vmul.f32 %v3442_v19, %v3425_v14  ;;  %v5197_v19 = vld [vmem:[#allocation22 + $0x8] sm:$0xff] }
0x264d   :  { %v3481_v21 = vmul.f32 %v3479_v27, %v3462_v3  ;;  %3681 = vmatpush.bf16.msra.mxu2 %v5197_v19  ;;  %3794 = vmatpush.bf16.msra.mxu3 %v5197_v19  ;;  %v5196_v27 = vld [vmem:[#allocation22] sm:$0xff] }
0x264e   :  { %v3482_v35 = vsel %vm7580_vm14, %v3444_v30, 0.0  ;;  %3907 = vmatpush.bf16.msrb.mxu0 %v5197_v19  ;;  %4020 = vmatpush.bf16.msrb.mxu1 %v5197_v19 }
0x264f   :  { %v3483_v38 = vsel %vm7581_vm9, %v3481_v21, 0.0  ;;  %3485 = vrot.lane.b32.xlu1 %v3482_v35, %s6062_s19 }
0x2650   :  { %3491 = vrot.lane.b32.xlu0 %v3483_v38, %s6060_s25  ;;  %v3495_v38 = vld [vmem:[#allocation6] sm:$0x3] }
0x2651   :  { %3682 = vmatpush.bf16.msra.mxu2 %v5196_v27  ;;  %3795 = vmatpush.bf16.msra.mxu3 %v5196_v27 }
0x2652   :  { %3908 = vmatpush.bf16.msrb.mxu0 %v5196_v27  ;;  %4021 = vmatpush.bf16.msrb.mxu1 %v5196_v27 }
0x2653   :  { %v3264_v23 = vpop.permute.xlu1 %3263 }
0x2654   :  { %v2776_v0 = vpop.permute.xlu0 %2775  ;;  %3267 = vst.msk [vmem:[#allocation7 + $0x4] sm:$0x3] %vm2643_vm10, %v3264_v23  ;;  %3683 = vmatmul.bf16.vlgmr.msra.gmra.mxu2 %v6057_v48 }
0x2655   :  { %2779 = vst.msk [vmem:[#allocation7 + $0xc] sm:$0x3] %vm2643_vm10, %v2776_v0  ;;  %4133 = vmatpush.bf16.msrb.mxu2 %v5197_v19  ;;  %4246 = vmatpush.bf16.msrb.mxu3 %v5197_v19 }
0x2656   :  { %4359 = vmatpush.bf16.msra.mxu0 %v5197_v19 }
0x2657   :  { %5239 = vrot.lane.b32.xlu1 %v5238_v46, %s6060_s25 }
0x2659   :  { %4134 = vmatpush.bf16.msrb.mxu2 %v5196_v27  ;;  %4247 = vmatpush.bf16.msrb.mxu3 %v5196_v27 }
0x265a   :  { %4360 = vmatpush.bf16.msra.mxu0 %v5196_v27 }
0x265b   :  { %v3505_v5 = vld [vmem:[#allocation7 + $0x4] sm:$0x3] }
0x265c   :  { %v3149_v10 = vpop.permute.xlu0 %3148  ;;  %v3509_v36 = vld [vmem:[#allocation7 + $0xc] sm:$0x3] }
0x265d   :  { %3152 = vst.msk [vmem:[#allocation7 + $0x6] sm:$0x3] %vm2643_vm10, %v3149_v10  ;;  %v5248_v32 = vpack.i.bf16 %v3510_v13, %v3509_v36 }
0x2664   :  { %v3506_v1 = vld [vmem:[#allocation7 + $0x6] sm:$0x3] }
0x2665   :  { %v5233_v63 = vpack.i.bf16 %v3506_v1, %v3505_v5  ;;  %v3501_v1 = vld [vmem:[#allocation6 + $0xc] sm:$0x3] }
0x2667   :  { %5234 = vrot.lane.b32.xlu0 %v5233_v63, %s6060_s25 }
0x26c1   :  { %v3486_v3 = vpop.permute.xlu1 %3485 }
0x26c2   :  { %v3492_v53 = vpop.permute.xlu0 %3491  ;;  %3489 = vst.msk [vmem:[#allocation6 + $0xe] sm:$0x3] %vm2643_vm10, %v3486_v3 }
0x26c3   :  { %3494 = vst.msk [vmem:[#allocation7] sm:$0x3] %vm2643_vm10, %v3492_v53 }
0x26c9   :  { %v5240_v55 = vpop.permute.xlu1 %5239  ;;  %v3502_v63 = vld [vmem:[#allocation6 + $0xe] sm:$0x3] }
0x26ca   :  { %v5242_v58 = vunpack.i.h.bf16 %v5240_v55  ;;  %v5241_v43 = vunpack.i.l.bf16 %v5240_v55  ;;  %v3503_v37 = vld [vmem:[#allocation7] sm:$0x3] }
0x26cb   :  { %v5243_v7 = vpack.i.bf16 %v3504_v9, %v3503_v37 }
0x26cc   :  { %v3548_v50 = vsel %vm537_vm4, %v3500_v6, %v5242_v58  ;;  %v3547_v44 = vsel %vm537_vm4, %v3499_v61, %v5241_v43  ;;  %v5270_v43 = vld [vmem:[#allocation24] ss:$0 sm:$0xff] }
0x26cd   :  { %v3556_v14 = vpack.c.bf16 %v3548_v50, %v3548_v50  ;;  %v3555_v11 = vpack.c.bf16 %v3547_v44, %v3547_v44  ;;  %5244 = vrot.lane.b32.xlu2 %v5243_v7, %s6060_s25 }
0x26cf   :  { %3579 = vst [vmem:[#allocation1 + $0x4] ss:$9 sm:$0xff] %v3555_v11 }
0x26d0   :  { %3582 = vst [vmem:[#allocation1 + $0x5] ss:$9 sm:$0xff] %v3556_v14 }
0x26d5   :  { %5249 = vrot.lane.b32.xlu2 %v5248_v32, %s6060_s25 }
0x26d7   :  { %v3684_v9 = vpop.f32.mrf.mxu2 }
0x26d9   :  { %v5235_v20 = vpop.permute.xlu0 %5234 }
0x26da   :  { %v5237_v40 = vunpack.i.h.bf16 %v5235_v20  ;;  %v5236_v34 = vunpack.i.l.bf16 %v5235_v20 }
0x26dc   :  { %v3546_v47 = vsel %vm537_vm4, %v3498_v4, %v5237_v40  ;;  %v3545_v42 = vsel %vm537_vm4, %v3497_v22, %v5236_v34 }
0x26dd   :  { %v3554_v24 = vpack.c.bf16 %v3546_v47, %v3546_v47  ;;  %v3553_v59 = vpack.c.bf16 %v3545_v42, %v3545_v42 }
0x26df   :  { %3573 = vst [vmem:[#allocation1 + $0x2] ss:$9 sm:$0xff] %v3553_v59  ;;  %v3686_v61 = vpop.f32.mrf.mxu2 }
0x26e0   :  { %3576 = vst [vmem:[#allocation1 + $0x3] ss:$9 sm:$0xff] %v3554_v24 }
0x2727   :  { %v5245_v30 = vpop.permute.xlu2 %5244 }
0x2728   :  { %v5247_v21 = vunpack.i.h.bf16 %v5245_v30  ;;  %v5246_v35 = vunpack.i.l.bf16 %v5245_v30 }
0x272a   :  { %v3544_v23 = vsel %vm537_vm4, %v3496_v26, %v5247_v21  ;;  %v3543_v0 = vsel %vm537_vm4, %v3495_v38, %v5246_v35 }
0x272b   :  { %v3552_v17 = vpack.c.bf16 %v3544_v23, %v3544_v23  ;;  %v3551_v46 = vpack.c.bf16 %v3543_v0, %v3543_v0 }
0x272d   :  { %3567 = vst [vmem:[#allocation1] ss:$9 sm:$0xff] %v3551_v46 }
0x272e   :  { %3570 = vst [vmem:[#allocation1 + $0x1] ss:$9 sm:$0xff] %v3552_v17 }
0x272f   :  { %v5250_v10 = vpop.permute.xlu2 %5249 }
0x2730   :  { %v5252_v5 = vunpack.i.h.bf16 %v5250_v10  ;;  %v5251_v48 = vunpack.i.l.bf16 %v5250_v10 }
0x2732   :  { %v3549_v3 = vsel %vm537_vm4, %v3501_v1, %v5251_v48  ;;  %v3550_v53 = vsel %vm537_vm4, %v3502_v63, %v5252_v5 }
0x2733   :  { %v3557_v55 = vpack.c.bf16 %v3549_v3, %v3549_v3  ;;  %v3558_v58 = vpack.c.bf16 %v3550_v53, %v3550_v53 }
0x2735   :  { %3585 = vst [vmem:[#allocation1 + $0x6] ss:$9 sm:$0xff] %v3557_v55 }
0x2736   :  { %3588 = vst [vmem:[#allocation1 + $0x7] ss:$9 sm:$0xff] %v3558_v58 }
0x2737   :  { %3610 = vst [vmem:[#allocation1 + $0x20] ss:$4 sm:$0xff] %v5270_v43 }
0x2738   :  { %3612 = vst [vmem:[#allocation1 + $0x21] ss:$4 sm:$0xff] %v5270_v43 }
0x2739   :  { %3614 = vst [vmem:[#allocation1 + $0x22] ss:$4 sm:$0xff] %v5270_v43 }
0x273a   :  { %3616 = vst [vmem:[#allocation1 + $0x23] ss:$4 sm:$0xff] %v5270_v43 }
0x273d   :  { %v3589_v37 = vld [vmem:[#allocation1] sm:$0xff] }
0x273e   :  { %5134 = vmatmul.msk.bf16.vlgmr.msra.gmra.mxu1 %vm675_vm7, %v3589_v37  ;;  %3602 = vst [vmem:[#allocation1] ss:$4 sm:$0xff] %v5270_v43 }
0x273f   :  { %3604 = vst [vmem:[#allocation1 + $0x1] ss:$4 sm:$0xff] %v5270_v43  ;;  %4472 = vmatpush.bf16.msra.mxu1 %v5197_v19 }
0x2740   :  { %3606 = vst [vmem:[#allocation1 + $0x2] ss:$4 sm:$0xff] %v5270_v43 }
0x2741   :  { %3608 = vst [vmem:[#allocation1 + $0x3] ss:$4 sm:$0xff] %v5270_v43  ;;  %v3618_v36 = vld.sshfl [vmem:[#allocation1 + $0x20] sm:$0xff pattern:$0x73625140] }
0x2743   :  { %4473 = vmatpush.bf16.msra.mxu1 %v5196_v27 }
0x2748   :  { %v3617_v6 = vld.sshfl [vmem:[#allocation1] sm:$0xff pattern:$0x73625140] }
0x27bb   :  { %v3632_v7 = vpop.f32.mrf.mxu1 }
0x27bc   :  { %v3633_v50 = vadd.f32 %v3632_v7, %v3617_v6 }
0x27be   :  { %v3639_v44 = vrot.slane %v3633_v50, 2  ;;  %v3640_v14 = vrot.slane %v3633_v50, 4  ;;  %v3641_v11 = vrot.slane %v3633_v50, 6  ;;  %3651 = vst [vmem:[#allocation5] sm:$0x3] %v3633_v50 }
0x27c0   :  { %3652 = vst [vmem:[#allocation5 + $0x2] sm:$0x3] %v3639_v44 }
0x27c1   :  { %3653 = vst [vmem:[#allocation5 + $0x4] sm:$0x3] %v3640_v14 }
0x27c2   :  { %3654 = vst [vmem:[#allocation5 + $0x6] sm:$0x3] %v3641_v11 }
0x27c3   :  { %v3634_v13 = vpop.f32.mrf.mxu1 }
0x27c4   :  { %v3635_v32 = vadd.f32 %v3634_v13, %v3618_v36 }
0x27c5   :  { %v3688_v20 = vld [vmem:[#allocation5] sm:$0x3] }
0x27c6   :  { %v3642_v40 = vrot.slane %v3635_v32, 2  ;;  %v3643_v34 = vrot.slane %v3635_v32, 4  ;;  %v3644_v22 = vrot.slane %v3635_v32, 6  ;;  %3655 = vst [vmem:[#allocation5 + $0x8] sm:$0x3] %v3635_v32  ;;  %v3689_v4 = vadd.f32 %v3688_v20, %v3684_v9 }
0x27c8   :  { %3656 = vst [vmem:[#allocation5 + $0xa] sm:$0x3] %v3642_v40  ;;  %5538 = vtanh.f32 %v3689_v4  ;;  %v5143_v39 = vmul.f32 -1.442695, %v3689_v4 }
0x27c9   :  { %3657 = vst [vmem:[#allocation5 + $0xc] sm:$0x3] %v3643_v34 }
0x27ca   :  { %3658 = vst [vmem:[#allocation5 + $0xe] sm:$0x3] %v3644_v22 }
0x27ce   :  { %v5539_v47 = vpop.eup %5538 }
0x27cf   :  { %3714 = vrot.lane.b32.xlu0 %v5539_v47, %s6058_s14 }
0x27d1   :  { %v3690_v42 = vld [vmem:[#allocation5 + $0xe] sm:$0x3] }
0x27d2   :  { %v3691_v24 = vadd.f32 %v3690_v42, %v3684_v9 }
0x27d4   :  { %5540 = vtanh.f32 %v3691_v24  ;;  %v5144_v19 = vmul.f32 -1.442695, %v3691_v24 }
0x27d5   :  { %5542 = vpow2.f32 %v5143_v39 }
0x27d6   :  { %5544 = vpow2.f32 %v5144_v19 }
0x27da   :  { %v5541_v59 = vpop.eup %5540 }
0x27db   :  { %3751 = vrot.lane.b32.xlu1 %v5541_v59, %s6058_s14  ;;  %v5543_v12 = vpop.eup %5542 }
0x27dc   :  { %v3695_v27 = vadd.f32 1.0, %v5543_v12  ;;  %v5545_v30 = vpop.eup %5544 }
0x27dd   :  { %v3732_v35 = vadd.f32 1.0, %v5545_v30 }
0x27de   :  { %5546 = vrcp.f32 %v3695_v27  ;;  %v3707_v10 = vand.u32 2147483648, %v3695_v27  ;;  %vm3701_vm12 = vweird.f32 %v3695_v27  ;;  %v3705_v5 = vand.u32 2147483647, %v3695_v27 }
0x27df   :  { %5548 = vrcp.f32 %v3732_v35  ;;  %v3744_v37 = vand.u32 2147483648, %v3732_v35  ;;  %vm3738_vm8 = vweird.f32 %v3732_v35  ;;  %v3742_v9 = vand.u32 2147483647, %v3732_v35 }
0x27e0   :  { %v3708_v63 = vor.u32 1.1754944e-38, %v3707_v10  ;;  %vm3706_vm3 = vcmp.eq.f32.partialorder %v3705_v5, 8.507059e+37 }
0x27e1   :  { %v3745_v6 = vor.u32 1.1754944e-38, %v3744_v37  ;;  %vm3743_vm9 = vcmp.eq.f32.partialorder %v3742_v9, 8.507059e+37 }
0x27e4   :  { %v5547_v21 = vpop.eup %5546 }
0x27e5   :  { %v3697_v38 = vmul.f32 %v5547_v21, %v3695_v27  ;;  %v5549_v0 = vpop.eup %5548  ;;  %vm3702_vm15 = vweird.f32 %v5547_v21 }
0x27e6   :  { %v3734_v46 = vmul.f32 %v5549_v0, %v3732_v35  ;;  %vm3703_vm2 = vmor %vm3701_vm12, %vm3702_vm15  ;;  %vm3739_vm5 = vweird.f32 %v5549_v0  ;;  %vm7582_vm15 = vcmp.eq.s32.totalorder %v6726_v57, 1  ;;  %vm7583_vm12 = vcmp.eq.s32.totalorder %v6733_v62, 1  ;;  %v3803_v35 = vld [vmem:[#allocation5 + $0xc] sm:$0x3] }
0x27e7   :  { %v3698_v26 = vsub.f32 1.0, %v3697_v38  ;;  %vm3740_vm14 = vmor %vm3738_vm8, %vm3739_vm5 }
0x27e8   :  { %v3735_v1 = vsub.f32 1.0, %v3734_v46 }
0x27e9   :  { %v3699_v23 = vmul.f32 %v5547_v21, %v3698_v26 }
0x27ea   :  { %v3736_v58 = vmul.f32 %v5549_v0, %v3735_v1 }
0x27eb   :  { %v3700_v17 = vadd.f32 %v5547_v21, %v3699_v23 }
0x27ec   :  { %v3737_v43 = vadd.f32 %v5549_v0, %v3736_v58 }
0x27ed   :  { %v3704_v48 = vsel %vm3703_vm2, %v5547_v21, %v3700_v17  ;;  %v3801_v21 = vld [vmem:[#allocation5 + $0x2] sm:$0x3] }
0x27ee   :  { %v3709_v53 = vsel %vm3706_vm3, %v3708_v63, %v3704_v48  ;;  %v3741_v61 = vsel %vm3740_vm14, %v5549_v0, %v3737_v43 }
0x27ef   :  { %v3746_v50 = vsel %vm3743_vm9, %v3745_v6, %v3741_v61  ;;  %v3712_v14 = vmul.f32 0.0, %v3709_v53 }
0x27f0   :  { %v3749_v32 = vmul.f32 0.0, %v3746_v50 }
0x2841   :  { %v3715_v3 = vpop.permute.xlu0 %3714 }
0x2842   :  { %v3717_v55 = vmul.f32 %v3715_v3, %v3709_v53 }
0x2844   :  { %3719 = vrot.lane.b32.xlu2 %v3717_v55, %s6060_s25 }
0x284d   :  { %v3752_v7 = vpop.permute.xlu1 %3751 }
0x284e   :  { %v3754_v44 = vmul.f32 %v3752_v7, %v3746_v50 }
0x2850   :  { %3756 = vrot.lane.b32.xlu0 %v3754_v44, %s6060_s25 }
0x289e   :  { %v3720_v11 = vpop.permute.xlu2 %3719 }
0x289f   :  { %v7021_v36 = vadd.f32 %v3720_v11, %v3712_v14 }
0x28a1   :  { %5550 = vtanh.f32 %v7021_v36 }
0x28a7   :  { %v5551_v13 = vpop.eup %5550 }
0x28a8   :  { %3725 = vrot.lane.b32.xlu1 %v5551_v13, %s6061_s21 }
0x28c2   :  { %v3757_v20 = vpop.permute.xlu0 %3756 }
0x28c3   :  { %v7025_v40 = vadd.f32 %v3757_v20, %v3749_v32 }
0x28c5   :  { %5552 = vtanh.f32 %v7025_v40 }
0x28cb   :  { %v5553_v34 = vpop.eup %5552 }
0x28cc   :  { %3762 = vrot.lane.b32.xlu2 %v5553_v34, %s6061_s21 }
0x291a   :  { %v3726_v22 = vpop.permute.xlu1 %3725 }
0x291b   :  { %v3728_v4 = vmul.f32 %v3726_v22, %v3709_v53 }
0x291d   :  { %v3766_v47 = vsel %vm7582_vm15, %v3728_v4, 0.0 }
0x291e   :  { %3771 = vrot.lane.b32.xlu0 %v3766_v47, %s6062_s19 }
0x2926   :  { %v3763_v42 = vpop.permute.xlu2 %3762 }
0x2927   :  { %v3765_v24 = vmul.f32 %v3763_v42, %v3746_v50 }
0x2929   :  { %v7034_v59 = vsel %vm7583_vm12, %v3765_v24, 0.0 }
0x292a   :  { %3780 = vrot.lane.b32.xlu1 %v7034_v59, %s6061_s21 }
0x2990   :  { %v3772_v39 = vpop.permute.xlu0 %3771 }
0x2991   :  { %3774 = vst.msk [vmem:[#allocation6] sm:$0x3] %vm2643_vm10, %v3772_v39 }
0x299c   :  { %v3781_v12 = vpop.permute.xlu1 %3780 }
0x299d   :  { %v3783_v19 = vsel %vm537_vm4, %v3772_v39, %v3781_v12 }
0x299e   :  { %v3784_v27 = vpack.c.bf16 %v3783_v19, %v3783_v19 }
0x29a0   :  { %5145 = vmatmul.msk.bf16.vlgmr.msra.gmra.mxu3 %vm675_vm7, %v3784_v27 }
0x2a23   :  { %v3797_v30 = vpop.f32.mrf.mxu3 }
0x2a24   :  { %v3802_v38 = vadd.f32 %v3801_v21, %v3797_v30  ;;  %v3804_v26 = vadd.f32 %v3803_v35, %v3797_v30 }
0x2a26   :  { %5554 = vtanh.f32 %v3802_v38  ;;  %v5146_v46 = vmul.f32 -1.442695, %v3802_v38  ;;  %v5147_v1 = vmul.f32 -1.442695, %v3804_v26 }
0x2a27   :  { %5556 = vtanh.f32 %v3804_v26 }
0x2a28   :  { %5558 = vpow2.f32 %v5146_v46 }
0x2a2b   :  { %v3799_v23 = vpop.f32.mrf.mxu3 }
0x2a2c   :  { %v5555_v0 = vpop.eup %5554 }
0x2a2d   :  { %v5557_v17 = vpop.eup %5556  ;;  %3827 = vrot.lane.b32.xlu2 %v5555_v0, %s6058_s14 }
0x2a2e   :  { %3864 = vrot.lane.b32.xlu0 %v5557_v17, %s6058_s14  ;;  %v5559_v10 = vpop.eup %5558 }
0x2a2f   :  { %v3808_v5 = vadd.f32 1.0, %v5559_v10 }
0x2a31   :  { %5560 = vrcp.f32 %v3808_v5  ;;  %v3820_v37 = vand.u32 2147483648, %v3808_v5  ;;  %vm3814_vm3 = vweird.f32 %v3808_v5  ;;  %v3818_v9 = vand.u32 2147483647, %v3808_v5 }
0x2a32   :  { %5562 = vpow2.f32 %v5147_v1 }
0x2a33   :  { %v3821_v6 = vor.u32 1.1754944e-38, %v3820_v37  ;;  %vm3819_vm8 = vcmp.eq.f32.partialorder %v3818_v9, 8.507059e+37 }
0x2a37   :  { %v5561_v48 = vpop.eup %5560 }
0x2a38   :  { %v3810_v63 = vmul.f32 %v5561_v48, %v3808_v5  ;;  %v5563_v55 = vpop.eup %5562  ;;  %vm3815_vm2 = vweird.f32 %v5561_v48 }
0x2a39   :  { %v3845_v58 = vadd.f32 1.0, %v5563_v55  ;;  %vm3816_vm5 = vmor %vm3814_vm3, %vm3815_vm2  ;;  %vm7584_vm2 = vcmp.eq.s32.totalorder %v6726_v57, 1  ;;  %vm7585_vm3 = vcmp.eq.s32.totalorder %v6733_v62, 1  ;;  %v3914_v55 = vld [vmem:[#allocation5 + $0x4] sm:$0x3] }
0x2a3a   :  { %v3811_v3 = vsub.f32 1.0, %v3810_v63  ;;  %v3767_v12 = vsel %vm7584_vm2, %v7021_v36, 0.0  ;;  %v3769_v19 = vsel %vm7585_vm3, %v7025_v40, 0.0 }
0x2a3b   :  { %5564 = vrcp.f32 %v3845_v58  ;;  %v3857_v34 = vand.u32 2147483648, %v3845_v58  ;;  %vm3851_vm9 = vweird.f32 %v3845_v58  ;;  %v3855_v22 = vand.u32 2147483647, %v3845_v58 }
0x2a3c   :  { %v3812_v53 = vmul.f32 %v5561_v48, %v3811_v3 }
0x2a3d   :  { %v3858_v47 = vor.u32 1.1754944e-38, %v3857_v34  ;;  %vm3856_vm12 = vcmp.eq.f32.partialorder %v3855_v22, 8.507059e+37 }
0x2a3e   :  { %v3813_v43 = vadd.f32 %v5561_v48, %v3812_v53 }
0x2a40   :  { %v3817_v61 = vsel %vm3816_vm5, %v5561_v48, %v3813_v43 }
0x2a41   :  { %v3822_v50 = vsel %vm3819_vm8, %v3821_v6, %v3817_v61  ;;  %v5565_v14 = vpop.eup %5564 }
0x2a42   :  { %v3847_v11 = vmul.f32 %v5565_v14, %v3845_v58  ;;  %vm3852_vm14 = vweird.f32 %v5565_v14  ;;  %v3825_v27 = vmul.f32 %v3822_v50, %v3767_v12  ;;  %v3916_v58 = vld [vmem:[#allocation5 + $0xa] sm:$0x3] }
0x2a43   :  { %vm3853_vm15 = vmor %vm3851_vm9, %vm3852_vm14 }
0x2a44   :  { %v3848_v13 = vsub.f32 1.0, %v3847_v11 }
0x2a46   :  { %v3849_v32 = vmul.f32 %v5565_v14, %v3848_v13 }
0x2a48   :  { %v3850_v20 = vadd.f32 %v5565_v14, %v3849_v32 }
0x2a4a   :  { %v3854_v4 = vsel %vm3853_vm15, %v5565_v14, %v3850_v20 }
0x2a4b   :  { %v3859_v24 = vsel %vm3856_vm12, %v3858_v47, %v3854_v4 }
0x2a4c   :  { %v3862_v30 = vmul.f32 %v3859_v24, %v3769_v19 }
0x2a87   :  { %v3828_v7 = vpop.permute.xlu2 %3827 }
0x2a88   :  { %v3830_v44 = vmul.f32 %v3828_v7, %v3822_v50 }
0x2a8a   :  { %3832 = vrot.lane.b32.xlu1 %v3830_v44, %s6060_s25 }
0x2aa0   :  { %v3865_v42 = vpop.permute.xlu0 %3864 }
0x2aa1   :  { %v3867_v39 = vmul.f32 %v3865_v42, %v3859_v24 }
0x2aa3   :  { %3869 = vrot.lane.b32.xlu2 %v3867_v39, %s6060_s25 }
0x2afc   :  { %v3833_v21 = vpop.permute.xlu1 %3832 }
0x2afd   :  { %v3870_v35 = vpop.permute.xlu2 %3869  ;;  %v7051_v38 = vadd.f32 %v3833_v21, %v3825_v27 }
0x2afe   :  { %v7053_v26 = vadd.f32 %v3870_v35, %v3862_v30 }
0x2aff   :  { %5566 = vtanh.f32 %v7051_v38 }
0x2b00   :  { %5568 = vtanh.f32 %v7053_v26 }
0x2b05   :  { %v5567_v23 = vpop.eup %5566 }
0x2b06   :  { %v5569_v0 = vpop.eup %5568  ;;  %3838 = vrot.lane.b32.xlu0 %v5567_v23, %s6061_s21 }
0x2b07   :  { %3875 = vrot.lane.b32.xlu1 %v5569_v0, %s6061_s21 }
0x2b78   :  { %v3839_v36 = vpop.permute.xlu0 %3838 }
0x2b79   :  { %v3876_v40 = vpop.permute.xlu1 %3875  ;;  %v3841_v17 = vmul.f32 %v3839_v36, %v3822_v50 }
0x2b7a   :  { %v3878_v46 = vmul.f32 %v3876_v40, %v3859_v24 }
0x2b7b   :  { %v3879_v10 = vsel %vm2758_vm13, %v3841_v17, 0.0 }
0x2b7c   :  { %v7063_v5 = vsel %vm2765_vm1, %v3878_v46, 0.0  ;;  %3884 = vrot.lane.b32.xlu2 %v3879_v10, %s6062_s19 }
0x2b7d   :  { %3893 = vrot.lane.b32.xlu0 %v7063_v5, %s6061_s21 }
0x2bd6   :  { %v3885_v48 = vpop.permute.xlu2 %3884 }
0x2bd7   :  { %3887 = vst.msk [vmem:[#allocation6 + $0x2] sm:$0x3] %vm2643_vm10, %v3885_v48 }
0x2bef   :  { %v3894_v1 = vpop.permute.xlu0 %3893 }
0x2bf0   :  { %v3896_v63 = vsel %vm537_vm4, %v3885_v48, %v3894_v1 }
0x2bf1   :  { %v3897_v3 = vpack.c.bf16 %v3896_v63, %v3896_v63  ;;  %v3882_v63 = vsel %vm2765_vm1, %v7053_v26, 0.0 }
0x2bf3   :  { %5148 = vmatmul.msk.bf16.vlgmr.msrb.gmra.mxu0 %vm675_vm7, %v3897_v3 }
0x2c70   :  { %v3910_v53 = vpop.f32.mrf.mxu0 }
0x2c71   :  { %v3915_v43 = vadd.f32 %v3914_v55, %v3910_v53  ;;  %v3917_v37 = vadd.f32 %v3916_v58, %v3910_v53 }
0x2c73   :  { %5570 = vtanh.f32 %v3915_v43  ;;  %v5150_v7 = vmul.f32 -1.442695, %v3917_v37  ;;  %v5149_v11 = vmul.f32 -1.442695, %v3915_v43  ;;  %v3880_v43 = vsel %vm2758_vm13, %v7051_v38, 0.0 }
0x2c74   :  { %5572 = vtanh.f32 %v3917_v37 }
0x2c75   :  { %5574 = vpow2.f32 %v5150_v7 }
0x2c78   :  { %v3912_v9 = vpop.f32.mrf.mxu0 }
0x2c79   :  { %v5571_v61 = vpop.eup %5570 }
0x2c7a   :  { %v5573_v6 = vpop.eup %5572  ;;  %3940 = vrot.lane.b32.xlu1 %v5571_v61, %s6058_s14 }
0x2c7b   :  { %3977 = vrot.lane.b32.xlu2 %v5573_v6, %s6058_s14  ;;  %v5575_v50 = vpop.eup %5574 }
0x2c7c   :  { %v3958_v44 = vadd.f32 1.0, %v5575_v50 }
0x2c7e   :  { %5576 = vrcp.f32 %v3958_v44  ;;  %v3970_v47 = vand.u32 2147483648, %v3958_v44  ;;  %vm3964_vm8 = vweird.f32 %v3958_v44  ;;  %v3968_v42 = vand.u32 2147483647, %v3958_v44 }
0x2c7f   :  { %5578 = vpow2.f32 %v5149_v11 }
0x2c80   :  { %v3971_v39 = vor.u32 1.1754944e-38, %v3970_v47  ;;  %vm3969_vm9 = vcmp.eq.f32.partialorder %v3968_v42, 8.507059e+37 }
0x2c84   :  { %v5577_v14 = vpop.eup %5576 }
0x2c85   :  { %v3960_v13 = vmul.f32 %v5577_v14, %v3958_v44  ;;  %v5579_v20 = vpop.eup %5578  ;;  %vm3965_vm5 = vweird.f32 %v5577_v14 }
0x2c86   :  { %v3921_v22 = vadd.f32 1.0, %v5579_v20  ;;  %vm3966_vm14 = vmor %vm3964_vm8, %vm3965_vm5 }
0x2c87   :  { %v3961_v32 = vsub.f32 1.0, %v3960_v13 }
0x2c88   :  { %5580 = vrcp.f32 %v3921_v22  ;;  %v3933_v36 = vand.u32 2147483648, %v3921_v22  ;;  %vm3927_vm12 = vweird.f32 %v3921_v22  ;;  %v3931_v40 = vand.u32 2147483647, %v3921_v22 }
0x2c89   :  { %v3962_v34 = vmul.f32 %v5577_v14, %v3961_v32 }
0x2c8a   :  { %v3934_v46 = vor.u32 1.1754944e-38, %v3933_v36  ;;  %vm3932_vm3 = vcmp.eq.f32.partialorder %v3931_v40, 8.507059e+37 }
0x2c8b   :  { %v3963_v4 = vadd.f32 %v5577_v14, %v3962_v34 }
0x2c8d   :  { %v3967_v24 = vsel %vm3966_vm14, %v5577_v14, %v3963_v4  ;;  %v4029_v4 = vld [vmem:[#allocation5 + $0x8] sm:$0x3] }
0x2c8e   :  { %v3972_v19 = vsel %vm3969_vm9, %v3971_v39, %v3967_v24  ;;  %v5581_v27 = vpop.eup %5580 }
0x2c8f   :  { %v3923_v21 = vmul.f32 %v5581_v27, %v3921_v22  ;;  %vm3928_vm15 = vweird.f32 %v5581_v27  ;;  %v3975_v3 = vmul.f32 %v3972_v19, %v3882_v63  ;;  %v4027_v22 = vld [vmem:[#allocation5 + $0x6] sm:$0x3] }
0x2c90   :  { %vm3929_vm2 = vmor %vm3927_vm12, %vm3928_vm15 }
0x2c91   :  { %v3924_v35 = vsub.f32 1.0, %v3923_v21 }
0x2c93   :  { %v3925_v23 = vmul.f32 %v5581_v27, %v3924_v35 }
0x2c95   :  { %v3926_v0 = vadd.f32 %v5581_v27, %v3925_v23 }
0x2c97   :  { %v3930_v17 = vsel %vm3929_vm2, %v5581_v27, %v3926_v0 }
0x2c98   :  { %v3935_v48 = vsel %vm3932_vm3, %v3934_v46, %v3930_v17 }
0x2c99   :  { %v3938_v37 = vmul.f32 %v3935_v48, %v3880_v43 }
0x2cd5   :  { %v3978_v12 = vpop.permute.xlu2 %3977 }
0x2cd6   :  { %v3980_v30 = vmul.f32 %v3978_v12, %v3972_v19 }
0x2cd8   :  { %3982 = vrot.lane.b32.xlu1 %v3980_v30, %s6060_s25 }
0x2cec   :  { %v3941_v10 = vpop.permute.xlu1 %3940 }
0x2ced   :  { %v3943_v1 = vmul.f32 %v3941_v10, %v3935_v48 }
0x2cef   :  { %3945 = vrot.lane.b32.xlu0 %v3943_v1, %s6060_s25 }
0x2d4a   :  { %v3983_v53 = vpop.permute.xlu1 %3982 }
0x2d4b   :  { %v7078_v55 = vadd.f32 %v3983_v53, %v3975_v3 }
0x2d4d   :  { %5582 = vtanh.f32 %v7078_v55 }
0x2d53   :  { %v5583_v58 = vpop.eup %5582 }
0x2d54   :  { %3988 = vrot.lane.b32.xlu0 %v5583_v58, %s6061_s21 }
0x2d61   :  { %v3946_v9 = vpop.permute.xlu0 %3945 }
0x2d62   :  { %v7085_v61 = vadd.f32 %v3946_v9, %v3938_v37 }
0x2d64   :  { %5584 = vtanh.f32 %v7085_v61 }
0x2d6a   :  { %v5585_v26 = vpop.eup %5584 }
0x2d6b   :  { %3951 = vrot.lane.b32.xlu2 %v5585_v26, %s6061_s21 }
0x2dc5   :  { %v3952_v6 = vpop.permute.xlu2 %3951 }
0x2dc6   :  { %v3989_v7 = vpop.permute.xlu0 %3988  ;;  %v3954_v50 = vmul.f32 %v3952_v6, %v3935_v48 }
0x2dc7   :  { %v3991_v44 = vmul.f32 %v3989_v7, %v3972_v19 }
0x2dc8   :  { %v3992_v14 = vsel %vm2887_vm6, %v3954_v50, 0.0 }
0x2dc9   :  { %v7093_v11 = vsel %vm2894_vm11, %v3991_v44, 0.0  ;;  %3997 = vrot.lane.b32.xlu1 %v3992_v14, %s6062_s19 }
0x2dca   :  { %4006 = vrot.lane.b32.xlu2 %v7093_v11, %s6061_s21 }
0x2e24   :  { %v4007_v38 = vpop.permute.xlu2 %4006 }
0x2e3b   :  { %v3998_v13 = vpop.permute.xlu1 %3997 }
0x2e3c   :  { %4000 = vst.msk [vmem:[#allocation6 + $0x4] sm:$0x3] %vm2643_vm10, %v3998_v13  ;;  %v4009_v32 = vsel %vm537_vm4, %v3998_v13, %v4007_v38 }
0x2e3d   :  { %v4010_v20 = vpack.c.bf16 %v4009_v32, %v4009_v32 }
0x2e3f   :  { %5151 = vmatmul.msk.bf16.vlgmr.msrb.gmra.mxu1 %vm675_vm7, %v4010_v20  ;;  %v3993_v20 = vsel %vm2887_vm6, %v7085_v61, 0.0 }
0x2ebc   :  { %v4023_v34 = vpop.f32.mrf.mxu1 }
0x2ebd   :  { %v4028_v47 = vadd.f32 %v4027_v22, %v4023_v34  ;;  %v4030_v42 = vadd.f32 %v4029_v4, %v4023_v34 }
0x2ebf   :  { %5586 = vtanh.f32 %v4028_v47  ;;  %v5152_v19 = vmul.f32 -1.442695, %v4028_v47  ;;  %v5153_v27 = vmul.f32 -1.442695, %v4030_v42 }
0x2ec0   :  { %5588 = vtanh.f32 %v4030_v42  ;;  %v3995_v42 = vsel %vm2894_vm11, %v7078_v55, 0.0 }
0x2ec1   :  { %5590 = vpow2.f32 %v5152_v19 }
0x2ec2   :  { %5592 = vpow2.f32 %v5153_v27 }
0x2ec4   :  { %v4025_v24 = vpop.f32.mrf.mxu1 }
0x2ec5   :  { %v5587_v39 = vpop.eup %5586 }
0x2ec6   :  { %v5589_v12 = vpop.eup %5588  ;;  %4053 = vrot.lane.b32.xlu0 %v5587_v39, %s6058_s14 }
0x2ec7   :  { %4090 = vrot.lane.b32.xlu1 %v5589_v12, %s6058_s14  ;;  %v5591_v30 = vpop.eup %5590 }
0x2ec8   :  { %v5593_v21 = vpop.eup %5592  ;;  %v4034_v35 = vadd.f32 1.0, %v5591_v30 }
0x2ec9   :  { %v4071_v23 = vadd.f32 1.0, %v5593_v21 }
0x2eca   :  { %5594 = vrcp.f32 %v4034_v35  ;;  %v4046_v53 = vand.u32 2147483648, %v4034_v35  ;;  %vm4040_vm14 = vweird.f32 %v4034_v35  ;;  %v4044_v43 = vand.u32 2147483647, %v4034_v35 }
0x2ecb   :  { %5596 = vrcp.f32 %v4071_v23  ;;  %v4083_v58 = vand.u32 2147483648, %v4071_v23  ;;  %vm4077_vm9 = vweird.f32 %v4071_v23  ;;  %v4081_v37 = vand.u32 2147483647, %v4071_v23 }
0x2ecc   :  { %v4047_v6 = vor.u32 1.1754944e-38, %v4046_v53  ;;  %vm4045_vm2 = vcmp.eq.f32.partialorder %v4044_v43, 8.507059e+37 }
0x2ecd   :  { %v4084_v7 = vor.u32 1.1754944e-38, %v4083_v58  ;;  %vm4082_vm3 = vcmp.eq.f32.partialorder %v4081_v37, 8.507059e+37 }
0x2ed0   :  { %v5595_v0 = vpop.eup %5594 }
0x2ed1   :  { %v5597_v36 = vpop.eup %5596  ;;  %v4036_v40 = vmul.f32 %v5595_v0, %v4034_v35  ;;  %vm4041_vm5 = vweird.f32 %v5595_v0 }
0x2ed2   :  { %v4073_v17 = vmul.f32 %v5597_v36, %v4071_v23  ;;  %vm4078_vm8 = vweird.f32 %v5597_v36  ;;  %vm4042_vm15 = vmor %vm4040_vm14, %vm4041_vm5  ;;  %vm7586_vm5 = vcmp.eq.s32.totalorder %v6860_v33, 1 }
0x2ed3   :  { %v4037_v46 = vsub.f32 1.0, %v4036_v40  ;;  %vm4079_vm12 = vmor %vm4077_vm9, %vm4078_vm8 }
0x2ed4   :  { %v4074_v10 = vsub.f32 1.0, %v4073_v17 }
0x2ed5   :  { %v4038_v48 = vmul.f32 %v5595_v0, %v4037_v46  ;;  %v4140_v46 = vld [vmem:[#allocation5 + $0x8] sm:$0x3] }
0x2ed6   :  { %v4075_v1 = vmul.f32 %v5597_v36, %v4074_v10  ;;  %v4142_v10 = vld [vmem:[#allocation5 + $0x6] sm:$0x3] }
0x2ed7   :  { %v4039_v63 = vadd.f32 %v5595_v0, %v4038_v48 }
0x2ed8   :  { %v4076_v3 = vadd.f32 %v5597_v36, %v4075_v1 }
0x2ed9   :  { %v4043_v9 = vsel %vm4042_vm15, %v5595_v0, %v4039_v63 }
0x2eda   :  { %v4080_v26 = vsel %vm4079_vm12, %v5597_v36, %v4076_v3  ;;  %v4048_v44 = vsel %vm4045_vm2, %v4047_v6, %v4043_v9 }
0x2edb   :  { %v4085_v38 = vsel %vm4082_vm3, %v4084_v7, %v4080_v26  ;;  %v4051_v34 = vmul.f32 %v4048_v44, %v3993_v20 }
0x2edc   :  { %v4088_v24 = vmul.f32 %v4085_v38, %v3995_v42 }
0x2f38   :  { %v4054_v50 = vpop.permute.xlu0 %4053 }
0x2f39   :  { %v4091_v14 = vpop.permute.xlu1 %4090  ;;  %v4056_v13 = vmul.f32 %v4054_v50, %v4048_v44 }
0x2f3a   :  { %v4093_v32 = vmul.f32 %v4091_v14, %v4085_v38 }
0x2f3b   :  { %4058 = vrot.lane.b32.xlu2 %v4056_v13, %s6060_s25 }
0x2f3c   :  { %4095 = vrot.lane.b32.xlu0 %v4093_v32, %s6060_s25 }
0x2f95   :  { %v4059_v22 = vpop.permute.xlu2 %4058 }
0x2f96   :  { %v7108_v4 = vadd.f32 %v4059_v22, %v4051_v34 }
0x2f98   :  { %5598 = vtanh.f32 %v7108_v4 }
0x2f9e   :  { %v5599_v47 = vpop.eup %5598 }
0x2f9f   :  { %4064 = vrot.lane.b32.xlu1 %v5599_v47, %s6061_s21 }
0x2fae   :  { %v4096_v39 = vpop.permute.xlu0 %4095 }
0x2faf   :  { %v7115_v12 = vadd.f32 %v4096_v39, %v4088_v24 }
0x2fb1   :  { %5600 = vtanh.f32 %v7115_v12 }
0x2fb7   :  { %v5601_v61 = vpop.eup %5600 }
0x2fb8   :  { %4101 = vrot.lane.b32.xlu2 %v5601_v61, %s6061_s21 }
0x3011   :  { %v4065_v19 = vpop.permute.xlu1 %4064 }
0x3012   :  { %v4102_v27 = vpop.permute.xlu2 %4101  ;;  %v4067_v30 = vmul.f32 %v4065_v19, %v4048_v44 }
0x3013   :  { %v4104_v21 = vmul.f32 %v4102_v27, %v4085_v38 }
0x3014   :  { %v4105_v35 = vsel %vm3016_vm0, %v4067_v30, 0.0 }
0x3015   :  { %v7123_v23 = vsel %vm7586_vm5, %v4104_v21, 0.0  ;;  %4110 = vrot.lane.b32.xlu0 %v4105_v35, %s6062_s19 }
0x3016   :  { %4119 = vrot.lane.b32.xlu1 %v7123_v23, %s6061_s21 }
0x3087   :  { %v4111_v55 = vpop.permute.xlu0 %4110 }
0x3088   :  { %4113 = vst.msk [vmem:[#allocation6 + $0x6] sm:$0x3] %vm2643_vm10, %v4111_v55  ;;  %v4120_v0 = vpop.permute.xlu1 %4119 }
0x3089   :  { %v4122_v36 = vsel %vm537_vm4, %v4111_v55, %v4120_v0 }
0x308a   :  { %v4123_v40 = vpack.c.bf16 %v4122_v36, %v4122_v36 }
0x308c   :  { %5154 = vmatmul.msk.bf16.vlgmr.msrb.gmra.mxu2 %vm675_vm7, %v4123_v40 }
0x310f   :  { %v4136_v17 = vpop.f32.mrf.mxu2 }
0x3110   :  { %v4141_v48 = vadd.f32 %v4140_v46, %v4136_v17  ;;  %v4143_v1 = vadd.f32 %v4142_v10, %v4136_v17  ;;  %v4106_v17 = vsel %vm3016_vm0, %v7108_v4, 0.0 }
0x3112   :  { %5602 = vtanh.f32 %v4141_v48  ;;  %v5155_v58 = vmul.f32 -1.442695, %v4141_v48  ;;  %v5156_v26 = vmul.f32 -1.442695, %v4143_v1 }
0x3113   :  { %5604 = vtanh.f32 %v4143_v1 }
0x3114   :  { %5606 = vpow2.f32 %v5155_v58 }
0x3117   :  { %v4138_v63 = vpop.f32.mrf.mxu2 }
0x3118   :  { %v5603_v3 = vpop.eup %5602 }
0x3119   :  { %v5605_v53 = vpop.eup %5604  ;;  %4166 = vrot.lane.b32.xlu2 %v5603_v3, %s6058_s14 }
0x311a   :  { %4203 = vrot.lane.b32.xlu0 %v5605_v53, %s6058_s14  ;;  %v5607_v43 = vpop.eup %5606 }
0x311b   :  { %v4147_v37 = vadd.f32 1.0, %v5607_v43 }
0x311d   :  { %5608 = vrcp.f32 %v4147_v37  ;;  %v4159_v13 = vand.u32 2147483648, %v4147_v37  ;;  %vm4153_vm14 = vweird.f32 %v4147_v37  ;;  %v4157_v32 = vand.u32 2147483647, %v4147_v37 }
0x311e   :  { %5610 = vpow2.f32 %v5156_v26 }
0x311f   :  { %v4160_v34 = vor.u32 1.1754944e-38, %v4159_v13  ;;  %vm4158_vm15 = vcmp.eq.f32.partialorder %v4157_v32, 8.507059e+37  ;;  %v4253_v13 = vld [vmem:[#allocation5 + $0xa] sm:$0x3]  ;;  %v4255_v32 = vld [vmem:[#allocation5 + $0x4] sm:$0x3] }
0x3123   :  { %v5609_v9 = vpop.eup %5608 }
0x3124   :  { %v4149_v6 = vmul.f32 %v5609_v9, %v4147_v37  ;;  %v5611_v44 = vpop.eup %5610  ;;  %vm4154_vm8 = vweird.f32 %v5609_v9 }
0x3125   :  { %v4184_v14 = vadd.f32 1.0, %v5611_v44  ;;  %vm4155_vm9 = vmor %vm4153_vm14, %vm4154_vm8  ;;  %vm7587_vm8 = vcmp.eq.s32.totalorder %v6860_v33, 1 }
0x3126   :  { %v4150_v7 = vsub.f32 1.0, %v4149_v6  ;;  %v4108_v46 = vsel %vm7587_vm8, %v7115_v12, 0.0  ;;  %vm7588_vm14 = vmmov %vm7587_vm8 }
0x3127   :  { %5612 = vrcp.f32 %v4184_v14  ;;  %v4196_v30 = vand.u32 2147483648, %v4184_v14  ;;  %vm4190_vm2 = vweird.f32 %v4184_v14  ;;  %v4194_v21 = vand.u32 2147483647, %v4184_v14 }
0x3128   :  { %v4151_v50 = vmul.f32 %v5609_v9, %v4150_v7 }
0x3129   :  { %v4197_v55 = vor.u32 1.1754944e-38, %v4196_v30  ;;  %vm4195_vm5 = vcmp.eq.f32.partialorder %v4194_v21, 8.507059e+37 }
0x312a   :  { %v4152_v38 = vadd.f32 %v5609_v9, %v4151_v50 }
0x312c   :  { %v4156_v20 = vsel %vm4155_vm9, %v5609_v9, %v4152_v38 }
0x312d   :  { %v4161_v47 = vsel %vm4158_vm15, %v4160_v34, %v4156_v20  ;;  %v5613_v24 = vpop.eup %5612 }
0x312e   :  { %v4186_v39 = vmul.f32 %v5613_v24, %v4184_v14  ;;  %vm4191_vm12 = vweird.f32 %v5613_v24  ;;  %v4164_v10 = vmul.f32 %v4161_v47, %v4106_v17 }
0x312f   :  { %vm4192_vm3 = vmor %vm4190_vm2, %vm4191_vm12 }
0x3130   :  { %v4187_v61 = vsub.f32 1.0, %v4186_v39 }
0x3132   :  { %v4188_v19 = vmul.f32 %v5613_v24, %v4187_v61 }
0x3134   :  { %v4189_v27 = vadd.f32 %v5613_v24, %v4188_v19 }
0x3136   :  { %v4193_v35 = vsel %vm4192_vm3, %v5613_v24, %v4189_v27 }
0x3137   :  { %v4198_v36 = vsel %vm4195_vm5, %v4197_v55, %v4193_v35 }
0x3138   :  { %v4201_v48 = vmul.f32 %v4198_v36, %v4108_v46 }
0x3173   :  { %v4167_v22 = vpop.permute.xlu2 %4166 }
0x3174   :  { %v4169_v42 = vmul.f32 %v4167_v22, %v4161_v47 }
0x3176   :  { %4171 = vrot.lane.b32.xlu1 %v4169_v42, %s6060_s25 }
0x318c   :  { %v4204_v0 = vpop.permute.xlu0 %4203 }
0x318d   :  { %v4206_v40 = vmul.f32 %v4204_v0, %v4198_v36 }
0x318f   :  { %4208 = vrot.lane.b32.xlu2 %v4206_v40, %s6060_s25 }
0x31e8   :  { %v4172_v1 = vpop.permute.xlu1 %4171 }
0x31e9   :  { %v4209_v63 = vpop.permute.xlu2 %4208  ;;  %v7141_v3 = vadd.f32 %v4172_v1, %v4164_v10 }
0x31ea   :  { %v7143_v53 = vadd.f32 %v4209_v63, %v4201_v48 }
0x31eb   :  { %5614 = vtanh.f32 %v7141_v3 }
0x31ec   :  { %5616 = vtanh.f32 %v7143_v53 }
0x31f1   :  { %v5615_v58 = vpop.eup %5614 }
0x31f2   :  { %v5617_v43 = vpop.eup %5616  ;;  %4177 = vrot.lane.b32.xlu0 %v5615_v58, %s6061_s21 }
0x31f3   :  { %4214 = vrot.lane.b32.xlu1 %v5617_v43, %s6061_s21 }
0x3264   :  { %v4178_v4 = vpop.permute.xlu0 %4177 }
0x3265   :  { %v4215_v12 = vpop.permute.xlu1 %4214  ;;  %v4180_v37 = vmul.f32 %v4178_v4, %v4161_v47 }
0x3266   :  { %v4217_v9 = vmul.f32 %v4215_v12, %v4198_v36 }
0x3267   :  { %v4218_v26 = vsel %vm7588_vm14, %v4180_v37, 0.0 }
0x3268   :  { %v7153_v6 = vsel %vm3016_vm0, %v4217_v9, 0.0  ;;  %4223 = vrot.lane.b32.xlu2 %v4218_v26, %s6062_s19 }
0x3269   :  { %4232 = vrot.lane.b32.xlu0 %v7153_v6, %s6061_s21 }
0x32c2   :  { %v4224_v7 = vpop.permute.xlu2 %4223 }
0x32c3   :  { %4226 = vst.msk [vmem:[#allocation6 + $0x8] sm:$0x3] %vm2643_vm10, %v4224_v7 }
0x32db   :  { %v4233_v50 = vpop.permute.xlu0 %4232 }
0x32dc   :  { %v4235_v44 = vsel %vm537_vm4, %v4224_v7, %v4233_v50 }
0x32dd   :  { %v4236_v14 = vpack.c.bf16 %v4235_v44, %v4235_v44 }
0x32df   :  { %5157 = vmatmul.msk.bf16.vlgmr.msrb.gmra.mxu3 %vm675_vm7, %v4236_v14 }
0x3362   :  { %v4249_v38 = vpop.f32.mrf.mxu3 }
0x3363   :  { %v4254_v20 = vadd.f32 %v4253_v13, %v4249_v38  ;;  %v4256_v34 = vadd.f32 %v4255_v32, %v4249_v38  ;;  %v4221_v13 = vsel %vm3016_vm0, %v7143_v53, 0.0 }
0x3365   :  { %5618 = vtanh.f32 %v4254_v20  ;;  %v5159_v24 = vmul.f32 -1.442695, %v4256_v34  ;;  %v5158_v27 = vmul.f32 -1.442695, %v4254_v20 }
0x3366   :  { %5620 = vtanh.f32 %v4256_v34 }
0x3367   :  { %5622 = vpow2.f32 %v5159_v24 }
0x336a   :  { %v4251_v22 = vpop.f32.mrf.mxu3 }
0x336b   :  { %v5619_v47 = vpop.eup %5618 }
0x336c   :  { %v5621_v42 = vpop.eup %5620  ;;  %4279 = vrot.lane.b32.xlu1 %v5619_v47, %s6058_s14 }
0x336d   :  { %4316 = vrot.lane.b32.xlu2 %v5621_v42, %s6058_s14  ;;  %v5623_v39 = vpop.eup %5622 }
0x336e   :  { %v4297_v61 = vadd.f32 1.0, %v5623_v39 }
0x3370   :  { %5624 = vrcp.f32 %v4297_v61  ;;  %v4309_v40 = vand.u32 2147483648, %v4297_v61  ;;  %vm4303_vm15 = vweird.f32 %v4297_v61  ;;  %v4307_v17 = vand.u32 2147483647, %v4297_v61 }
0x3371   :  { %5626 = vpow2.f32 %v5158_v27 }
0x3372   :  { %v4310_v10 = vor.u32 1.1754944e-38, %v4309_v40  ;;  %vm4308_vm2 = vcmp.eq.f32.partialorder %v4307_v17, 8.507059e+37  ;;  %v4368_v40 = vld [vmem:[#allocation5 + $0x2] sm:$0x3] }
0x3376   :  { %v5625_v19 = vpop.eup %5624 }
0x3377   :  { %v4299_v30 = vmul.f32 %v5625_v19, %v4297_v61  ;;  %v5627_v35 = vpop.eup %5626  ;;  %vm4304_vm9 = vweird.f32 %v5625_v19 }
0x3378   :  { %v4260_v0 = vadd.f32 1.0, %v5627_v35  ;;  %vm4305_vm12 = vmor %vm4303_vm15, %vm4304_vm9  ;;  %vm7589_vm9 = vcmp.eq.s32.totalorder %v6860_v33, 1 }
0x3379   :  { %v4300_v21 = vsub.f32 1.0, %v4299_v30  ;;  %v4219_v47 = vsel %vm7589_vm9, %v7141_v3, 0.0 }
0x337a   :  { %5628 = vrcp.f32 %v4260_v0  ;;  %v4272_v9 = vand.u32 2147483648, %v4260_v0  ;;  %vm4266_vm5 = vweird.f32 %v4260_v0  ;;  %v4270_v26 = vand.u32 2147483647, %v4260_v0 }
0x337b   :  { %v4301_v55 = vmul.f32 %v5625_v19, %v4300_v21 }
0x337c   :  { %v4273_v50 = vor.u32 1.1754944e-38, %v4272_v9  ;;  %vm4271_vm14 = vcmp.eq.f32.partialorder %v4270_v26, 8.507059e+37 }
0x337d   :  { %v4302_v36 = vadd.f32 %v5625_v19, %v4301_v55 }
0x337f   :  { %v4306_v46 = vsel %vm4305_vm12, %v5625_v19, %v4302_v36  ;;  %v4366_v36 = vld [vmem:[#allocation5 + $0xc] sm:$0x3] }
0x3380   :  { %v4311_v1 = vsel %vm4308_vm2, %v4310_v10, %v4306_v46  ;;  %v5629_v63 = vpop.eup %5628 }
0x3381   :  { %v4262_v43 = vmul.f32 %v5629_v63, %v4260_v0  ;;  %vm4267_vm3 = vweird.f32 %v5629_v63  ;;  %v4314_v32 = vmul.f32 %v4311_v1, %v4221_v13 }
0x3382   :  { %vm4268_vm8 = vmor %vm4266_vm5, %vm4267_vm3 }
0x3383   :  { %v4263_v4 = vsub.f32 1.0, %v4262_v43 }
0x3385   :  { %v4264_v12 = vmul.f32 %v5629_v63, %v4263_v4 }
0x3387   :  { %v4265_v37 = vadd.f32 %v5629_v63, %v4264_v12 }
0x3389   :  { %v4269_v7 = vsel %vm4268_vm8, %v5629_v63, %v4265_v37 }
0x338a   :  { %v4274_v14 = vsel %vm4271_vm14, %v4273_v50, %v4269_v7 }
0x338b   :  { %v4277_v42 = vmul.f32 %v4274_v14, %v4219_v47 }
0x33c7   :  { %v4317_v48 = vpop.permute.xlu2 %4316 }
0x33c8   :  { %v4319_v58 = vmul.f32 %v4317_v48, %v4311_v1 }
0x33ca   :  { %4321 = vrot.lane.b32.xlu1 %v4319_v58, %s6060_s25 }
0x33de   :  { %v4280_v44 = vpop.permute.xlu1 %4279 }
0x33df   :  { %v4282_v38 = vmul.f32 %v4280_v44, %v4274_v14 }
0x33e1   :  { %4284 = vrot.lane.b32.xlu0 %v4282_v38, %s6060_s25 }
0x343c   :  { %v4322_v20 = vpop.permute.xlu1 %4321 }
0x343d   :  { %v7168_v34 = vadd.f32 %v4322_v20, %v4314_v32 }
0x343f   :  { %5630 = vtanh.f32 %v7168_v34 }
0x3445   :  { %v5631_v22 = vpop.eup %5630 }
0x3446   :  { %4327 = vrot.lane.b32.xlu0 %v5631_v22, %s6061_s21 }
0x3453   :  { %v4285_v24 = vpop.permute.xlu0 %4284 }
0x3454   :  { %v7175_v39 = vadd.f32 %v4285_v24, %v4277_v42 }
0x3456   :  { %5632 = vtanh.f32 %v7175_v39 }
0x345c   :  { %v5633_v15 = vpop.eup %5632 }
0x345d   :  { %4290 = vrot.lane.b32.xlu2 %v5633_v15, %s6061_s21 }
0x34b7   :  { %v4291_v53 = vpop.permute.xlu2 %4290 }
0x34b8   :  { %v4328_v61 = vpop.permute.xlu0 %4327  ;;  %v4293_v19 = vmul.f32 %v4291_v53, %v4274_v14 }
0x34b9   :  { %v4330_v27 = vmul.f32 %v4328_v61, %v4311_v1 }
0x34ba   :  { %v4331_v30 = vsel %vm2894_vm11, %v4293_v19, 0.0 }
0x34bb   :  { %v7183_v33 = vsel %vm2887_vm6, %v4330_v27, 0.0  ;;  %4336 = vrot.lane.b32.xlu1 %v4331_v30, %s6062_s19 }
0x34bc   :  { %4345 = vrot.lane.b32.xlu2 %v7183_v33, %s6061_s21 }
0x3516   :  { %v4346_v3 = vpop.permute.xlu2 %4345 }
0x352d   :  { %v4337_v21 = vpop.permute.xlu1 %4336 }
0x352e   :  { %4339 = vst.msk [vmem:[#allocation6 + $0xa] sm:$0x3] %vm2643_vm10, %v4337_v21  ;;  %v4348_v35 = vsel %vm537_vm4, %v4337_v21, %v4346_v3 }
0x352f   :  { %v4349_v55 = vpack.c.bf16 %v4348_v35, %v4348_v35 }
0x3531   :  { %5160 = vmatmul.msk.bf16.vlgmr.msra.gmra.mxu0 %vm675_vm7, %v4349_v55 }
0x35ae   :  { %v4362_v0 = vpop.f32.mrf.mxu0 }
0x35af   :  { %v4367_v17 = vadd.f32 %v4366_v36, %v4362_v0  ;;  %v4369_v46 = vadd.f32 %v4368_v40, %v4362_v0  ;;  %v4332_v0 = vsel %vm2894_vm11, %v7175_v39, 0.0 }
0x35b1   :  { %5634 = vtanh.f32 %v4367_v17  ;;  %v5161_v63 = vmul.f32 -1.442695, %v4367_v17  ;;  %v5162_v58 = vmul.f32 -1.442695, %v4369_v46 }
0x35b2   :  { %5636 = vtanh.f32 %v4369_v46 }
0x35b3   :  { %5638 = vpow2.f32 %v5161_v63 }
0x35b4   :  { %5640 = vpow2.f32 %v5162_v58 }
0x35b6   :  { %v4364_v10 = vpop.f32.mrf.mxu0 }
0x35b7   :  { %v5635_v48 = vpop.eup %5634  ;;  %v4334_v10 = vsel %vm2887_vm6, %v7168_v34, 0.0 }
0x35b8   :  { %v5637_v1 = vpop.eup %5636  ;;  %4392 = vrot.lane.b32.xlu0 %v5635_v48, %s6058_s14 }
0x35b9   :  { %4429 = vrot.lane.b32.xlu1 %v5637_v1, %s6058_s14  ;;  %v5639_v43 = vpop.eup %5638 }
0x35ba   :  { %v5641_v4 = vpop.eup %5640  ;;  %v4373_v12 = vadd.f32 1.0, %v5639_v43 }
0x35bb   :  { %v4410_v37 = vadd.f32 1.0, %v5641_v4 }
0x35bc   :  { %5642 = vrcp.f32 %v4373_v12  ;;  %v4385_v22 = vand.u32 2147483648, %v4373_v12  ;;  %vm4379_vm12 = vweird.f32 %v4373_v12  ;;  %v4383_v42 = vand.u32 2147483647, %v4373_v12 }
0x35bd   :  { %5644 = vrcp.f32 %v4410_v37  ;;  %v4422_v47 = vand.u32 2147483648, %v4410_v37  ;;  %vm4416_vm2 = vweird.f32 %v4410_v37  ;;  %v4420_v24 = vand.u32 2147483647, %v4410_v37 }
0x35be   :  { %v4386_v61 = vor.u32 1.1754944e-38, %v4385_v22  ;;  %vm4384_vm8 = vcmp.eq.f32.partialorder %v4383_v42, 8.507059e+37 }
0x35bf   :  { %v4423_v19 = vor.u32 1.1754944e-38, %v4422_v47  ;;  %vm4421_vm14 = vcmp.eq.f32.partialorder %v4420_v24, 8.507059e+37 }
0x35c2   :  { %v5643_v9 = vpop.eup %5642 }
0x35c3   :  { %v5645_v26 = vpop.eup %5644  ;;  %v4375_v7 = vmul.f32 %v5643_v9, %v4373_v12  ;;  %vm4380_vm0 = vweird.f32 %v5643_v9 }
0x35c4   :  { %v4412_v50 = vmul.f32 %v5645_v26, %v4410_v37  ;;  %vm4417_vm15 = vweird.f32 %v5645_v26  ;;  %vm4381_vm3 = vmor %vm4379_vm12, %vm4380_vm0 }
0x35c5   :  { %v4376_v44 = vsub.f32 1.0, %v4375_v7  ;;  %vm4418_vm5 = vmor %vm4416_vm2, %vm4417_vm15 }
0x35c6   :  { %v4413_v14 = vsub.f32 1.0, %v4412_v50  ;;  %v4479_v50 = vld [vmem:[#allocation5 + $0xe] sm:$0x3] }
0x35c7   :  { %v4377_v38 = vmul.f32 %v5643_v9, %v4376_v44  ;;  %v4481_v44 = vld [vmem:[#allocation5] sm:$0x3] }
0x35c8   :  { %v4414_v13 = vmul.f32 %v5645_v26, %v4413_v14 }
0x35c9   :  { %v4378_v32 = vadd.f32 %v5643_v9, %v4377_v38 }
0x35ca   :  { %v4415_v20 = vadd.f32 %v5645_v26, %v4414_v13 }
0x35cb   :  { %v4382_v15 = vsel %vm4381_vm3, %v5643_v9, %v4378_v32 }
0x35cc   :  { %v4419_v53 = vsel %vm4418_vm5, %v5645_v26, %v4415_v20  ;;  %v4387_v30 = vsel %vm4384_vm8, %v4386_v61, %v4382_v15 }
0x35cd   :  { %v4424_v21 = vsel %vm4421_vm14, %v4423_v19, %v4419_v53  ;;  %v4390_v36 = vmul.f32 %v4387_v30, %v4332_v0 }
0x35ce   :  { %v4427_v48 = vmul.f32 %v4424_v21, %v4334_v10 }
0x362a   :  { %v4393_v27 = vpop.permute.xlu0 %4392 }
0x362b   :  { %v4430_v3 = vpop.permute.xlu1 %4429  ;;  %v4395_v35 = vmul.f32 %v4393_v27, %v4387_v30 }
0x362c   :  { %v4432_v55 = vmul.f32 %v4430_v3, %v4424_v21 }
0x362d   :  { %4397 = vrot.lane.b32.xlu2 %v4395_v35, %s6060_s25 }
0x362e   :  { %4434 = vrot.lane.b32.xlu0 %v4432_v55, %s6060_s25 }
0x3687   :  { %v4398_v40 = vpop.permute.xlu2 %4397 }
0x3688   :  { %v7198_v17 = vadd.f32 %v4398_v40, %v4390_v36 }
0x368a   :  { %5646 = vtanh.f32 %v7198_v17 }
0x3690   :  { %v5647_v46 = vpop.eup %5646 }
0x3691   :  { %4403 = vrot.lane.b32.xlu1 %v5647_v46, %s6061_s21 }
0x36a0   :  { %v4435_v1 = vpop.permute.xlu0 %4434 }
0x36a1   :  { %v7205_v63 = vadd.f32 %v4435_v1, %v4427_v48 }
0x36a3   :  { %5648 = vtanh.f32 %v7205_v63 }
0x36a9   :  { %v5649_v52 = vpop.eup %5648 }
0x36aa   :  { %4440 = vrot.lane.b32.xlu2 %v5649_v52, %s6061_s21 }
0x3703   :  { %v4404_v39 = vpop.permute.xlu1 %4403 }
0x3704   :  { %v4441_v58 = vpop.permute.xlu2 %4440  ;;  %v4406_v43 = vmul.f32 %v4404_v39, %v4387_v30 }
0x3705   :  { %v4443_v4 = vmul.f32 %v4441_v58, %v4424_v21 }
0x3706   :  { %v4444_v12 = vsel %vm2765_vm1, %v4406_v43, 0.0 }
0x3707   :  { %v4446_v49 = vsel %vm2758_vm13, %v4443_v4, 0.0  ;;  %4449 = vrot.lane.b32.xlu0 %v4444_v12, %s6062_s19 }
0x3708   :  { %4458 = vrot.lane.b32.xlu1 %v4446_v49, %s6061_s21 }
0x3779   :  { %v4450_v34 = vpop.permute.xlu0 %4449 }
0x377a   :  { %4452 = vst.msk [vmem:[#allocation6 + $0xc] sm:$0x3] %vm2643_vm10, %v4450_v34  ;;  %v4459_v37 = vpop.permute.xlu1 %4458 }
0x377b   :  { %v4461_v9 = vsel %vm537_vm4, %v4450_v34, %v4459_v37 }
0x377c   :  { %v4462_v26 = vpack.c.bf16 %v4461_v9, %v4461_v9 }
0x377e   :  { %5163 = vmatmul.msk.bf16.vlgmr.msra.gmra.mxu1 %vm675_vm7, %v4462_v26  ;;  %v4445_v26 = vsel %vm2765_vm1, %v7198_v17, 0.0 }
0x37fb   :  { %v4475_v7 = vpop.f32.mrf.mxu1 }
0x37fc   :  { %v4480_v14 = vadd.f32 %v4479_v50, %v4475_v7  ;;  %v4482_v38 = vadd.f32 %v4481_v44, %v4475_v7  ;;  %v4447_v7 = vsel %vm2758_vm13, %v7205_v63, 0.0  ;;  %v2108_v63 = vadd.f32 %v2107_v41, %v6750_v18 }
0x37fe   :  { %5650 = vtanh.f32 %v4480_v14  ;;  %v5165_v22 = vmul.f32 -1.442695, %v4482_v38  ;;  %v5164_v15 = vmul.f32 -1.442695, %v4480_v14 }
0x37ff   :  { %5652 = vtanh.f32 %v4482_v38 }
0x3800   :  { %5654 = vpow2.f32 %v5165_v22 }
0x3803   :  { %v4477_v13 = vpop.f32.mrf.mxu1 }
0x3804   :  { %v5651_v32 = vpop.eup %5650 }
0x3805   :  { %v5653_v20 = vpop.eup %5652  ;;  %4505 = vrot.lane.b32.xlu1 %v5651_v32, %s6058_s14  ;;  %v2109_v32 = vld [vmem:[#allocation2 + $0x8] sm:$0x7f] }
0x3806   :  { %4542 = vrot.lane.b32.xlu2 %v5653_v20, %s6058_s14  ;;  %v5655_v47 = vpop.eup %5654 }
0x3807   :  { %v4523_v42 = vadd.f32 1.0, %v5655_v47 }
0x3809   :  { %5656 = vrcp.f32 %v4523_v42  ;;  %v4535_v21 = vand.u32 2147483648, %v4523_v42  ;;  %vm4529_vm11 = vweird.f32 %v4523_v42  ;;  %v4533_v35 = vand.u32 2147483647, %v4523_v42 }
0x380a   :  { %5658 = vpow2.f32 %v5164_v15 }
0x380b   :  { %v4536_v55 = vor.u32 1.1754944e-38, %v4535_v21  ;;  %vm4534_vm0 = vcmp.eq.f32.partialorder %v4533_v35, 8.507059e+37 }
0x380d   :  { %4454 = vrot.lane.b32.xlu1 %v4446_v49, %s6060_s25 }
0x380f   :  { %v5657_v24 = vpop.eup %5656 }
0x3810   :  { %v4525_v53 = vmul.f32 %v5657_v24, %v4523_v42  ;;  %v5659_v19 = vpop.eup %5658  ;;  %vm4530_vm6 = vweird.f32 %v5657_v24 }
0x3811   :  { %v4486_v30 = vadd.f32 1.0, %v5659_v19  ;;  %vm4531_vm9 = vmor %vm4529_vm11, %vm4530_vm6 }
0x3812   :  { %v4526_v61 = vsub.f32 1.0, %v4525_v53  ;;  %v5086_v53 = vmul.f32 -1.442695, %v2108_v63 }
0x3813   :  { %5660 = vrcp.f32 %v4486_v30  ;;  %v4498_v39 = vand.u32 2147483648, %v4486_v30  ;;  %vm4492_vm12 = vweird.f32 %v4486_v30  ;;  %v4496_v58 = vand.u32 2147483647, %v4486_v30 }
0x3814   :  { %v4527_v27 = vmul.f32 %v5657_v24, %v4526_v61 }
0x3815   :  { %4341 = vrot.lane.b32.xlu1 %v7183_v33, %s6060_s25  ;;  %v4499_v4 = vor.u32 1.1754944e-38, %v4498_v39  ;;  %vm4497_vm3 = vcmp.eq.f32.partialorder %v4496_v58, 8.507059e+37 }
0x3816   :  { %v4528_v3 = vadd.f32 %v5657_v24, %v4527_v27 }
0x3818   :  { %v4532_v33 = vsel %vm4531_vm9, %v5657_v24, %v4528_v3 }
0x3819   :  { %v7223_v36 = vsel %vm4534_vm0, %v4536_v55, %v4532_v33  ;;  %v5661_v40 = vpop.eup %5660  ;;  %vm7590_vm0 = vcmp.eq.s32.totalorder %v6726_v57, 1 }
0x381a   :  { %v4488_v10 = vmul.f32 %v5661_v40, %v4486_v30  ;;  %vm4493_vm15 = vweird.f32 %v5661_v40  ;;  %v4540_v44 = vmul.f32 %v7223_v36, %v4447_v7 }
0x381b   :  { %vm4494_vm2 = vmor %vm4492_vm12, %vm4493_vm15  ;;  %vm7591_vm15 = vcmp.eq.s32.totalorder %v6733_v62, 1  ;;  %vm4637_vm12 = vcmask 254976  }
0x381c   :  { %v4489_v48 = vsub.f32 1.0, %v4488_v10 }
0x381e   :  { %v4490_v1 = vmul.f32 %v5661_v40, %v4489_v48 }
0x3820   :  { %v4491_v52 = vadd.f32 %v5661_v40, %v4490_v1 }
0x3822   :  { %v4495_v43 = vsel %vm4494_vm2, %v5661_v40, %v4491_v52  ;;  %vm7592_vm2 = vcmp.eq.s32.totalorder %v6383_v54, 1 }
0x3823   :  { %v7227_v49 = vsel %vm4497_vm3, %v4499_v4, %v4495_v43  ;;  %vm7594_vm3 = vcmp.eq.s32.totalorder %v6389_v2, 1 }
0x3824   :  { %v4503_v50 = vmul.f32 %v7227_v49, %v4445_v26 }
0x3860   :  { %v4543_v0 = vpop.permute.xlu2 %4542 }
0x3861   :  { %v4545_v46 = vmul.f32 %v4543_v0, %v7223_v36 }
0x3863   :  { %4547 = vrot.lane.b32.xlu0 %v4545_v46, %s6060_s25 }
0x3877   :  { %v4506_v12 = vpop.permute.xlu1 %4505 }
0x3878   :  { %v4508_v34 = vmul.f32 %v4506_v12, %v7227_v49 }
0x387a   :  { %4510 = vrot.lane.b32.xlu2 %v4508_v34, %s6060_s25 }
0x387f   :  { %v4455_v37 = vpop.permute.xlu1 %4454 }
0x3880   :  { %4457 = vst.msk [vmem:[#allocation7 + $0x2] sm:$0x3] %vm2643_vm10, %v4455_v37 }
0x3882   :  { %4228 = vrot.lane.b32.xlu2 %v7153_v6, %s6060_s25 }
0x3887   :  { %v4342_v9 = vpop.permute.xlu1 %4341  ;;  %v4578_v15 = vld [vmem:[#allocation7 + $0x2] sm:$0x3] }
0x3888   :  { %4344 = vst.msk [vmem:[#allocation7 + $0x4] sm:$0x3] %vm2643_vm10, %v4342_v9 }
0x388a   :  { %4002 = vrot.lane.b32.xlu2 %v7093_v11, %s6060_s25  ;;  %v2110_v11 = vadd.f32 %v2109_v32, %v6750_v18 }
0x388f   :  { %v4579_v24 = vld [vmem:[#allocation7 + $0x4] sm:$0x3] }
0x38d4   :  { %v4511_v14 = vpop.permute.xlu2 %4510 }
0x38d5   :  { %v4548_v6 = vpop.permute.xlu0 %4547  ;;  %v4513_v38 = vadd.f32 %v4511_v14, %v4503_v50 }
0x38d6   :  { %v4550_v13 = vadd.f32 %v4548_v6, %v4540_v44 }
0x38d7   :  { %5662 = vtanh.f32 %v4513_v38 }
0x38d8   :  { %5664 = vtanh.f32 %v4550_v13 }
0x38d9   :  { %5666 = vtanh.f32 %v2110_v11 }
0x38da   :  { %5668 = vtanh.f32 %v2108_v63  ;;  %v4570_v63 = vld [vmem:[#allocation6 + $0x2] sm:$0x3] }
0x38dc   :  { %v4229_v20 = vpop.permute.xlu2 %4228 }
0x38dd   :  { %v5663_v25 = vpop.eup %5662  ;;  %4231 = vst.msk [vmem:[#allocation7 + $0x6] sm:$0x3] %vm2643_vm10, %v4229_v20 }
0x38de   :  { %v5665_v17 = vpop.eup %5664  ;;  %4516 = vrot.lane.b32.xlu1 %v5663_v25, %s6061_s21 }
0x38df   :  { %4553 = vrot.lane.b32.xlu0 %v5665_v17, %s6061_s21  ;;  %v5667_v47 = vpop.eup %5666 }
0x38e0   :  { %v5669_v42 = vpop.eup %5668 }
0x38e4   :  { %v4003_v22 = vpop.permute.xlu2 %4002 }
0x38e5   :  { %4005 = vst.msk [vmem:[#allocation7 + $0xa] sm:$0x3] %vm2643_vm10, %v4003_v22 }
0x38e6   :  { %3776 = vrot.lane.b32.xlu1 %v7034_v59, %s6060_s25  ;;  %v5087_v59 = vmul.f32 -1.442695, %v2110_v11 }
0x38e7   :  { %2170 = vrot.lane.b32.xlu0 %v5667_v47, %s6058_s14  ;;  %v7288_v47 = vld [vmem:[#allocation25] ss:$0 sm:$0xff] }
0x38e8   :  { %5670 = vpow2.f32 %v5087_v59 }
0x38e9   :  { %5672 = vpow2.f32 %v5086_v53 }
0x38ec   :  { %v4582_v18 = vld [vmem:[#allocation7 + $0xa] sm:$0x3] }
0x38ee   :  { %2133 = vrot.lane.b32.xlu1 %v5669_v42, %s6058_s14  ;;  %v5671_v61 = vpop.eup %5670  ;;  %v2075_v42 = vsel %vm7592_vm2, %v6706_v51, 0.0  ;;  %vm4705_vm2 = vcmask 1046534  }
0x38ef   :  { %4115 = vrot.lane.b32.xlu0 %v7123_v23, %s6060_s25  ;;  %v2151_v19 = vadd.f32 1.0, %v5671_v61  ;;  %v5673_v27 = vpop.eup %5672 }
0x38f0   :  { %v2114_v23 = vadd.f32 1.0, %v5673_v27 }
0x38f1   :  { %5674 = vrcp.f32 %v2151_v19  ;;  %v2163_v10 = vand.u32 2147483648, %v2151_v19  ;;  %vm2157_vm1 = vweird.f32 %v2151_v19  ;;  %v2161_v48 = vand.u32 2147483647, %v2151_v19 }
0x38f2   :  { %5676 = vrcp.f32 %v2114_v23  ;;  %v2126_v37 = vand.u32 2147483648, %v2114_v23  ;;  %vm2120_vm6 = vweird.f32 %v2114_v23  ;;  %v2124_v9 = vand.u32 2147483647, %v2114_v23 }
0x38f3   :  { %v2164_v39 = vor.u32 1.1754944e-38, %v2163_v10  ;;  %vm2162_vm8 = vcmp.eq.f32.partialorder %v2161_v48, 8.507059e+37  ;;  %v4575_v48 = vld [vmem:[#allocation6 + $0xc] sm:$0x3] }
0x38f4   :  { %v2127_v7 = vor.u32 1.1754944e-38, %v2126_v37  ;;  %vm2125_vm9 = vcmp.eq.f32.partialorder %v2124_v9, 8.507059e+37 }
0x38f6   :  { %4597 = vrot.lane.b32.xlu1 %v4579_v24, %s6060_s25 }
0x38f7   :  { %3889 = vrot.lane.b32.xlu0 %v7063_v5, %s6060_s25  ;;  %v5675_v30 = vpop.eup %5674 }
0x38f8   :  { %v2153_v3 = vmul.f32 %v5675_v30, %v2151_v19  ;;  %v5677_v21 = vpop.eup %5676  ;;  %vm2158_vm13 = vweird.f32 %v5675_v30  ;;  %v4572_v19 = vld [vmem:[#allocation6 + $0x6] sm:$0x3] }
0x38f9   :  { %v2116_v35 = vmul.f32 %v5677_v21, %v2114_v23  ;;  %vm2159_vm5 = vmor %vm2157_vm1, %vm2158_vm13  ;;  %vm2121_vm14 = vweird.f32 %v5677_v21  ;;  %vm7595_vm13 = vcmp.eq.s32.totalorder %v6349_v56, 1  ;;  %vm7597_vm1 = vcmask 129024  }
0x38fa   :  { %v2154_v5 = vsub.f32 1.0, %v2153_v3  ;;  %vm2122_vm11 = vmor %vm2120_vm6, %vm2121_vm14  ;;  %v4574_v3 = vld [vmem:[#allocation6 + $0xa] sm:$0x3]  ;;  %vm7600_vm14 = vcmp.eq.s32.totalorder %v6355_v60, 1 }
0x38fb   :  { %v2117_v40 = vsub.f32 1.0, %v2116_v35  ;;  %vm7601_vm6 = vmmov %vm7597_vm1 }
0x38fc   :  { %v2155_v33 = vmul.f32 %v5675_v30, %v2154_v5 }
0x38fd   :  { %v2118_v1 = vmul.f32 %v5677_v21, %v2117_v40 }
0x38fe   :  { %4603 = vrot.lane.b32.xlu1 %v4582_v18, %s6060_s25  ;;  %v2156_v46 = vadd.f32 %v5675_v30, %v2155_v33 }
0x38ff   :  { %4595 = vrot.lane.b32.xlu0 %v4578_v15, %s6060_s25  ;;  %v2119_v12 = vadd.f32 %v5677_v21, %v2118_v1 }
0x3900   :  { %v2160_v52 = vsel %vm2159_vm5, %v5675_v30, %v2156_v46  ;;  %vm7598_vm5 = vmmov %vm7597_vm1 }
0x3901   :  { %v7262_v43 = vsel %vm2162_vm8, %v2164_v39, %v2160_v52  ;;  %v2123_v26 = vsel %vm2122_vm11, %v5677_v21, %v2119_v12  ;;  %v4571_v12 = vld [vmem:[#allocation6 + $0x4] sm:$0x3]  ;;  %vm7599_vm8 = vmmov %vm7597_vm1  ;;  %vm4701_vm11 = vcmask 1044484  }
0x3902   :  { %v7268_v44 = vsel %vm2125_vm9, %v2127_v7, %v2123_v26  ;;  %v2168_v24 = vmul.f32 %v7262_v43, %v2075_v42  ;;  %vm7602_vm9 = vcmask 1041409  }
0x3950   :  { %v4517_v55 = vpop.permute.xlu1 %4516 }
0x3951   :  { %v4554_v0 = vpop.permute.xlu0 %4553  ;;  %v4519_v20 = vmul.f32 %v4517_v55, %v7227_v49  ;;  %v4573_v55 = vld [vmem:[#allocation6 + $0x8] sm:$0x3] }
0x3952   :  { %v4556_v50 = vmul.f32 %v4554_v0, %v7223_v36  ;;  %v4580_v36 = vld [vmem:[#allocation7 + $0x6] sm:$0x3] }
0x3953   :  { %v4557_v25 = vsel %vm7591_vm15, %v4519_v20, 0.0  ;;  %v5272_v20 = vld [vmem:[#allocation8] ss:$0 sm:$0xff]  ;;  %vm7603_vm15 = vcmask 1042434  }
0x3954   :  { %v4558_v13 = vsel %vm7590_vm0, %v4556_v50, 0.0  ;;  %vm4703_vm0 = vcmask 1045509  }
0x3958   :  { %v3777_v58 = vpop.permute.xlu1 %3776 }
0x3959   :  { %v2171_v4 = vpop.permute.xlu0 %2170  ;;  %3779 = vst.msk [vmem:[#allocation7 + $0xe] sm:$0x3] %vm2643_vm10, %v3777_v58 }
0x395a   :  { %v2173_v34 = vmul.f32 %v2171_v4, %v7262_v43  ;;  %v2197_v4 = vlaneseq }
0x395c   :  { %2175 = vrot.lane.b32.xlu2 %v2173_v34, %s6060_s25  ;;  %v7326_v37 = vshrl.u32 %v2197_v4, 7 }
0x395e   :  { %5265 = vset.pattern.permute.xlu1 %v7326_v37  ;;  %5253 = vset.pattern.permute.xlu0 %v7326_v37 }
0x3960   :  { %v2134_v14 = vpop.permute.xlu1 %2133  ;;  %v4584_v17 = vld [vmem:[#allocation7 + $0xe] sm:$0x3] }
0x3961   :  { %v4116_v6 = vpop.permute.xlu0 %4115  ;;  %v2136_v38 = vmul.f32 %v2134_v14, %v7268_v44 }
0x3962   :  { %4118 = vst.msk [vmem:[#allocation7 + $0x8] sm:$0x3] %vm2643_vm10, %v4116_v6 }
0x3963   :  { %2138 = vrot.lane.b32.xlu1 %v2136_v38, %s6060_s25 }
0x3964   :  { %4565 = vrot.lane.b32.xlu2 %v4558_v13, %s6060_s25 }
0x3968   :  { %v4598_v59 = vpop.permute.xlu1 %4597 }
0x3969   :  { %v3890_v32 = vpop.permute.xlu0 %3889  ;;  %v4581_v11 = vld [vmem:[#allocation7 + $0x8] sm:$0x3]  ;;  %v7329_v9 = vsel %vm537_vm4, %v4571_v12, %v4598_v59 }
0x396a   :  { %3892 = vst.msk [vmem:[#allocation7 + $0xc] sm:$0x3] %vm2643_vm10, %v3890_v32  ;;  %4601 = vrot.lane.b32.xlu0 %v4581_v11, %s6060_s25  ;;  %v4631_v26 = vmul.f32 %v7288_v47, %v7329_v9  ;;  %v2199_v32 = vld [vmem:[%s7593_s16] sm:$0x1] }
0x396b   :  { %v5088_v11 = vadd.s32 4294967295, %v2199_v32 }
0x396c   :  { %4599 = vrot.lane.b32.xlu2 %v4580_v36, %s6060_s25  ;;  %v4644_v38 = vsel %vm4637_vm12, %v4631_v26, 0.0 }
0x396d   :  { %v2201_v36 = vperm.slane %v5088_v11, 0 }
0x3970   :  { %v4604_v54 = vpop.permute.xlu1 %4603 }
0x3971   :  { %v4583_v57 = vld [vmem:[#allocation7 + $0xc] sm:$0x3]  ;;  %v4596_v41 = vpop.permute.xlu0 %4595  ;;  %v7307_v5 = vsel %vm537_vm4, %v4574_v3, %v4604_v54 }
0x3972   :  { %4560 = vrot.lane.b32.xlu0 %v4557_v25, %s6062_s19  ;;  %v7286_v22 = vsel %vm537_vm4, %v4570_v63, %v4596_v41  ;;  %v4634_v35 = vmul.f32 %v7288_v47, %v7307_v5  ;;  %v6063_v25 = vmov 0.0   ;;  %v2073_v41 = vsel %vm7594_vm3, %v6687_v29, 0.0 }
0x3973   :  { %v4630_v49 = vmul.f32 %v7288_v47, %v7286_v22  ;;  %vm4707_vm3 = vcmask 1047559  }
0x3974   :  { %4605 = vrot.lane.b32.xlu2 %v4583_v57, %s6060_s25  ;;  %v4653_v33 = vsel %vm4637_vm12, %v4634_v35, 0.0 }
0x3975   :  { %v4641_v62 = vsel %vm4637_vm12, %v4630_v49, 0.0 }
0x397a   :  { %4607 = vrot.lane.b32.xlu0 %v4584_v17, %s6060_s25 }
0x398d   :  { %4642 = vadd.xlane.f32.xlu1 %v4641_v62 }
0x39b6   :  { %v2176_v18 = vpop.permute.xlu2 %2175 }
0x39b7   :  { %v2178_v15 = vadd.f32 %v2176_v18, %v2168_v24  ;;  %v4569_v24 = vld [vmem:[#allocation6] sm:$0x3] }
0x39b9   :  { %5678 = vtanh.f32 %v2178_v15 }
0x39be   :  { %v4566_v53 = vpop.permute.xlu2 %4565 }
0x39bf   :  { %v5679_v61 = vpop.eup %5678  ;;  %4568 = vst.msk [vmem:[#allocation7] sm:$0x3] %vm2643_vm10, %v4566_v53 }
0x39c0   :  { %2181 = vrot.lane.b32.xlu2 %v5679_v61, %s6061_s21 }
0x39c6   :  { %v4600_v27 = vpop.permute.xlu2 %4599  ;;  %v4577_v23 = vld [vmem:[#allocation7] sm:$0x3] }
0x39c7   :  { %v7300_v30 = vsel %vm537_vm4, %v4572_v19, %v4600_v27 }
0x39c8   :  { %v4632_v51 = vmul.f32 %v7288_v47, %v7300_v30  ;;  %4593 = vrot.lane.b32.xlu2 %v4577_v23, %s6060_s25 }
0x39ca   :  { %v4647_v21 = vsel %vm4637_vm12, %v4632_v51, 0.0 }
0x39cb   :  { %4648 = vadd.xlane.f32.xlu0 %v4647_v21 }
0x39ce   :  { %v4606_v46 = vpop.permute.xlu2 %4605 }
0x39cf   :  { %v7319_v52 = vsel %vm537_vm4, %v4575_v48, %v4606_v46 }
0x39d0   :  { %v4635_v39 = vmul.f32 %v7288_v47, %v7319_v52 }
0x39d2   :  { %v4656_v34 = vsel %vm4637_vm12, %v4635_v39, 0.0 }
0x39d3   :  { %4654 = vadd.xlane.f32.xlu0 %v4653_v33 }
0x39d5   :  { %v2139_v63 = vpop.permute.xlu1 %2138 }
0x39dc   :  { %v4602_v0 = vpop.permute.xlu0 %4601 }
0x39dd   :  { %v7313_v40 = vsel %vm537_vm4, %v4573_v55, %v4602_v0 }
0x39de   :  { %v4633_v10 = vmul.f32 %v7288_v47, %v7313_v40 }
0x39e0   :  { %v4650_v1 = vsel %vm4637_vm12, %v4633_v10, 0.0 }
0x39e1   :  { %4651 = vadd.xlane.f32.xlu1 %v4650_v1 }
0x39e4   :  { %v4561_v58 = vpop.permute.xlu0 %4560 }
0x39e5   :  { %4563 = vst.msk [vmem:[#allocation6 + $0xe] sm:$0x3] %vm2643_vm10, %v4561_v58  ;;  %vm2202_vm10 = vcmp.eq.s32.totalorder %v7326_v37, %v2201_v36 }
0x39e6   :  { %v5089_v57 = vsel %vm2202_vm10, 1.0, %v6063_v25  ;;  %vm7604_vm10 = vcmask 1043459  }
0x39e7   :  { %v2233_v17 = vperm.slane %v5089_v57, 4  ;;  %v2219_v56 = vperm.slane %v5089_v57, 2  ;;  %v2205_v61 = vperm.slane %v5089_v57, 0  ;;  %v2212_v19 = vperm.slane %v5089_v57, 1 }
0x39e9   :  { %4657 = vadd.xlane.f32.xlu1 %v4656_v34  ;;  %v5254_v27 = vpack.i.bf16 %v2212_v19, %v2205_v61 }
0x39ec   :  { %v4576_v7 = vld [vmem:[#allocation6 + $0xe] sm:$0x3]  ;;  %v4608_v50 = vpop.permute.xlu0 %4607 }
0x39ed   :  { %v7336_v14 = vsel %vm537_vm4, %v4576_v7, %v4608_v50 }
0x39ee   :  { %v4636_v6 = vmul.f32 %v7288_v47, %v7336_v14 }
0x39f0   :  { %v4659_v13 = vsel %vm4637_vm12, %v4636_v6, 0.0 }
0x39f1   :  { %4645 = vadd.xlane.f32.xlu2 %v4644_v38  ;;  %4660 = vadd.xlane.f32.xlu0 %v4659_v13 }
0x3a00   :  { %v4643_v51 = vpop.xlane.xlu1 %4642 }
0x3a02   :  { %2082 = vrot.lane.b32.xlu1 %v6722_v45, %s6060_s25  ;;  %v2131_v45 = vmul.f32 %v7268_v44, %v2073_v41 }
0x3a04   :  { %v2141_v62 = vadd.f32 %v2139_v63, %v2131_v45  ;;  %v5273_v63 = vld [vmem:[#allocation10] ss:$0 sm:$0xff] }
0x3a06   :  { %5680 = vtanh.f32 %v2141_v62 }
0x3a09   :  { %4666 = vperm.xlu2 %5227, %v5272_v20  }
0x3a0a   :  { %1774 = vrot.lane.b32.xlu1 %v6568_v28, %s6060_s25 }
0x3a0c   :  { %v5681_v29 = vpop.eup %5680 }
0x3a11   :  { %5259 = vset.pattern.permute.xlu2 %v7326_v37 }
0x3a12   :  { %2238 = vperm.xlu1 %5265, %v2233_v17  }
0x3a1a   :  { %v2182_v49 = vpop.permute.xlu2 %2181 }
0x3a1b   :  { %v2184_v42 = vmul.f32 %v2182_v49, %v7262_v43  ;;  %v2226_v43 = vperm.slane %v5089_v57, 3 }
0x3a1d   :  { %v2186_v28 = vsel %vm7595_vm13, %v2184_v42, 0.0  ;;  %v5260_v53 = vpack.i.bf16 %v2226_v43, %v2219_v56  ;;  %vm4679_vm13 = vcmp.lt.s32.totalorder %v7326_v37, %v5273_v63 }
0x3a1e   :  { %2193 = vrot.lane.b32.xlu2 %v2186_v28, %s6060_s25 }
0x3a22   :  { %v4594_v18 = vpop.permute.xlu2 %4593 }
0x3a23   :  { %v7360_v15 = vsel %vm537_vm4, %v4569_v24, %v4594_v18 }
0x3a24   :  { %v4629_v2 = vmul.f32 %v7288_v47, %v7360_v15 }
0x3a26   :  { %2144 = vrot.lane.b32.xlu2 %v5681_v29, %s6061_s21  ;;  %v4638_v59 = vsel %vm4637_vm12, %v4629_v2, 0.0  ;;  %s7596_s21 = sld [smem:[#allocation45_spill]] }
0x3a27   :  { %4639 = vadd.xlane.f32.xlu0 %v4638_v59 }
0x3a2c   :  { %v7373_v47 = vld [vmem:[%s7596_s21] sm:$0xf]  ;;  %v7380_v54 = vld [vmem:[%s7596_s21 + $0x4] sm:$0xf] }
0x3a2d   :  { %v2285_v23 = vperm.slane %v7373_v47, 0  ;;  %v2292_v12 = vperm.slane %v7373_v47, 1  ;;  %v2313_v26 = vperm.slane %v7380_v54, 0  ;;  %v2334_v50 = vperm.slane %v7380_v54, 3 }
0x3a2e   :  { %1887 = vrot.lane.b32.xlu2 %v6591_v31, %s6060_s25  ;;  %v2306_v31 = vperm.slane %v7373_v47, 3 }
0x3a36   :  { %5261 = vperm.xlu2 %5259, %v5260_v53  }
0x3a3b   :  { %1969 = vrot.lane.b32.xlu0 %v6615_v8, %s6060_s25  ;;  %v2327_v8 = vperm.slane %v7380_v54, 2 }
0x3a3e   :  { %v4649_v10 = vpop.xlane.xlu0 %4648 }
0x3a43   :  { %5255 = vperm.xlu0 %5253, %v5254_v27  }
0x3a46   :  { %v4655_v34 = vpop.xlane.xlu0 %4654 }
0x3a4b   :  { %2290 = vperm.xlu0 %5253, %v2285_v23  }
0x3a53   :  { %2311 = vperm.xlu0 %5253, %v2306_v31  }
0x3a54   :  { %v4652_v3 = vpop.xlane.xlu1 %4651 }
0x3a5b   :  { %2332 = vperm.xlu0 %5253, %v2327_v8  }
0x3a5c   :  { %v4658_v35 = vpop.xlane.xlu1 %4657 }
0x3a64   :  { %v4646_v21 = vpop.xlane.xlu2 %4645  ;;  %v4661_v7 = vpop.xlane.xlu0 %4660 }
0x3a6c   :  { %v4667_v33 = vpop.permute.xlu2 %4666 }
0x3a6d   :  { %v4670_v60 = vadd.f32 %v4667_v33, %v4643_v51  ;;  %v4671_v6 = vadd.f32 %v4667_v33, %v4646_v21  ;;  %v4672_v13 = vadd.f32 %v4667_v33, %v4649_v10  ;;  %v4673_v11 = vadd.f32 %v4667_v33, %v4652_v3 }
0x3a6e   :  { %v4674_v36 = vadd.f32 %v4667_v33, %v4655_v34  ;;  %v4675_v57 = vadd.f32 %v4667_v33, %v4658_v35  ;;  %v4676_v41 = vadd.f32 %v4667_v33, %v4661_v7 }
0x3a74   :  { %v2083_v55 = vpop.permute.xlu1 %2082 }
0x3a75   :  { %2085 = vst.msk [vmem:[#allocation4 + $0x8] sm:$0x7f] %vm7597_vm1, %v2083_v55  ;;  %vm4711_vm1 = vcmask 15360  }
0x3a78   :  { %v2194_v0 = vpop.permute.xlu2 %2193 }
0x3a79   :  { %2196 = vst.msk [vmem:[#allocation4] sm:$0x7f] %vm7598_vm5, %v2194_v0 }
0x3a7c   :  { %v1775_v46 = vpop.permute.xlu1 %1774  ;;  %v2260_v7 = vld [vmem:[#allocation4 + $0x8] sm:$0x7f] }
0x3a7d   :  { %1777 = vst.msk [vmem:[#allocation4 + $0x20] sm:$0x7f] %vm7599_vm8, %v1775_v46  ;;  %vm7605_vm8 = vmmov %vm7598_vm5 }
0x3a80   :  { %v2145_v48 = vpop.permute.xlu2 %2144 }
0x3a81   :  { %v2147_v1 = vmul.f32 %v2145_v48, %v7268_v44  ;;  %v7395_v44 = vand.u32 127, %v2197_v4 }
0x3a83   :  { %v2185_v39 = vsel %vm7600_vm14, %v2147_v1, 0.0  ;;  %v4691_v25 = vperm.slane %v4670_v60, %v7395_v44  ;;  %v4692_v17 = vperm.slane %v4671_v6, %v7395_v44  ;;  %v4693_v4 = vperm.slane %v4672_v13, %v7395_v44  ;;  %v2243_v6 = vld [vmem:[#allocation3 + $0x18] sm:$0x7f]  ;;  %vm7606_vm14 = vmmov %vm7598_vm5 }
0x3a84   :  { %2188 = vrot.lane.b32.xlu2 %v2185_v39, %s6062_s19  ;;  %v4694_v49 = vperm.slane %v4673_v11, %v7395_v44  ;;  %v4695_v42 = vperm.slane %v4674_v36, %v7395_v44  ;;  %v4696_v24 = vperm.slane %v4675_v57, %v7395_v44  ;;  %v4697_v2 = vperm.slane %v4676_v41, %v7395_v44  ;;  %v2240_v39 = vld [vmem:[#allocation3] sm:$0x7f]  ;;  %v2263_v60 = vld [vmem:[#allocation4 + $0x20] sm:$0x7f] }
0x3a88   :  { %v1888_v58 = vpop.permute.xlu2 %1887 }
0x3a89   :  { %1890 = vst.msk [vmem:[#allocation4 + $0x18] sm:$0x7f] %vm7601_vm6, %v1888_v58  ;;  %v2241_v58 = vld [vmem:[#allocation3 + $0x8] sm:$0x7f]  ;;  %vm7607_vm6 = vmmov %vm7598_vm5 }
0x3a8c   :  { %2297 = vperm.xlu2 %5259, %v2292_v12   ;;  %v2259_v12 = vld [vmem:[#allocation4] sm:$0x7f] }
0x3a90   :  { %v5262_v8 = vpop.permute.xlu2 %5261  ;;  %v2262_v11 = vld [vmem:[#allocation4 + $0x18] sm:$0x7f] }
0x3a91   :  { %v5263_v3 = vunpack.i.l.bf16 %v5262_v8  ;;  %v5264_v55 = vunpack.i.h.bf16 %v5262_v8  ;;  %v2299_v8 = vperm.slane %v7373_v47, 2 }
0x3a93   :  { %v2248_v36 = vmul.f32 %v5264_v55, %v2243_v6 }
0x3a94   :  { %2318 = vperm.xlu2 %5259, %v2313_v26  }
0x3a9a   :  { %v4640_v38 = vpop.xlane.xlu0 %4639 }
0x3a9b   :  { %v4669_v32 = vadd.f32 %v4667_v33, %v4640_v38  ;;  %v2242_v33 = vld [vmem:[#allocation3 + $0x10] sm:$0x7f] }
0x3a9c   :  { %2339 = vperm.xlu2 %5259, %v2334_v50   ;;  %v2247_v1 = vmul.f32 %v5263_v3, %v2242_v33 }
0x3a9d   :  { %v4690_v20 = vperm.slane %v4669_v32, %v7395_v44  ;;  %v7415_v32 = vpop.permute.xlu1 %2238 }
0x3a9f   :  { %v4698_v45 = vsel %vm7602_vm9, %v4691_v25, %v4690_v20  ;;  %vm7608_vm9 = vmmov %vm7598_vm5 }
0x3aa0   :  { %v4699_v62 = vsel %vm7603_vm15, %v4692_v17, %v4698_v45  ;;  %v2267_v17 = vmul.f32 %v5264_v55, %v2262_v11  ;;  %vm7609_vm15 = vmmov %vm7598_vm5 }
0x3aa1   :  { %v4700_v28 = vsel %vm7604_vm10, %v4693_v4, %v4699_v62  ;;  %v2253_v4 = vsel %vm7609_vm15, %v2247_v1, 0.0  ;;  %vm7610_vm10 = vmmov %vm7598_vm5 }
0x3aa2   :  { %v4702_v18 = vsel %vm4701_vm11, %v4694_v49, %v4700_v28  ;;  %v2268_v49 = vmul.f32 %v2263_v60, %v7415_v32  ;;  %vm7613_vm15 = vmmov %vm7598_vm5 }
0x3aa3   :  { %v4704_v29 = vsel %vm4703_vm0, %v4695_v42, %v4702_v18 }
0x3aa4   :  { %v4706_v59 = vsel %vm4705_vm2, %v4696_v24, %v4704_v29 }
0x3aa5   :  { %v4708_v56 = vsel %vm4707_vm3, %v4697_v2, %v4706_v59  ;;  %v2274_v2 = vsel %vm7598_vm5, %v2267_v17, 0.0 }
0x3aa6   :  { %v4710_v43 = vsel %vm4679_vm13, %v4708_v56, -100.0  ;;  %vm7611_vm13 = vmmov %vm7598_vm5 }
0x3aa7   :  { %v4712_v53 = vsel %vm4711_vm1, %v4710_v43, -inf  ;;  %v2255_v24 = vsel %vm7611_vm13, %v2248_v36, 0.0  ;;  %vm2349_vm13 = vcmask 260096  }
0x3aa8   :  { %v4713_v61 = vrot.slane %v4712_v53, 4 }
0x3aaa   :  { %v4714_v19 = vmax.f32 %v4712_v53, %v4713_v61 }
0x3aac   :  { %v4715_v27 = vrot.slane %v4714_v19, 2 }
0x3aad   :  { %v1970_v23 = vpop.permute.xlu0 %1969 }
0x3aae   :  { %v4716_v31 = vmax.f32 %v4714_v19, %v4715_v27  ;;  %1972 = vst.msk [vmem:[#allocation4 + $0x10] sm:$0x7f] %vm7598_vm5, %v1970_v23 }
0x3ab0   :  { %v4717_v51 = vrot.slane %v4716_v31, 1 }
0x3ab2   :  { %v4718_v37 = vmax.f32 %v4716_v31, %v4717_v51 }
0x3ab4   :  { %v4719_v21 = vsub.f32 %v4710_v43, %v4718_v37  ;;  %v2320_v37 = vperm.slane %v7380_v54, 1 }
0x3ab5   :  { %v5256_v35 = vpop.permute.xlu0 %5255  ;;  %v2261_v46 = vld [vmem:[#allocation4 + $0x10] sm:$0x7f] }
0x3ab6   :  { %v4720_v0 = vmul.f32 1.442695, %v4719_v21  ;;  %v5258_v10 = vunpack.i.h.bf16 %v5256_v35  ;;  %v5257_v48 = vunpack.i.l.bf16 %v5256_v35  ;;  %v2266_v13 = vmul.f32 %v5263_v3, %v2261_v46 }
0x3ab8   :  { %5682 = vpow2.f32 %v4720_v0  ;;  %v2246_v34 = vmul.f32 %v5258_v10, %v2241_v58  ;;  %v2245_v26 = vmul.f32 %v5257_v48, %v2240_v39  ;;  %v2264_v50 = vmul.f32 %v5257_v48, %v2259_v12 }
0x3ab9   :  { %v2265_v38 = vmul.f32 %v5258_v10, %v2260_v7  ;;  %v2272_v42 = vsel %vm7610_vm10, %v2266_v13, 0.0  ;;  %vm7614_vm10 = vmmov %vm7598_vm5 }
0x3aba   :  { %v2251_v20 = vsel %vm7605_vm8, %v2246_v34, 0.0  ;;  %v2250_v25 = vsel %vm7606_vm14, %v2245_v26, 0.0  ;;  %v2269_v57 = vsel %vm7607_vm6, %v2264_v50, 0.0  ;;  %vm7612_vm8 = vmmov %vm7598_vm5  ;;  %vm7616_vm5 = vcmask 1042434  }
0x3abb   :  { %v2252_v41 = vadd.f32 %v2251_v20, %v2250_v25  ;;  %v2270_v63 = vsel %vm7608_vm9, %v2265_v38, 0.0  ;;  %v2276_v53 = vsel %vm7612_vm8, %v2268_v49, 0.0  ;;  %vm7617_vm8 = vcmask 1043459  }
0x3abc   :  { %v2271_v45 = vadd.f32 %v2270_v63, %v2269_v57 }
0x3abd   :  { %v2254_v62 = vadd.f32 %v2253_v4, %v2252_v41  ;;  %v2291_v6 = vpop.permute.xlu0 %2290 }
0x3abe   :  { %v5683_v28 = vpop.eup %5682  ;;  %v2273_v18 = vadd.f32 %v2272_v42, %v2271_v45 }
0x3abf   :  { %v4722_v29 = vsel %vm4711_vm1, %v5683_v28, 0.0  ;;  %v2256_v59 = vadd.f32 %v2255_v24, %v2254_v62  ;;  %v5201_v24 = vld [vmem:[%s7515_s24 + $0x8] sm:$0xff] }
0x3ac0   :  { %v4723_v56 = vrot.slane %v4722_v29, 4  ;;  %v2275_v43 = vadd.f32 %v2274_v2, %v2273_v18  ;;  %4933 = vmatpush.bf16.msra.mxu3 %v5201_v24 }
0x3ac2   :  { %v4724_v61 = vadd.f32 %v4723_v56, %v4722_v29  ;;  %v2277_v19 = vadd.f32 %v2276_v53, %v2275_v43 }
0x3ac4   :  { %v4725_v27 = vrot.slane %v4724_v61, 2  ;;  %2279 = vrot.lane.b32.xlu1 %v2277_v19, %s6060_s25 }
0x3ac5   :  { %v2312_v11 = vpop.permute.xlu0 %2311 }
0x3ac6   :  { %v4726_v23 = vadd.f32 %v4725_v27, %v4724_v61 }
0x3ac8   :  { %v4727_v31 = vrot.slane %v4726_v23, 1 }
0x3aca   :  { %v4728_v51 = vadd.f32 %v4727_v31, %v4726_v23 }
0x3acc   :  { %5684 = vrcp.f32 %v4728_v51  ;;  %2304 = vperm.xlu1 %5265, %v2299_v8   ;;  %v4740_v33 = vand.u32 2147483648, %v4728_v51  ;;  %v4738_v0 = vand.u32 2147483647, %v4728_v51  ;;  %vm4734_vm14 = vweird.f32 %v4728_v51 }
0x3acd   :  { %v2333_v63 = vpop.permute.xlu0 %2332 }
0x3ace   :  { %v4741_v10 = vor.u32 1.1754944e-38, %v4740_v33  ;;  %vm4739_vm9 = vcmp.eq.f32.partialorder %v4738_v0, 8.507059e+37 }
0x3ad2   :  { %v5685_v3 = vpop.eup %5684 }
0x3ad3   :  { %v4730_v21 = vmul.f32 %v5685_v3, %v4728_v51  ;;  %vm4735_vm1 = vweird.f32 %v5685_v3  ;;  %v5200_v51 = vld [vmem:[%s7515_s24] sm:$0xff] }
0x3ad4   :  { %2325 = vperm.xlu1 %5265, %v2320_v37   ;;  %vm4736_vm6 = vmor %vm4734_vm14, %vm4735_vm1  ;;  %4934 = vmatpush.bf16.msra.mxu3 %v5200_v51 }
0x3ad5   :  { %v4731_v35 = vsub.f32 1.0, %v4730_v21 }
0x3ad7   :  { %v4732_v55 = vmul.f32 %v5685_v3, %v4731_v35 }
0x3ad9   :  { %v4733_v46 = vadd.f32 %v5685_v3, %v4732_v55 }
0x3adb   :  { %v4737_v48 = vsel %vm4736_vm6, %v5685_v3, %v4733_v46 }
0x3adc   :  { %v4742_v47 = vsel %vm4739_vm9, %v4741_v10, %v4737_v48 }
0x3add   :  { %v4743_v1 = vmul.f32 %v5683_v28, %v4742_v47 }
0x3ade   :  { %v2189_v39 = vpop.permute.xlu2 %2188 }
0x3adf   :  { %2191 = vst.msk [vmem:[#allocation3 + $0x20] sm:$0x7f] %vm7613_vm15, %v2189_v39  ;;  %v4758_v54 = vperm.slane %v4743_v1, 2  ;;  %v4751_v58 = vperm.slane %v4743_v1, 1  ;;  %v4744_v12 = vperm.slane %v4743_v1, 0  ;;  %v4779_v34 = vperm.slane %v4743_v1, 5 }
0x3ae0   :  { %v4772_v26 = vperm.slane %v4743_v1, 4  ;;  %v4765_v7 = vperm.slane %v4743_v1, 3  ;;  %v4793_v50 = vperm.slane %v4743_v1, 7  ;;  %v4786_v60 = vperm.slane %v4743_v1, 6 }
0x3ae1   :  { %4763 = vperm.xlu2 %5259, %v4758_v54   ;;  %4756 = vperm.xlu0 %5253, %v4751_v58  }
0x3ae2   :  { %4749 = vperm.xlu1 %5265, %v4744_v12   ;;  %v5199_v12 = vld [vmem:[%s7513_s22 + $0x8] sm:$0xff] }
0x3ae3   :  { %4853 = vmatpush.bf16.msra.mxu2 %v5199_v12 }
0x3ae6   :  { %v2298_v38 = vpop.permute.xlu2 %2297  ;;  %v2244_v13 = vld [vmem:[#allocation3 + $0x20] sm:$0x7f] }
0x3ae7   :  { %v2249_v20 = vmul.f32 %v2244_v13, %v7415_v32 }
0x3ae9   :  { %4784 = vperm.xlu2 %5259, %v4779_v34   ;;  %4777 = vperm.xlu0 %5253, %v4772_v26   ;;  %v2257_v25 = vsel %vm7614_vm10, %v2249_v20, 0.0 }
0x3aea   :  { %4770 = vperm.xlu1 %5265, %v4765_v7   ;;  %v2258_v57 = vadd.f32 %v2257_v25, %v2256_v59 }
0x3aee   :  { %v2319_v36 = vpop.permute.xlu2 %2318 }
0x3af1   :  { %4798 = vperm.xlu0 %5253, %v4793_v50  }
0x3af2   :  { %4791 = vperm.xlu1 %5265, %v4786_v60  }
0x3af6   :  { %v2340_v4 = vpop.permute.xlu2 %2339 }
0x3af9   :  { %5266 = vset.pattern.permute.xlu0 %v6059_v16 }
0x3b36   :  { %v2280_v17 = vpop.permute.xlu1 %2279 }
0x3b37   :  { %v2282_v41 = vsel %vm537_vm4, %v2258_v57, %v2280_v17  ;;  %vm7615_vm4 = vcmask 1041409  }
0x3b38   :  { %v2341_v45 = vmul.f32 %v2291_v6, %v2282_v41  ;;  %v2342_v49 = vmul.f32 %v2298_v38, %v2282_v41  ;;  %v2344_v62 = vmul.f32 %v2312_v11, %v2282_v41  ;;  %v2345_v16 = vmul.f32 %v2319_v36, %v2282_v41 }
0x3b39   :  { %v2347_v42 = vmul.f32 %v2333_v63, %v2282_v41  ;;  %v2348_v28 = vmul.f32 %v2340_v4, %v2282_v41 }
0x3b3a   :  { %v2350_v32 = vsel %vm2349_vm13, %v2341_v45, 0.0  ;;  %v2357_v18 = vsel %vm2349_vm13, %v2342_v49, 0.0  ;;  %v2371_v2 = vsel %vm2349_vm13, %v2344_v62, 0.0  ;;  %v2378_v29 = vsel %vm2349_vm13, %v2345_v16, 0.0 }
0x3b3b   :  { %v2351_v59 = vrot.slane %v2350_v32, 4  ;;  %v2358_v56 = vrot.slane %v2357_v18, 4  ;;  %v2372_v43 = vrot.slane %v2371_v2, 4  ;;  %v2379_v53 = vrot.slane %v2378_v29, 4 }
0x3b3c   :  { %v2392_v61 = vsel %vm2349_vm13, %v2347_v42, 0.0  ;;  %v2399_v19 = vsel %vm2349_vm13, %v2348_v28, 0.0 }
0x3b3d   :  { %v2352_v27 = vadd.f32 %v2351_v59, %v2350_v32  ;;  %v2359_v23 = vadd.f32 %v2358_v56, %v2357_v18  ;;  %v2373_v31 = vadd.f32 %v2372_v43, %v2371_v2  ;;  %v2380_v8 = vadd.f32 %v2379_v53, %v2378_v29 }
0x3b3e   :  { %v2305_v37 = vpop.permute.xlu1 %2304  ;;  %v2393_v3 = vrot.slane %v2392_v61, 4  ;;  %v2400_v21 = vrot.slane %v2399_v19, 4 }
0x3b3f   :  { %v2343_v35 = vmul.f32 %v2305_v37, %v2282_v41  ;;  %v2353_v33 = vrot.slane %v2352_v27, 2  ;;  %v2360_v55 = vrot.slane %v2359_v23, 2  ;;  %v2374_v0 = vrot.slane %v2373_v31, 2 }
0x3b40   :  { %v2394_v46 = vadd.f32 %v2393_v3, %v2392_v61  ;;  %v2401_v10 = vadd.f32 %v2400_v21, %v2399_v19  ;;  %v2381_v39 = vrot.slane %v2380_v8, 2  ;;  %v5274_v19 = vld [vmem:[#allocation28] ss:$0 sm:$0xff] }
0x3b41   :  { %v2354_v48 = vadd.f32 %v2353_v33, %v2352_v27  ;;  %v2361_v47 = vadd.f32 %v2360_v55, %v2359_v23  ;;  %v2364_v1 = vsel %vm2349_vm13, %v2343_v35, 0.0  ;;  %v2375_v58 = vadd.f32 %v2374_v0, %v2373_v31  ;;  %4919 = vst [vmem:[#allocation1] ss:$2 sm:$0xff] %v5274_v19 }
0x3b42   :  { %v2365_v54 = vrot.slane %v2364_v1, 4  ;;  %v2395_v7 = vrot.slane %v2394_v46, 2  ;;  %v2402_v50 = vrot.slane %v2401_v10, 2  ;;  %v2382_v13 = vadd.f32 %v2381_v39, %v2380_v8  ;;  %4921 = vst [vmem:[#allocation1 + $0x1] ss:$2 sm:$0xff] %v5274_v19 }
0x3b43   :  { %v2355_v34 = vrot.slane %v2354_v48, 1  ;;  %v2362_v26 = vrot.slane %v2361_v47, 1  ;;  %v2376_v36 = vrot.slane %v2375_v58, 1 }
0x3b44   :  { %v2366_v60 = vadd.f32 %v2365_v54, %v2364_v1  ;;  %v2396_v57 = vadd.f32 %v2395_v7, %v2394_v46  ;;  %v2403_v17 = vadd.f32 %v2402_v50, %v2401_v10  ;;  %v2383_v49 = vrot.slane %v2382_v13, 1  ;;  %v4764_v46 = vpop.permute.xlu2 %4763 }
0x3b45   :  { %v2356_v6 = vadd.f32 %v2355_v34, %v2354_v48  ;;  %v2363_v38 = vadd.f32 %v2362_v26, %v2361_v47  ;;  %v2377_v42 = vadd.f32 %v2376_v36, %v2375_v58 }
0x3b46   :  { %v2367_v11 = vrot.slane %v2366_v60, 2  ;;  %v2326_v20 = vpop.permute.xlu1 %2325  ;;  %v2397_v24 = vrot.slane %v2396_v57, 1  ;;  %v2404_v32 = vrot.slane %v2403_v17, 1  ;;  %v2384_v56 = vadd.f32 %v2383_v49, %v2382_v13 }
0x3b47   :  { %v2346_v25 = vmul.f32 %v2326_v20, %v2282_v41  ;;  %v4860_v4 = vpack.c.bf16 %v2356_v6, %v2356_v6  ;;  %v4861_v45 = vpack.c.bf16 %v2363_v38, %v2363_v38  ;;  %v5198_v41 = vld [vmem:[%s7513_s22] sm:$0xff]  ;;  %v4863_v53 = vpack.c.bf16 %v2377_v42, %v2377_v42 }
0x3b48   :  { %v2368_v63 = vadd.f32 %v2367_v11, %v2366_v60  ;;  %4854 = vmatpush.bf16.msra.mxu2 %v5198_v41  ;;  %v2398_v27 = vadd.f32 %v2397_v24, %v2396_v57  ;;  %v2405_v23 = vadd.f32 %v2404_v32, %v2403_v17  ;;  %v4864_v3 = vpack.c.bf16 %v2384_v56, %v2384_v56 }
0x3b49   :  { %v2385_v62 = vsel %vm2349_vm13, %v2346_v25, 0.0  ;;  %v4883_v2 = vperm.slane %v4860_v4, 0  ;;  %v4884_v29 = vperm.slane %v4861_v45, 0  ;;  %v4886_v21 = vperm.slane %v4863_v53, 0 }
0x3b4a   :  { %v2369_v16 = vrot.slane %v2368_v63, 1  ;;  %v2386_v28 = vrot.slane %v2385_v62, 4  ;;  %v4866_v0 = vpack.c.bf16 %v2398_v27, %v2398_v27  ;;  %v4867_v39 = vpack.c.bf16 %v2405_v23, %v2405_v23 }
0x3b4b   :  { %v4891_v8 = vunpack.c.l.b16 %v4883_v2  ;;  %v4892_v51 = vunpack.c.l.b16 %v4884_v29  ;;  %v4887_v58 = vperm.slane %v4864_v3, 0  ;;  %v4894_v34 = vunpack.c.l.b16 %v4886_v21 }
0x3b4c   :  { %v2370_v18 = vadd.f32 %v2369_v16, %v2368_v63  ;;  %v2387_v59 = vadd.f32 %v2386_v28, %v2385_v62  ;;  %v4889_v60 = vperm.slane %v4866_v0, 0  ;;  %v4890_v13 = vperm.slane %v4867_v39, 0 }
0x3b4d   :  { %v4899_v10 = vsel %vm7615_vm4, %v4892_v51, %v4891_v8  ;;  %v4895_v11 = vunpack.c.l.b16 %v4887_v58  ;;  %v4975_v8 = vld [vmem:[%s7618_s17] sm:$0x3] }
0x3b4e   :  { %v4862_v43 = vpack.c.bf16 %v2370_v18, %v2370_v18  ;;  %v2388_v61 = vrot.slane %v2387_v59, 2  ;;  %v4898_v4 = vunpack.c.l.b16 %v4890_v13 }
0x3b50   :  { %v4885_v31 = vperm.slane %v4862_v43, 0  ;;  %v2389_v37 = vadd.f32 %v2388_v61, %v2387_v59 }
0x3b52   :  { %v4893_v35 = vunpack.c.l.b16 %v4885_v31  ;;  %v2390_v33 = vrot.slane %v2389_v37, 1  ;;  %v5276_v31 = vld [vmem:[#allocation9] ss:$0 sm:$0xff] }
0x3b53   :  { %v4757_v55 = vpop.permute.xlu0 %4756  ;;  %4970 = vperm.xlu0 %5266, %v5276_v31  }
0x3b54   :  { %v2391_v48 = vadd.f32 %v2390_v33, %v2389_v37  ;;  %v4801_v47 = vmul.f32 %v4757_v55, %v7286_v22  ;;  %v4750_v1 = vpop.permute.xlu1 %4749  ;;  %v4900_v54 = vsel %vm7616_vm5, %v4893_v35, %v4899_v10  ;;  %v4802_v22 = vmul.f32 %v4764_v46, %v7329_v9  ;;  %v4785_v9 = vpop.permute.xlu2 %4784  ;;  %v4922_v37 = vld.sshfl [vmem:[#allocation1] sm:$0xff pattern:$0x75316420] }
0x3b55   :  { %v4800_v12 = vmul.f32 %v4750_v1, %v7360_v15  ;;  %v4901_v6 = vsel %vm7617_vm8, %v4894_v34, %v4900_v54  ;;  %v4897_v15 = vunpack.c.l.b16 %v4889_v60  ;;  %v4805_v2 = vmul.f32 %v4785_v9, %v7307_v5  ;;  %v5277_v1 = vld [vmem:[#allocation30] ss:$0 sm:$0xff] }
0x3b56   :  { %v4865_v26 = vpack.c.bf16 %v2391_v48, %v2391_v48  ;;  %v4809_v7 = vsel %vm4637_vm12, %v4801_v47, 0.0  ;;  %v4902_v25 = vsel %vm4701_vm11, %v4895_v11, %v4901_v6  ;;  %v4811_v45 = vsel %vm4637_vm12, %v4802_v22, 0.0 }
0x3b57   :  { %v4808_v50 = vsel %vm4637_vm12, %v4800_v12, 0.0 }
0x3b58   :  { %v4888_v38 = vperm.slane %v4865_v26, 0  ;;  %v4810_v20 = vadd.f32 %v4809_v7, %v4808_v50 }
0x3b5a   :  { %v4896_v36 = vunpack.c.l.b16 %v4888_v38  ;;  %v4812_v42 = vadd.f32 %v4811_v45, %v4810_v20 }
0x3b5b   :  { %v4778_v57 = vpop.permute.xlu0 %4777  ;;  %4977 = vperm.xlu0 %5266, %v4975_v8  }
0x3b5c   :  { %v4903_v17 = vsel %vm4703_vm0, %v4896_v36, %v4902_v25  ;;  %v4771_v63 = vpop.permute.xlu1 %4770  ;;  %v4804_v49 = vmul.f32 %v4778_v57, %v7313_v40  ;;  %vm7619_vm0 = vmmov %vm7615_vm4 }
0x3b5d   :  { %v4803_v62 = vmul.f32 %v4771_v63, %v7300_v30  ;;  %v4904_v16 = vsel %vm4705_vm2, %v4897_v15, %v4903_v17  ;;  %v4817_v30 = vsel %vm4637_vm12, %v4805_v2, 0.0 }
0x3b5e   :  { %v4905_v28 = vsel %vm4707_vm3, %v4898_v4, %v4904_v16  ;;  %v4815_v29 = vsel %vm4637_vm12, %v4804_v49, 0.0 }
0x3b5f   :  { %v4813_v24 = vsel %vm4637_vm12, %v4803_v62, 0.0  ;;  %v4906_v32 = vpack.c.b16 %v4905_v28, %v4905_v28 }
0x3b60   :  { %v4814_v18 = vadd.f32 %v4813_v24, %v4812_v42 }
0x3b61   :  { %5183 = vmatmul.msk.bf16.vlgmr.msra.gmra.mxu3 %vm675_vm7, %v4906_v32 }
0x3b62   :  { %v4816_v59 = vadd.f32 %v4815_v29, %v4814_v18 }
0x3b63   :  { %v4799_v40 = vpop.permute.xlu0 %4798 }
0x3b64   :  { %v4792_v41 = vpop.permute.xlu1 %4791  ;;  %v4807_v56 = vmul.f32 %v4799_v40, %v7336_v14  ;;  %v4818_v53 = vadd.f32 %v4817_v30, %v4816_v59 }
0x3b65   :  { %v4806_v43 = vmul.f32 %v4792_v41, %v7319_v52  ;;  %v5275_v52 = vld [vmem:[#allocation27] ss:$0 sm:$0xff] }
0x3b66   :  { %v4821_v27 = vsel %vm4637_vm12, %v4807_v56, 0.0 }
0x3b67   :  { %v4819_v61 = vsel %vm4637_vm12, %v4806_v43, 0.0  ;;  %vm4987_vm12 = vcmask 25600  }
0x3b68   :  { %v4820_v19 = vadd.f32 %v4819_v61, %v4818_v53 }
0x3b6a   :  { %v4822_v5 = vadd.f32 %v4821_v27, %v4820_v19 }
0x3b6c   :  { %v4823_v23 = vpack.c.bf16 %v4822_v5, %v4822_v5 }
0x3b6e   :  { %5174 = vmatmul.msk.bf16.vlgmr.msra.gmra.mxu2 %vm675_vm7, %v4823_v23  ;;  %vm4959_vm7 = vcmask 257024  }
0x3bc5   :  { %v4971_v7 = vpop.permute.xlu0 %4970 }
0x3bcd   :  { %v4978_v13 = vpop.permute.xlu0 %4977 }
0x3bce   :  { %vm4979_vm11 = vcmp.lt.s32.totalorder %v7395_v44, %v4978_v13 }
0x3be4   :  { %v4936_v51 = vpop.f32.mrf.mxu3 }
0x3be5   :  { %v4937_v21 = vadd.f32 %v4936_v51, %v4922_v37 }
0x3be7   :  { %v4941_v0 = vrot.slane %v4937_v21, 4 }
0x3bec   :  { %v4938_v14 = vpop.f32.mrf.mxu3 }
0x3bf1   :  { %v4856_v3 = vpop.f32.mrf.mxu2 }
0x3bf2   :  { %v4857_v35 = vadd.f32 %v5275_v52, %v4856_v3 }
0x3bf4   :  { %v4944_v33 = vrot.slane %v4857_v35, 1  ;;  %v4945_v55 = vperm.slane %v4857_v35, 0 }
0x3bf6   :  { %v4946_v46 = vperm.slane %v4944_v33, 0  ;;  %v4949_v10 = vadd.f32 %v4945_v55, %v4937_v21 }
0x3bf8   :  { %v4950_v48 = vadd.f32 %v4946_v46, %v4941_v0  ;;  %5686 = vtanh.f32 %v4949_v10 }
0x3bf9   :  { %v4858_v47 = vpop.f32.mrf.mxu2 }
0x3bfa   :  { %5688 = vtanh.f32 %v4950_v48 }
0x3bfe   :  { %v5687_v39 = vpop.eup %5686 }
0x3bff   :  { %v4957_v54 = vmul.f32 %v5687_v39, %v5277_v1 }
0x3c00   :  { %v5689_v58 = vpop.eup %5688 }
0x3c01   :  { %v4960_v12 = vsel %vm4959_vm7, %v4957_v54, 0.0  ;;  %v4958_v34 = vmul.f32 %v5689_v58, %v5277_v1 }
0x3c02   :  { %4961 = vadd.xlane.f32.xlu2 %v4960_v12 }
0x3c03   :  { %v4963_v26 = vsel %vm4959_vm7, %v4958_v34, 0.0 }
0x3c04   :  { %4964 = vadd.xlane.f32.xlu1 %v4963_v26 }
0x3c75   :  { %v4962_v50 = vpop.xlane.xlu2 %4961 }
0x3c76   :  { %v4973_v60 = vadd.f32 %v4971_v7, %v4962_v50 }
0x3c77   :  { %v4965_v6 = vpop.xlane.xlu1 %4964 }
0x3c78   :  { %v4974_v38 = vadd.f32 %v4971_v7, %v4965_v6  ;;  %v4982_v22 = vperm.slane %v4973_v60, %v7395_v44 }
0x3c7a   :  { %v4983_v11 = vperm.slane %v4974_v38, %v7395_v44 }
0x3c7c   :  { %v4984_v36 = vsel %vm7619_vm0, %v4983_v11, %v4982_v22 }
0x3c7d   :  { %v4986_v20 = vsel %vm4979_vm11, %v4984_v36, -100.0 }
0x3c7e   :  { %4988 = vst.msk [vmem:[#allocation31] sm:$0x3] %vm4987_vm12, %v4986_v20 }
0x3c7f   :  { %4999 = dma.vmem_to_hbm [thread:$0]  %s4995_s3, 32, %s4997_s0, [#allocation12]  }
0x3c80   :  { %6040 = dma.done.wait [#allocation12], 32  }
0x3c81   :  { %6041 = vsyncadd [#allocation12], 4294967264 }
0x3c82   :  { %5004 = vsyncpa [#allocation11], 1 }
0x3c83   :  { %5005 = vsyncpa [#allocation14], 1 }
0x3c84   :  { %5006 = vsyncpa [#allocation17], 1 }
0x3c85   :  { %5007 = vsyncpa [#allocation20], 1 }
0x3c86   :  { %5008 = vsyncpa [#allocation23], 1 }
0x3c87   :  { %5009 = vsyncpa [#allocation26], 1 }
0x3c88   :  { %5010 = vsyncpa [#allocation29], 1 }
0x3c89   :  { %5011 = vsyncpa [#allocation12], 1 }

</bundles_post_ra>
